<compile_context>
chip_gen: v7x
topology: tpu7x:2x2x1
jax: 0.10.0
libtpu: 0.0.40
codegen_flags: <defaults>
</compile_context>

<pallas_src>
import math
from functools import partial

import numpy as np
import jax
import jax.numpy as jnp
from jax.experimental import pallas as pl
from jax.experimental.pallas import tpu as pltpu


_OFFSETS = tuple((dy, dx) for dy in (-1, 0, 1) for dx in (-1, 0, 1))  # == w[ky, kx]


def _round_up(v, m):
    return -(-v // m) * m


# ----------------------------------------------------------------------------
# Pallas kernels
# ----------------------------------------------------------------------------
def fused_sg_gen_kernel(x_ref, z_ref, w1_ref, b1_ref, w2_ref, b2_ref, m_ref,
                        out_ref, *, W):
    """One synthetic SGGen scale for one batch element, spatial-on-lanes.

    x_ref, z_ref : (C, S_pad)   f32, flattened NCHW image (S_pad = roundup(H*W, 128))
    w1_ref       : (9, CH, C)   bf16, per-tap transposed conv1 weight
    b1_ref       : (CH, 1)      f32
    w2_ref       : (9, C, CH)   bf16, per-tap transposed conv2 weight
    b2_ref       : (C, 1)       f32
    m_ref        : (9, 1, S_pad) f32 0/1 boundary masks per tap
    out_ref      : (C, S_pad)   f32
    """
    C, S = x_ref.shape
    CH = w1_ref.shape[1]

    x = x_ref[...]
    xz = x + z_ref[...]                                   # (x + z), computed once

    # conv1: h^T (CH, S) = sum_t w1_t (CH, C) @ mask_t * roll(xz, t) (C, S)
    acc1 = jnp.zeros((CH, S), jnp.float32)
    for t, (dy, dx) in enumerate(_OFFSETS):
        shift = (-(dy * W + dx)) % S
        tap = xz if shift == 0 else pltpu.roll(xz, shift=shift, axis=1)
        if (dy, dx) != (0, 0):
            tap = tap * m_ref[t]                          # zero wrapped / OOB lanes
        acc1 = acc1 + jnp.dot(w1_ref[t], tap.astype(jnp.bfloat16),
                              preferred_element_type=jnp.float32)
    pre = acc1 + b1_ref[...]
    h = jnp.maximum(pre, 0.2 * pre).astype(jnp.bfloat16)  # leaky_relu(0.2), bf16 for MXU

    # conv2: roll the small (C, S) partial outputs instead of the (CH, S) hidden:
    #   out[:, p] += mask_t[p] * (w2_t @ h)[:, p + s_t]
    acc2 = jnp.zeros((C, S), jnp.float32)
    for t, (dy, dx) in enumerate(_OFFSETS):
        part = jnp.dot(w2_ref[t], h, preferred_element_type=jnp.float32)
        shift = (-(dy * W + dx)) % S
        if shift != 0:
            part = pltpu.roll(part, shift=shift, axis=1)
        if (dy, dx) != (0, 0):
            part = part * m_ref[t]
        acc2 = acc2 + part

    out_ref[...] = (x + jnp.tanh(acc2 + b2_ref[...])).astype(out_ref.dtype)


def resize_kernel(x_ref, m_ref, out_ref):
    """Bicubic resize of one image on the flattened spatial (lane) axis.

    out (C, Sout_pad) = x (C, Sin_pad) @ kron(Wr, Wc)^T (Sin_pad, Sout_pad)
    Padded rows/cols of m are zero, so pad lanes stay inert.
    """
    out_ref[...] = jnp.dot(x_ref[...], m_ref[...],
                           preferred_element_type=jnp.float32).astype(out_ref.dtype)


# ----------------------------------------------------------------------------
# Host-side constants (built from static shapes at trace time)
# ----------------------------------------------------------------------------
def _tap_masks(H, W, s_pad):
    """(9, 1, s_pad) f32 masks: 1 where the tap's source pixel is in-bounds."""
    S = H * W
    p = np.arange(s_pad)
    row, col = p // W, p % W
    valid = p < S
    masks = np.zeros((9, 1, s_pad), np.float32)
    for t, (dy, dx) in enumerate(_OFFSETS):
        ok = valid & (row + dy >= 0) & (row + dy < H) & (col + dx >= 0) & (col + dx < W)
        masks[t, 0, :] = ok.astype(np.float32)
    return masks


def _bicubic_matrix(out_size, in_size, a=-0.75):
    """Torch-style bicubic (align_corners=False) as a dense (out, in) matrix."""
    def cub(x):
        x = abs(x)
        if x <= 1.0:
            return (a + 2) * x ** 3 - (a + 3) * x ** 2 + 1.0
        if x < 2.0:
            return a * x ** 3 - 5 * a * x ** 2 + 8 * a * x - 4 * a
        return 0.0
    W = np.zeros((out_size, in_size), np.float32)
    scale = in_size / out_size
    for o in range(out_size):
        src = (o + 0.5) * scale - 0.5
        i0 = math.floor(src)
        f = src - i0
        for k in range(-1, 3):
            idx = min(max(i0 + k, 0), in_size - 1)
            W[o, idx] += cub(k - f)
    return W


# ----------------------------------------------------------------------------
# Pallas wrappers
# ----------------------------------------------------------------------------
def _pad_lanes(x):
    s = x.shape[-1]
    s_pad = _round_up(s, 128)
    if s_pad == s:
        return x
    return jnp.pad(x, ((0, 0), (0, 0), (0, s_pad - s)))


def sg_gen_fused(x_pad, z_pad, params, H, W):
    """One synthetic SGGen scale, fully fused into a single pallas_call."""
    N, C, S_pad = x_pad.shape
    CH = params["w1"].shape[-1]

    # Per-tap transposed weights (C_out, C_in) for the spatial-on-lanes matmuls.
    w1t = jnp.transpose(params["w1"], (0, 1, 3, 2)).reshape(9, CH, C).astype(jnp.bfloat16)
    w2t = jnp.transpose(params["w2"], (0, 1, 3, 2)).reshape(9, C, CH).astype(jnp.bfloat16)
    b1 = params["b1"].reshape(CH, 1)
    b2 = params["b2"].reshape(C, 1)
    masks = jnp.asarray(_tap_masks(H, W, S_pad))

    # grid=(N,) "parallel" keeps a 2-way axis for v7x megacore while each step
    # still does a full lane-dense (>=256-lane) matmul per tap.
    return pl.pallas_call(
        partial(fused_sg_gen_kernel, W=W),
        out_shape=jax.ShapeDtypeStruct((N, C, S_pad), jnp.float32),
        grid=(N,),
        in_specs=[
            pl.BlockSpec((None, C, S_pad), lambda n: (n, 0, 0)),
            pl.BlockSpec((None, C, S_pad), lambda n: (n, 0, 0)),
            pl.BlockSpec((9, CH, C), lambda n: (0, 0, 0)),
            pl.BlockSpec((CH, 1), lambda n: (0, 0)),
            pl.BlockSpec((9, C, CH), lambda n: (0, 0, 0)),
            pl.BlockSpec((C, 1), lambda n: (0, 0)),
            pl.BlockSpec((9, 1, S_pad), lambda n: (0, 0, 0)),
        ],
        out_specs=pl.BlockSpec((None, C, S_pad), lambda n: (n, 0, 0)),
        compiler_params=pltpu.CompilerParams(
            dimension_semantics=("parallel",),
            vmem_limit_bytes=32 * 1024 * 1024),
    )(x_pad, z_pad, w1t, b1, w2t, b2, masks)


def exact_interpolate(x_pad, scaling_factor, exact_size, in_hw, scaling_mode="bicubic"):
    """Resize by scaling_factor using the running 'exact' float size (bicubic)."""
    assert scaling_mode == "bicubic", "only bicubic exact_interpolate is implemented"
    Hin, Win = in_hw
    new_exact = (exact_size[0] * scaling_factor, exact_size[1] * scaling_factor)
    Hout, Wout = int(round(new_exact[0])), int(round(new_exact[1]))
    N, C, Sin_pad = x_pad.shape
    Sin, Sout = Hin * Win, Hout * Wout
    Sout_pad = _round_up(Sout, 128)

    wr = _bicubic_matrix(Hout, Hin)
    wc = _bicubic_matrix(Wout, Win)
    mt = np.zeros((Sin_pad, Sout_pad), np.float32)       # zero pad rows/cols
    mt[:Sin, :Sout] = np.kron(wr, wc).T                  # (Sin, Sout)
    mt = jnp.asarray(mt)                                 # device constant under jit

    out = pl.pallas_call(
        resize_kernel,
        out_shape=jax.ShapeDtypeStruct((N, C, Sout_pad), jnp.float32),
        grid=(N,),
        in_specs=[
            pl.BlockSpec((None, C, Sin_pad), lambda n: (n, 0, 0)),
            pl.BlockSpec((Sin_pad, Sout_pad), lambda n: (0, 0)),
        ],
        out_specs=pl.BlockSpec((None, C, Sout_pad), lambda n: (n, 0, 0)),
        compiler_params=pltpu.CompilerParams(
            dimension_semantics=("parallel",),
            vmem_limit_bytes=32 * 1024 * 1024),
    )(x_pad, mt)
    return out, new_exact, (Hout, Wout)


# ----------------------------------------------------------------------------
# MultiScaleSGGenView forward (jitted; resize matrices / masks are trace-time consts)
# ----------------------------------------------------------------------------
@partial(jax.jit, static_argnames=("scaling_factor", "exact_size", "scaling_mode"))
def multi_scale_sg_gen_view_forward(x_nchw, params_list, z_input, scaling_factor,
                                    exact_size=None, scaling_mode="bicubic"):
    N, C, H, W = x_nchw.shape
    if exact_size is None:
        exact_size = (float(H), float(W))
    cur_h, cur_w = H, W
    x = _pad_lanes(x_nchw.reshape(N, C, H * W))          # NCHW flatten is free
    x_out = None
    for i, params in enumerate(params_list):
        z = _pad_lanes(z_input[i].reshape(N, C, cur_h * cur_w))
        x_out = sg_gen_fused(x, z, params, cur_h, cur_w)
        if i < len(params_list) - 1:
            x, exact_size, (cur_h, cur_w) = exact_interpolate(
                x_out, scaling_factor, exact_size, (cur_h, cur_w), scaling_mode)
    S = cur_h * cur_w
    return x_out[:, :, :S].reshape(N, C, cur_h, cur_w)   # single slice at the end


def compute_scale_sizes(h, w, scaling_factor, n_scales):
    sizes = [(h, w)]
    eh, ew = float(h), float(w)
    for _ in range(n_scales - 1):
        eh, ew = eh * scaling_factor, ew * scaling_factor
        sizes.append((int(round(eh)), int(round(ew))))
    return sizes


# ----------------------------------------------------------------------------
# Main
# ----------------------------------------------------------------------------
if __name__ == "__main__":
    N, C, H, W = 2, 4, 16, 16      # coarsest-scale image
    CH = 32                        # hidden channels of each synthetic SGGen
    N_SCALES = 3
    SCALING_FACTOR = 4.0 / 3.0

    root = jax.random.PRNGKey(0)

    # Deterministic per-scale generator parameters (HWIO conv weights).
    params_list = []
    for i in range(N_SCALES):
        k1, k2, k3, k4 = jax.random.split(jax.random.fold_in(root, 100 + i), 4)
        params_list.append(dict(
            w1=0.1 * jax.random.normal(k1, (3, 3, C, CH), jnp.float32),
            b1=0.01 * jax.random.normal(k2, (CH,), jnp.float32),
            w2=0.1 * jax.random.normal(k3, (3, 3, CH, C), jnp.float32),
            b2=0.01 * jax.random.normal(k4, (C,), jnp.float32),
        ))

    # Input image and per-scale noise (z_input), NCHW like PyTorch.
    x = jax.random.normal(jax.random.fold_in(root, 1), (N, C, H, W), jnp.float32)
    sizes = compute_scale_sizes(H, W, SCALING_FACTOR, N_SCALES)
    z_input = [
        0.1 * jax.random.normal(jax.random.fold_in(root, 200 + i),
                                (N, C, hi, wi), jnp.float32)
        for i, (hi, wi) in enumerate(sizes)
    ]

    out = multi_scale_sg_gen_view_forward(x, params_list, z_input,
                                          scaling_factor=SCALING_FACTOR)
    out = jax.block_until_ready(out)

    expected = (N, C) + sizes[-1]
    assert out.shape == expected, (out.shape, expected)
    assert bool(jnp.all(jnp.isfinite(out)))
    print("KERNEL_OK")
</pallas_src>

<mosaic_0001>
module attributes {stable_mosaic.version = 11 : i64} {
  func.func @resize_kernel(%arg0: i32, %arg1: memref<1x4x256xf32, #tpu.memory_space<vmem>>, %arg2: memref<256x512xf32, #tpu.memory_space<vmem>>, %arg3: memref<1x4x512xf32, #tpu.memory_space<vmem>>) attributes {dimension_semantics = [#tpu.dimension_semantics<parallel>], iteration_bounds = array<i64: 2>, scalar_prefetch = 0 : i64, scratch_operands = 0 : i64, tpu.core_type = #tpu.core_type<tc>, window_params = [{transform_indices = @transform_0, window_bounds = array<i64: 1, 4, 256>}, {pipeline_mode = #tpu.pipeline_mode<synchronous>, transform_indices = @transform_1, window_bounds = array<i64: 256, 512>}, {transform_indices = @transform_2, window_bounds = array<i64: 1, 4, 512>}]} {
    %c0 = arith.constant 0 : index
    %c0_0 = arith.constant 0 : index
    %c0_1 = arith.constant 0 : index
    %0 = vector.load %arg1[%c0, %c0_0, %c0_1] : memref<1x4x256xf32, #tpu.memory_space<vmem>>, vector<1x4x256xf32>
    %1 = vector.shape_cast %0 : vector<1x4x256xf32> to vector<4x256xf32>
    %c0_2 = arith.constant 0 : index
    %c0_3 = arith.constant 0 : index
    %2 = vector.load %arg2[%c0_2, %c0_3] : memref<256x512xf32, #tpu.memory_space<vmem>>, vector<256x512xf32>
    %cst = arith.constant dense<0.000000e+00> : vector<4x512xf32>
    %3 = tpu.matmul %1, %2, %cst {dimension_numbers = #tpu.dot_dimension_numbers<[1], [0], [0], [1], [0, 0, 1, 1], [], []>} : vector<4x256xf32>, vector<256x512xf32>, vector<4x512xf32> -> vector<4x512xf32>
    %c0_4 = arith.constant 0 : index
    %c0_5 = arith.constant 0 : index
    %c0_6 = arith.constant 0 : index
    %4 = vector.load %arg3[%c0_4, %c0_5, %c0_6] : memref<1x4x512xf32, #tpu.memory_space<vmem>>, vector<1x4x512xf32>
    %5 = vector.shape_cast %4 : vector<1x4x512xf32> to vector<4x512xf32>
    %6 = vector.shape_cast %3 : vector<4x512xf32> to vector<1x4x512xf32>
    tpu.vector_store %arg3[%c0_4, %c0_5, %c0_6], %6 {strides = array<i32>} : memref<1x4x512xf32, #tpu.memory_space<vmem>>, vector<1x4x512xf32>,
    return
  }
  func.func @transform_0(%arg0: i32) -> (i32, i32, i32) {
    %c0_i32 = arith.constant 0 : i32
    %c0_i32_0 = arith.constant 0 : i32
    %c0_i32_1 = arith.constant 0 : i32
    return %arg0, %c0_i32, %c0_i32_0 : i32, i32, i32
  }
  func.func @transform_1(%arg0: i32) -> (i32, i32) {
    %c0_i32 = arith.constant 0 : i32
    %c0_i32_0 = arith.constant 0 : i32
    %c0_i32_1 = arith.constant 0 : i32
    return %c0_i32, %c0_i32_0 : i32, i32
  }
  func.func @transform_2(%arg0: i32) -> (i32, i32, i32) {
    %c0_i32 = arith.constant 0 : i32
    %c0_i32_0 = arith.constant 0 : i32
    %c0_i32_1 = arith.constant 0 : i32
    return %arg0, %c0_i32, %c0_i32_0 : i32, i32, i32
  }
}

module attributes {stable_mosaic.version = 11 : i64} {
  func.func @fused_sg_gen_kernel(%arg0: i32, %arg1: memref<1x4x512xf32, #tpu.memory_space<vmem>>, %arg2: memref<1x4x512xf32, #tpu.memory_space<vmem>>, %arg3: memref<9x32x4xbf16, #tpu.memory_space<vmem>>, %arg4: memref<32x1xf32, #tpu.memory_space<vmem>>, %arg5: memref<9x4x32xbf16, #tpu.memory_space<vmem>>, %arg6: memref<4x1xf32, #tpu.memory_space<vmem>>, %arg7: memref<9x1x512xf32, #tpu.memory_space<vmem>>, %arg8: memref<1x4x512xf32, #tpu.memory_space<vmem>>) attributes {dimension_semantics = [#tpu.dimension_semantics<parallel>], iteration_bounds = array<i64: 2>, scalar_prefetch = 0 : i64, scratch_operands = 0 : i64, tpu.core_type = #tpu.core_type<tc>, window_params = [{transform_indices = @transform_0, window_bounds = array<i64: 1, 4, 512>}, {transform_indices = @transform_1, window_bounds = array<i64: 1, 4, 512>}, {pipeline_mode = #tpu.pipeline_mode<synchronous>, transform_indices = @transform_2, window_bounds = array<i64: 9, 32, 4>}, {pipeline_mode = #tpu.pipeline_mode<synchronous>, transform_indices = @transform_3, window_bounds = array<i64: 32, 1>}, {pipeline_mode = #tpu.pipeline_mode<synchronous>, transform_indices = @transform_4, window_bounds = array<i64: 9, 4, 32>}, {pipeline_mode = #tpu.pipeline_mode<synchronous>, transform_indices = @transform_5, window_bounds = array<i64: 4, 1>}, {pipeline_mode = #tpu.pipeline_mode<synchronous>, transform_indices = @transform_6, window_bounds = array<i64: 9, 1, 512>}, {transform_indices = @transform_7, window_bounds = array<i64: 1, 4, 512>}]} {
    %c0 = arith.constant 0 : index
    %c0_0 = arith.constant 0 : index
    %c0_1 = arith.constant 0 : index
    %0 = vector.load %arg1[%c0, %c0_0, %c0_1] : memref<1x4x512xf32, #tpu.memory_space<vmem>>, vector<1x4x512xf32>
    %1 = vector.shape_cast %0 : vector<1x4x512xf32> to vector<4x512xf32>
    %c0_2 = arith.constant 0 : index
    %c0_3 = arith.constant 0 : index
    %c0_4 = arith.constant 0 : index
    %2 = vector.load %arg2[%c0_2, %c0_3, %c0_4] : memref<1x4x512xf32, #tpu.memory_space<vmem>>, vector<1x4x512xf32>
    %3 = vector.shape_cast %2 : vector<1x4x512xf32> to vector<4x512xf32>
    %4 = arith.addf %1, %3 : vector<4x512xf32>
    %cst = arith.constant 0.000000e+00 : f32
    %5 = vector.broadcast %cst : f32 to vector<32x512xf32>
    %c22_i32 = arith.constant 22 : i32
    %6 = tpu.dynamic_rotate %4 by %c22_i32 dim 1 : vector<4x512xf32>, i32 -> vector<4x512xf32>
    %c0_5 = arith.constant 0 : index
    %c0_6 = arith.constant 0 : index
    %c0_7 = arith.constant 0 : index
    %7 = vector.load %arg7[%c0_5, %c0_6, %c0_7] : memref<9x1x512xf32, #tpu.memory_space<vmem>>, vector<1x1x512xf32>
    %8 = vector.shape_cast %7 : vector<1x1x512xf32> to vector<1x512xf32>
    %9 = vector.broadcast %8 : vector<1x512xf32> to vector<4x512xf32>
    %10 = arith.mulf %6, %9 : vector<4x512xf32>
    %c0_8 = arith.constant 0 : index
    %c0_9 = arith.constant 0 : index
    %c0_10 = arith.constant 0 : index
    %11 = vector.load %arg3[%c0_8, %c0_9, %c0_10] : memref<9x32x4xbf16, #tpu.memory_space<vmem>>, vector<1x32x4xbf16>
    %12 = vector.shape_cast %11 : vector<1x32x4xbf16> to vector<32x4xbf16>
    %13 = arith.truncf %10 : vector<4x512xf32> to vector<4x512xbf16>
    %cst_11 = arith.constant dense<0.000000e+00> : vector<32x512xf32>
    %14 = tpu.matmul %12, %13, %cst_11 {dimension_numbers = #tpu.dot_dimension_numbers<[1], [0], [0], [1], [0, 0, 1, 1], [], []>} : vector<32x4xbf16>, vector<4x512xbf16>, vector<32x512xf32> -> vector<32x512xf32>
    %15 = arith.addf %5, %14 : vector<32x512xf32>
    %c21_i32 = arith.constant 21 : i32
    %16 = tpu.dynamic_rotate %4 by %c21_i32 dim 1 : vector<4x512xf32>, i32 -> vector<4x512xf32>
    %c1 = arith.constant 1 : index
    %c0_12 = arith.constant 0 : index
    %c0_13 = arith.constant 0 : index
    %17 = vector.load %arg7[%c1, %c0_12, %c0_13] : memref<9x1x512xf32, #tpu.memory_space<vmem>>, vector<1x1x512xf32>
    %18 = vector.shape_cast %17 : vector<1x1x512xf32> to vector<1x512xf32>
    %19 = vector.broadcast %18 : vector<1x512xf32> to vector<4x512xf32>
    %20 = arith.mulf %16, %19 : vector<4x512xf32>
    %c1_14 = arith.constant 1 : index
    %c0_15 = arith.constant 0 : index
    %c0_16 = arith.constant 0 : index
    %21 = vector.load %arg3[%c1_14, %c0_15, %c0_16] : memref<9x32x4xbf16, #tpu.memory_space<vmem>>, vector<1x32x4xbf16>
    %22 = vector.shape_cast %21 : vector<1x32x4xbf16> to vector<32x4xbf16>
    %23 = arith.truncf %20 : vector<4x512xf32> to vector<4x512xbf16>
    %cst_17 = arith.constant dense<0.000000e+00> : vector<32x512xf32>
    %24 = tpu.matmul %22, %23, %cst_17 {dimension_numbers = #tpu.dot_dimension_numbers<[1], [0], [0], [1], [0, 0, 1, 1], [], []>} : vector<32x4xbf16>, vector<4x512xbf16>, vector<32x512xf32> -> vector<32x512xf32>
    %25 = arith.addf %15, %24 : vector<32x512xf32>
    %c20_i32 = arith.constant 20 : i32
    %26 = tpu.dynamic_rotate %4 by %c20_i32 dim 1 : vector<4x512xf32>, i32 -> vector<4x512xf32>
    %c2 = arith.constant 2 : index
    %c0_18 = arith.constant 0 : index
    %c0_19 = arith.constant 0 : index
    %27 = vector.load %arg7[%c2, %c0_18, %c0_19] : memref<9x1x512xf32, #tpu.memory_space<vmem>>, vector<1x1x512xf32>
    %28 = vector.shape_cast %27 : vector<1x1x512xf32> to vector<1x512xf32>
    %29 = vector.broadcast %28 : vector<1x512xf32> to vector<4x512xf32>
    %30 = arith.mulf %26, %29 : vector<4x512xf32>
    %c2_20 = arith.constant 2 : index
    %c0_21 = arith.constant 0 : index
    %c0_22 = arith.constant 0 : index
    %31 = vector.load %arg3[%c2_20, %c0_21, %c0_22] : memref<9x32x4xbf16, #tpu.memory_space<vmem>>, vector<1x32x4xbf16>
    %32 = vector.shape_cast %31 : vector<1x32x4xbf16> to vector<32x4xbf16>
    %33 = arith.truncf %30 : vector<4x512xf32> to vector<4x512xbf16>
    %cst_23 = arith.constant dense<0.000000e+00> : vector<32x512xf32>
    %34 = tpu.matmul %32, %33, %cst_23 {dimension_numbers = #tpu.dot_dimension_numbers<[1], [0], [0], [1], [0, 0, 1, 1], [], []>} : vector<32x4xbf16>, vector<4x512xbf16>, vector<32x512xf32> -> vector<32x512xf32>
    %35 = arith.addf %25, %34 : vector<32x512xf32>
    %c1_i32 = arith.constant 1 : i32
    %36 = tpu.dynamic_rotate %4 by %c1_i32 dim 1 : vector<4x512xf32>, i32 -> vector<4x512xf32>
    %c3 = arith.constant 3 : index
    %c0_24 = arith.constant 0 : index
    %c0_25 = arith.constant 0 : index
    %37 = vector.load %arg7[%c3, %c0_24, %c0_25] : memref<9x1x512xf32, #tpu.memory_space<vmem>>, vector<1x1x512xf32>
    %38 = vector.shape_cast %37 : vector<1x1x512xf32> to vector<1x512xf32>
    %39 = vector.broadcast %38 : vector<1x512xf32> to vector<4x512xf32>
    %40 = arith.mulf %36, %39 : vector<4x512xf32>
    %c3_26 = arith.constant 3 : index
    %c0_27 = arith.constant 0 : index
    %c0_28 = arith.constant 0 : index
    %41 = vector.load %arg3[%c3_26, %c0_27, %c0_28] : memref<9x32x4xbf16, #tpu.memory_space<vmem>>, vector<1x32x4xbf16>
    %42 = vector.shape_cast %41 : vector<1x32x4xbf16> to vector<32x4xbf16>
    %43 = arith.truncf %40 : vector<4x512xf32> to vector<4x512xbf16>
    %cst_29 = arith.constant dense<0.000000e+00> : vector<32x512xf32>
    %44 = tpu.matmul %42, %43, %cst_29 {dimension_numbers = #tpu.dot_dimension_numbers<[1], [0], [0], [1], [0, 0, 1, 1], [], []>} : vector<32x4xbf16>, vector<4x512xbf16>, vector<32x512xf32> -> vector<32x512xf32>
    %45 = arith.addf %35, %44 : vector<32x512xf32>
    %c4 = arith.constant 4 : index
    %c0_30 = arith.constant 0 : index
    %c0_31 = arith.constant 0 : index
    %46 = vector.load %arg3[%c4, %c0_30, %c0_31] : memref<9x32x4xbf16, #tpu.memory_space<vmem>>, vector<1x32x4xbf16>
    %47 = vector.shape_cast %46 : vector<1x32x4xbf16> to vector<32x4xbf16>
    %48 = arith.truncf %4 : vector<4x512xf32> to vector<4x512xbf16>
    %cst_32 = arith.constant dense<0.000000e+00> : vector<32x512xf32>
    %49 = tpu.matmul %47, %48, %cst_32 {dimension_numbers = #tpu.dot_dimension_numbers<[1], [0], [0], [1], [0, 0, 1, 1], [], []>} : vector<32x4xbf16>, vector<4x512xbf16>, vector<32x512xf32> -> vector<32x512xf32>
    %50 = arith.addf %45, %49 : vector<32x512xf32>
    %c511_i32 = arith.constant 511 : i32
    %51 = tpu.dynamic_rotate %4 by %c511_i32 dim 1 : vector<4x512xf32>, i32 -> vector<4x512xf32>
    %c5 = arith.constant 5 : index
    %c0_33 = arith.constant 0 : index
    %c0_34 = arith.constant 0 : index
    %52 = vector.load %arg7[%c5, %c0_33, %c0_34] : memref<9x1x512xf32, #tpu.memory_space<vmem>>, vector<1x1x512xf32>
    %53 = vector.shape_cast %52 : vector<1x1x512xf32> to vector<1x512xf32>
    %54 = vector.broadcast %53 : vector<1x512xf32> to vector<4x512xf32>
    %55 = arith.mulf %51, %54 : vector<4x512xf32>
    %c5_35 = arith.constant 5 : index
    %c0_36 = arith.constant 0 : index
    %c0_37 = arith.constant 0 : index
    %56 = vector.load %arg3[%c5_35, %c0_36, %c0_37] : memref<9x32x4xbf16, #tpu.memory_space<vmem>>, vector<1x32x4xbf16>
    %57 = vector.shape_cast %56 : vector<1x32x4xbf16> to vector<32x4xbf16>
    %58 = arith.truncf %55 : vector<4x512xf32> to vector<4x512xbf16>
    %cst_38 = arith.constant dense<0.000000e+00> : vector<32x512xf32>
    %59 = tpu.matmul %57, %58, %cst_38 {dimension_numbers = #tpu.dot_dimension_numbers<[1], [0], [0], [1], [0, 0, 1, 1], [], []>} : vector<32x4xbf16>, vector<4x512xbf16>, vector<32x512xf32> -> vector<32x512xf32>
    %60 = arith.addf %50, %59 : vector<32x512xf32>
    %c492_i32 = arith.constant 492 : i32
    %61 = tpu.dynamic_rotate %4 by %c492_i32 dim 1 : vector<4x512xf32>, i32 -> vector<4x512xf32>
    %c6 = arith.constant 6 : index
    %c0_39 = arith.constant 0 : index
    %c0_40 = arith.constant 0 : index
    %62 = vector.load %arg7[%c6, %c0_39, %c0_40] : memref<9x1x512xf32, #tpu.memory_space<vmem>>, vector<1x1x512xf32>
    %63 = vector.shape_cast %62 : vector<1x1x512xf32> to vector<1x512xf32>
    %64 = vector.broadcast %63 : vector<1x512xf32> to vector<4x512xf32>
    %65 = arith.mulf %61, %64 : vector<4x512xf32>
    %c6_41 = arith.constant 6 : index
    %c0_42 = arith.constant 0 : index
    %c0_43 = arith.constant 0 : index
    %66 = vector.load %arg3[%c6_41, %c0_42, %c0_43] : memref<9x32x4xbf16, #tpu.memory_space<vmem>>, vector<1x32x4xbf16>
    %67 = vector.shape_cast %66 : vector<1x32x4xbf16> to vector<32x4xbf16>
    %68 = arith.truncf %65 : vector<4x512xf32> to vector<4x512xbf16>
    %cst_44 = arith.constant dense<0.000000e+00> : vector<32x512xf32>
    %69 = tpu.matmul %67, %68, %cst_44 {dimension_numbers = #tpu.dot_dimension_numbers<[1], [0], [0], [1], [0, 0, 1, 1], [], []>} : vector<32x4xbf16>, vector<4x512xbf16>, vector<32x512xf32> -> vector<32x512xf32>
    %70 = arith.addf %60, %69 : vector<32x512xf32>
    %c491_i32 = arith.constant 491 : i32
    %71 = tpu.dynamic_rotate %4 by %c491_i32 dim 1 : vector<4x512xf32>, i32 -> vector<4x512xf32>
    %c7 = arith.constant 7 : index
    %c0_45 = arith.constant 0 : index
    %c0_46 = arith.constant 0 : index
    %72 = vector.load %arg7[%c7, %c0_45, %c0_46] : memref<9x1x512xf32, #tpu.memory_space<vmem>>, vector<1x1x512xf32>
    %73 = vector.shape_cast %72 : vector<1x1x512xf32> to vector<1x512xf32>
    %74 = vector.broadcast %73 : vector<1x512xf32> to vector<4x512xf32>
    %75 = arith.mulf %71, %74 : vector<4x512xf32>
    %c7_47 = arith.constant 7 : index
    %c0_48 = arith.constant 0 : index
    %c0_49 = arith.constant 0 : index
    %76 = vector.load %arg3[%c7_47, %c0_48, %c0_49] : memref<9x32x4xbf16, #tpu.memory_space<vmem>>, vector<1x32x4xbf16>
    %77 = vector.shape_cast %76 : vector<1x32x4xbf16> to vector<32x4xbf16>
    %78 = arith.truncf %75 : vector<4x512xf32> to vector<4x512xbf16>
    %cst_50 = arith.constant dense<0.000000e+00> : vector<32x512xf32>
    %79 = tpu.matmul %77, %78, %cst_50 {dimension_numbers = #tpu.dot_dimension_numbers<[1], [0], [0], [1], [0, 0, 1, 1], [], []>} : vector<32x4xbf16>, vector<4x512xbf16>, vector<32x512xf32> -> vector<32x512xf32>
    %80 = arith.addf %70, %79 : vector<32x512xf32>
    %c490_i32 = arith.constant 490 : i32
    %81 = tpu.dynamic_rotate %4 by %c490_i32 dim 1 : vector<4x512xf32>, i32 -> vector<4x512xf32>
    %c8 = arith.constant 8 : index
    %c0_51 = arith.constant 0 : index
    %c0_52 = arith.constant 0 : index
    %82 = vector.load %arg7[%c8, %c0_51, %c0_52] : memref<9x1x512xf32, #tpu.memory_space<vmem>>, vector<1x1x512xf32>
    %83 = vector.shape_cast %82 : vector<1x1x512xf32> to vector<1x512xf32>
    %84 = vector.broadcast %83 : vector<1x512xf32> to vector<4x512xf32>
    %85 = arith.mulf %81, %84 : vector<4x512xf32>
    %c8_53 = arith.constant 8 : index
    %c0_54 = arith.constant 0 : index
    %c0_55 = arith.constant 0 : index
    %86 = vector.load %arg3[%c8_53, %c0_54, %c0_55] : memref<9x32x4xbf16, #tpu.memory_space<vmem>>, vector<1x32x4xbf16>
    %87 = vector.shape_cast %86 : vector<1x32x4xbf16> to vector<32x4xbf16>
    %88 = arith.truncf %85 : vector<4x512xf32> to vector<4x512xbf16>
    %cst_56 = arith.constant dense<0.000000e+00> : vector<32x512xf32>
    %89 = tpu.matmul %87, %88, %cst_56 {dimension_numbers = #tpu.dot_dimension_numbers<[1], [0], [0], [1], [0, 0, 1, 1], [], []>} : vector<32x4xbf16>, vector<4x512xbf16>, vector<32x512xf32> -> vector<32x512xf32>
    %90 = arith.addf %80, %89 : vector<32x512xf32>
    %c0_57 = arith.constant 0 : index
    %c0_58 = arith.constant 0 : index
    %91 = vector.load %arg4[%c0_57, %c0_58] : memref<32x1xf32, #tpu.memory_space<vmem>>, vector<32x1xf32>
    %92 = vector.broadcast %91 : vector<32x1xf32> to vector<32x512xf32>
    %93 = arith.addf %90, %92 : vector<32x512xf32>
    %cst_59 = arith.constant 2.000000e-01 : f32
    %94 = vector.broadcast %cst_59 : f32 to vector<32x512xf32>
    %95 = arith.mulf %94, %93 : vector<32x512xf32>
    %96 = arith.maximumf %93, %95 : vector<32x512xf32>
    %97 = arith.truncf %96 : vector<32x512xf32> to vector<32x512xbf16>
    %cst_60 = arith.constant 0.000000e+00 : f32
    %98 = vector.broadcast %cst_60 : f32 to vector<4x512xf32>
    %c0_61 = arith.constant 0 : index
    %c0_62 = arith.constant 0 : index
    %c0_63 = arith.constant 0 : index
    %99 = vector.load %arg5[%c0_61, %c0_62, %c0_63] : memref<9x4x32xbf16, #tpu.memory_space<vmem>>, vector<1x4x32xbf16>
    %100 = vector.shape_cast %99 : vector<1x4x32xbf16> to vector<4x32xbf16>
    %cst_64 = arith.constant dense<0.000000e+00> : vector<4x512xf32>
    %101 = tpu.matmul %100, %97, %cst_64 {dimension_numbers = #tpu.dot_dimension_numbers<[1], [0], [0], [1], [0, 0, 1, 1], [], []>} : vector<4x32xbf16>, vector<32x512xbf16>, vector<4x512xf32> -> vector<4x512xf32>
    %c22_i32_65 = arith.constant 22 : i32
    %102 = tpu.dynamic_rotate %101 by %c22_i32_65 dim 1 : vector<4x512xf32>, i32 -> vector<4x512xf32>
    %c0_66 = arith.constant 0 : index
    %c0_67 = arith.constant 0 : index
    %c0_68 = arith.constant 0 : index
    %103 = vector.load %arg7[%c0_66, %c0_67, %c0_68] : memref<9x1x512xf32, #tpu.memory_space<vmem>>, vector<1x1x512xf32>
    %104 = vector.shape_cast %103 : vector<1x1x512xf32> to vector<1x512xf32>
    %105 = vector.broadcast %104 : vector<1x512xf32> to vector<4x512xf32>
    %106 = arith.mulf %102, %105 : vector<4x512xf32>
    %107 = arith.addf %98, %106 : vector<4x512xf32>
    %c1_69 = arith.constant 1 : index
    %c0_70 = arith.constant 0 : index
    %c0_71 = arith.constant 0 : index
    %108 = vector.load %arg5[%c1_69, %c0_70, %c0_71] : memref<9x4x32xbf16, #tpu.memory_space<vmem>>, vector<1x4x32xbf16>
    %109 = vector.shape_cast %108 : vector<1x4x32xbf16> to vector<4x32xbf16>
    %cst_72 = arith.constant dense<0.000000e+00> : vector<4x512xf32>
    %110 = tpu.matmul %109, %97, %cst_72 {dimension_numbers = #tpu.dot_dimension_numbers<[1], [0], [0], [1], [0, 0, 1, 1], [], []>} : vector<4x32xbf16>, vector<32x512xbf16>, vector<4x512xf32> -> vector<4x512xf32>
    %c21_i32_73 = arith.constant 21 : i32
    %111 = tpu.dynamic_rotate %110 by %c21_i32_73 dim 1 : vector<4x512xf32>, i32 -> vector<4x512xf32>
    %c1_74 = arith.constant 1 : index
    %c0_75 = arith.constant 0 : index
    %c0_76 = arith.constant 0 : index
    %112 = vector.load %arg7[%c1_74, %c0_75, %c0_76] : memref<9x1x512xf32, #tpu.memory_space<vmem>>, vector<1x1x512xf32>
    %113 = vector.shape_cast %112 : vector<1x1x512xf32> to vector<1x512xf32>
    %114 = vector.broadcast %113 : vector<1x512xf32> to vector<4x512xf32>
    %115 = arith.mulf %111, %114 : vector<4x512xf32>
    %116 = arith.addf %107, %115 : vector<4x512xf32>
    %c2_77 = arith.constant 2 : index
    %c0_78 = arith.constant 0 : index
    %c0_79 = arith.constant 0 : index
    %117 = vector.load %arg5[%c2_77, %c0_78, %c0_79] : memref<9x4x32xbf16, #tpu.memory_space<vmem>>, vector<1x4x32xbf16>
    %118 = vector.shape_cast %117 : vector<1x4x32xbf16> to vector<4x32xbf16>
    %cst_80 = arith.constant dense<0.000000e+00> : vector<4x512xf32>
    %119 = tpu.matmul %118, %97, %cst_80 {dimension_numbers = #tpu.dot_dimension_numbers<[1], [0], [0], [1], [0, 0, 1, 1], [], []>} : vector<4x32xbf16>, vector<32x512xbf16>, vector<4x512xf32> -> vector<4x512xf32>
    %c20_i32_81 = arith.constant 20 : i32
    %120 = tpu.dynamic_rotate %119 by %c20_i32_81 dim 1 : vector<4x512xf32>, i32 -> vector<4x512xf32>
    %c2_82 = arith.constant 2 : index
    %c0_83 = arith.constant 0 : index
    %c0_84 = arith.constant 0 : index
    %121 = vector.load %arg7[%c2_82, %c0_83, %c0_84] : memref<9x1x512xf32, #tpu.memory_space<vmem>>, vector<1x1x512xf32>
    %122 = vector.shape_cast %121 : vector<1x1x512xf32> to vector<1x512xf32>
    %123 = vector.broadcast %122 : vector<1x512xf32> to vector<4x512xf32>
    %124 = arith.mulf %120, %123 : vector<4x512xf32>
    %125 = arith.addf %116, %124 : vector<4x512xf32>
    %c3_85 = arith.constant 3 : index
    %c0_86 = arith.constant 0 : index
    %c0_87 = arith.constant 0 : index
    %126 = vector.load %arg5[%c3_85, %c0_86, %c0_87] : memref<9x4x32xbf16, #tpu.memory_space<vmem>>, vector<1x4x32xbf16>
    %127 = vector.shape_cast %126 : vector<1x4x32xbf16> to vector<4x32xbf16>
    %cst_88 = arith.constant dense<0.000000e+00> : vector<4x512xf32>
    %128 = tpu.matmul %127, %97, %cst_88 {dimension_numbers = #tpu.dot_dimension_numbers<[1], [0], [0], [1], [0, 0, 1, 1], [], []>} : vector<4x32xbf16>, vector<32x512xbf16>, vector<4x512xf32> -> vector<4x512xf32>
    %c1_i32_89 = arith.constant 1 : i32
    %129 = tpu.dynamic_rotate %128 by %c1_i32_89 dim 1 : vector<4x512xf32>, i32 -> vector<4x512xf32>
    %c3_90 = arith.constant 3 : index
    %c0_91 = arith.constant 0 : index
    %c0_92 = arith.constant 0 : index
    %130 = vector.load %arg7[%c3_90, %c0_91, %c0_92] : memref<9x1x512xf32, #tpu.memory_space<vmem>>, vector<1x1x512xf32>
    %131 = vector.shape_cast %130 : vector<1x1x512xf32> to vector<1x512xf32>
    %132 = vector.broadcast %131 : vector<1x512xf32> to vector<4x512xf32>
    %133 = arith.mulf %129, %132 : vector<4x512xf32>
    %134 = arith.addf %125, %133 : vector<4x512xf32>
    %c4_93 = arith.constant 4 : index
    %c0_94 = arith.constant 0 : index
    %c0_95 = arith.constant 0 : index
    %135 = vector.load %arg5[%c4_93, %c0_94, %c0_95] : memref<9x4x32xbf16, #tpu.memory_space<vmem>>, vector<1x4x32xbf16>
    %136 = vector.shape_cast %135 : vector<1x4x32xbf16> to vector<4x32xbf16>
    %cst_96 = arith.constant dense<0.000000e+00> : vector<4x512xf32>
    %137 = tpu.matmul %136, %97, %cst_96 {dimension_numbers = #tpu.dot_dimension_numbers<[1], [0], [0], [1], [0, 0, 1, 1], [], []>} : vector<4x32xbf16>, vector<32x512xbf16>, vector<4x512xf32> -> vector<4x512xf32>
    %138 = arith.addf %134, %137 : vector<4x512xf32>
    %c5_97 = arith.constant 5 : index
    %c0_98 = arith.constant 0 : index
    %c0_99 = arith.constant 0 : index
    %139 = vector.load %arg5[%c5_97, %c0_98, %c0_99] : memref<9x4x32xbf16, #tpu.memory_space<vmem>>, vector<1x4x32xbf16>
    %140 = vector.shape_cast %139 : vector<1x4x32xbf16> to vector<4x32xbf16>
    %cst_100 = arith.constant dense<0.000000e+00> : vector<4x512xf32>
    %141 = tpu.matmul %140, %97, %cst_100 {dimension_numbers = #tpu.dot_dimension_numbers<[1], [0], [0], [1], [0, 0, 1, 1], [], []>} : vector<4x32xbf16>, vector<32x512xbf16>, vector<4x512xf32> -> vector<4x512xf32>
    %c511_i32_101 = arith.constant 511 : i32
    %142 = tpu.dynamic_rotate %141 by %c511_i32_101 dim 1 : vector<4x512xf32>, i32 -> vector<4x512xf32>
    %c5_102 = arith.constant 5 : index
    %c0_103 = arith.constant 0 : index
    %c0_104 = arith.constant 0 : index
    %143 = vector.load %arg7[%c5_102, %c0_103, %c0_104] : memref<9x1x512xf32, #tpu.memory_space<vmem>>, vector<1x1x512xf32>
    %144 = vector.shape_cast %143 : vector<1x1x512xf32> to vector<1x512xf32>
    %145 = vector.broadcast %144 : vector<1x512xf32> to vector<4x512xf32>
    %146 = arith.mulf %142, %145 : vector<4x512xf32>
    %147 = arith.addf %138, %146 : vector<4x512xf32>
    %c6_105 = arith.constant 6 : index
    %c0_106 = arith.constant 0 : index
    %c0_107 = arith.constant 0 : index
    %148 = vector.load %arg5[%c6_105, %c0_106, %c0_107] : memref<9x4x32xbf16, #tpu.memory_space<vmem>>, vector<1x4x32xbf16>
    %149 = vector.shape_cast %148 : vector<1x4x32xbf16> to vector<4x32xbf16>
    %cst_108 = arith.constant dense<0.000000e+00> : vector<4x512xf32>
    %150 = tpu.matmul %149, %97, %cst_108 {dimension_numbers = #tpu.dot_dimension_numbers<[1], [0], [0], [1], [0, 0, 1, 1], [], []>} : vector<4x32xbf16>, vector<32x512xbf16>, vector<4x512xf32> -> vector<4x512xf32>
    %c492_i32_109 = arith.constant 492 : i32
    %151 = tpu.dynamic_rotate %150 by %c492_i32_109 dim 1 : vector<4x512xf32>, i32 -> vector<4x512xf32>
    %c6_110 = arith.constant 6 : index
    %c0_111 = arith.constant 0 : index
    %c0_112 = arith.constant 0 : index
    %152 = vector.load %arg7[%c6_110, %c0_111, %c0_112] : memref<9x1x512xf32, #tpu.memory_space<vmem>>, vector<1x1x512xf32>
    %153 = vector.shape_cast %152 : vector<1x1x512xf32> to vector<1x512xf32>
    %154 = vector.broadcast %153 : vector<1x512xf32> to vector<4x512xf32>
    %155 = arith.mulf %151, %154 : vector<4x512xf32>
    %156 = arith.addf %147, %155 : vector<4x512xf32>
    %c7_113 = arith.constant 7 : index
    %c0_114 = arith.constant 0 : index
    %c0_115 = arith.constant 0 : index
    %157 = vector.load %arg5[%c7_113, %c0_114, %c0_115] : memref<9x4x32xbf16, #tpu.memory_space<vmem>>, vector<1x4x32xbf16>
    %158 = vector.shape_cast %157 : vector<1x4x32xbf16> to vector<4x32xbf16>
    %cst_116 = arith.constant dense<0.000000e+00> : vector<4x512xf32>
    %159 = tpu.matmul %158, %97, %cst_116 {dimension_numbers = #tpu.dot_dimension_numbers<[1], [0], [0], [1], [0, 0, 1, 1], [], []>} : vector<4x32xbf16>, vector<32x512xbf16>, vector<4x512xf32> -> vector<4x512xf32>
    %c491_i32_117 = arith.constant 491 : i32
    %160 = tpu.dynamic_rotate %159 by %c491_i32_117 dim 1 : vector<4x512xf32>, i32 -> vector<4x512xf32>
    %c7_118 = arith.constant 7 : index
    %c0_119 = arith.constant 0 : index
    %c0_120 = arith.constant 0 : index
    %161 = vector.load %arg7[%c7_118, %c0_119, %c0_120] : memref<9x1x512xf32, #tpu.memory_space<vmem>>, vector<1x1x512xf32>
    %162 = vector.shape_cast %161 : vector<1x1x512xf32> to vector<1x512xf32>
    %163 = vector.broadcast %162 : vector<1x512xf32> to vector<4x512xf32>
    %164 = arith.mulf %160, %163 : vector<4x512xf32>
    %165 = arith.addf %156, %164 : vector<4x512xf32>
    %c8_121 = arith.constant 8 : index
    %c0_122 = arith.constant 0 : index
    %c0_123 = arith.constant 0 : index
    %166 = vector.load %arg5[%c8_121, %c0_122, %c0_123] : memref<9x4x32xbf16, #tpu.memory_space<vmem>>, vector<1x4x32xbf16>
    %167 = vector.shape_cast %166 : vector<1x4x32xbf16> to vector<4x32xbf16>
    %cst_124 = arith.constant dense<0.000000e+00> : vector<4x512xf32>
    %168 = tpu.matmul %167, %97, %cst_124 {dimension_numbers = #tpu.dot_dimension_numbers<[1], [0], [0], [1], [0, 0, 1, 1], [], []>} : vector<4x32xbf16>, vector<32x512xbf16>, vector<4x512xf32> -> vector<4x512xf32>
    %c490_i32_125 = arith.constant 490 : i32
    %169 = tpu.dynamic_rotate %168 by %c490_i32_125 dim 1 : vector<4x512xf32>, i32 -> vector<4x512xf32>
    %c8_126 = arith.constant 8 : index
    %c0_127 = arith.constant 0 : index
    %c0_128 = arith.constant 0 : index
    %170 = vector.load %arg7[%c8_126, %c0_127, %c0_128] : memref<9x1x512xf32, #tpu.memory_space<vmem>>, vector<1x1x512xf32>
    %171 = vector.shape_cast %170 : vector<1x1x512xf32> to vector<1x512xf32>
    %172 = vector.broadcast %171 : vector<1x512xf32> to vector<4x512xf32>
    %173 = arith.mulf %169, %172 : vector<4x512xf32>
    %174 = arith.addf %165, %173 : vector<4x512xf32>
    %c0_129 = arith.constant 0 : index
    %c0_130 = arith.constant 0 : index
    %175 = vector.load %arg6[%c0_129, %c0_130] : memref<4x1xf32, #tpu.memory_space<vmem>>, vector<4x1xf32>
    %176 = vector.broadcast %175 : vector<4x1xf32> to vector<4x512xf32>
    %177 = arith.addf %174, %176 : vector<4x512xf32>
    %178 = math.tanh %177 : vector<4x512xf32>
    %179 = arith.addf %1, %178 : vector<4x512xf32>
    %c0_131 = arith.constant 0 : index
    %c0_132 = arith.constant 0 : index
    %c0_133 = arith.constant 0 : index
    %180 = vector.load %arg8[%c0_131, %c0_132, %c0_133] : memref<1x4x512xf32, #tpu.memory_space<vmem>>, vector<1x4x512xf32>
    %181 = vector.shape_cast %180 : vector<1x4x512xf32> to vector<4x512xf32>
    %182 = vector.shape_cast %179 : vector<4x512xf32> to vector<1x4x512xf32>
    tpu.vector_store %arg8[%c0_131, %c0_132, %c0_133], %182 {strides = array<i32>} : memref<1x4x512xf32, #tpu.memory_space<vmem>>, vector<1x4x512xf32>,
    return
  }
  func.func @transform_0(%arg0: i32) -> (i32, i32, i32) {
    %c0_i32 = arith.constant 0 : i32
    %c0_i32_0 = arith.constant 0 : i32
    %c0_i32_1 = arith.constant 0 : i32
    return %arg0, %c0_i32, %c0_i32_0 : i32, i32, i32
  }
  func.func @transform_1(%arg0: i32) -> (i32, i32, i32) {
    %c0_i32 = arith.constant 0 : i32
    %c0_i32_0 = arith.constant 0 : i32
    %c0_i32_1 = arith.constant 0 : i32
    return %arg0, %c0_i32, %c0_i32_0 : i32, i32, i32
  }
  func.func @transform_2(%arg0: i32) -> (i32, i32, i32) {
    %c0_i32 = arith.constant 0 : i32
    %c0_i32_0 = arith.constant 0 : i32
    %c0_i32_1 = arith.constant 0 : i32
    %c0_i32_2 = arith.constant 0 : i32
    return %c0_i32, %c0_i32_0, %c0_i32_1 : i32, i32, i32
  }
  func.func @transform_3(%arg0: i32) -> (i32, i32) {
    %c0_i32 = arith.constant 0 : i32
    %c0_i32_0 = arith.constant 0 : i32
    %c0_i32_1 = arith.constant 0 : i32
    return %c0_i32, %c0_i32_0 : i32, i32
  }
  func.func @transform_4(%arg0: i32) -> (i32, i32, i32) {
    %c0_i32 = arith.constant 0 : i32
    %c0_i32_0 = arith.constant 0 : i32
    %c0_i32_1 = arith.constant 0 : i32
    %c0_i32_2 = arith.constant 0 : i32
    return %c0_i32, %c0_i32_0, %c0_i32_1 : i32, i32, i32
  }
  func.func @transform_5(%arg0: i32) -> (i32, i32) {
    %c0_i32 = arith.constant 0 : i32
    %c0_i32_0 = arith.constant 0 : i32
    %c0_i32_1 = arith.constant 0 : i32
    return %c0_i32, %c0_i32_0 : i32, i32
  }
  func.func @transform_6(%arg0: i32) -> (i32, i32, i32) {
    %c0_i32 = arith.constant 0 : i32
    %c0_i32_0 = arith.constant 0 : i32
    %c0_i32_1 = arith.constant 0 : i32
    %c0_i32_2 = arith.constant 0 : i32
    return %c0_i32, %c0_i32_0, %c0_i32_1 : i32, i32, i32
  }
  func.func @transform_7(%arg0: i32) -> (i32, i32, i32) {
    %c0_i32 = arith.constant 0 : i32
    %c0_i32_0 = arith.constant 0 : i32
    %c0_i32_1 = arith.constant 0 : i32
    return %arg0, %c0_i32, %c0_i32_0 : i32, i32, i32
  }
}

module attributes {stable_mosaic.version = 11 : i64} {
  func.func @fused_sg_gen_kernel(%arg0: i32, %arg1: memref<1x4x256xf32, #tpu.memory_space<vmem>>, %arg2: memref<1x4x256xf32, #tpu.memory_space<vmem>>, %arg3: memref<9x32x4xbf16, #tpu.memory_space<vmem>>, %arg4: memref<32x1xf32, #tpu.memory_space<vmem>>, %arg5: memref<9x4x32xbf16, #tpu.memory_space<vmem>>, %arg6: memref<4x1xf32, #tpu.memory_space<vmem>>, %arg7: memref<9x1x256xf32, #tpu.memory_space<vmem>>, %arg8: memref<1x4x256xf32, #tpu.memory_space<vmem>>) attributes {dimension_semantics = [#tpu.dimension_semantics<parallel>], iteration_bounds = array<i64: 2>, scalar_prefetch = 0 : i64, scratch_operands = 0 : i64, tpu.core_type = #tpu.core_type<tc>, window_params = [{transform_indices = @transform_0, window_bounds = array<i64: 1, 4, 256>}, {transform_indices = @transform_1, window_bounds = array<i64: 1, 4, 256>}, {pipeline_mode = #tpu.pipeline_mode<synchronous>, transform_indices = @transform_2, window_bounds = array<i64: 9, 32, 4>}, {pipeline_mode = #tpu.pipeline_mode<synchronous>, transform_indices = @transform_3, window_bounds = array<i64: 32, 1>}, {pipeline_mode = #tpu.pipeline_mode<synchronous>, transform_indices = @transform_4, window_bounds = array<i64: 9, 4, 32>}, {pipeline_mode = #tpu.pipeline_mode<synchronous>, transform_indices = @transform_5, window_bounds = array<i64: 4, 1>}, {pipeline_mode = #tpu.pipeline_mode<synchronous>, transform_indices = @transform_6, window_bounds = array<i64: 9, 1, 256>}, {transform_indices = @transform_7, window_bounds = array<i64: 1, 4, 256>}]} {
    %c0 = arith.constant 0 : index
    %c0_0 = arith.constant 0 : index
    %c0_1 = arith.constant 0 : index
    %0 = vector.load %arg1[%c0, %c0_0, %c0_1] : memref<1x4x256xf32, #tpu.memory_space<vmem>>, vector<1x4x256xf32>
    %1 = vector.shape_cast %0 : vector<1x4x256xf32> to vector<4x256xf32>
    %c0_2 = arith.constant 0 : index
    %c0_3 = arith.constant 0 : index
    %c0_4 = arith.constant 0 : index
    %2 = vector.load %arg2[%c0_2, %c0_3, %c0_4] : memref<1x4x256xf32, #tpu.memory_space<vmem>>, vector<1x4x256xf32>
    %3 = vector.shape_cast %2 : vector<1x4x256xf32> to vector<4x256xf32>
    %4 = arith.addf %1, %3 : vector<4x256xf32>
    %cst = arith.constant 0.000000e+00 : f32
    %5 = vector.broadcast %cst : f32 to vector<32x256xf32>
    %c17_i32 = arith.constant 17 : i32
    %6 = tpu.dynamic_rotate %4 by %c17_i32 dim 1 : vector<4x256xf32>, i32 -> vector<4x256xf32>
    %c0_5 = arith.constant 0 : index
    %c0_6 = arith.constant 0 : index
    %c0_7 = arith.constant 0 : index
    %7 = vector.load %arg7[%c0_5, %c0_6, %c0_7] : memref<9x1x256xf32, #tpu.memory_space<vmem>>, vector<1x1x256xf32>
    %8 = vector.shape_cast %7 : vector<1x1x256xf32> to vector<1x256xf32>
    %9 = vector.broadcast %8 : vector<1x256xf32> to vector<4x256xf32>
    %10 = arith.mulf %6, %9 : vector<4x256xf32>
    %c0_8 = arith.constant 0 : index
    %c0_9 = arith.constant 0 : index
    %c0_10 = arith.constant 0 : index
    %11 = vector.load %arg3[%c0_8, %c0_9, %c0_10] : memref<9x32x4xbf16, #tpu.memory_space<vmem>>, vector<1x32x4xbf16>
    %12 = vector.shape_cast %11 : vector<1x32x4xbf16> to vector<32x4xbf16>
    %13 = arith.truncf %10 : vector<4x256xf32> to vector<4x256xbf16>
    %cst_11 = arith.constant dense<0.000000e+00> : vector<32x256xf32>
    %14 = tpu.matmul %12, %13, %cst_11 {dimension_numbers = #tpu.dot_dimension_numbers<[1], [0], [0], [1], [0, 0, 1, 1], [], []>} : vector<32x4xbf16>, vector<4x256xbf16>, vector<32x256xf32> -> vector<32x256xf32>
    %15 = arith.addf %5, %14 : vector<32x256xf32>
    %c16_i32 = arith.constant 16 : i32
    %16 = tpu.dynamic_rotate %4 by %c16_i32 dim 1 : vector<4x256xf32>, i32 -> vector<4x256xf32>
    %c1 = arith.constant 1 : index
    %c0_12 = arith.constant 0 : index
    %c0_13 = arith.constant 0 : index
    %17 = vector.load %arg7[%c1, %c0_12, %c0_13] : memref<9x1x256xf32, #tpu.memory_space<vmem>>, vector<1x1x256xf32>
    %18 = vector.shape_cast %17 : vector<1x1x256xf32> to vector<1x256xf32>
    %19 = vector.broadcast %18 : vector<1x256xf32> to vector<4x256xf32>
    %20 = arith.mulf %16, %19 : vector<4x256xf32>
    %c1_14 = arith.constant 1 : index
    %c0_15 = arith.constant 0 : index
    %c0_16 = arith.constant 0 : index
    %21 = vector.load %arg3[%c1_14, %c0_15, %c0_16] : memref<9x32x4xbf16, #tpu.memory_space<vmem>>, vector<1x32x4xbf16>
    %22 = vector.shape_cast %21 : vector<1x32x4xbf16> to vector<32x4xbf16>
    %23 = arith.truncf %20 : vector<4x256xf32> to vector<4x256xbf16>
    %cst_17 = arith.constant dense<0.000000e+00> : vector<32x256xf32>
    %24 = tpu.matmul %22, %23, %cst_17 {dimension_numbers = #tpu.dot_dimension_numbers<[1], [0], [0], [1], [0, 0, 1, 1], [], []>} : vector<32x4xbf16>, vector<4x256xbf16>, vector<32x256xf32> -> vector<32x256xf32>
    %25 = arith.addf %15, %24 : vector<32x256xf32>
    %c15_i32 = arith.constant 15 : i32
    %26 = tpu.dynamic_rotate %4 by %c15_i32 dim 1 : vector<4x256xf32>, i32 -> vector<4x256xf32>
    %c2 = arith.constant 2 : index
    %c0_18 = arith.constant 0 : index
    %c0_19 = arith.constant 0 : index
    %27 = vector.load %arg7[%c2, %c0_18, %c0_19] : memref<9x1x256xf32, #tpu.memory_space<vmem>>, vector<1x1x256xf32>
    %28 = vector.shape_cast %27 : vector<1x1x256xf32> to vector<1x256xf32>
    %29 = vector.broadcast %28 : vector<1x256xf32> to vector<4x256xf32>
    %30 = arith.mulf %26, %29 : vector<4x256xf32>
    %c2_20 = arith.constant 2 : index
    %c0_21 = arith.constant 0 : index
    %c0_22 = arith.constant 0 : index
    %31 = vector.load %arg3[%c2_20, %c0_21, %c0_22] : memref<9x32x4xbf16, #tpu.memory_space<vmem>>, vector<1x32x4xbf16>
    %32 = vector.shape_cast %31 : vector<1x32x4xbf16> to vector<32x4xbf16>
    %33 = arith.truncf %30 : vector<4x256xf32> to vector<4x256xbf16>
    %cst_23 = arith.constant dense<0.000000e+00> : vector<32x256xf32>
    %34 = tpu.matmul %32, %33, %cst_23 {dimension_numbers = #tpu.dot_dimension_numbers<[1], [0], [0], [1], [0, 0, 1, 1], [], []>} : vector<32x4xbf16>, vector<4x256xbf16>, vector<32x256xf32> -> vector<32x256xf32>
    %35 = arith.addf %25, %34 : vector<32x256xf32>
    %c1_i32 = arith.constant 1 : i32
    %36 = tpu.dynamic_rotate %4 by %c1_i32 dim 1 : vector<4x256xf32>, i32 -> vector<4x256xf32>
    %c3 = arith.constant 3 : index
    %c0_24 = arith.constant 0 : index
    %c0_25 = arith.constant 0 : index
    %37 = vector.load %arg7[%c3, %c0_24, %c0_25] : memref<9x1x256xf32, #tpu.memory_space<vmem>>, vector<1x1x256xf32>
    %38 = vector.shape_cast %37 : vector<1x1x256xf32> to vector<1x256xf32>
    %39 = vector.broadcast %38 : vector<1x256xf32> to vector<4x256xf32>
    %40 = arith.mulf %36, %39 : vector<4x256xf32>
    %c3_26 = arith.constant 3 : index
    %c0_27 = arith.constant 0 : index
    %c0_28 = arith.constant 0 : index
    %41 = vector.load %arg3[%c3_26, %c0_27, %c0_28] : memref<9x32x4xbf16, #tpu.memory_space<vmem>>, vector<1x32x4xbf16>
    %42 = vector.shape_cast %41 : vector<1x32x4xbf16> to vector<32x4xbf16>
    %43 = arith.truncf %40 : vector<4x256xf32> to vector<4x256xbf16>
    %cst_29 = arith.constant dense<0.000000e+00> : vector<32x256xf32>
    %44 = tpu.matmul %42, %43, %cst_29 {dimension_numbers = #tpu.dot_dimension_numbers<[1], [0], [0], [1], [0, 0, 1, 1], [], []>} : vector<32x4xbf16>, vector<4x256xbf16>, vector<32x256xf32> -> vector<32x256xf32>
    %45 = arith.addf %35, %44 : vector<32x256xf32>
    %c4 = arith.constant 4 : index
    %c0_30 = arith.constant 0 : index
    %c0_31 = arith.constant 0 : index
    %46 = vector.load %arg3[%c4, %c0_30, %c0_31] : memref<9x32x4xbf16, #tpu.memory_space<vmem>>, vector<1x32x4xbf16>
    %47 = vector.shape_cast %46 : vector<1x32x4xbf16> to vector<32x4xbf16>
    %48 = arith.truncf %4 : vector<4x256xf32> to vector<4x256xbf16>
    %cst_32 = arith.constant dense<0.000000e+00> : vector<32x256xf32>
    %49 = tpu.matmul %47, %48, %cst_32 {dimension_numbers = #tpu.dot_dimension_numbers<[1], [0], [0], [1], [0, 0, 1, 1], [], []>} : vector<32x4xbf16>, vector<4x256xbf16>, vector<32x256xf32> -> vector<32x256xf32>
    %50 = arith.addf %45, %49 : vector<32x256xf32>
    %c255_i32 = arith.constant 255 : i32
    %51 = tpu.dynamic_rotate %4 by %c255_i32 dim 1 : vector<4x256xf32>, i32 -> vector<4x256xf32>
    %c5 = arith.constant 5 : index
    %c0_33 = arith.constant 0 : index
    %c0_34 = arith.constant 0 : index
    %52 = vector.load %arg7[%c5, %c0_33, %c0_34] : memref<9x1x256xf32, #tpu.memory_space<vmem>>, vector<1x1x256xf32>
    %53 = vector.shape_cast %52 : vector<1x1x256xf32> to vector<1x256xf32>
    %54 = vector.broadcast %53 : vector<1x256xf32> to vector<4x256xf32>
    %55 = arith.mulf %51, %54 : vector<4x256xf32>
    %c5_35 = arith.constant 5 : index
    %c0_36 = arith.constant 0 : index
    %c0_37 = arith.constant 0 : index
    %56 = vector.load %arg3[%c5_35, %c0_36, %c0_37] : memref<9x32x4xbf16, #tpu.memory_space<vmem>>, vector<1x32x4xbf16>
    %57 = vector.shape_cast %56 : vector<1x32x4xbf16> to vector<32x4xbf16>
    %58 = arith.truncf %55 : vector<4x256xf32> to vector<4x256xbf16>
    %cst_38 = arith.constant dense<0.000000e+00> : vector<32x256xf32>
    %59 = tpu.matmul %57, %58, %cst_38 {dimension_numbers = #tpu.dot_dimension_numbers<[1], [0], [0], [1], [0, 0, 1, 1], [], []>} : vector<32x4xbf16>, vector<4x256xbf16>, vector<32x256xf32> -> vector<32x256xf32>
    %60 = arith.addf %50, %59 : vector<32x256xf32>
    %c241_i32 = arith.constant 241 : i32
    %61 = tpu.dynamic_rotate %4 by %c241_i32 dim 1 : vector<4x256xf32>, i32 -> vector<4x256xf32>
    %c6 = arith.constant 6 : index
    %c0_39 = arith.constant 0 : index
    %c0_40 = arith.constant 0 : index
    %62 = vector.load %arg7[%c6, %c0_39, %c0_40] : memref<9x1x256xf32, #tpu.memory_space<vmem>>, vector<1x1x256xf32>
    %63 = vector.shape_cast %62 : vector<1x1x256xf32> to vector<1x256xf32>
    %64 = vector.broadcast %63 : vector<1x256xf32> to vector<4x256xf32>
    %65 = arith.mulf %61, %64 : vector<4x256xf32>
    %c6_41 = arith.constant 6 : index
    %c0_42 = arith.constant 0 : index
    %c0_43 = arith.constant 0 : index
    %66 = vector.load %arg3[%c6_41, %c0_42, %c0_43] : memref<9x32x4xbf16, #tpu.memory_space<vmem>>, vector<1x32x4xbf16>
    %67 = vector.shape_cast %66 : vector<1x32x4xbf16> to vector<32x4xbf16>
    %68 = arith.truncf %65 : vector<4x256xf32> to vector<4x256xbf16>
    %cst_44 = arith.constant dense<0.000000e+00> : vector<32x256xf32>
    %69 = tpu.matmul %67, %68, %cst_44 {dimension_numbers = #tpu.dot_dimension_numbers<[1], [0], [0], [1], [0, 0, 1, 1], [], []>} : vector<32x4xbf16>, vector<4x256xbf16>, vector<32x256xf32> -> vector<32x256xf32>
    %70 = arith.addf %60, %69 : vector<32x256xf32>
    %c240_i32 = arith.constant 240 : i32
    %71 = tpu.dynamic_rotate %4 by %c240_i32 dim 1 : vector<4x256xf32>, i32 -> vector<4x256xf32>
    %c7 = arith.constant 7 : index
    %c0_45 = arith.constant 0 : index
    %c0_46 = arith.constant 0 : index
    %72 = vector.load %arg7[%c7, %c0_45, %c0_46] : memref<9x1x256xf32, #tpu.memory_space<vmem>>, vector<1x1x256xf32>
    %73 = vector.shape_cast %72 : vector<1x1x256xf32> to vector<1x256xf32>
    %74 = vector.broadcast %73 : vector<1x256xf32> to vector<4x256xf32>
    %75 = arith.mulf %71, %74 : vector<4x256xf32>
    %c7_47 = arith.constant 7 : index
    %c0_48 = arith.constant 0 : index
    %c0_49 = arith.constant 0 : index
    %76 = vector.load %arg3[%c7_47, %c0_48, %c0_49] : memref<9x32x4xbf16, #tpu.memory_space<vmem>>, vector<1x32x4xbf16>
    %77 = vector.shape_cast %76 : vector<1x32x4xbf16> to vector<32x4xbf16>
    %78 = arith.truncf %75 : vector<4x256xf32> to vector<4x256xbf16>
    %cst_50 = arith.constant dense<0.000000e+00> : vector<32x256xf32>
    %79 = tpu.matmul %77, %78, %cst_50 {dimension_numbers = #tpu.dot_dimension_numbers<[1], [0], [0], [1], [0, 0, 1, 1], [], []>} : vector<32x4xbf16>, vector<4x256xbf16>, vector<32x256xf32> -> vector<32x256xf32>
    %80 = arith.addf %70, %79 : vector<32x256xf32>
    %c239_i32 = arith.constant 239 : i32
    %81 = tpu.dynamic_rotate %4 by %c239_i32 dim 1 : vector<4x256xf32>, i32 -> vector<4x256xf32>
    %c8 = arith.constant 8 : index
    %c0_51 = arith.constant 0 : index
    %c0_52 = arith.constant 0 : index
    %82 = vector.load %arg7[%c8, %c0_51, %c0_52] : memref<9x1x256xf32, #tpu.memory_space<vmem>>, vector<1x1x256xf32>
    %83 = vector.shape_cast %82 : vector<1x1x256xf32> to vector<1x256xf32>
    %84 = vector.broadcast %83 : vector<1x256xf32> to vector<4x256xf32>
    %85 = arith.mulf %81, %84 : vector<4x256xf32>
    %c8_53 = arith.constant 8 : index
    %c0_54 = arith.constant 0 : index
    %c0_55 = arith.constant 0 : index
    %86 = vector.load %arg3[%c8_53, %c0_54, %c0_55] : memref<9x32x4xbf16, #tpu.memory_space<vmem>>, vector<1x32x4xbf16>
    %87 = vector.shape_cast %86 : vector<1x32x4xbf16> to vector<32x4xbf16>
    %88 = arith.truncf %85 : vector<4x256xf32> to vector<4x256xbf16>
    %cst_56 = arith.constant dense<0.000000e+00> : vector<32x256xf32>
    %89 = tpu.matmul %87, %88, %cst_56 {dimension_numbers = #tpu.dot_dimension_numbers<[1], [0], [0], [1], [0, 0, 1, 1], [], []>} : vector<32x4xbf16>, vector<4x256xbf16>, vector<32x256xf32> -> vector<32x256xf32>
    %90 = arith.addf %80, %89 : vector<32x256xf32>
    %c0_57 = arith.constant 0 : index
    %c0_58 = arith.constant 0 : index
    %91 = vector.load %arg4[%c0_57, %c0_58] : memref<32x1xf32, #tpu.memory_space<vmem>>, vector<32x1xf32>
    %92 = vector.broadcast %91 : vector<32x1xf32> to vector<32x256xf32>
    %93 = arith.addf %90, %92 : vector<32x256xf32>
    %cst_59 = arith.constant 2.000000e-01 : f32
    %94 = vector.broadcast %cst_59 : f32 to vector<32x256xf32>
    %95 = arith.mulf %94, %93 : vector<32x256xf32>
    %96 = arith.maximumf %93, %95 : vector<32x256xf32>
    %97 = arith.truncf %96 : vector<32x256xf32> to vector<32x256xbf16>
    %cst_60 = arith.constant 0.000000e+00 : f32
    %98 = vector.broadcast %cst_60 : f32 to vector<4x256xf32>
    %c0_61 = arith.constant 0 : index
    %c0_62 = arith.constant 0 : index
    %c0_63 = arith.constant 0 : index
    %99 = vector.load %arg5[%c0_61, %c0_62, %c0_63] : memref<9x4x32xbf16, #tpu.memory_space<vmem>>, vector<1x4x32xbf16>
    %100 = vector.shape_cast %99 : vector<1x4x32xbf16> to vector<4x32xbf16>
    %cst_64 = arith.constant dense<0.000000e+00> : vector<4x256xf32>
    %101 = tpu.matmul %100, %97, %cst_64 {dimension_numbers = #tpu.dot_dimension_numbers<[1], [0], [0], [1], [0, 0, 1, 1], [], []>} : vector<4x32xbf16>, vector<32x256xbf16>, vector<4x256xf32> -> vector<4x256xf32>
    %c17_i32_65 = arith.constant 17 : i32
    %102 = tpu.dynamic_rotate %101 by %c17_i32_65 dim 1 : vector<4x256xf32>, i32 -> vector<4x256xf32>
    %c0_66 = arith.constant 0 : index
    %c0_67 = arith.constant 0 : index
    %c0_68 = arith.constant 0 : index
    %103 = vector.load %arg7[%c0_66, %c0_67, %c0_68] : memref<9x1x256xf32, #tpu.memory_space<vmem>>, vector<1x1x256xf32>
    %104 = vector.shape_cast %103 : vector<1x1x256xf32> to vector<1x256xf32>
    %105 = vector.broadcast %104 : vector<1x256xf32> to vector<4x256xf32>
    %106 = arith.mulf %102, %105 : vector<4x256xf32>
    %107 = arith.addf %98, %106 : vector<4x256xf32>
    %c1_69 = arith.constant 1 : index
    %c0_70 = arith.constant 0 : index
    %c0_71 = arith.constant 0 : index
    %108 = vector.load %arg5[%c1_69, %c0_70, %c0_71] : memref<9x4x32xbf16, #tpu.memory_space<vmem>>, vector<1x4x32xbf16>
    %109 = vector.shape_cast %108 : vector<1x4x32xbf16> to vector<4x32xbf16>
    %cst_72 = arith.constant dense<0.000000e+00> : vector<4x256xf32>
    %110 = tpu.matmul %109, %97, %cst_72 {dimension_numbers = #tpu.dot_dimension_numbers<[1], [0], [0], [1], [0, 0, 1, 1], [], []>} : vector<4x32xbf16>, vector<32x256xbf16>, vector<4x256xf32> -> vector<4x256xf32>
    %c16_i32_73 = arith.constant 16 : i32
    %111 = tpu.dynamic_rotate %110 by %c16_i32_73 dim 1 : vector<4x256xf32>, i32 -> vector<4x256xf32>
    %c1_74 = arith.constant 1 : index
    %c0_75 = arith.constant 0 : index
    %c0_76 = arith.constant 0 : index
    %112 = vector.load %arg7[%c1_74, %c0_75, %c0_76] : memref<9x1x256xf32, #tpu.memory_space<vmem>>, vector<1x1x256xf32>
    %113 = vector.shape_cast %112 : vector<1x1x256xf32> to vector<1x256xf32>
    %114 = vector.broadcast %113 : vector<1x256xf32> to vector<4x256xf32>
    %115 = arith.mulf %111, %114 : vector<4x256xf32>
    %116 = arith.addf %107, %115 : vector<4x256xf32>
    %c2_77 = arith.constant 2 : index
    %c0_78 = arith.constant 0 : index
    %c0_79 = arith.constant 0 : index
    %117 = vector.load %arg5[%c2_77, %c0_78, %c0_79] : memref<9x4x32xbf16, #tpu.memory_space<vmem>>, vector<1x4x32xbf16>
    %118 = vector.shape_cast %117 : vector<1x4x32xbf16> to vector<4x32xbf16>
    %cst_80 = arith.constant dense<0.000000e+00> : vector<4x256xf32>
    %119 = tpu.matmul %118, %97, %cst_80 {dimension_numbers = #tpu.dot_dimension_numbers<[1], [0], [0], [1], [0, 0, 1, 1], [], []>} : vector<4x32xbf16>, vector<32x256xbf16>, vector<4x256xf32> -> vector<4x256xf32>
    %c15_i32_81 = arith.constant 15 : i32
    %120 = tpu.dynamic_rotate %119 by %c15_i32_81 dim 1 : vector<4x256xf32>, i32 -> vector<4x256xf32>
    %c2_82 = arith.constant 2 : index
    %c0_83 = arith.constant 0 : index
    %c0_84 = arith.constant 0 : index
    %121 = vector.load %arg7[%c2_82, %c0_83, %c0_84] : memref<9x1x256xf32, #tpu.memory_space<vmem>>, vector<1x1x256xf32>
    %122 = vector.shape_cast %121 : vector<1x1x256xf32> to vector<1x256xf32>
    %123 = vector.broadcast %122 : vector<1x256xf32> to vector<4x256xf32>
    %124 = arith.mulf %120, %123 : vector<4x256xf32>
    %125 = arith.addf %116, %124 : vector<4x256xf32>
    %c3_85 = arith.constant 3 : index
    %c0_86 = arith.constant 0 : index
    %c0_87 = arith.constant 0 : index
    %126 = vector.load %arg5[%c3_85, %c0_86, %c0_87] : memref<9x4x32xbf16, #tpu.memory_space<vmem>>, vector<1x4x32xbf16>
    %127 = vector.shape_cast %126 : vector<1x4x32xbf16> to vector<4x32xbf16>
    %cst_88 = arith.constant dense<0.000000e+00> : vector<4x256xf32>
    %128 = tpu.matmul %127, %97, %cst_88 {dimension_numbers = #tpu.dot_dimension_numbers<[1], [0], [0], [1], [0, 0, 1, 1], [], []>} : vector<4x32xbf16>, vector<32x256xbf16>, vector<4x256xf32> -> vector<4x256xf32>
    %c1_i32_89 = arith.constant 1 : i32
    %129 = tpu.dynamic_rotate %128 by %c1_i32_89 dim 1 : vector<4x256xf32>, i32 -> vector<4x256xf32>
    %c3_90 = arith.constant 3 : index
    %c0_91 = arith.constant 0 : index
    %c0_92 = arith.constant 0 : index
    %130 = vector.load %arg7[%c3_90, %c0_91, %c0_92] : memref<9x1x256xf32, #tpu.memory_space<vmem>>, vector<1x1x256xf32>
    %131 = vector.shape_cast %130 : vector<1x1x256xf32> to vector<1x256xf32>
    %132 = vector.broadcast %131 : vector<1x256xf32> to vector<4x256xf32>
    %133 = arith.mulf %129, %132 : vector<4x256xf32>
    %134 = arith.addf %125, %133 : vector<4x256xf32>
    %c4_93 = arith.constant 4 : index
    %c0_94 = arith.constant 0 : index
    %c0_95 = arith.constant 0 : index
    %135 = vector.load %arg5[%c4_93, %c0_94, %c0_95] : memref<9x4x32xbf16, #tpu.memory_space<vmem>>, vector<1x4x32xbf16>
    %136 = vector.shape_cast %135 : vector<1x4x32xbf16> to vector<4x32xbf16>
    %cst_96 = arith.constant dense<0.000000e+00> : vector<4x256xf32>
    %137 = tpu.matmul %136, %97, %cst_96 {dimension_numbers = #tpu.dot_dimension_numbers<[1], [0], [0], [1], [0, 0, 1, 1], [], []>} : vector<4x32xbf16>, vector<32x256xbf16>, vector<4x256xf32> -> vector<4x256xf32>
    %138 = arith.addf %134, %137 : vector<4x256xf32>
    %c5_97 = arith.constant 5 : index
    %c0_98 = arith.constant 0 : index
    %c0_99 = arith.constant 0 : index
    %139 = vector.load %arg5[%c5_97, %c0_98, %c0_99] : memref<9x4x32xbf16, #tpu.memory_space<vmem>>, vector<1x4x32xbf16>
    %140 = vector.shape_cast %139 : vector<1x4x32xbf16> to vector<4x32xbf16>
    %cst_100 = arith.constant dense<0.000000e+00> : vector<4x256xf32>
    %141 = tpu.matmul %140, %97, %cst_100 {dimension_numbers = #tpu.dot_dimension_numbers<[1], [0], [0], [1], [0, 0, 1, 1], [], []>} : vector<4x32xbf16>, vector<32x256xbf16>, vector<4x256xf32> -> vector<4x256xf32>
    %c255_i32_101 = arith.constant 255 : i32
    %142 = tpu.dynamic_rotate %141 by %c255_i32_101 dim 1 : vector<4x256xf32>, i32 -> vector<4x256xf32>
    %c5_102 = arith.constant 5 : index
    %c0_103 = arith.constant 0 : index
    %c0_104 = arith.constant 0 : index
    %143 = vector.load %arg7[%c5_102, %c0_103, %c0_104] : memref<9x1x256xf32, #tpu.memory_space<vmem>>, vector<1x1x256xf32>
    %144 = vector.shape_cast %143 : vector<1x1x256xf32> to vector<1x256xf32>
    %145 = vector.broadcast %144 : vector<1x256xf32> to vector<4x256xf32>
    %146 = arith.mulf %142, %145 : vector<4x256xf32>
    %147 = arith.addf %138, %146 : vector<4x256xf32>
    %c6_105 = arith.constant 6 : index
    %c0_106 = arith.constant 0 : index
    %c0_107 = arith.constant 0 : index
    %148 = vector.load %arg5[%c6_105, %c0_106, %c0_107] : memref<9x4x32xbf16, #tpu.memory_space<vmem>>, vector<1x4x32xbf16>
    %149 = vector.shape_cast %148 : vector<1x4x32xbf16> to vector<4x32xbf16>
    %cst_108 = arith.constant dense<0.000000e+00> : vector<4x256xf32>
    %150 = tpu.matmul %149, %97, %cst_108 {dimension_numbers = #tpu.dot_dimension_numbers<[1], [0], [0], [1], [0, 0, 1, 1], [], []>} : vector<4x32xbf16>, vector<32x256xbf16>, vector<4x256xf32> -> vector<4x256xf32>
    %c241_i32_109 = arith.constant 241 : i32
    %151 = tpu.dynamic_rotate %150 by %c241_i32_109 dim 1 : vector<4x256xf32>, i32 -> vector<4x256xf32>
    %c6_110 = arith.constant 6 : index
    %c0_111 = arith.constant 0 : index
    %c0_112 = arith.constant 0 : index
    %152 = vector.load %arg7[%c6_110, %c0_111, %c0_112] : memref<9x1x256xf32, #tpu.memory_space<vmem>>, vector<1x1x256xf32>
    %153 = vector.shape_cast %152 : vector<1x1x256xf32> to vector<1x256xf32>
    %154 = vector.broadcast %153 : vector<1x256xf32> to vector<4x256xf32>
    %155 = arith.mulf %151, %154 : vector<4x256xf32>
    %156 = arith.addf %147, %155 : vector<4x256xf32>
    %c7_113 = arith.constant 7 : index
    %c0_114 = arith.constant 0 : index
    %c0_115 = arith.constant 0 : index
    %157 = vector.load %arg5[%c7_113, %c0_114, %c0_115] : memref<9x4x32xbf16, #tpu.memory_space<vmem>>, vector<1x4x32xbf16>
    %158 = vector.shape_cast %157 : vector<1x4x32xbf16> to vector<4x32xbf16>
    %cst_116 = arith.constant dense<0.000000e+00> : vector<4x256xf32>
    %159 = tpu.matmul %158, %97, %cst_116 {dimension_numbers = #tpu.dot_dimension_numbers<[1], [0], [0], [1], [0, 0, 1, 1], [], []>} : vector<4x32xbf16>, vector<32x256xbf16>, vector<4x256xf32> -> vector<4x256xf32>
    %c240_i32_117 = arith.constant 240 : i32
    %160 = tpu.dynamic_rotate %159 by %c240_i32_117 dim 1 : vector<4x256xf32>, i32 -> vector<4x256xf32>
    %c7_118 = arith.constant 7 : index
    %c0_119 = arith.constant 0 : index
    %c0_120 = arith.constant 0 : index
    %161 = vector.load %arg7[%c7_118, %c0_119, %c0_120] : memref<9x1x256xf32, #tpu.memory_space<vmem>>, vector<1x1x256xf32>
    %162 = vector.shape_cast %161 : vector<1x1x256xf32> to vector<1x256xf32>
    %163 = vector.broadcast %162 : vector<1x256xf32> to vector<4x256xf32>
    %164 = arith.mulf %160, %163 : vector<4x256xf32>
    %165 = arith.addf %156, %164 : vector<4x256xf32>
    %c8_121 = arith.constant 8 : index
    %c0_122 = arith.constant 0 : index
    %c0_123 = arith.constant 0 : index
    %166 = vector.load %arg5[%c8_121, %c0_122, %c0_123] : memref<9x4x32xbf16, #tpu.memory_space<vmem>>, vector<1x4x32xbf16>
    %167 = vector.shape_cast %166 : vector<1x4x32xbf16> to vector<4x32xbf16>
    %cst_124 = arith.constant dense<0.000000e+00> : vector<4x256xf32>
    %168 = tpu.matmul %167, %97, %cst_124 {dimension_numbers = #tpu.dot_dimension_numbers<[1], [0], [0], [1], [0, 0, 1, 1], [], []>} : vector<4x32xbf16>, vector<32x256xbf16>, vector<4x256xf32> -> vector<4x256xf32>
    %c239_i32_125 = arith.constant 239 : i32
    %169 = tpu.dynamic_rotate %168 by %c239_i32_125 dim 1 : vector<4x256xf32>, i32 -> vector<4x256xf32>
    %c8_126 = arith.constant 8 : index
    %c0_127 = arith.constant 0 : index
    %c0_128 = arith.constant 0 : index
    %170 = vector.load %arg7[%c8_126, %c0_127, %c0_128] : memref<9x1x256xf32, #tpu.memory_space<vmem>>, vector<1x1x256xf32>
    %171 = vector.shape_cast %170 : vector<1x1x256xf32> to vector<1x256xf32>
    %172 = vector.broadcast %171 : vector<1x256xf32> to vector<4x256xf32>
    %173 = arith.mulf %169, %172 : vector<4x256xf32>
    %174 = arith.addf %165, %173 : vector<4x256xf32>
    %c0_129 = arith.constant 0 : index
    %c0_130 = arith.constant 0 : index
    %175 = vector.load %arg6[%c0_129, %c0_130] : memref<4x1xf32, #tpu.memory_space<vmem>>, vector<4x1xf32>
    %176 = vector.broadcast %175 : vector<4x1xf32> to vector<4x256xf32>
    %177 = arith.addf %174, %176 : vector<4x256xf32>
    %178 = math.tanh %177 : vector<4x256xf32>
    %179 = arith.addf %1, %178 : vector<4x256xf32>
    %c0_131 = arith.constant 0 : index
    %c0_132 = arith.constant 0 : index
    %c0_133 = arith.constant 0 : index
    %180 = vector.load %arg8[%c0_131, %c0_132, %c0_133] : memref<1x4x256xf32, #tpu.memory_space<vmem>>, vector<1x4x256xf32>
    %181 = vector.shape_cast %180 : vector<1x4x256xf32> to vector<4x256xf32>
    %182 = vector.shape_cast %179 : vector<4x256xf32> to vector<1x4x256xf32>
    tpu.vector_store %arg8[%c0_131, %c0_132, %c0_133], %182 {strides = array<i32>} : memref<1x4x256xf32, #tpu.memory_space<vmem>>, vector<1x4x256xf32>,
    return
  }
  func.func @transform_0(%arg0: i32) -> (i32, i32, i32) {
    %c0_i32 = arith.constant 0 : i32
    %c0_i32_0 = arith.constant 0 : i32
    %c0_i32_1 = arith.constant 0 : i32
    return %arg0, %c0_i32, %c0_i32_0 : i32, i32, i32
  }
  func.func @transform_1(%arg0: i32) -> (i32, i32, i32) {
    %c0_i32 = arith.constant 0 : i32
    %c0_i32_0 = arith.constant 0 : i32
    %c0_i32_1 = arith.constant 0 : i32
    return %arg0, %c0_i32, %c0_i32_0 : i32, i32, i32
  }
  func.func @transform_2(%arg0: i32) -> (i32, i32, i32) {
    %c0_i32 = arith.constant 0 : i32
    %c0_i32_0 = arith.constant 0 : i32
    %c0_i32_1 = arith.constant 0 : i32
    %c0_i32_2 = arith.constant 0 : i32
    return %c0_i32, %c0_i32_0, %c0_i32_1 : i32, i32, i32
  }
  func.func @transform_3(%arg0: i32) -> (i32, i32) {
    %c0_i32 = arith.constant 0 : i32
    %c0_i32_0 = arith.constant 0 : i32
    %c0_i32_1 = arith.constant 0 : i32
    return %c0_i32, %c0_i32_0 : i32, i32
  }
  func.func @transform_4(%arg0: i32) -> (i32, i32, i32) {
    %c0_i32 = arith.constant 0 : i32
    %c0_i32_0 = arith.constant 0 : i32
    %c0_i32_1 = arith.constant 0 : i32
    %c0_i32_2 = arith.constant 0 : i32
    return %c0_i32, %c0_i32_0, %c0_i32_1 : i32, i32, i32
  }
  func.func @transform_5(%arg0: i32) -> (i32, i32) {
    %c0_i32 = arith.constant 0 : i32
    %c0_i32_0 = arith.constant 0 : i32
    %c0_i32_1 = arith.constant 0 : i32
    return %c0_i32, %c0_i32_0 : i32, i32
  }
  func.func @transform_6(%arg0: i32) -> (i32, i32, i32) {
    %c0_i32 = arith.constant 0 : i32
    %c0_i32_0 = arith.constant 0 : i32
    %c0_i32_1 = arith.constant 0 : i32
    %c0_i32_2 = arith.constant 0 : i32
    return %c0_i32, %c0_i32_0, %c0_i32_1 : i32, i32, i32
  }
  func.func @transform_7(%arg0: i32) -> (i32, i32, i32) {
    %c0_i32 = arith.constant 0 : i32
    %c0_i32_0 = arith.constant 0 : i32
    %c0_i32_1 = arith.constant 0 : i32
    return %arg0, %c0_i32, %c0_i32_0 : i32, i32, i32
  }
}

module attributes {stable_mosaic.version = 11 : i64} {
  func.func @resize_kernel(%arg0: i32, %arg1: memref<1x4x512xf32, #tpu.memory_space<vmem>>, %arg2: memref<512x896xf32, #tpu.memory_space<vmem>>, %arg3: memref<1x4x896xf32, #tpu.memory_space<vmem>>) attributes {dimension_semantics = [#tpu.dimension_semantics<parallel>], iteration_bounds = array<i64: 2>, scalar_prefetch = 0 : i64, scratch_operands = 0 : i64, tpu.core_type = #tpu.core_type<tc>, window_params = [{transform_indices = @transform_0, window_bounds = array<i64: 1, 4, 512>}, {pipeline_mode = #tpu.pipeline_mode<synchronous>, transform_indices = @transform_1, window_bounds = array<i64: 512, 896>}, {transform_indices = @transform_2, window_bounds = array<i64: 1, 4, 896>}]} {
    %c0 = arith.constant 0 : index
    %c0_0 = arith.constant 0 : index
    %c0_1 = arith.constant 0 : index
    %0 = vector.load %arg1[%c0, %c0_0, %c0_1] : memref<1x4x512xf32, #tpu.memory_space<vmem>>, vector<1x4x512xf32>
    %1 = vector.shape_cast %0 : vector<1x4x512xf32> to vector<4x512xf32>
    %c0_2 = arith.constant 0 : index
    %c0_3 = arith.constant 0 : index
    %2 = vector.load %arg2[%c0_2, %c0_3] : memref<512x896xf32, #tpu.memory_space<vmem>>, vector<512x896xf32>
    %cst = arith.constant dense<0.000000e+00> : vector<4x896xf32>
    %3 = tpu.matmul %1, %2, %cst {dimension_numbers = #tpu.dot_dimension_numbers<[1], [0], [0], [1], [0, 0, 1, 1], [], []>} : vector<4x512xf32>, vector<512x896xf32>, vector<4x896xf32> -> vector<4x896xf32>
    %c0_4 = arith.constant 0 : index
    %c0_5 = arith.constant 0 : index
    %c0_6 = arith.constant 0 : index
    %4 = vector.load %arg3[%c0_4, %c0_5, %c0_6] : memref<1x4x896xf32, #tpu.memory_space<vmem>>, vector<1x4x896xf32>
    %5 = vector.shape_cast %4 : vector<1x4x896xf32> to vector<4x896xf32>
    %6 = vector.shape_cast %3 : vector<4x896xf32> to vector<1x4x896xf32>
    tpu.vector_store %arg3[%c0_4, %c0_5, %c0_6], %6 {strides = array<i32>} : memref<1x4x896xf32, #tpu.memory_space<vmem>>, vector<1x4x896xf32>,
    return
  }
  func.func @transform_0(%arg0: i32) -> (i32, i32, i32) {
    %c0_i32 = arith.constant 0 : i32
    %c0_i32_0 = arith.constant 0 : i32
    %c0_i32_1 = arith.constant 0 : i32
    return %arg0, %c0_i32, %c0_i32_0 : i32, i32, i32
  }
  func.func @transform_1(%arg0: i32) -> (i32, i32) {
    %c0_i32 = arith.constant 0 : i32
    %c0_i32_0 = arith.constant 0 : i32
    %c0_i32_1 = arith.constant 0 : i32
    return %c0_i32, %c0_i32_0 : i32, i32
  }
  func.func @transform_2(%arg0: i32) -> (i32, i32, i32) {
    %c0_i32 = arith.constant 0 : i32
    %c0_i32_0 = arith.constant 0 : i32
    %c0_i32_1 = arith.constant 0 : i32
    return %arg0, %c0_i32, %c0_i32_0 : i32, i32, i32
  }
}

module attributes {stable_mosaic.version = 11 : i64} {
  func.func @fused_sg_gen_kernel(%arg0: i32, %arg1: memref<1x4x896xf32, #tpu.memory_space<vmem>>, %arg2: memref<1x4x896xf32, #tpu.memory_space<vmem>>, %arg3: memref<9x32x4xbf16, #tpu.memory_space<vmem>>, %arg4: memref<32x1xf32, #tpu.memory_space<vmem>>, %arg5: memref<9x4x32xbf16, #tpu.memory_space<vmem>>, %arg6: memref<4x1xf32, #tpu.memory_space<vmem>>, %arg7: memref<9x1x896xf32, #tpu.memory_space<vmem>>, %arg8: memref<1x4x896xf32, #tpu.memory_space<vmem>>) attributes {dimension_semantics = [#tpu.dimension_semantics<parallel>], iteration_bounds = array<i64: 2>, scalar_prefetch = 0 : i64, scratch_operands = 0 : i64, tpu.core_type = #tpu.core_type<tc>, window_params = [{transform_indices = @transform_0, window_bounds = array<i64: 1, 4, 896>}, {transform_indices = @transform_1, window_bounds = array<i64: 1, 4, 896>}, {pipeline_mode = #tpu.pipeline_mode<synchronous>, transform_indices = @transform_2, window_bounds = array<i64: 9, 32, 4>}, {pipeline_mode = #tpu.pipeline_mode<synchronous>, transform_indices = @transform_3, window_bounds = array<i64: 32, 1>}, {pipeline_mode = #tpu.pipeline_mode<synchronous>, transform_indices = @transform_4, window_bounds = array<i64: 9, 4, 32>}, {pipeline_mode = #tpu.pipeline_mode<synchronous>, transform_indices = @transform_5, window_bounds = array<i64: 4, 1>}, {pipeline_mode = #tpu.pipeline_mode<synchronous>, transform_indices = @transform_6, window_bounds = array<i64: 9, 1, 896>}, {transform_indices = @transform_7, window_bounds = array<i64: 1, 4, 896>}]} {
    %c0 = arith.constant 0 : index
    %c0_0 = arith.constant 0 : index
    %c0_1 = arith.constant 0 : index
    %0 = vector.load %arg1[%c0, %c0_0, %c0_1] : memref<1x4x896xf32, #tpu.memory_space<vmem>>, vector<1x4x896xf32>
    %1 = vector.shape_cast %0 : vector<1x4x896xf32> to vector<4x896xf32>
    %c0_2 = arith.constant 0 : index
    %c0_3 = arith.constant 0 : index
    %c0_4 = arith.constant 0 : index
    %2 = vector.load %arg2[%c0_2, %c0_3, %c0_4] : memref<1x4x896xf32, #tpu.memory_space<vmem>>, vector<1x4x896xf32>
    %3 = vector.shape_cast %2 : vector<1x4x896xf32> to vector<4x896xf32>
    %4 = arith.addf %1, %3 : vector<4x896xf32>
    %cst = arith.constant 0.000000e+00 : f32
    %5 = vector.broadcast %cst : f32 to vector<32x896xf32>
    %c29_i32 = arith.constant 29 : i32
    %6 = tpu.dynamic_rotate %4 by %c29_i32 dim 1 : vector<4x896xf32>, i32 -> vector<4x896xf32>
    %c0_5 = arith.constant 0 : index
    %c0_6 = arith.constant 0 : index
    %c0_7 = arith.constant 0 : index
    %7 = vector.load %arg7[%c0_5, %c0_6, %c0_7] : memref<9x1x896xf32, #tpu.memory_space<vmem>>, vector<1x1x896xf32>
    %8 = vector.shape_cast %7 : vector<1x1x896xf32> to vector<1x896xf32>
    %9 = vector.broadcast %8 : vector<1x896xf32> to vector<4x896xf32>
    %10 = arith.mulf %6, %9 : vector<4x896xf32>
    %c0_8 = arith.constant 0 : index
    %c0_9 = arith.constant 0 : index
    %c0_10 = arith.constant 0 : index
    %11 = vector.load %arg3[%c0_8, %c0_9, %c0_10] : memref<9x32x4xbf16, #tpu.memory_space<vmem>>, vector<1x32x4xbf16>
    %12 = vector.shape_cast %11 : vector<1x32x4xbf16> to vector<32x4xbf16>
    %13 = arith.truncf %10 : vector<4x896xf32> to vector<4x896xbf16>
    %cst_11 = arith.constant dense<0.000000e+00> : vector<32x896xf32>
    %14 = tpu.matmul %12, %13, %cst_11 {dimension_numbers = #tpu.dot_dimension_numbers<[1], [0], [0], [1], [0, 0, 1, 1], [], []>} : vector<32x4xbf16>, vector<4x896xbf16>, vector<32x896xf32> -> vector<32x896xf32>
    %15 = arith.addf %5, %14 : vector<32x896xf32>
    %c28_i32 = arith.constant 28 : i32
    %16 = tpu.dynamic_rotate %4 by %c28_i32 dim 1 : vector<4x896xf32>, i32 -> vector<4x896xf32>
    %c1 = arith.constant 1 : index
    %c0_12 = arith.constant 0 : index
    %c0_13 = arith.constant 0 : index
    %17 = vector.load %arg7[%c1, %c0_12, %c0_13] : memref<9x1x896xf32, #tpu.memory_space<vmem>>, vector<1x1x896xf32>
    %18 = vector.shape_cast %17 : vector<1x1x896xf32> to vector<1x896xf32>
    %19 = vector.broadcast %18 : vector<1x896xf32> to vector<4x896xf32>
    %20 = arith.mulf %16, %19 : vector<4x896xf32>
    %c1_14 = arith.constant 1 : index
    %c0_15 = arith.constant 0 : index
    %c0_16 = arith.constant 0 : index
    %21 = vector.load %arg3[%c1_14, %c0_15, %c0_16] : memref<9x32x4xbf16, #tpu.memory_space<vmem>>, vector<1x32x4xbf16>
    %22 = vector.shape_cast %21 : vector<1x32x4xbf16> to vector<32x4xbf16>
    %23 = arith.truncf %20 : vector<4x896xf32> to vector<4x896xbf16>
    %cst_17 = arith.constant dense<0.000000e+00> : vector<32x896xf32>
    %24 = tpu.matmul %22, %23, %cst_17 {dimension_numbers = #tpu.dot_dimension_numbers<[1], [0], [0], [1], [0, 0, 1, 1], [], []>} : vector<32x4xbf16>, vector<4x896xbf16>, vector<32x896xf32> -> vector<32x896xf32>
    %25 = arith.addf %15, %24 : vector<32x896xf32>
    %c27_i32 = arith.constant 27 : i32
    %26 = tpu.dynamic_rotate %4 by %c27_i32 dim 1 : vector<4x896xf32>, i32 -> vector<4x896xf32>
    %c2 = arith.constant 2 : index
    %c0_18 = arith.constant 0 : index
    %c0_19 = arith.constant 0 : index
    %27 = vector.load %arg7[%c2, %c0_18, %c0_19] : memref<9x1x896xf32, #tpu.memory_space<vmem>>, vector<1x1x896xf32>
    %28 = vector.shape_cast %27 : vector<1x1x896xf32> to vector<1x896xf32>
    %29 = vector.broadcast %28 : vector<1x896xf32> to vector<4x896xf32>
    %30 = arith.mulf %26, %29 : vector<4x896xf32>
    %c2_20 = arith.constant 2 : index
    %c0_21 = arith.constant 0 : index
    %c0_22 = arith.constant 0 : index
    %31 = vector.load %arg3[%c2_20, %c0_21, %c0_22] : memref<9x32x4xbf16, #tpu.memory_space<vmem>>, vector<1x32x4xbf16>
    %32 = vector.shape_cast %31 : vector<1x32x4xbf16> to vector<32x4xbf16>
    %33 = arith.truncf %30 : vector<4x896xf32> to vector<4x896xbf16>
    %cst_23 = arith.constant dense<0.000000e+00> : vector<32x896xf32>
    %34 = tpu.matmul %32, %33, %cst_23 {dimension_numbers = #tpu.dot_dimension_numbers<[1], [0], [0], [1], [0, 0, 1, 1], [], []>} : vector<32x4xbf16>, vector<4x896xbf16>, vector<32x896xf32> -> vector<32x896xf32>
    %35 = arith.addf %25, %34 : vector<32x896xf32>
    %c1_i32 = arith.constant 1 : i32
    %36 = tpu.dynamic_rotate %4 by %c1_i32 dim 1 : vector<4x896xf32>, i32 -> vector<4x896xf32>
    %c3 = arith.constant 3 : index
    %c0_24 = arith.constant 0 : index
    %c0_25 = arith.constant 0 : index
    %37 = vector.load %arg7[%c3, %c0_24, %c0_25] : memref<9x1x896xf32, #tpu.memory_space<vmem>>, vector<1x1x896xf32>
    %38 = vector.shape_cast %37 : vector<1x1x896xf32> to vector<1x896xf32>
    %39 = vector.broadcast %38 : vector<1x896xf32> to vector<4x896xf32>
    %40 = arith.mulf %36, %39 : vector<4x896xf32>
    %c3_26 = arith.constant 3 : index
    %c0_27 = arith.constant 0 : index
    %c0_28 = arith.constant 0 : index
    %41 = vector.load %arg3[%c3_26, %c0_27, %c0_28] : memref<9x32x4xbf16, #tpu.memory_space<vmem>>, vector<1x32x4xbf16>
    %42 = vector.shape_cast %41 : vector<1x32x4xbf16> to vector<32x4xbf16>
    %43 = arith.truncf %40 : vector<4x896xf32> to vector<4x896xbf16>
    %cst_29 = arith.constant dense<0.000000e+00> : vector<32x896xf32>
    %44 = tpu.matmul %42, %43, %cst_29 {dimension_numbers = #tpu.dot_dimension_numbers<[1], [0], [0], [1], [0, 0, 1, 1], [], []>} : vector<32x4xbf16>, vector<4x896xbf16>, vector<32x896xf32> -> vector<32x896xf32>
    %45 = arith.addf %35, %44 : vector<32x896xf32>
    %c4 = arith.constant 4 : index
    %c0_30 = arith.constant 0 : index
    %c0_31 = arith.constant 0 : index
    %46 = vector.load %arg3[%c4, %c0_30, %c0_31] : memref<9x32x4xbf16, #tpu.memory_space<vmem>>, vector<1x32x4xbf16>
    %47 = vector.shape_cast %46 : vector<1x32x4xbf16> to vector<32x4xbf16>
    %48 = arith.truncf %4 : vector<4x896xf32> to vector<4x896xbf16>
    %cst_32 = arith.constant dense<0.000000e+00> : vector<32x896xf32>
    %49 = tpu.matmul %47, %48, %cst_32 {dimension_numbers = #tpu.dot_dimension_numbers<[1], [0], [0], [1], [0, 0, 1, 1], [], []>} : vector<32x4xbf16>, vector<4x896xbf16>, vector<32x896xf32> -> vector<32x896xf32>
    %50 = arith.addf %45, %49 : vector<32x896xf32>
    %c895_i32 = arith.constant 895 : i32
    %51 = tpu.dynamic_rotate %4 by %c895_i32 dim 1 : vector<4x896xf32>, i32 -> vector<4x896xf32>
    %c5 = arith.constant 5 : index
    %c0_33 = arith.constant 0 : index
    %c0_34 = arith.constant 0 : index
    %52 = vector.load %arg7[%c5, %c0_33, %c0_34] : memref<9x1x896xf32, #tpu.memory_space<vmem>>, vector<1x1x896xf32>
    %53 = vector.shape_cast %52 : vector<1x1x896xf32> to vector<1x896xf32>
    %54 = vector.broadcast %53 : vector<1x896xf32> to vector<4x896xf32>
    %55 = arith.mulf %51, %54 : vector<4x896xf32>
    %c5_35 = arith.constant 5 : index
    %c0_36 = arith.constant 0 : index
    %c0_37 = arith.constant 0 : index
    %56 = vector.load %arg3[%c5_35, %c0_36, %c0_37] : memref<9x32x4xbf16, #tpu.memory_space<vmem>>, vector<1x32x4xbf16>
    %57 = vector.shape_cast %56 : vector<1x32x4xbf16> to vector<32x4xbf16>
    %58 = arith.truncf %55 : vector<4x896xf32> to vector<4x896xbf16>
    %cst_38 = arith.constant dense<0.000000e+00> : vector<32x896xf32>
    %59 = tpu.matmul %57, %58, %cst_38 {dimension_numbers = #tpu.dot_dimension_numbers<[1], [0], [0], [1], [0, 0, 1, 1], [], []>} : vector<32x4xbf16>, vector<4x896xbf16>, vector<32x896xf32> -> vector<32x896xf32>
    %60 = arith.addf %50, %59 : vector<32x896xf32>
    %c869_i32 = arith.constant 869 : i32
    %61 = tpu.dynamic_rotate %4 by %c869_i32 dim 1 : vector<4x896xf32>, i32 -> vector<4x896xf32>
    %c6 = arith.constant 6 : index
    %c0_39 = arith.constant 0 : index
    %c0_40 = arith.constant 0 : index
    %62 = vector.load %arg7[%c6, %c0_39, %c0_40] : memref<9x1x896xf32, #tpu.memory_space<vmem>>, vector<1x1x896xf32>
    %63 = vector.shape_cast %62 : vector<1x1x896xf32> to vector<1x896xf32>
    %64 = vector.broadcast %63 : vector<1x896xf32> to vector<4x896xf32>
    %65 = arith.mulf %61, %64 : vector<4x896xf32>
    %c6_41 = arith.constant 6 : index
    %c0_42 = arith.constant 0 : index
    %c0_43 = arith.constant 0 : index
    %66 = vector.load %arg3[%c6_41, %c0_42, %c0_43] : memref<9x32x4xbf16, #tpu.memory_space<vmem>>, vector<1x32x4xbf16>
    %67 = vector.shape_cast %66 : vector<1x32x4xbf16> to vector<32x4xbf16>
    %68 = arith.truncf %65 : vector<4x896xf32> to vector<4x896xbf16>
    %cst_44 = arith.constant dense<0.000000e+00> : vector<32x896xf32>
    %69 = tpu.matmul %67, %68, %cst_44 {dimension_numbers = #tpu.dot_dimension_numbers<[1], [0], [0], [1], [0, 0, 1, 1], [], []>} : vector<32x4xbf16>, vector<4x896xbf16>, vector<32x896xf32> -> vector<32x896xf32>
    %70 = arith.addf %60, %69 : vector<32x896xf32>
    %c868_i32 = arith.constant 868 : i32
    %71 = tpu.dynamic_rotate %4 by %c868_i32 dim 1 : vector<4x896xf32>, i32 -> vector<4x896xf32>
    %c7 = arith.constant 7 : index
    %c0_45 = arith.constant 0 : index
    %c0_46 = arith.constant 0 : index
    %72 = vector.load %arg7[%c7, %c0_45, %c0_46] : memref<9x1x896xf32, #tpu.memory_space<vmem>>, vector<1x1x896xf32>
    %73 = vector.shape_cast %72 : vector<1x1x896xf32> to vector<1x896xf32>
    %74 = vector.broadcast %73 : vector<1x896xf32> to vector<4x896xf32>
    %75 = arith.mulf %71, %74 : vector<4x896xf32>
    %c7_47 = arith.constant 7 : index
    %c0_48 = arith.constant 0 : index
    %c0_49 = arith.constant 0 : index
    %76 = vector.load %arg3[%c7_47, %c0_48, %c0_49] : memref<9x32x4xbf16, #tpu.memory_space<vmem>>, vector<1x32x4xbf16>
    %77 = vector.shape_cast %76 : vector<1x32x4xbf16> to vector<32x4xbf16>
    %78 = arith.truncf %75 : vector<4x896xf32> to vector<4x896xbf16>
    %cst_50 = arith.constant dense<0.000000e+00> : vector<32x896xf32>
    %79 = tpu.matmul %77, %78, %cst_50 {dimension_numbers = #tpu.dot_dimension_numbers<[1], [0], [0], [1], [0, 0, 1, 1], [], []>} : vector<32x4xbf16>, vector<4x896xbf16>, vector<32x896xf32> -> vector<32x896xf32>
    %80 = arith.addf %70, %79 : vector<32x896xf32>
    %c867_i32 = arith.constant 867 : i32
    %81 = tpu.dynamic_rotate %4 by %c867_i32 dim 1 : vector<4x896xf32>, i32 -> vector<4x896xf32>
    %c8 = arith.constant 8 : index
    %c0_51 = arith.constant 0 : index
    %c0_52 = arith.constant 0 : index
    %82 = vector.load %arg7[%c8, %c0_51, %c0_52] : memref<9x1x896xf32, #tpu.memory_space<vmem>>, vector<1x1x896xf32>
    %83 = vector.shape_cast %82 : vector<1x1x896xf32> to vector<1x896xf32>
    %84 = vector.broadcast %83 : vector<1x896xf32> to vector<4x896xf32>
    %85 = arith.mulf %81, %84 : vector<4x896xf32>
    %c8_53 = arith.constant 8 : index
    %c0_54 = arith.constant 0 : index
    %c0_55 = arith.constant 0 : index
    %86 = vector.load %arg3[%c8_53, %c0_54, %c0_55] : memref<9x32x4xbf16, #tpu.memory_space<vmem>>, vector<1x32x4xbf16>
    %87 = vector.shape_cast %86 : vector<1x32x4xbf16> to vector<32x4xbf16>
    %88 = arith.truncf %85 : vector<4x896xf32> to vector<4x896xbf16>
    %cst_56 = arith.constant dense<0.000000e+00> : vector<32x896xf32>
    %89 = tpu.matmul %87, %88, %cst_56 {dimension_numbers = #tpu.dot_dimension_numbers<[1], [0], [0], [1], [0, 0, 1, 1], [], []>} : vector<32x4xbf16>, vector<4x896xbf16>, vector<32x896xf32> -> vector<32x896xf32>
    %90 = arith.addf %80, %89 : vector<32x896xf32>
    %c0_57 = arith.constant 0 : index
    %c0_58 = arith.constant 0 : index
    %91 = vector.load %arg4[%c0_57, %c0_58] : memref<32x1xf32, #tpu.memory_space<vmem>>, vector<32x1xf32>
    %92 = vector.broadcast %91 : vector<32x1xf32> to vector<32x896xf32>
    %93 = arith.addf %90, %92 : vector<32x896xf32>
    %cst_59 = arith.constant 2.000000e-01 : f32
    %94 = vector.broadcast %cst_59 : f32 to vector<32x896xf32>
    %95 = arith.mulf %94, %93 : vector<32x896xf32>
    %96 = arith.maximumf %93, %95 : vector<32x896xf32>
    %97 = arith.truncf %96 : vector<32x896xf32> to vector<32x896xbf16>
    %cst_60 = arith.constant 0.000000e+00 : f32
    %98 = vector.broadcast %cst_60 : f32 to vector<4x896xf32>
    %c0_61 = arith.constant 0 : index
    %c0_62 = arith.constant 0 : index
    %c0_63 = arith.constant 0 : index
    %99 = vector.load %arg5[%c0_61, %c0_62, %c0_63] : memref<9x4x32xbf16, #tpu.memory_space<vmem>>, vector<1x4x32xbf16>
    %100 = vector.shape_cast %99 : vector<1x4x32xbf16> to vector<4x32xbf16>
    %cst_64 = arith.constant dense<0.000000e+00> : vector<4x896xf32>
    %101 = tpu.matmul %100, %97, %cst_64 {dimension_numbers = #tpu.dot_dimension_numbers<[1], [0], [0], [1], [0, 0, 1, 1], [], []>} : vector<4x32xbf16>, vector<32x896xbf16>, vector<4x896xf32> -> vector<4x896xf32>
    %c29_i32_65 = arith.constant 29 : i32
    %102 = tpu.dynamic_rotate %101 by %c29_i32_65 dim 1 : vector<4x896xf32>, i32 -> vector<4x896xf32>
    %c0_66 = arith.constant 0 : index
    %c0_67 = arith.constant 0 : index
    %c0_68 = arith.constant 0 : index
    %103 = vector.load %arg7[%c0_66, %c0_67, %c0_68] : memref<9x1x896xf32, #tpu.memory_space<vmem>>, vector<1x1x896xf32>
    %104 = vector.shape_cast %103 : vector<1x1x896xf32> to vector<1x896xf32>
    %105 = vector.broadcast %104 : vector<1x896xf32> to vector<4x896xf32>
    %106 = arith.mulf %102, %105 : vector<4x896xf32>
    %107 = arith.addf %98, %106 : vector<4x896xf32>
    %c1_69 = arith.constant 1 : index
    %c0_70 = arith.constant 0 : index
    %c0_71 = arith.constant 0 : index
    %108 = vector.load %arg5[%c1_69, %c0_70, %c0_71] : memref<9x4x32xbf16, #tpu.memory_space<vmem>>, vector<1x4x32xbf16>
    %109 = vector.shape_cast %108 : vector<1x4x32xbf16> to vector<4x32xbf16>
    %cst_72 = arith.constant dense<0.000000e+00> : vector<4x896xf32>
    %110 = tpu.matmul %109, %97, %cst_72 {dimension_numbers = #tpu.dot_dimension_numbers<[1], [0], [0], [1], [0, 0, 1, 1], [], []>} : vector<4x32xbf16>, vector<32x896xbf16>, vector<4x896xf32> -> vector<4x896xf32>
    %c28_i32_73 = arith.constant 28 : i32
    %111 = tpu.dynamic_rotate %110 by %c28_i32_73 dim 1 : vector<4x896xf32>, i32 -> vector<4x896xf32>
    %c1_74 = arith.constant 1 : index
    %c0_75 = arith.constant 0 : index
    %c0_76 = arith.constant 0 : index
    %112 = vector.load %arg7[%c1_74, %c0_75, %c0_76] : memref<9x1x896xf32, #tpu.memory_space<vmem>>, vector<1x1x896xf32>
    %113 = vector.shape_cast %112 : vector<1x1x896xf32> to vector<1x896xf32>
    %114 = vector.broadcast %113 : vector<1x896xf32> to vector<4x896xf32>
    %115 = arith.mulf %111, %114 : vector<4x896xf32>
    %116 = arith.addf %107, %115 : vector<4x896xf32>
    %c2_77 = arith.constant 2 : index
    %c0_78 = arith.constant 0 : index
    %c0_79 = arith.constant 0 : index
    %117 = vector.load %arg5[%c2_77, %c0_78, %c0_79] : memref<9x4x32xbf16, #tpu.memory_space<vmem>>, vector<1x4x32xbf16>
    %118 = vector.shape_cast %117 : vector<1x4x32xbf16> to vector<4x32xbf16>
    %cst_80 = arith.constant dense<0.000000e+00> : vector<4x896xf32>
    %119 = tpu.matmul %118, %97, %cst_80 {dimension_numbers = #tpu.dot_dimension_numbers<[1], [0], [0], [1], [0, 0, 1, 1], [], []>} : vector<4x32xbf16>, vector<32x896xbf16>, vector<4x896xf32> -> vector<4x896xf32>
    %c27_i32_81 = arith.constant 27 : i32
    %120 = tpu.dynamic_rotate %119 by %c27_i32_81 dim 1 : vector<4x896xf32>, i32 -> vector<4x896xf32>
    %c2_82 = arith.constant 2 : index
    %c0_83 = arith.constant 0 : index
    %c0_84 = arith.constant 0 : index
    %121 = vector.load %arg7[%c2_82, %c0_83, %c0_84] : memref<9x1x896xf32, #tpu.memory_space<vmem>>, vector<1x1x896xf32>
    %122 = vector.shape_cast %121 : vector<1x1x896xf32> to vector<1x896xf32>
    %123 = vector.broadcast %122 : vector<1x896xf32> to vector<4x896xf32>
    %124 = arith.mulf %120, %123 : vector<4x896xf32>
    %125 = arith.addf %116, %124 : vector<4x896xf32>
    %c3_85 = arith.constant 3 : index
    %c0_86 = arith.constant 0 : index
    %c0_87 = arith.constant 0 : index
    %126 = vector.load %arg5[%c3_85, %c0_86, %c0_87] : memref<9x4x32xbf16, #tpu.memory_space<vmem>>, vector<1x4x32xbf16>
    %127 = vector.shape_cast %126 : vector<1x4x32xbf16> to vector<4x32xbf16>
    %cst_88 = arith.constant dense<0.000000e+00> : vector<4x896xf32>
    %128 = tpu.matmul %127, %97, %cst_88 {dimension_numbers = #tpu.dot_dimension_numbers<[1], [0], [0], [1], [0, 0, 1, 1], [], []>} : vector<4x32xbf16>, vector<32x896xbf16>, vector<4x896xf32> -> vector<4x896xf32>
    %c1_i32_89 = arith.constant 1 : i32
    %129 = tpu.dynamic_rotate %128 by %c1_i32_89 dim 1 : vector<4x896xf32>, i32 -> vector<4x896xf32>
    %c3_90 = arith.constant 3 : index
    %c0_91 = arith.constant 0 : index
    %c0_92 = arith.constant 0 : index
    %130 = vector.load %arg7[%c3_90, %c0_91, %c0_92] : memref<9x1x896xf32, #tpu.memory_space<vmem>>, vector<1x1x896xf32>
    %131 = vector.shape_cast %130 : vector<1x1x896xf32> to vector<1x896xf32>
    %132 = vector.broadcast %131 : vector<1x896xf32> to vector<4x896xf32>
    %133 = arith.mulf %129, %132 : vector<4x896xf32>
    %134 = arith.addf %125, %133 : vector<4x896xf32>
    %c4_93 = arith.constant 4 : index
    %c0_94 = arith.constant 0 : index
    %c0_95 = arith.constant 0 : index
    %135 = vector.load %arg5[%c4_93, %c0_94, %c0_95] : memref<9x4x32xbf16, #tpu.memory_space<vmem>>, vector<1x4x32xbf16>
    %136 = vector.shape_cast %135 : vector<1x4x32xbf16> to vector<4x32xbf16>
    %cst_96 = arith.constant dense<0.000000e+00> : vector<4x896xf32>
    %137 = tpu.matmul %136, %97, %cst_96 {dimension_numbers = #tpu.dot_dimension_numbers<[1], [0], [0], [1], [0, 0, 1, 1], [], []>} : vector<4x32xbf16>, vector<32x896xbf16>, vector<4x896xf32> -> vector<4x896xf32>
    %138 = arith.addf %134, %137 : vector<4x896xf32>
    %c5_97 = arith.constant 5 : index
    %c0_98 = arith.constant 0 : index
    %c0_99 = arith.constant 0 : index
    %139 = vector.load %arg5[%c5_97, %c0_98, %c0_99] : memref<9x4x32xbf16, #tpu.memory_space<vmem>>, vector<1x4x32xbf16>
    %140 = vector.shape_cast %139 : vector<1x4x32xbf16> to vector<4x32xbf16>
    %cst_100 = arith.constant dense<0.000000e+00> : vector<4x896xf32>
    %141 = tpu.matmul %140, %97, %cst_100 {dimension_numbers = #tpu.dot_dimension_numbers<[1], [0], [0], [1], [0, 0, 1, 1], [], []>} : vector<4x32xbf16>, vector<32x896xbf16>, vector<4x896xf32> -> vector<4x896xf32>
    %c895_i32_101 = arith.constant 895 : i32
    %142 = tpu.dynamic_rotate %141 by %c895_i32_101 dim 1 : vector<4x896xf32>, i32 -> vector<4x896xf32>
    %c5_102 = arith.constant 5 : index
    %c0_103 = arith.constant 0 : index
    %c0_104 = arith.constant 0 : index
    %143 = vector.load %arg7[%c5_102, %c0_103, %c0_104] : memref<9x1x896xf32, #tpu.memory_space<vmem>>, vector<1x1x896xf32>
    %144 = vector.shape_cast %143 : vector<1x1x896xf32> to vector<1x896xf32>
    %145 = vector.broadcast %144 : vector<1x896xf32> to vector<4x896xf32>
    %146 = arith.mulf %142, %145 : vector<4x896xf32>
    %147 = arith.addf %138, %146 : vector<4x896xf32>
    %c6_105 = arith.constant 6 : index
    %c0_106 = arith.constant 0 : index
    %c0_107 = arith.constant 0 : index
    %148 = vector.load %arg5[%c6_105, %c0_106, %c0_107] : memref<9x4x32xbf16, #tpu.memory_space<vmem>>, vector<1x4x32xbf16>
    %149 = vector.shape_cast %148 : vector<1x4x32xbf16> to vector<4x32xbf16>
    %cst_108 = arith.constant dense<0.000000e+00> : vector<4x896xf32>
    %150 = tpu.matmul %149, %97, %cst_108 {dimension_numbers = #tpu.dot_dimension_numbers<[1], [0], [0], [1], [0, 0, 1, 1], [], []>} : vector<4x32xbf16>, vector<32x896xbf16>, vector<4x896xf32> -> vector<4x896xf32>
    %c869_i32_109 = arith.constant 869 : i32
    %151 = tpu.dynamic_rotate %150 by %c869_i32_109 dim 1 : vector<4x896xf32>, i32 -> vector<4x896xf32>
    %c6_110 = arith.constant 6 : index
    %c0_111 = arith.constant 0 : index
    %c0_112 = arith.constant 0 : index
    %152 = vector.load %arg7[%c6_110, %c0_111, %c0_112] : memref<9x1x896xf32, #tpu.memory_space<vmem>>, vector<1x1x896xf32>
    %153 = vector.shape_cast %152 : vector<1x1x896xf32> to vector<1x896xf32>
    %154 = vector.broadcast %153 : vector<1x896xf32> to vector<4x896xf32>
    %155 = arith.mulf %151, %154 : vector<4x896xf32>
    %156 = arith.addf %147, %155 : vector<4x896xf32>
    %c7_113 = arith.constant 7 : index
    %c0_114 = arith.constant 0 : index
    %c0_115 = arith.constant 0 : index
    %157 = vector.load %arg5[%c7_113, %c0_114, %c0_115] : memref<9x4x32xbf16, #tpu.memory_space<vmem>>, vector<1x4x32xbf16>
    %158 = vector.shape_cast %157 : vector<1x4x32xbf16> to vector<4x32xbf16>
    %cst_116 = arith.constant dense<0.000000e+00> : vector<4x896xf32>
    %159 = tpu.matmul %158, %97, %cst_116 {dimension_numbers = #tpu.dot_dimension_numbers<[1], [0], [0], [1], [0, 0, 1, 1], [], []>} : vector<4x32xbf16>, vector<32x896xbf16>, vector<4x896xf32> -> vector<4x896xf32>
    %c868_i32_117 = arith.constant 868 : i32
    %160 = tpu.dynamic_rotate %159 by %c868_i32_117 dim 1 : vector<4x896xf32>, i32 -> vector<4x896xf32>
    %c7_118 = arith.constant 7 : index
    %c0_119 = arith.constant 0 : index
    %c0_120 = arith.constant 0 : index
    %161 = vector.load %arg7[%c7_118, %c0_119, %c0_120] : memref<9x1x896xf32, #tpu.memory_space<vmem>>, vector<1x1x896xf32>
    %162 = vector.shape_cast %161 : vector<1x1x896xf32> to vector<1x896xf32>
    %163 = vector.broadcast %162 : vector<1x896xf32> to vector<4x896xf32>
    %164 = arith.mulf %160, %163 : vector<4x896xf32>
    %165 = arith.addf %156, %164 : vector<4x896xf32>
    %c8_121 = arith.constant 8 : index
    %c0_122 = arith.constant 0 : index
    %c0_123 = arith.constant 0 : index
    %166 = vector.load %arg5[%c8_121, %c0_122, %c0_123] : memref<9x4x32xbf16, #tpu.memory_space<vmem>>, vector<1x4x32xbf16>
    %167 = vector.shape_cast %166 : vector<1x4x32xbf16> to vector<4x32xbf16>
    %cst_124 = arith.constant dense<0.000000e+00> : vector<4x896xf32>
    %168 = tpu.matmul %167, %97, %cst_124 {dimension_numbers = #tpu.dot_dimension_numbers<[1], [0], [0], [1], [0, 0, 1, 1], [], []>} : vector<4x32xbf16>, vector<32x896xbf16>, vector<4x896xf32> -> vector<4x896xf32>
    %c867_i32_125 = arith.constant 867 : i32
    %169 = tpu.dynamic_rotate %168 by %c867_i32_125 dim 1 : vector<4x896xf32>, i32 -> vector<4x896xf32>
    %c8_126 = arith.constant 8 : index
    %c0_127 = arith.constant 0 : index
    %c0_128 = arith.constant 0 : index
    %170 = vector.load %arg7[%c8_126, %c0_127, %c0_128] : memref<9x1x896xf32, #tpu.memory_space<vmem>>, vector<1x1x896xf32>
    %171 = vector.shape_cast %170 : vector<1x1x896xf32> to vector<1x896xf32>
    %172 = vector.broadcast %171 : vector<1x896xf32> to vector<4x896xf32>
    %173 = arith.mulf %169, %172 : vector<4x896xf32>
    %174 = arith.addf %165, %173 : vector<4x896xf32>
    %c0_129 = arith.constant 0 : index
    %c0_130 = arith.constant 0 : index
    %175 = vector.load %arg6[%c0_129, %c0_130] : memref<4x1xf32, #tpu.memory_space<vmem>>, vector<4x1xf32>
    %176 = vector.broadcast %175 : vector<4x1xf32> to vector<4x896xf32>
    %177 = arith.addf %174, %176 : vector<4x896xf32>
    %178 = math.tanh %177 : vector<4x896xf32>
    %179 = arith.addf %1, %178 : vector<4x896xf32>
    %c0_131 = arith.constant 0 : index
    %c0_132 = arith.constant 0 : index
    %c0_133 = arith.constant 0 : index
    %180 = vector.load %arg8[%c0_131, %c0_132, %c0_133] : memref<1x4x896xf32, #tpu.memory_space<vmem>>, vector<1x4x896xf32>
    %181 = vector.shape_cast %180 : vector<1x4x896xf32> to vector<4x896xf32>
    %182 = vector.shape_cast %179 : vector<4x896xf32> to vector<1x4x896xf32>
    tpu.vector_store %arg8[%c0_131, %c0_132, %c0_133], %182 {strides = array<i32>} : memref<1x4x896xf32, #tpu.memory_space<vmem>>, vector<1x4x896xf32>,
    return
  }
  func.func @transform_0(%arg0: i32) -> (i32, i32, i32) {
    %c0_i32 = arith.constant 0 : i32
    %c0_i32_0 = arith.constant 0 : i32
    %c0_i32_1 = arith.constant 0 : i32
    return %arg0, %c0_i32, %c0_i32_0 : i32, i32, i32
  }
  func.func @transform_1(%arg0: i32) -> (i32, i32, i32) {
    %c0_i32 = arith.constant 0 : i32
    %c0_i32_0 = arith.constant 0 : i32
    %c0_i32_1 = arith.constant 0 : i32
    return %arg0, %c0_i32, %c0_i32_0 : i32, i32, i32
  }
  func.func @transform_2(%arg0: i32) -> (i32, i32, i32) {
    %c0_i32 = arith.constant 0 : i32
    %c0_i32_0 = arith.constant 0 : i32
    %c0_i32_1 = arith.constant 0 : i32
    %c0_i32_2 = arith.constant 0 : i32
    return %c0_i32, %c0_i32_0, %c0_i32_1 : i32, i32, i32
  }
  func.func @transform_3(%arg0: i32) -> (i32, i32) {
    %c0_i32 = arith.constant 0 : i32
    %c0_i32_0 = arith.constant 0 : i32
    %c0_i32_1 = arith.constant 0 : i32
    return %c0_i32, %c0_i32_0 : i32, i32
  }
  func.func @transform_4(%arg0: i32) -> (i32, i32, i32) {
    %c0_i32 = arith.constant 0 : i32
    %c0_i32_0 = arith.constant 0 : i32
    %c0_i32_1 = arith.constant 0 : i32
    %c0_i32_2 = arith.constant 0 : i32
    return %c0_i32, %c0_i32_0, %c0_i32_1 : i32, i32, i32
  }
  func.func @transform_5(%arg0: i32) -> (i32, i32) {
    %c0_i32 = arith.constant 0 : i32
    %c0_i32_0 = arith.constant 0 : i32
    %c0_i32_1 = arith.constant 0 : i32
    return %c0_i32, %c0_i32_0 : i32, i32
  }
  func.func @transform_6(%arg0: i32) -> (i32, i32, i32) {
    %c0_i32 = arith.constant 0 : i32
    %c0_i32_0 = arith.constant 0 : i32
    %c0_i32_1 = arith.constant 0 : i32
    %c0_i32_2 = arith.constant 0 : i32
    return %c0_i32, %c0_i32_0, %c0_i32_1 : i32, i32, i32
  }
  func.func @transform_7(%arg0: i32) -> (i32, i32, i32) {
    %c0_i32 = arith.constant 0 : i32
    %c0_i32_0 = arith.constant 0 : i32
    %c0_i32_1 = arith.constant 0 : i32
    return %arg0, %c0_i32, %c0_i32_0 : i32, i32, i32
  }
}

</mosaic_0001>

<bundles_post_ra>
// kernel: multi_scale_sg_gen_view_forward.6
= control target key start
LH: loop header
LB: loop body
LE: loop exit
PB: predicated region body
PF: predicated region fallthrough
CT: control target
= control target key end

     0   :  { %7 = vsyncpa [#allocation3], 0  ;;  %s733_s9 = smov 0   ;;  %s801_s0 = inlined_call_operand.vmem [shape: f32[2,4,256], index: 0, kind: input, shape index: {}]   ;;  %s802_s1 = inlined_call_operand.hbm [shape: f32[256,512], index: 1, kind: input, shape index: {}]   ;;  %s803_s2 = inlined_call_operand.vmem [shape: f32[2,4,512], index: 2, kind: output, shape index: {}]  }
   0x1 LB: > { %s739_s10 = sadd.s32 4294967295, %s713_s9   ;;  %p512_p0 = scmp.ge.s32.totalorder %s713_s9, 1  ;;  %s713_s9 = sphi %s733_s9, %s13_s9  }
   0x2   : > { %p91_p1 = scmp.lt.s32.totalorder %s713_s9, 3  ;;  %s715_s11 = smov [#allocation2]  }
   0x3   : > { %s103_s12 = sshll.u32 %s715_s11, 4  ;;  %p804_p3 = scmp.eq.s32.totalorder %s739_s10, 0  ;;  %s104_s12 = int_to_ptr.vmem [resolvable:$true] %s103_s12 }
   0x4   : > { %p743_p2 = pnand %p512_p0, %p91_p1  ;;  %s675_s17 = scalar_lea.hbm %s802_s1, 16384 }
   0x5   : > { %p676_p6 = scmp.ne.s32.totalorder %s802_s1, %s675_s17  ;;  %p682_p10 = scmp.lt.u32.totalorder %s675_s17, %s802_s1 }
   0x6   : > { %s806_s13 = scalar_select %p743_p2, 1, 0 }
   0x7   : > { %p657_p4 = pneg %p743_p2 }
   0x9   : > { %p752_p5 = pnand %p804_p3, %p657_p4 }
   0xb   : > { %p677_p7 = pneg %p752_p5 }
   0xd   : > { %p678_p8 = pnand %p677_p7, %p676_p6 }
   0xf   : > { %p679_p9 = pneg %p678_p8 }
  0x11   : > { %p684_p11 = pnand %p682_p10, %p679_p9 }
  0x13   : > { %687 = shalt.err (!%p684_p11)
}
  0x14   : > { %s688_s22 = scalar_lea.vmem %s104_s12, 16384  ;;  %p696_p1 = scmp.lt.s32.totalorder %s104_s12, %s104_s12 }
  0x15   : > { %p689_p12 = scmp.ne.s32.totalorder %s104_s12, %s688_s22  ;;  %p697_p4 = scmp.lt.s32.totalorder %s688_s22, %s688_s22 }
  0x17   : > { %p691_p13 = pnand %p689_p12, %p677_p7  ;;  %p698_p3 = por %p697_p4, %p696_p1 }
  0x19   : > { %p692_p0 = pneg %p691_p13 }
  0x1b   : > { %p699_p2 = pnand %p698_p3, %p692_p0 }
  0x1d   : > { %702 = shalt.err (!%p699_p2)
}
  0x1e   : > { %s716_s23 = smov 512   ;;  %s717_s24 = smov 32  }
  0x1f   : > { %660 = dma.hbm_to_vmem [thread:$0]  (!%p752_p5), %s802_s1, 16384, %s104_s12, [#allocation3], %s716_s23, %s716_s23, %s717_s24  }
  0x20   : > { %p808_p6 = scmp.ne.s32.totalorder %s806_s13, 0 }
  0x21   : > { %p809_p8 = scmp.eq.s32.totalorder (!%p808_p6), %s739_s10, 0 }
  0x22   : > { %127 = sbr.rel (%p808_p6) target bundleno = 327 (0x147), region = 28 }
  0x29   : > { %708 = dma.done.wait (%p809_p8), [#allocation3], 16384   ;;  %p810_p7 = pmov %p809_p8 }
  0x2a   : > { %v161_v0 = vld [vmem:[#allocation2 + $0x8] sm:$0xff]  ;;  %v163_v2 = vld [vmem:[#allocation2 + $0x18] sm:$0xff]  ;;  %v160_v5 = vld [vmem:[#allocation2] sm:$0xff]  ;;  %p149_p2 = scmp.lt.s32.totalorder %s739_s10, 1 }
  0x2b   : > { %710 = vsyncadd (%p810_p7), [#allocation3], 4294950912  ;;  %v165_v1 = vld [vmem:[#allocation2 + $0x28] sm:$0xff]  ;;  %v167_v4 = vld [vmem:[#allocation2 + $0x38] sm:$0xff] }
  0x2c   : > { %v525_v3 = vpack.c.bf16 %v165_v1, %v161_v0  ;;  %v164_v6 = vld [vmem:[#allocation2 + $0x20] sm:$0xff]  ;;  %v589_v7 = vpack.c.bf16 %v167_v4, %v163_v2  ;;  %v162_v9 = vld [vmem:[#allocation2 + $0x10] sm:$0xff]  ;;  %v169_v11 = vld [vmem:[#allocation2 + $0x48] sm:$0xff]  ;;  %s812_s10 = smov (!%p149_p2, %s739_s10), 1 }
  0x2d   : > { %v527_v8 = vpack.c.bf16 %v164_v6, %v160_v5  ;;  %v166_v10 = vld [vmem:[#allocation2 + $0x30] sm:$0xff]  ;;  %v173_v13 = vld [vmem:[#allocation2 + $0x68] sm:$0xff]  ;;  %v171_v14 = vld [vmem:[#allocation2 + $0x58] sm:$0xff]  ;;  %s523_s27 = sshll.u32 %s812_s10, 3  ;;  %s524_s3 = sshll.u32 %s812_s10, 4 }
  0x2e   : > { %526 = vmatprep.subr.bf16.mxu0 %v525_v3  ;;  %v591_v12 = vpack.c.bf16 %v166_v10, %v162_v9  ;;  %v175_v15 = vld [vmem:[#allocation2 + $0x78] sm:$0xff]  ;;  %590 = vmatprep.subr.bf16.mxu1 %v589_v7  ;;  %v529_v16 = vpack.c.bf16 %v173_v13, %v169_v11  ;;  %v168_v18 = vld [vmem:[#allocation2 + $0x40] sm:$0xff]  ;;  %v170_v20 = vld [vmem:[#allocation2 + $0x50] sm:$0xff]  ;;  %s153_s30 = scalar_lea.vmem %s801_s0, %s523_s27  ;;  %s158_s6 = scalar_lea.vmem %s803_s2, %s524_s3 }
  0x2f   : > { %528 = vmatpush1.bf16.msra.mxu0 %v527_v8  ;;  %v593_v17 = vpack.c.bf16 %v175_v15, %v171_v14  ;;  %v172_v19 = vld [vmem:[#allocation2 + $0x60] sm:$0xff]  ;;  %v174_v22 = vld [vmem:[#allocation2 + $0x70] sm:$0xff]  ;;  %v177_v23 = vld [vmem:[#allocation2 + $0x88] sm:$0xff] }
  0x30   : > { %592 = vmatpush1.bf16.msra.mxu1 %v591_v12  ;;  %v531_v21 = vpack.c.bf16 %v172_v19, %v168_v18  ;;  %v181_v24 = vld [vmem:[#allocation2 + $0xa8] sm:$0xff]  ;;  %530 = vmatprep.subr.bf16.mxu0 %v529_v16  ;;  %v595_v25 = vpack.c.bf16 %v174_v22, %v170_v20  ;;  %v179_v27 = vld [vmem:[#allocation2 + $0x98] sm:$0xff]  ;;  %v176_v29 = vld [vmem:[#allocation2 + $0x80] sm:$0xff] }
  0x31   : > { %594 = vmatprep.subr.bf16.mxu1 %v593_v17  ;;  %v533_v26 = vpack.c.bf16 %v181_v24, %v177_v23  ;;  %v183_v28 = vld [vmem:[#allocation2 + $0xb8] sm:$0xff]  ;;  %v180_v31 = vld [vmem:[#allocation2 + $0xa0] sm:$0xff]  ;;  %v178_v32 = vld [vmem:[#allocation2 + $0x90] sm:$0xff] }
  0x32   : > { %v597_v30 = vpack.c.bf16 %v183_v28, %v179_v27  ;;  %v182_v33 = vld [vmem:[#allocation2 + $0xb0] sm:$0xff]  ;;  %v535_v34 = vpack.c.bf16 %v180_v31, %v176_v29  ;;  %v185_v35 = vld [vmem:[#allocation2 + $0xc8] sm:$0xff]  ;;  %v187_v37 = vld [vmem:[#allocation2 + $0xd8] sm:$0xff] }
  0x33   : > { %532 = vmatpush1.bf16.msra.mxu0 %v531_v21  ;;  %v189_v36 = vld [vmem:[#allocation2 + $0xe8] sm:$0xff]  ;;  %v599_v38 = vpack.c.bf16 %v182_v33, %v178_v32  ;;  %v191_v40 = vld [vmem:[#allocation2 + $0xf8] sm:$0xff]  ;;  %v184_v41 = vld [vmem:[#allocation2 + $0xc0] sm:$0xff] }
  0x34   : > { %596 = vmatpush1.bf16.msra.mxu1 %v595_v25  ;;  %534 = vmatprep.subr.bf16.mxu0 %v533_v26  ;;  %v537_v39 = vpack.c.bf16 %v189_v36, %v185_v35  ;;  %v188_v42 = vld [vmem:[#allocation2 + $0xe0] sm:$0xff]  ;;  %v601_v43 = vpack.c.bf16 %v191_v40, %v187_v37  ;;  %v186_v44 = vld [vmem:[#allocation2 + $0xd0] sm:$0xff]  ;;  %v193_v46 = vld [vmem:[#allocation2 + $0x108] sm:$0xff] }
  0x35   : > { %598 = vmatprep.subr.bf16.mxu1 %v597_v30  ;;  %v190_v45 = vld [vmem:[#allocation2 + $0xf0] sm:$0xff]  ;;  %v197_v47 = vld [vmem:[#allocation2 + $0x128] sm:$0xff]  ;;  %v195_v48 = vld [vmem:[#allocation2 + $0x118] sm:$0xff]  ;;  %v539_v50 = vpack.c.bf16 %v188_v42, %v184_v41 }
  0x36   : > { %v199_v49 = vld [vmem:[#allocation2 + $0x138] sm:$0xff]  ;;  %v603_v51 = vpack.c.bf16 %v190_v45, %v186_v44  ;;  %v541_v52 = vpack.c.bf16 %v197_v47, %v193_v46  ;;  %v192_v53 = vld [vmem:[#allocation2 + $0x100] sm:$0xff]  ;;  %v194_v55 = vld [vmem:[#allocation2 + $0x110] sm:$0xff] }
  0x37   : > { %536 = vmatpush1.bf16.msra.mxu0 %v535_v34  ;;  %v196_v54 = vld [vmem:[#allocation2 + $0x120] sm:$0xff]  ;;  %v605_v56 = vpack.c.bf16 %v199_v49, %v195_v48  ;;  %v198_v57 = vld [vmem:[#allocation2 + $0x130] sm:$0xff]  ;;  %v201_v58 = vld [vmem:[#allocation2 + $0x148] sm:$0xff] }
  0x38   : > { %600 = vmatpush1.bf16.msra.mxu1 %v599_v38  ;;  %538 = vmatprep.subr.bf16.mxu0 %v537_v39  ;;  %v205_v59 = vld [vmem:[#allocation2 + $0x168] sm:$0xff]  ;;  %v203_v60 = vld [vmem:[#allocation2 + $0x158] sm:$0xff]  ;;  %v543_v62 = vpack.c.bf16 %v196_v54, %v192_v53  ;;  %v607_v63 = vpack.c.bf16 %v198_v57, %v194_v55  ;;  %v200_v1 = vld [vmem:[#allocation2 + $0x140] sm:$0xff] }
  0x39   : > { %602 = vmatprep.subr.bf16.mxu1 %v601_v43  ;;  %v207_v61 = vld [vmem:[#allocation2 + $0x178] sm:$0xff]  ;;  %v545_v0 = vpack.c.bf16 %v205_v59, %v201_v58  ;;  %v204_v2 = vld [vmem:[#allocation2 + $0x160] sm:$0xff]  ;;  %v202_v3 = vld [vmem:[#allocation2 + $0x150] sm:$0xff] }
  0x3a   : > { %v609_v4 = vpack.c.bf16 %v207_v61, %v203_v60  ;;  %v206_v5 = vld [vmem:[#allocation2 + $0x170] sm:$0xff]  ;;  %v209_v6 = vld [vmem:[#allocation2 + $0x188] sm:$0xff]  ;;  %v211_v8 = vld [vmem:[#allocation2 + $0x198] sm:$0xff]  ;;  %v547_v10 = vpack.c.bf16 %v204_v2, %v200_v1 }
  0x3b   : > { %540 = vmatpush1.bf16.msra.mxu0 %v539_v50  ;;  %v213_v7 = vld [vmem:[#allocation2 + $0x1a8] sm:$0xff]  ;;  %v215_v9 = vld [vmem:[#allocation2 + $0x1b8] sm:$0xff]  ;;  %v611_v11 = vpack.c.bf16 %v206_v5, %v202_v3  ;;  %v208_v13 = vld [vmem:[#allocation2 + $0x180] sm:$0xff] }
  0x3c   : > { %604 = vmatpush1.bf16.msra.mxu1 %v603_v51  ;;  %542 = vmatprep.subr.bf16.mxu0 %v541_v52  ;;  %v549_v12 = vpack.c.bf16 %v213_v7, %v209_v6  ;;  %v212_v14 = vld [vmem:[#allocation2 + $0x1a0] sm:$0xff]  ;;  %v210_v15 = vld [vmem:[#allocation2 + $0x190] sm:$0xff]  ;;  %v613_v16 = vpack.c.bf16 %v215_v9, %v211_v8  ;;  %v217_v18 = vld [vmem:[#allocation2 + $0x1c8] sm:$0xff] }
  0x3d   : > { %606 = vmatprep.subr.bf16.mxu1 %v605_v56  ;;  %v214_v17 = vld [vmem:[#allocation2 + $0x1b0] sm:$0xff]  ;;  %v221_v19 = vld [vmem:[#allocation2 + $0x1e8] sm:$0xff]  ;;  %v219_v20 = vld [vmem:[#allocation2 + $0x1d8] sm:$0xff]  ;;  %v551_v22 = vpack.c.bf16 %v212_v14, %v208_v13 }
  0x3e   : > { %v223_v21 = vld [vmem:[#allocation2 + $0x1f8] sm:$0xff]  ;;  %v615_v23 = vpack.c.bf16 %v214_v17, %v210_v15  ;;  %v553_v24 = vpack.c.bf16 %v221_v19, %v217_v18  ;;  %v216_v25 = vld [vmem:[#allocation2 + $0x1c0] sm:$0xff]  ;;  %v218_v27 = vld [vmem:[#allocation2 + $0x1d0] sm:$0xff] }
  0x3f   : > { %544 = vmatpush1.bf16.msra.mxu0 %v543_v62  ;;  %v220_v26 = vld [vmem:[#allocation2 + $0x1e0] sm:$0xff]  ;;  %v617_v28 = vpack.c.bf16 %v223_v21, %v219_v20  ;;  %v222_v29 = vld [vmem:[#allocation2 + $0x1f0] sm:$0xff]  ;;  %v225_v30 = vld [vmem:[#allocation2 + $0x208] sm:$0xff] }
  0x40   : > { %608 = vmatpush1.bf16.msra.mxu1 %v607_v63  ;;  %546 = vmatprep.subr.bf16.mxu0 %v545_v0  ;;  %v229_v31 = vld [vmem:[#allocation2 + $0x228] sm:$0xff]  ;;  %v227_v32 = vld [vmem:[#allocation2 + $0x218] sm:$0xff]  ;;  %v555_v34 = vpack.c.bf16 %v220_v26, %v216_v25  ;;  %v619_v35 = vpack.c.bf16 %v222_v29, %v218_v27  ;;  %v224_v37 = vld [vmem:[#allocation2 + $0x200] sm:$0xff] }
  0x41   : > { %610 = vmatprep.subr.bf16.mxu1 %v609_v4  ;;  %v231_v33 = vld [vmem:[#allocation2 + $0x238] sm:$0xff]  ;;  %v557_v36 = vpack.c.bf16 %v229_v31, %v225_v30  ;;  %v228_v38 = vld [vmem:[#allocation2 + $0x220] sm:$0xff]  ;;  %v226_v39 = vld [vmem:[#allocation2 + $0x210] sm:$0xff] }
  0x42   : > { %v621_v40 = vpack.c.bf16 %v231_v33, %v227_v32  ;;  %v230_v41 = vld [vmem:[#allocation2 + $0x230] sm:$0xff]  ;;  %v233_v42 = vld [vmem:[#allocation2 + $0x248] sm:$0xff]  ;;  %v235_v44 = vld [vmem:[#allocation2 + $0x258] sm:$0xff]  ;;  %v559_v46 = vpack.c.bf16 %v228_v38, %v224_v37 }
  0x43   : > { %548 = vmatpush1.bf16.msra.mxu0 %v547_v10  ;;  %v237_v43 = vld [vmem:[#allocation2 + $0x268] sm:$0xff]  ;;  %v239_v45 = vld [vmem:[#allocation2 + $0x278] sm:$0xff]  ;;  %v623_v47 = vpack.c.bf16 %v230_v41, %v226_v39  ;;  %v232_v49 = vld [vmem:[#allocation2 + $0x240] sm:$0xff] }
  0x44   : > { %612 = vmatpush1.bf16.msra.mxu1 %v611_v11  ;;  %550 = vmatprep.subr.bf16.mxu0 %v549_v12  ;;  %v561_v48 = vpack.c.bf16 %v237_v43, %v233_v42  ;;  %v236_v50 = vld [vmem:[#allocation2 + $0x260] sm:$0xff]  ;;  %v234_v51 = vld [vmem:[#allocation2 + $0x250] sm:$0xff]  ;;  %v625_v52 = vpack.c.bf16 %v239_v45, %v235_v44  ;;  %v241_v54 = vld [vmem:[#allocation2 + $0x288] sm:$0xff] }
  0x45   : > { %614 = vmatprep.subr.bf16.mxu1 %v613_v16  ;;  %v238_v53 = vld [vmem:[#allocation2 + $0x270] sm:$0xff]  ;;  %v245_v55 = vld [vmem:[#allocation2 + $0x2a8] sm:$0xff]  ;;  %v243_v56 = vld [vmem:[#allocation2 + $0x298] sm:$0xff]  ;;  %v563_v58 = vpack.c.bf16 %v236_v50, %v232_v49 }
  0x46   : > { %v247_v57 = vld [vmem:[#allocation2 + $0x2b8] sm:$0xff]  ;;  %v627_v59 = vpack.c.bf16 %v238_v53, %v234_v51  ;;  %v565_v60 = vpack.c.bf16 %v245_v55, %v241_v54  ;;  %v240_v61 = vld [vmem:[#allocation2 + $0x280] sm:$0xff]  ;;  %v242_v63 = vld [vmem:[#allocation2 + $0x290] sm:$0xff] }
  0x47   : > { %552 = vmatpush1.bf16.msra.mxu0 %v551_v22  ;;  %v244_v62 = vld [vmem:[#allocation2 + $0x2a0] sm:$0xff]  ;;  %v629_v0 = vpack.c.bf16 %v247_v57, %v243_v56  ;;  %v246_v1 = vld [vmem:[#allocation2 + $0x2b0] sm:$0xff]  ;;  %v249_v2 = vld [vmem:[#allocation2 + $0x2c8] sm:$0xff] }
  0x48   : > { %616 = vmatpush1.bf16.msra.mxu1 %v615_v23  ;;  %554 = vmatprep.subr.bf16.mxu0 %v553_v24  ;;  %v253_v3 = vld [vmem:[#allocation2 + $0x2e8] sm:$0xff]  ;;  %v251_v4 = vld [vmem:[#allocation2 + $0x2d8] sm:$0xff]  ;;  %v567_v6 = vpack.c.bf16 %v244_v62, %v240_v61  ;;  %v248_v7 = vld [vmem:[#allocation2 + $0x2c0] sm:$0xff]  ;;  %v631_v8 = vpack.c.bf16 %v246_v1, %v242_v63 }
  0x49   : > { %618 = vmatprep.subr.bf16.mxu1 %v617_v28  ;;  %v255_v5 = vld [vmem:[#allocation2 + $0x2f8] sm:$0xff]  ;;  %v569_v9 = vpack.c.bf16 %v253_v3, %v249_v2  ;;  %v252_v10 = vld [vmem:[#allocation2 + $0x2e0] sm:$0xff]  ;;  %v250_v11 = vld [vmem:[#allocation2 + $0x2d0] sm:$0xff] }
  0x4a   : > { %v254_v12 = vld [vmem:[#allocation2 + $0x2f0] sm:$0xff]  ;;  %v633_v13 = vpack.c.bf16 %v255_v5, %v251_v4  ;;  %v257_v14 = vld [vmem:[#allocation2 + $0x308] sm:$0xff]  ;;  %v788_v16 = vld [vmem:[%s153_s30] sm:$0xff]  ;;  %v571_v20 = vpack.c.bf16 %v252_v10, %v248_v7 }
  0x4b   : > { %556 = vmatpush1.bf16.msra.mxu0 %v555_v34  ;;  %v261_v15 = vld [vmem:[#allocation2 + $0x328] sm:$0xff]  ;;  %v259_v17 = vld [vmem:[#allocation2 + $0x318] sm:$0xff]  ;;  %v289_v19 = vcombine.high %v788_v16, %v788_v16  ;;  %v635_v21 = vpack.c.bf16 %v254_v12, %v250_v11  ;;  %v256_v23 = vld [vmem:[#allocation2 + $0x300] sm:$0xff] }
  0x4c   : > { %620 = vmatpush1.bf16.msra.mxu1 %v619_v35  ;;  %558 = vmatprep.subr.bf16.mxu0 %v557_v36  ;;  %v263_v18 = vld [vmem:[#allocation2 + $0x338] sm:$0xff]  ;;  %v573_v22 = vpack.c.bf16 %v261_v15, %v257_v14  ;;  %v260_v24 = vld [vmem:[#allocation2 + $0x320] sm:$0xff]  ;;  %v258_v25 = vld [vmem:[#allocation2 + $0x310] sm:$0xff] }
  0x4d   : > { %622 = vmatprep.subr.bf16.mxu1 %v621_v40  ;;  %v637_v26 = vpack.c.bf16 %v263_v18, %v259_v17  ;;  %v262_v27 = vld [vmem:[#allocation2 + $0x330] sm:$0xff]  ;;  %v265_v28 = vld [vmem:[#allocation2 + $0x348] sm:$0xff]  ;;  %355 = vmatprep.mubr.f32.mxu0 %v289_v19  ;;  %v267_v30 = vld [vmem:[#allocation2 + $0x358] sm:$0xff]  ;;  %v575_v32 = vpack.c.bf16 %v260_v24, %v256_v23 }
  0x4e   : > { %v269_v29 = vld [vmem:[#allocation2 + $0x368] sm:$0xff]  ;;  %v271_v31 = vld [vmem:[#allocation2 + $0x378] sm:$0xff]  ;;  %426 = vmatprep.mubr.f32.mxu1 %v289_v19  ;;  %v639_v33 = vpack.c.bf16 %v262_v27, %v258_v25  ;;  %v264_v35 = vld [vmem:[#allocation2 + $0x340] sm:$0xff] }
  0x4f   : > { %560 = vmatpush1.bf16.msra.mxu0 %v559_v46  ;;  %v577_v34 = vpack.c.bf16 %v269_v29, %v265_v28  ;;  %v268_v36 = vld [vmem:[#allocation2 + $0x360] sm:$0xff]  ;;  %v266_v37 = vld [vmem:[#allocation2 + $0x350] sm:$0xff]  ;;  %v641_v38 = vpack.c.bf16 %v271_v31, %v267_v30  ;;  %v273_v40 = vld [vmem:[#allocation2 + $0x388] sm:$0xff] }
  0x50   : > { %624 = vmatpush1.bf16.msra.mxu1 %v623_v47  ;;  %562 = vmatprep.subr.bf16.mxu0 %v561_v48  ;;  %v270_v39 = vld [vmem:[#allocation2 + $0x370] sm:$0xff]  ;;  %v277_v41 = vld [vmem:[#allocation2 + $0x3a8] sm:$0xff]  ;;  %v275_v42 = vld [vmem:[#allocation2 + $0x398] sm:$0xff]  ;;  %v579_v44 = vpack.c.bf16 %v268_v36, %v264_v35 }
  0x51   : > { %626 = vmatprep.subr.bf16.mxu1 %v625_v52  ;;  %v279_v43 = vld [vmem:[#allocation2 + $0x3b8] sm:$0xff]  ;;  %v643_v45 = vpack.c.bf16 %v270_v39, %v266_v37  ;;  %v581_v46 = vpack.c.bf16 %v277_v41, %v273_v40  ;;  %v272_v47 = vld [vmem:[#allocation2 + $0x380] sm:$0xff]  ;;  %v274_v49 = vld [vmem:[#allocation2 + $0x390] sm:$0xff] }
  0x52   : > { %v276_v48 = vld [vmem:[#allocation2 + $0x3a0] sm:$0xff]  ;;  %v645_v50 = vpack.c.bf16 %v279_v43, %v275_v42  ;;  %v278_v51 = vld [vmem:[#allocation2 + $0x3b0] sm:$0xff]  ;;  %v281_v52 = vld [vmem:[#allocation2 + $0x3c8] sm:$0xff] }
  0x53   : > { %564 = vmatpush1.bf16.msra.mxu0 %v563_v58  ;;  %v285_v53 = vld [vmem:[#allocation2 + $0x3e8] sm:$0xff]  ;;  %v283_v54 = vld [vmem:[#allocation2 + $0x3d8] sm:$0xff]  ;;  %v583_v56 = vpack.c.bf16 %v276_v48, %v272_v47  ;;  %v647_v57 = vpack.c.bf16 %v278_v51, %v274_v49  ;;  %v282_v62 = vld [vmem:[#allocation2 + $0x3d0] sm:$0xff] }
  0x54   : > { %628 = vmatpush1.bf16.msra.mxu1 %v627_v59  ;;  %566 = vmatprep.subr.bf16.mxu0 %v565_v60  ;;  %v287_v55 = vld [vmem:[#allocation2 + $0x3f8] sm:$0xff]  ;;  %v585_v58 = vpack.c.bf16 %v285_v53, %v281_v52  ;;  %v280_v59 = vld [vmem:[#allocation2 + $0x3c0] sm:$0xff]  ;;  %v286_v63 = vld [vmem:[#allocation2 + $0x3f0] sm:$0xff] }
  0x55   : > { %630 = vmatprep.subr.bf16.mxu1 %v629_v0  ;;  %v284_v60 = vld [vmem:[#allocation2 + $0x3e0] sm:$0xff]  ;;  %v649_v61 = vpack.c.bf16 %v287_v55, %v283_v54  ;;  %v651_v1 = vpack.c.bf16 %v286_v63, %v282_v62 }
  0x56   : > { %v587_v0 = vpack.c.bf16 %v284_v60, %v280_v59 }
  0x57   : > { %568 = vmatpush1.bf16.msra.mxu0 %v567_v6 }
  0x58   : > { %632 = vmatpush1.bf16.msra.mxu1 %v631_v8  ;;  %570 = vmatprep.subr.bf16.mxu0 %v569_v9 }
  0x59   : > { %634 = vmatprep.subr.bf16.mxu1 %v633_v13 }
  0x5b   : > { %572 = vmatpush1.bf16.msra.mxu0 %v571_v20 }
  0x5c   : > { %636 = vmatpush1.bf16.msra.mxu1 %v635_v21  ;;  %574 = vmatprep.subr.bf16.mxu0 %v573_v22 }
  0x5d   : > { %638 = vmatprep.subr.bf16.mxu1 %v637_v26 }
  0x5f   : > { %576 = vmatpush1.bf16.msra.mxu0 %v575_v32 }
  0x60   : > { %640 = vmatpush1.bf16.msra.mxu1 %v639_v33  ;;  %578 = vmatprep.subr.bf16.mxu0 %v577_v34 }
  0x61   : > { %642 = vmatprep.subr.bf16.mxu1 %v641_v38 }
  0x63   : > { %580 = vmatpush1.bf16.msra.mxu0 %v579_v44 }
  0x64   : > { %644 = vmatpush1.bf16.msra.mxu1 %v643_v45  ;;  %582 = vmatprep.subr.bf16.mxu0 %v581_v46 }
  0x65   : > { %646 = vmatprep.subr.bf16.mxu1 %v645_v50 }
  0x67   : > { %584 = vmatpush1.bf16.msra.mxu0 %v583_v56 }
  0x68   : > { %648 = vmatpush1.bf16.msra.mxu1 %v647_v57  ;;  %586 = vmatprep.subr.bf16.mxu0 %v585_v58 }
  0x69   : > { %650 = vmatprep.subr.bf16.mxu1 %v649_v61 }
  0x6b   : > { %588 = vmatpush1.bf16.msra.mxu0 %v587_v0 }
  0x6c   : > { %652 = vmatpush1.bf16.msra.mxu1 %v651_v1 }
  0x6e   : > { %356 = vmatmul.mubr.f32.vlgmr.msra.gmra.mrb[0].mxu0 %v788_v16 }
  0x6f   : > { %427 = vmatmul.mubr.f32.vlgmr.msra.gmra.mrb[0].mxu1 %v788_v16 }
 0x141   : > { %v357_v2 = vpop.f32.mrb[0].mxu0 }
 0x142   : > { %v428_v3 = vpop.f32.mrb[0].mxu1  ;;  %v359_v4 = vpop.f32.mrb[1].mxu0 }
 0x143   : > { %v437_v5 = vcombine.low %v357_v2, %v359_v4  ;;  %v430_v6 = vpop.f32.mrb[1].mxu1 }
 0x144   : > { %v438_v7 = vcombine.low %v428_v3, %v430_v6 }
 0x145   : > { %441 = vst [vmem:[%s158_s6] sm:$0xff] %v437_v5 }
 0x146   : > { %442 = vst [vmem:[%s158_s6 + $0x8] sm:$0xff] %v438_v7 }
 0x147 PF: > { %s13_s9 = sadd.s32 1, %s713_s9  }
 0x148   : > { %p10_p3 = scmp.ge.s32.totalorder %s13_s9, 4  }
 0x14a   :  { %12 = sbr.rel (!%p10_p3) target bundleno = 1 (0x1), region = 63 }
 0x151   :  { %464 = vsyncpa [#allocation3], 1 }
 0x152   :  { %466 = vsyncpa [#allocation3 + $0x1], 1 }

// kernel: multi_scale_sg_gen_view_forward.7
= control target key start
LH: loop header
LB: loop body
LE: loop exit
PB: predicated region body
PF: predicated region fallthrough
CT: control target
= control target key end

     0   :  { %12 = vsyncpa [#allocation3], 0  ;;  %s3608_s24 = smov 0   ;;  %s4448_s0 = inlined_call_operand.vmem [shape: f32[2,4,512], index: 0, kind: input, shape index: {}]   ;;  %s4449_s1 = inlined_call_operand.vmem [shape: f32[2,4,512], index: 1, kind: input, shape index: {}]   ;;  %s4450_s2 = inlined_call_operand.vmem [shape: bf16[9,32,4], index: 2, kind: input, shape index: {}]   ;;  %s4451_s3 = inlined_call_operand.vmem [shape: f32[32,1], index: 3, kind: input, shape index: {}]   ;;  %s4452_s4 = inlined_call_operand.vmem [shape: bf16[9,4,32], index: 4, kind: input, shape index: {}]   ;;  %s4453_s5 = inlined_call_operand.vmem [shape: f32[4,1], index: 5, kind: input, shape index: {}]   ;;  %s4454_s6 = inlined_call_operand.hbm [shape: f32[9,1,512], index: 6, kind: input, shape index: {}]   ;;  %s4455_s7 = inlined_call_operand.vmem [shape: f32[2,4,512], index: 7, kind: output, shape index: {}]  }
   0x1 LB: > { %s3614_s25 = sadd.s32 4294967295, %s3554_s24   ;;  %p3182_p0 = scmp.ge.s32.totalorder %s3554_s24, 1  ;;  %s3554_s24 = sphi %s3608_s24, %s18_s24  }
   0x2   : > { %p206_p1 = scmp.lt.s32.totalorder %s3554_s24, 3  ;;  %s3556_s26 = smov [#allocation2]  }
   0x3   : > { %s230_s27 = sshll.u32 %s3556_s26, 4  ;;  %p4456_p3 = scmp.eq.s32.totalorder %s3614_s25, 0  ;;  %s231_s27 = int_to_ptr.vmem [resolvable:$true] %s230_s27 }
   0x4   : > { %p3618_p2 = pnand %p3182_p0, %p206_p1  ;;  %s3516_s9 = scalar_lea.hbm %s4454_s6, 576 }
   0x5   : > { %p3517_p6 = scmp.ne.s32.totalorder %s4454_s6, %s3516_s9  ;;  %p3523_p10 = scmp.lt.u32.totalorder %s3516_s9, %s4454_s6 }
   0x6   : > { %s4465_s28 = scalar_select %p3618_p2, 1, 0 }
   0x7   : > { %p3460_p4 = pneg %p3618_p2 }
   0x9   : > { %p3627_p5 = pnand %p4456_p3, %p3460_p4 }
   0xb   : > { %p3518_p7 = pneg %p3627_p5 }
   0xd   : > { %p3519_p8 = pnand %p3518_p7, %p3517_p6 }
   0xf   : > { %p3520_p9 = pneg %p3519_p8 }
  0x11   : > { %p3525_p11 = pnand %p3523_p10, %p3520_p9 }
  0x13   : > { %3528 = shalt.err (!%p3525_p11)
}
  0x14   : > { %s3529_s14 = scalar_lea.vmem %s231_s27, 576  ;;  %p3537_p1 = scmp.lt.s32.totalorder %s231_s27, %s231_s27 }
  0x15   : > { %p3530_p12 = scmp.ne.s32.totalorder %s231_s27, %s3529_s14  ;;  %p3538_p4 = scmp.lt.s32.totalorder %s3529_s14, %s3529_s14 }
  0x17   : > { %p3532_p13 = pnand %p3530_p12, %p3518_p7  ;;  %p3539_p3 = por %p3538_p4, %p3537_p1 }
  0x19   : > { %p3533_p0 = pneg %p3532_p13 }
  0x1b   : > { %p3540_p2 = pnand %p3539_p3, %p3533_p0 }
  0x1d   : > { %3543 = shalt.err (!%p3540_p2)
}
  0x1e   : > { %s3557_s15 = smov 64   ;;  %s3558_s16 = smov 4  }
  0x1f   : > { %3463 = dma.hbm_to_vmem [thread:$0]  (!%p3627_p5), %s4454_s6, 576, %s231_s27, [#allocation3], %s3557_s15, %s3557_s15, %s3558_s16  }
  0x20   : > { %p4467_p6 = scmp.ne.s32.totalorder %s4465_s28, 0 }
  0x22   : > { %262 = sbr.rel (%p4467_p6) target bundleno = 965 (0x3c5), region = 48 }
  0x29   : > { %p4468_p8 = scmp.eq.s32.totalorder %s3614_s25, 0 }
  0x2b   : > { %3549 = dma.done.wait (%p4468_p8), [#allocation3], 576   ;;  %p4469_p7 = pmov %p4468_p8 }
  0x2c   : > { %p299_p2 = scmp.lt.s32.totalorder %s3614_s25, 1  ;;  %v4458_v8 = vmov 0   ;;  %s3561_s28 = smov 22   ;;  %v335_v9 = vlaneseq  ;;  %v390_v14 = vld [vmem:[#allocation2 + $0x4] sm:$0xf]  ;;  %vm442_vm2 = vcmask 1041408  }
  0x2d   : > { %3551 = vsyncadd (%p4469_p7), [#allocation3], 4294966720  ;;  %487 = vmatprep.mubr.bf16.mxu0 %v4458_v8  ;;  %540 = vmatprep.mubr.bf16.mxu1 %v4458_v8  ;;  %s3562_s29 = smov 20   ;;  %s3563_s30 = smov 1   ;;  %v342_v24 = vld [vmem:[#allocation2] sm:$0xf] }
  0x2e   : > { %s4482_s25 = smov (!%p299_p2, %s3614_s25), 1  ;;  %3487 = vset.pattern.permute.xlu1 %v4458_v8  ;;  %3486 = vset.pattern.permute.xlu0 %v4458_v8  ;;  %s3564_s8 = smov 127   ;;  %v345_v10 = vshrl.u32 %v335_v9, 7  ;;  %v3749_v11 = vand.u32 127, %v335_v9  ;;  %v3488_v48 = vld [vmem:[%s4450_s2 + $0x10] sm:$0xff]   ;;  %vm435_vm3 = vcmask 31744  }
  0x2f   : > { %s3655_s19 = sshll.u32 %s4482_s25, 4  ;;  %s3559_s25 = smov 21   ;;  %v709_v50 = vld [vmem:[#allocation2 + $0x8] sm:$0xf]  ;;  %vm2129_vm10 = vcmask 261120  }
  0x30   : > { %s3661_s22 = scalar_lea.vmem %s4448_s0, %s3655_s19  ;;  %s308_s27 = scalar_lea.vmem %s4449_s1, %s3655_s19  ;;  %v3751_v12 = vsub.s32 0, %v345_v10  ;;  %v3753_v13 = vsub.s32 3, %v345_v10  ;;  %v3755_v15 = vsub.s32 2, %v345_v10  ;;  %v3757_v16 = vsub.s32 1, %v345_v10 }
  0x31   : > { %v316_v0 = vld [vmem:[%s3661_s22 + $0x8] sm:$0xff]  ;;  %v315_v2 = vld [vmem:[%s3661_s22] sm:$0xff]  ;;  %s3565_s9 = smov 108   ;;  %s3566_s10 = smov 107   ;;  %vm384_vm0 = vcmp.lt.s32.totalorder %v3749_v11, 21  ;;  %vm337_vm1 = vcmp.lt.s32.totalorder %v3749_v11, 22 }
  0x32   : > { %v318_v1 = vld [vmem:[%s308_s27 + $0x8] sm:$0xff]  ;;  %v317_v4 = vld [vmem:[%s308_s27] sm:$0xff]  ;;  %s3567_s11 = smov 106   ;;  %v3761_v19 = vrot.slane %v390_v14, %v3751_v12  ;;  %v3764_v20 = vrot.slane %v390_v14, %v3753_v13  ;;  %v3767_v21 = vrot.slane %v390_v14, %v3755_v15  ;;  %v3770_v22 = vrot.slane %v390_v14, %v3757_v16  ;;  %v3489_v14 = vld [vmem:[%s4450_s2 + $0x18] sm:$0xff]  }
  0x33   : > { %v3669_v3 = vadd.f32 %v318_v1, %v316_v0  ;;  %v3671_v5 = vadd.f32 %v317_v4, %v315_v2  ;;  %v3785_v33 = vrot.slane %v342_v24, %v3757_v16  ;;  %v3793_v43 = vrot.slane %v342_v24, %v3751_v12 }
  0x34   : > { %v3799_v46 = vrot.slane %v342_v24, %v3755_v15  ;;  %v3802_v47 = vrot.slane %v342_v24, %v3753_v13  ;;  %vm703_vm4 = vcmp.lt.s32.totalorder %v3749_v11, 20  ;;  %v3820_v59 = vrot.slane %v709_v50, %v3757_v16  ;;  %v908_v24 = vld [vmem:[#allocation2 + $0xc] sm:$0xf] }
  0x35   : > { %380 = vrot.lane.b32.xlu1 %v3669_v3, %s3559_s25  ;;  %v3677_v6 = vcombine.high %v3669_v3, %v3669_v3  ;;  %376 = vrot.lane.b32.xlu0 %v3671_v5, %s3559_s25  ;;  %v3683_v7 = vcombine.high %v3671_v5, %v3671_v5  ;;  %v3829_v4 = vrot.slane %v709_v50, %v3751_v12  ;;  %vm902_vm5 = vcmp.lt.s32.totalorder %v3749_v11, 1 }
  0x36   : > { %vm1260_vm6 = vcmp.lt.s32.totalorder %v3749_v11, 127  ;;  %vm1459_vm7 = vcmp.lt.s32.totalorder %v3749_v11, 108  ;;  %vm1658_vm8 = vcmp.lt.s32.totalorder %v3749_v11, 107  ;;  %vm1857_vm9 = vcmp.lt.s32.totalorder %v3749_v11, 106 }
  0x39   : > { %382 = vrot.lane.b32.xlu1 %v3677_v6, %s3559_s25  ;;  %378 = vrot.lane.b32.xlu0 %v3683_v7, %s3559_s25 }
  0x3d   : > { %329 = vrot.lane.b32.xlu1 %v3683_v7, %s3561_s28  ;;  %327 = vrot.lane.b32.xlu0 %v3671_v5, %s3561_s28 }
  0x41   : > { %333 = vrot.lane.b32.xlu1 %v3677_v6, %s3561_s28  ;;  %331 = vrot.lane.b32.xlu0 %v3669_v3, %s3561_s28 }
  0x45   : > { %697 = vrot.lane.b32.xlu1 %v3683_v7, %s3562_s29  ;;  %695 = vrot.lane.b32.xlu0 %v3671_v5, %s3562_s29 }
  0x49   : > { %701 = vrot.lane.b32.xlu1 %v3677_v6, %s3562_s29  ;;  %699 = vrot.lane.b32.xlu0 %v3669_v3, %s3562_s29 }
  0x4d   : > { %896 = vrot.lane.b32.xlu1 %v3683_v7, %s3563_s30  ;;  %894 = vrot.lane.b32.xlu0 %v3671_v5, %s3563_s30 }
  0x51   : > { %900 = vrot.lane.b32.xlu1 %v3677_v6, %s3563_s30  ;;  %898 = vrot.lane.b32.xlu0 %v3669_v3, %s3563_s30 }
  0x55   : > { %1254 = vrot.lane.b32.xlu1 %v3683_v7, %s3564_s8  ;;  %1252 = vrot.lane.b32.xlu0 %v3671_v5, %s3564_s8 }
  0x59   : > { %1258 = vrot.lane.b32.xlu1 %v3677_v6, %s3564_s8  ;;  %1256 = vrot.lane.b32.xlu0 %v3669_v3, %s3564_s8 }
  0x5d   : > { %1453 = vrot.lane.b32.xlu1 %v3683_v7, %s3565_s9  ;;  %1451 = vrot.lane.b32.xlu0 %v3671_v5, %s3565_s9 }
  0x61   : > { %1457 = vrot.lane.b32.xlu1 %v3677_v6, %s3565_s9  ;;  %1455 = vrot.lane.b32.xlu0 %v3669_v3, %s3565_s9 }
  0x65   : > { %1652 = vrot.lane.b32.xlu1 %v3683_v7, %s3566_s10  ;;  %1650 = vrot.lane.b32.xlu0 %v3671_v5, %s3566_s10 }
  0x69   : > { %1656 = vrot.lane.b32.xlu1 %v3677_v6, %s3566_s10  ;;  %1654 = vrot.lane.b32.xlu0 %v3669_v3, %s3566_s10 }
  0x6d   : > { %1851 = vrot.lane.b32.xlu1 %v3683_v7, %s3567_s11  ;;  %1849 = vrot.lane.b32.xlu0 %v3671_v5, %s3567_s11 }
  0x71   : > { %1855 = vrot.lane.b32.xlu1 %v3677_v6, %s3567_s11  ;;  %1853 = vrot.lane.b32.xlu0 %v3669_v3, %s3567_s11 }
  0xa7   : > { %v381_v17 = vpop.permute.xlu1 %380  ;;  %v377_v18 = vpop.permute.xlu0 %376 }
  0xab   : > { %v383_v23 = vpop.permute.xlu1 %382  ;;  %v379_v27 = vpop.permute.xlu0 %378 }
  0xac   : > { %v385_v25 = vsel %vm384_vm0, %v381_v17, %v383_v23  ;;  %v388_v26 = vsel %vm384_vm0, %v383_v23, %v377_v18  ;;  %v386_v29 = vsel %vm384_vm0, %v379_v27, %v381_v17  ;;  %v387_v30 = vsel %vm384_vm0, %v377_v18, %v379_v27 }
  0xad   : > { %v412_v28 = vmul.f32 %v3761_v19, %v388_v26  ;;  %v415_v31 = vmul.f32 %v3764_v20, %v385_v25  ;;  %v414_v32 = vmul.f32 %v3767_v21, %v386_v29  ;;  %v413_v34 = vmul.f32 %v3770_v22, %v387_v30 }
  0xae   : > { %v3838_v17 = vrot.slane %v709_v50, %v3755_v15  ;;  %v3841_v18 = vrot.slane %v709_v50, %v3753_v13  ;;  %v2051_v50 = vld [vmem:[%s4451_s3 + $0x18] sm:$0xff] }
  0xaf   : > { %v330_v35 = vpop.permute.xlu1 %329  ;;  %v424_v36 = vpack.c.bf16 %v415_v31, %v415_v31  ;;  %v421_v37 = vpack.c.bf16 %v412_v28, %v412_v28  ;;  %v328_v38 = vpop.permute.xlu0 %327  ;;  %v422_v39 = vpack.c.bf16 %v413_v34, %v413_v34  ;;  %v423_v40 = vpack.c.bf16 %v414_v32, %v414_v32 }
  0xb0   : > { %v340_v41 = vsel %vm337_vm1, %v328_v38, %v330_v35  ;;  %v3856_v34 = vrot.slane %v908_v24, %v3757_v16 }
  0xb1   : > { %3202 = vmatprep.subr.msk.bf16.mxu1 %vm442_vm2, %v424_v36  ;;  %v444_v42 = vsel %vm442_vm2, %v421_v37, 0  ;;  %v365_v44 = vmul.f32 %v3785_v33, %v340_v41  ;;  %3199 = vmatprep.subr.msk.bf16.mxu0 %vm442_vm2, %v422_v39  ;;  %v450_v45 = vsel %vm442_vm2, %v423_v40, 0  ;;  %v2048_v36 = vld [vmem:[%s4451_s3] sm:$0xff] }
  0xb2   : > { %456 = vmatpush1.bf16.msra.mxu0 %v444_v42  ;;  %509 = vmatpush1.bf16.msra.mxu1 %v450_v45  ;;  %v3490_v45 = vld [vmem:[%s4450_s2] sm:$0xff]  }
  0xb3   : > { %v334_v49 = vpop.permute.xlu1 %333  ;;  %v373_v51 = vpack.c.bf16 %v365_v44, %v365_v44  ;;  %v332_v53 = vpop.permute.xlu0 %331  ;;  %v2050_v44 = vld [vmem:[%s4451_s3 + $0x10] sm:$0xff]  ;;  %2054 = vperm.xlu0 %3486, %v2048_v36  }
  0xb4   : > { %v341_v52 = vsel %vm337_vm1, %v334_v49, %v328_v38  ;;  %v338_v55 = vsel %vm337_vm1, %v332_v53, %v334_v49  ;;  %v339_v56 = vsel %vm337_vm1, %v330_v35, %v332_v53  ;;  %v2049_v35 = vld [vmem:[%s4451_s3 + $0x8] sm:$0xff]  ;;  %v3878_v49 = vrot.slane %v908_v24, %v3753_v13 }
  0xb5   : > { %v364_v54 = vmul.f32 %v3793_v43, %v341_v52  ;;  %v366_v57 = vmul.f32 %v3799_v46, %v339_v56  ;;  %v367_v58 = vmul.f32 %v3802_v47, %v338_v55  ;;  %3200 = vmatmul.mubr.msk.bf16.vlgmr.msra.gmra.mrb[0].mxu0 %vm435_vm3, %v3488_v48  ;;  %3203 = vmatmul.mubr.msk.bf16.vlgmr.msra.gmra.mrb[0].mxu1 %vm435_vm3, %v3488_v48 }
  0xb6   : > { %3207 = vmatprep.subr.msk.bf16.mxu0 %vm442_vm2, %v373_v51  ;;  %497 = vmatprep.mubr.bf16.mxu0 %v4458_v8 }
  0xb7   : > { %v372_v60 = vpack.c.bf16 %v364_v54, %v364_v54  ;;  %v698_v61 = vpop.permute.xlu1 %697  ;;  %v374_v62 = vpack.c.bf16 %v366_v57, %v366_v57  ;;  %v375_v63 = vpack.c.bf16 %v367_v58, %v367_v58  ;;  %v696_v0 = vpop.permute.xlu0 %695  ;;  %550 = vmatprep.mubr.bf16.mxu1 %v4458_v8  ;;  %2059 = vperm.xlu1 %3487, %v2049_v35   ;;  %v3075_v58 = vld [vmem:[%s4453_s5] sm:$0xf] }
  0xb8   : > { %v706_v2 = vsel %vm703_vm4, %v696_v0, %v698_v61  ;;  %2069 = vperm.xlu0 %3486, %v2051_v50  }
  0xb9   : > { %v578_v1 = vsel %vm442_vm2, %v372_v60, 0  ;;  %3210 = vmatprep.subr.msk.bf16.mxu1 %vm442_vm2, %v375_v63  ;;  %v584_v9 = vsel %vm442_vm2, %v374_v62, 0  ;;  %v732_v10 = vmul.f32 %v3820_v59, %v706_v2  ;;  %v3896_v60 = vrot.slane %v908_v24, %v3751_v12 }
  0xba   : > { %590 = vmatpush1.bf16.msra.mxu0 %v578_v1  ;;  %643 = vmatpush1.bf16.msra.mxu1 %v584_v9  ;;  %v3491_v1 = vld [vmem:[%s4450_s2 + $0x8] sm:$0xff]  }
  0xbb   : > { %v702_v23 = vpop.permute.xlu1 %701  ;;  %v741_v25 = vpack.c.bf16 %v732_v10, %v732_v10  ;;  %v700_v27 = vpop.permute.xlu0 %699  ;;  %2064 = vperm.xlu1 %3487, %v2050_v44  }
  0xbc   : > { %v707_v26 = vsel %vm703_vm4, %v702_v23, %v696_v0  ;;  %v704_v29 = vsel %vm703_vm4, %v700_v27, %v702_v23  ;;  %v705_v30 = vsel %vm703_vm4, %v698_v61, %v700_v27  ;;  %v3899_v61 = vrot.slane %v908_v24, %v3755_v15  ;;  %v3492_v23 = vld [vmem:[%s4450_s2 + $0x20] sm:$0xff]  }
  0xbd   : > { %v731_v28 = vmul.f32 %v3829_v4, %v707_v26  ;;  %3201 = vmatmul.mubr.msk.bf16.gmra.mrb[4].mxu0 %vm435_vm3, %v3489_v14  ;;  %3204 = vmatmul.mubr.msk.bf16.gmra.mrb[4].mxu1 %vm435_vm3, %v3489_v14  ;;  %v733_v31 = vmul.f32 %v3838_v17, %v705_v30  ;;  %v734_v32 = vmul.f32 %v3841_v18, %v704_v29  ;;  %v1266_v30 = vld [vmem:[#allocation2 + $0x14] sm:$0xf] }
  0xbe   : > { %621 = vmatprep.mubr.bf16.mxu0 %v4458_v8  ;;  %674 = vmatprep.mubr.bf16.mxu1 %v4458_v8  ;;  %v1099_v26 = vpack.c.bf16 %v3683_v7, %v3683_v7  ;;  %v1101_v29 = vpack.c.bf16 %v3677_v6, %v3677_v6  ;;  %v3493_v7 = vld [vmem:[%s4450_s2 + $0x28] sm:$0xff]   ;;  %v3939_v35 = vrot.slane %v1266_v30, %v3757_v16 }
  0xbf   : > { %v897_v37 = vpop.permute.xlu1 %896  ;;  %v740_v38 = vpack.c.bf16 %v731_v28, %v731_v28  ;;  %v742_v39 = vpack.c.bf16 %v733_v31, %v733_v31  ;;  %v743_v40 = vpack.c.bf16 %v734_v32, %v734_v32  ;;  %3219 = vmatprep.subr.msk.bf16.mxu0 %vm442_vm2, %v741_v25  ;;  %v895_v41 = vpop.permute.xlu0 %894  ;;  %3078 = vperm.xlu1 %3487, %v3075_v58  }
  0xc0   : > { %v905_v42 = vsel %vm902_vm5, %v895_v41, %v897_v37  ;;  %v3936_v32 = vrot.slane %v1266_v30, %v3753_v13 }
  0xc1   : > { %3222 = vmatprep.subr.msk.bf16.mxu1 %vm442_vm2, %v743_v40  ;;  %v931_v48 = vmul.f32 %v3856_v34, %v905_v42  ;;  %v767_v52 = vsel %vm442_vm2, %v742_v39, 0  ;;  %v761_v53 = vsel %vm442_vm2, %v740_v38, 0  ;;  %v1098_v38 = vpack.c.bf16 %v3671_v5, %v3671_v5  ;;  %v3494_v42 = vld [vmem:[%s4450_s2 + $0x30] sm:$0xff]  }
  0xc2   : > { %v1100_v39 = vpack.c.bf16 %v3669_v3, %v3669_v3  ;;  %v3964_v3 = vrot.slane %v1266_v30, %v3751_v12  ;;  %v3968_v5 = vrot.slane %v1266_v30, %v3755_v15 }
  0xc3   : > { %v901_v51 = vpop.permute.xlu1 %900  ;;  %v899_v54 = vpop.permute.xlu0 %898  ;;  %v940_v55 = vpack.c.bf16 %v931_v48, %v931_v48  ;;  %v1119_v44 = vsel %vm442_vm2, %v1098_v38, 0  ;;  %v3497_v38 = vld [vmem:[%s4450_s2 + $0x48] sm:$0xff]  }
  0xc4   : > { %v903_v56 = vsel %vm902_vm5, %v899_v54, %v901_v51  ;;  %v906_v63 = vsel %vm902_vm5, %v901_v51, %v895_v41  ;;  %v904_v0 = vsel %vm902_vm5, %v897_v37, %v899_v54 }
  0xc5   : > { %3208 = vmatmul.mubr.msk.bf16.vlgmr.msra.gmra.mrb[0].mxu0 %vm435_vm3, %v3490_v45  ;;  %3211 = vmatmul.mubr.msk.bf16.vlgmr.msra.gmra.mrb[0].mxu1 %vm435_vm3, %v3490_v45  ;;  %v933_v57 = vmul.f32 %v3878_v49, %v903_v56  ;;  %v930_v2 = vmul.f32 %v3896_v60, %v906_v63  ;;  %v932_v9 = vmul.f32 %v3899_v61, %v904_v0  ;;  %v1125_v45 = vsel %vm442_vm2, %v1100_v39, 0  ;;  %v1465_v56 = vld [vmem:[#allocation2 + $0x18] sm:$0xf]  ;;  %v1664_v39 = vld [vmem:[#allocation2 + $0x1c] sm:$0xf] }
  0xc6   : > { %826 = vmatpush1.bf16.msra.mxu1 %v767_v52  ;;  %773 = vmatpush1.bf16.msra.mxu0 %v761_v53  ;;  %v3983_v0 = vrot.slane %v1465_v56, %v3753_v13 }
  0xc7   : > { %631 = vmatprep.mubr.bf16.mxu0 %v4458_v8  ;;  %684 = vmatprep.mubr.bf16.mxu1 %v4458_v8  ;;  %v942_v62 = vpack.c.bf16 %v933_v57, %v933_v57  ;;  %v939_v10 = vpack.c.bf16 %v930_v2, %v930_v2  ;;  %v941_v14 = vpack.c.bf16 %v932_v9, %v932_v9  ;;  %v1255_v27 = vpop.permute.xlu1 %1254  ;;  %v1253_v28 = vpop.permute.xlu0 %1252 }
  0xc8   : > { %3231 = vmatprep.subr.msk.bf16.mxu0 %vm442_vm2, %v940_v55  ;;  %v1263_v53 = vsel %vm1260_vm6, %v1253_v28, %v1255_v27  ;;  %v3495_v55 = vld [vmem:[%s4450_s2 + $0x38] sm:$0xff]  }
  0xc9   : > { %3234 = vmatprep.subr.msk.bf16.mxu1 %vm442_vm2, %v942_v62  ;;  %v966_v24 = vsel %vm442_vm2, %v941_v14, 0  ;;  %v960_v25 = vsel %vm442_vm2, %v939_v10, 0  ;;  %v1288_v62 = vmul.f32 %v3964_v3, %v1263_v53 }
  0xcb   : > { %v1259_v6 = vpop.permute.xlu1 %1258  ;;  %v1257_v31 = vpop.permute.xlu0 %1256  ;;  %v1297_v10 = vpack.c.bf16 %v1288_v62, %v1288_v62 }
  0xcc   : > { %v1264_v36 = vsel %vm1260_vm6, %v1259_v6, %v1253_v28  ;;  %v1262_v37 = vsel %vm1260_vm6, %v1255_v27, %v1257_v31  ;;  %v1261_v54 = vsel %vm1260_vm6, %v1257_v31, %v1259_v6  ;;  %v4006_v6 = vrot.slane %v1465_v56, %v3751_v12 }
  0xcd   : > { %3209 = vmatmul.mubr.msk.bf16.gmra.mrb[4].mxu0 %vm435_vm3, %v3491_v1  ;;  %3212 = vmatmul.mubr.msk.bf16.gmra.mrb[4].mxu1 %vm435_vm3, %v3491_v1  ;;  %v1291_v40 = vmul.f32 %v3936_v32, %v1264_v36  ;;  %v1289_v41 = vmul.f32 %v3939_v35, %v1262_v37  ;;  %v1290_v63 = vmul.f32 %v3968_v5, %v1261_v54 }
  0xce   : > { %804 = vmatprep.mubr.bf16.mxu0 %v4458_v8  ;;  %857 = vmatprep.mubr.bf16.mxu1 %v4458_v8  ;;  %v3986_v1 = vrot.slane %v1465_v56, %v3757_v16  ;;  %v4011_v31 = vrot.slane %v1465_v56, %v3755_v15  ;;  %v3498_v56 = vld [vmem:[%s4450_s2 + $0x50] sm:$0xff]  }
  0xcf   : > { %v1300_v48 = vpack.c.bf16 %v1291_v40, %v1291_v40  ;;  %v1298_v50 = vpack.c.bf16 %v1289_v41, %v1289_v41  ;;  %v1454_v51 = vpop.permute.xlu1 %1453  ;;  %v1452_v52 = vpop.permute.xlu0 %1451  ;;  %v1299_v14 = vpack.c.bf16 %v1290_v63, %v1290_v63 }
  0xd0   : > { %v1462_v36 = vsel %vm1459_vm7, %v1452_v52, %v1454_v51 }
  0xd1   : > { %v1324_v27 = vsel %vm442_vm2, %v1299_v14, 0  ;;  %v4054_v14 = vrot.slane %v1664_v39, %v3755_v15 }
  0xd3   : > { %v1458_v57 = vpop.permute.xlu1 %1457  ;;  %v1456_v58 = vpop.permute.xlu0 %1455 }
  0xd4   : > { %v1463_v2 = vsel %vm1459_vm7, %v1458_v57, %v1452_v52  ;;  %v1461_v9 = vsel %vm1459_vm7, %v1454_v51, %v1456_v58  ;;  %v1460_v37 = vsel %vm1459_vm7, %v1456_v58, %v1458_v57 }
  0xd5   : > { %3220 = vmatmul.mubr.msk.bf16.vlgmr.msra.gmra.mrb[0].mxu0 %vm435_vm3, %v3492_v23  ;;  %3223 = vmatmul.mubr.msk.bf16.vlgmr.msra.gmra.mrb[0].mxu1 %vm435_vm3, %v3492_v23  ;;  %v1490_v23 = vmul.f32 %v3983_v0, %v1463_v2 }
  0xd6   : > { %1025 = vmatpush1.bf16.msra.mxu1 %v966_v24  ;;  %972 = vmatpush1.bf16.msra.mxu0 %v960_v25  ;;  %v1488_v24 = vmul.f32 %v3986_v1, %v1461_v9  ;;  %v3496_v25 = vld [vmem:[%s4450_s2 + $0x40] sm:$0xff]  }
  0xd7   : > { %814 = vmatprep.mubr.bf16.mxu0 %v4458_v8  ;;  %867 = vmatprep.mubr.bf16.mxu1 %v4458_v8  ;;  %v1499_v28 = vpack.c.bf16 %v1490_v23, %v1490_v23  ;;  %v1651_v30 = vpop.permute.xlu0 %1650 }
  0xd8   : > { %3243 = vmatprep.subr.msk.bf16.mxu0 %vm442_vm2, %v1099_v26  ;;  %3246 = vmatprep.subr.msk.bf16.mxu1 %vm442_vm2, %v1101_v29  ;;  %v1318_v26 = vsel %vm442_vm2, %v1297_v10, 0  ;;  %v1497_v29 = vpack.c.bf16 %v1488_v24, %v1488_v24  ;;  %v4049_v10 = vrot.slane %v1664_v39, %v3751_v12 }
  0xdb   : > { %v1655_v41 = vpop.permute.xlu0 %1654 }
  0xdd   : > { %3221 = vmatmul.mubr.msk.bf16.gmra.mrb[4].mxu0 %vm435_vm3, %v3493_v7  ;;  %3224 = vmatmul.mubr.msk.bf16.gmra.mrb[4].mxu1 %vm435_vm3, %v3493_v7  ;;  %v1653_v7 = vpop.permute.xlu1 %1652 }
  0xde   : > { %1003 = vmatprep.mubr.bf16.mxu0 %v4458_v8  ;;  %1056 = vmatprep.mubr.bf16.mxu1 %v4458_v8  ;;  %v1660_v51 = vsel %vm1658_vm8, %v1653_v7, %v1655_v41  ;;  %v1661_v23 = vsel %vm1658_vm8, %v1651_v30, %v1653_v7 }
  0xdf   : > { %v1850_v9 = vpop.permute.xlu0 %1849 }
  0xe1   : > { %v1657_v40 = vpop.permute.xlu1 %1656 }
  0xe2   : > { %v1659_v24 = vsel %vm1658_vm8, %v1655_v41, %v1657_v40  ;;  %v3500_v41 = vld [vmem:[%s4450_s2 + $0x60] sm:$0xff]  }
  0xe3   : > { %v1688_v7 = vmul.f32 %v4054_v14, %v1659_v24  ;;  %v3505_v24 = vld [vmem:[%s4450_s2 + $0x88] sm:$0xff]  }
  0xe5   : > { %3232 = vmatmul.mubr.msk.bf16.vlgmr.msra.gmra.mrb[0].mxu0 %vm435_vm3, %v3494_v42  ;;  %3235 = vmatmul.mubr.msk.bf16.vlgmr.msra.gmra.mrb[0].mxu1 %vm435_vm3, %v3494_v42  ;;  %v1487_v42 = vmul.f32 %v4006_v6, %v1462_v36  ;;  %v1852_v2 = vpop.permute.xlu1 %1851 }
  0xe6   : > { %1131 = vmatpush1.bf16.msra.mxu0 %v1119_v44  ;;  %1013 = vmatprep.mubr.bf16.mxu0 %v4458_v8  ;;  %v1489_v44 = vmul.f32 %v4011_v31, %v1460_v37 }
  0xe7   : > { %1066 = vmatprep.mubr.bf16.mxu1 %v4458_v8  ;;  %1184 = vmatpush1.bf16.msra.mxu1 %v1125_v45  ;;  %v4026_v45 = vrot.slane %v1664_v39, %v3753_v13  ;;  %v1496_v52 = vpack.c.bf16 %v1487_v42, %v1487_v42 }
  0xe8   : > { %3255 = vmatprep.subr.msk.bf16.mxu0 %vm442_vm2, %v1298_v50  ;;  %3258 = vmatprep.subr.msk.bf16.mxu1 %vm442_vm2, %v1300_v48  ;;  %v4029_v48 = vrot.slane %v1664_v39, %v3757_v16  ;;  %v1662_v50 = vsel %vm1658_vm8, %v1657_v40, %v1651_v30  ;;  %v1498_v53 = vpack.c.bf16 %v1489_v44, %v1489_v44 }
  0xe9   : > { %v1689_v54 = vmul.f32 %v4026_v45, %v1662_v50  ;;  %v1517_v57 = vsel %vm442_vm2, %v1496_v52, 0 }
  0xea   : > { %v1523_v58 = vsel %vm442_vm2, %v1498_v53, 0 }
  0xeb   : > { %v1698_v62 = vpack.c.bf16 %v1689_v54, %v1689_v54  ;;  %v1860_v54 = vsel %vm1857_vm9, %v1850_v9, %v1852_v2 }
  0xed   : > { %3233 = vmatmul.mubr.msk.bf16.gmra.mrb[4].mxu0 %vm435_vm3, %v3495_v55  ;;  %3236 = vmatmul.mubr.msk.bf16.gmra.mrb[4].mxu1 %vm435_vm3, %v3495_v55  ;;  %v1687_v55 = vmul.f32 %v4029_v48, %v1660_v51 }
  0xee   : > { %1162 = vmatprep.mubr.bf16.mxu0 %v4458_v8  ;;  %1215 = vmatprep.mubr.bf16.mxu1 %v4458_v8 }
  0xef   : > { %v1696_v63 = vpack.c.bf16 %v1687_v55, %v1687_v55 }
  0xf5   : > { %3244 = vmatmul.mubr.msk.bf16.vlgmr.msra.gmra.mrb[0].mxu0 %vm435_vm3, %v3496_v25  ;;  %3247 = vmatmul.mubr.msk.bf16.vlgmr.msra.gmra.mrb[0].mxu1 %vm435_vm3, %v3496_v25  ;;  %v3499_v25 = vld [vmem:[%s4450_s2 + $0x58] sm:$0xff]  }
  0xf6   : > { %1330 = vmatpush1.bf16.msra.mxu0 %v1318_v26  ;;  %1383 = vmatpush1.bf16.msra.mxu1 %v1324_v27  ;;  %v1863_v26 = vld [vmem:[#allocation2 + $0x20] sm:$0xf]  ;;  %v1856_v27 = vpop.permute.xlu1 %1855 }
  0xf7   : > { %1172 = vmatprep.mubr.bf16.mxu0 %v4458_v8  ;;  %1225 = vmatprep.mubr.bf16.mxu1 %v4458_v8  ;;  %v4069_v30 = vrot.slane %v1863_v26, %v3753_v13  ;;  %v4072_v36 = vrot.slane %v1863_v26, %v3757_v16  ;;  %v1861_v37 = vsel %vm1857_vm9, %v1856_v27, %v1850_v9  ;;  %v3503_v9 = vld [vmem:[%s4450_s2 + $0x78] sm:$0xff]  }
  0xf8   : > { %3267 = vmatprep.subr.msk.bf16.mxu0 %vm442_vm2, %v1497_v29  ;;  %3270 = vmatprep.subr.msk.bf16.mxu1 %vm442_vm2, %v1499_v28  ;;  %v1854_v28 = vpop.permute.xlu0 %1853  ;;  %v1686_v29 = vmul.f32 %v4049_v10, %v1661_v23  ;;  %v1697_v13 = vpack.c.bf16 %v1688_v7, %v1688_v7  ;;  %v4092_v52 = vrot.slane %v1863_v26, %v3751_v12  ;;  %v3501_v12 = vld [vmem:[%s4450_s2 + $0x68] sm:$0xff]   ;;  %v3504_v23 = vld [vmem:[%s4450_s2 + $0x80] sm:$0xff]  }
  0xf9   : > { %4470 = vst [vmem:[#allocation5_spill] sm:$0xff] %v4069_v30  ;;  %4471 = vst [vmem:[#allocation6_spill] sm:$0xff] %v4072_v36  ;;  %v1888_v40 = vmul.f32 %v4069_v30, %v1861_v37  ;;  %v4097_v53 = vrot.slane %v1863_v26, %v3755_v15  ;;  %v1858_v55 = vsel %vm1857_vm9, %v1854_v28, %v1856_v27 }
  0xfa   : > { %v1695_v39 = vpack.c.bf16 %v1686_v29, %v1686_v29  ;;  %v1722_v44 = vsel %vm442_vm2, %v1697_v13, 0  ;;  %4472 = vst [vmem:[#allocation7_spill] sm:$0xff] %v4092_v52 }
  0xfb   : > { %v1897_v50 = vpack.c.bf16 %v1888_v40, %v1888_v40  ;;  %4473 = vst [vmem:[#allocation8_spill] sm:$0xff] %v4097_v53 }
  0xfc   : > { %v1716_v42 = vsel %vm442_vm2, %v1695_v39, 0 }
  0xfd   : > { %3245 = vmatmul.mubr.msk.bf16.gmra.mrb[4].mxu0 %vm435_vm3, %v3497_v38  ;;  %3248 = vmatmul.mubr.msk.bf16.gmra.mrb[4].mxu1 %vm435_vm3, %v3497_v38  ;;  %v1859_v38 = vsel %vm1857_vm9, %v1852_v2, %v1854_v28 }
  0xfe   : > { %1361 = vmatprep.mubr.bf16.mxu0 %v4458_v8  ;;  %1414 = vmatprep.mubr.bf16.mxu1 %v4458_v8  ;;  %v1886_v16 = vmul.f32 %v4072_v36, %v1859_v38 }
 0x100   : > { %v1895_v51 = vpack.c.bf16 %v1886_v16, %v1886_v16 }
 0x105   : > { %3256 = vmatmul.mubr.msk.bf16.vlgmr.msra.gmra.mrb[0].mxu0 %vm435_vm3, %v3498_v56  ;;  %3259 = vmatmul.mubr.msk.bf16.vlgmr.msra.gmra.mrb[0].mxu1 %vm435_vm3, %v3498_v56  ;;  %v1885_v56 = vmul.f32 %v4092_v52, %v1860_v54 }
 0x106   : > { %1529 = vmatpush1.bf16.msra.mxu0 %v1517_v57  ;;  %1582 = vmatpush1.bf16.msra.mxu1 %v1523_v58  ;;  %v1887_v57 = vmul.f32 %v4097_v53, %v1858_v55 }
 0x107   : > { %1371 = vmatprep.mubr.bf16.mxu0 %v4458_v8  ;;  %1424 = vmatprep.mubr.bf16.mxu1 %v4458_v8  ;;  %v1894_v15 = vpack.c.bf16 %v1885_v56, %v1885_v56 }
 0x108   : > { %3279 = vmatprep.subr.msk.bf16.mxu0 %vm442_vm2, %v1696_v63  ;;  %3282 = vmatprep.subr.msk.bf16.mxu1 %vm442_vm2, %v1698_v62  ;;  %v1896_v58 = vpack.c.bf16 %v1887_v57, %v1887_v57  ;;  %v3502_v62 = vld [vmem:[%s4450_s2 + $0x70] sm:$0xff]  }
 0x109   : > { %v1915_v63 = vsel %vm442_vm2, %v1894_v15, 0 }
 0x10a   : > { %v1921_v2 = vsel %vm442_vm2, %v1896_v58, 0 }
 0x10d   : > { %3257 = vmatmul.mubr.msk.bf16.gmra.mrb[4].mxu0 %vm435_vm3, %v3499_v25  ;;  %3260 = vmatmul.mubr.msk.bf16.gmra.mrb[4].mxu1 %vm435_vm3, %v3499_v25 }
 0x10e   : > { %1560 = vmatprep.mubr.bf16.mxu0 %v4458_v8  ;;  %1613 = vmatprep.mubr.bf16.mxu1 %v4458_v8 }
 0x115   : > { %3268 = vmatmul.mubr.msk.bf16.vlgmr.msra.gmra.mrb[0].mxu0 %vm435_vm3, %v3500_v41  ;;  %3271 = vmatmul.mubr.msk.bf16.vlgmr.msra.gmra.mrb[0].mxu1 %vm435_vm3, %v3500_v41 }
 0x116   : > { %1728 = vmatpush1.bf16.msra.mxu0 %v1716_v42  ;;  %1781 = vmatpush1.bf16.msra.mxu1 %v1722_v44 }
 0x117   : > { %1570 = vmatprep.mubr.bf16.mxu0 %v4458_v8  ;;  %1623 = vmatprep.mubr.bf16.mxu1 %v4458_v8 }
 0x118   : > { %3291 = vmatprep.subr.msk.bf16.mxu0 %vm442_vm2, %v1895_v51  ;;  %3294 = vmatprep.subr.msk.bf16.mxu1 %vm442_vm2, %v1897_v50 }
 0x11d   : > { %3269 = vmatmul.mubr.msk.bf16.gmra.mrb[4].mxu0 %vm435_vm3, %v3501_v12  ;;  %3272 = vmatmul.mubr.msk.bf16.gmra.mrb[4].mxu1 %vm435_vm3, %v3501_v12 }
 0x11e   : > { %1759 = vmatprep.mubr.bf16.mxu0 %v4458_v8  ;;  %1812 = vmatprep.mubr.bf16.mxu1 %v4458_v8 }
 0x125   : > { %3280 = vmatmul.mubr.msk.bf16.vlgmr.msra.gmra.mrb[0].mxu0 %vm435_vm3, %v3502_v62  ;;  %3283 = vmatmul.mubr.msk.bf16.vlgmr.msra.gmra.mrb[0].mxu1 %vm435_vm3, %v3502_v62 }
 0x126   : > { %1927 = vmatpush1.bf16.msra.mxu0 %v1915_v63  ;;  %1980 = vmatpush1.bf16.msra.mxu1 %v1921_v2 }
 0x127   : > { %1769 = vmatprep.mubr.bf16.mxu0 %v4458_v8  ;;  %1822 = vmatprep.mubr.bf16.mxu1 %v4458_v8 }
 0x12d   : > { %3281 = vmatmul.mubr.msk.bf16.gmra.mrb[4].mxu0 %vm435_vm3, %v3503_v9  ;;  %3284 = vmatmul.mubr.msk.bf16.gmra.mrb[4].mxu1 %vm435_vm3, %v3503_v9 }
 0x12e   : > { %1958 = vmatprep.mubr.bf16.mxu0 %v4458_v8  ;;  %2011 = vmatprep.mubr.bf16.mxu1 %v4458_v8 }
 0x132   : > { %v2055_v25 = vpop.permute.xlu0 %2054 }
 0x135   : > { %3292 = vmatmul.mubr.msk.bf16.vlgmr.msra.gmra.mrb[0].mxu0 %vm435_vm3, %v3504_v23  ;;  %3295 = vmatmul.mubr.msk.bf16.vlgmr.msra.gmra.mrb[0].mxu1 %vm435_vm3, %v3504_v23 }
 0x136   : > { %1968 = vmatprep.mubr.bf16.mxu0 %v4458_v8  ;;  %2021 = vmatprep.mubr.bf16.mxu1 %v4458_v8  ;;  %v2060_v26 = vpop.permute.xlu1 %2059 }
 0x13a   : > { %v2065_v2 = vpop.permute.xlu1 %2064 }
 0x13d   : > { %3293 = vmatmul.mubr.msk.bf16.gmra.mrb[4].mxu0 %vm435_vm3, %v3505_v24  ;;  %3296 = vmatmul.mubr.msk.bf16.gmra.mrb[4].mxu1 %vm435_vm3, %v3505_v24 }
 0x13e   : > { %2165 = vmatprep.mubr.bf16.mxu0 %v4458_v8  ;;  %2206 = vmatprep.mubr.bf16.mxu1 %v4458_v8 }
 0x208   : > { %v1960_v27 = vpop.f32.mrb[0].mxu0  ;;  %v2013_v28 = vpop.f32.mrb[0].mxu1 }
 0x209   : > { %v2072_v29 = vadd.f32 %v2055_v25, %v1960_v27  ;;  %v2074_v7 = vadd.f32 %v2055_v25, %v2013_v28  ;;  %v1962_v37 = vpop.f32.mrb[1].mxu0  ;;  %v2015_v38 = vpop.f32.mrb[1].mxu1 }
 0x20a   : > { %v2073_v39 = vadd.f32 %v2055_v25, %v1962_v37  ;;  %v2075_v13 = vadd.f32 %v2055_v25, %v2015_v38  ;;  %v1964_v40 = vpop.f32.mrb[2].mxu0  ;;  %v2017_v16 = vpop.f32.mrb[2].mxu1 }
 0x20b   : > { %v2088_v41 = vmul.f32 0.2, %v2072_v29  ;;  %v2090_v42 = vmul.f32 0.2, %v2074_v7  ;;  %v2076_v44 = vadd.f32 %v2060_v26, %v1964_v40  ;;  %v2078_v50 = vadd.f32 %v2060_v26, %v2017_v16  ;;  %v2019_v51 = vpop.f32.mrb[3].mxu1  ;;  %v1966_v54 = vpop.f32.mrb[3].mxu0 }
 0x20c   : > { %v2089_v55 = vmul.f32 0.2, %v2073_v39  ;;  %v2091_v12 = vmul.f32 0.2, %v2075_v13  ;;  %v2079_v56 = vadd.f32 %v2060_v26, %v2019_v51  ;;  %v2077_v57 = vadd.f32 %v2060_v26, %v1966_v54  ;;  %v2070_v27 = vpop.permute.xlu0 %2069 }
 0x20d   : > { %v2092_v15 = vmul.f32 0.2, %v2076_v44  ;;  %v2094_v58 = vmul.f32 0.2, %v2078_v50  ;;  %v2104_v9 = vmax.f32 %v2072_v29, %v2088_v41  ;;  %v2106_v23 = vmax.f32 %v2074_v7, %v2090_v42 }
 0x20e   : > { %v2095_v62 = vmul.f32 0.2, %v2079_v56  ;;  %v2093_v63 = vmul.f32 0.2, %v2077_v57  ;;  %v2105_v28 = vmax.f32 %v2073_v39, %v2089_v55  ;;  %v2107_v37 = vmax.f32 %v2075_v13, %v2091_v12 }
 0x20f   : > { %v2108_v24 = vmax.f32 %v2076_v44, %v2092_v15  ;;  %v2110_v25 = vmax.f32 %v2078_v50, %v2094_v58 }
 0x210   : > { %v2111_v38 = vmax.f32 %v2079_v56, %v2095_v62  ;;  %v2109_v40 = vmax.f32 %v2077_v57, %v2093_v63  ;;  %v1970_v16 = vpop.f32.mrb[4].mxu0  ;;  %v2023_v8 = vpop.f32.mrb[4].mxu1 }
 0x211   : > { %v4144_v30 = vpack.c.bf16 %v2108_v24, %v2104_v9  ;;  %v4146_v51 = vpack.c.bf16 %v2110_v25, %v2106_v23  ;;  %v2080_v26 = vadd.f32 %v2065_v2, %v1970_v16  ;;  %v2082_v54 = vadd.f32 %v2065_v2, %v2023_v8  ;;  %v1972_v53 = vpop.f32.mrb[5].mxu0  ;;  %v2025_v36 = vpop.f32.mrb[5].mxu1 }
 0x212   : > { %v4148_v52 = vpack.c.bf16 %v2111_v38, %v2107_v37  ;;  %v4150_v29 = vpack.c.bf16 %v2109_v40, %v2105_v28  ;;  %v2081_v7 = vadd.f32 %v2065_v2, %v1972_v53  ;;  %v2083_v41 = vadd.f32 %v2065_v2, %v2025_v36  ;;  %v1974_v39 = vpop.f32.mrb[6].mxu0  ;;  %v2027_v13 = vpop.f32.mrb[6].mxu1 }
 0x213   : > { %v2096_v42 = vmul.f32 0.2, %v2080_v26  ;;  %v2098_v44 = vmul.f32 0.2, %v2082_v54  ;;  %v2084_v50 = vadd.f32 %v2070_v27, %v1974_v39  ;;  %v2086_v55 = vadd.f32 %v2070_v27, %v2027_v13  ;;  %v1976_v12 = vpop.f32.mrb[7].mxu0  ;;  %v2029_v56 = vpop.f32.mrb[7].mxu1 }
 0x214   : > { %v2097_v57 = vmul.f32 0.2, %v2081_v7  ;;  %v2099_v15 = vmul.f32 0.2, %v2083_v41  ;;  %v2085_v58 = vadd.f32 %v2070_v27, %v1976_v12  ;;  %v2087_v8 = vadd.f32 %v2070_v27, %v2029_v56  ;;  %2133 = vmatprep.subr.bf16.mxu0 %v4150_v29  ;;  %2174 = vmatprep.subr.bf16.mxu1 %v4148_v52  ;;  %v3305_v13 = vld [vmem:[%s4452_s4 + $0x6] sm:$0x3] }
 0x215   : > { %v2100_v62 = vmul.f32 0.2, %v2084_v50  ;;  %v2102_v63 = vmul.f32 0.2, %v2086_v55  ;;  %2134 = vmatpush1.bf16.msra.mxu0 %v4144_v30  ;;  %2175 = vmatpush1.bf16.msra.mxu1 %v4146_v51  ;;  %v2112_v2 = vmax.f32 %v2080_v26, %v2096_v42  ;;  %v2114_v9 = vmax.f32 %v2082_v54, %v2098_v44  ;;  %v2128_v26 = vld [vmem:[%s4452_s4] sm:$0x3] }
 0x216   : > { %v2101_v36 = vmul.f32 0.2, %v2085_v58  ;;  %v2103_v53 = vmul.f32 0.2, %v2087_v8  ;;  %v2113_v25 = vmax.f32 %v2081_v7, %v2097_v57  ;;  %v2115_v28 = vmax.f32 %v2083_v41, %v2099_v15  ;;  %v3299_v7 = vld [vmem:[%s4452_s4 + $0x2] sm:$0x3] }
 0x217   : > { %v2116_v23 = vmax.f32 %v2084_v50, %v2100_v62  ;;  %v2118_v24 = vmax.f32 %v2086_v55, %v2102_v63  ;;  %v4474_v54 = vmov 0   ;;  %v3302_v41 = vld [vmem:[%s4452_s4 + $0x4] sm:$0x3]  ;;  %v3308_v42 = vld [vmem:[%s4452_s4 + $0x8] sm:$0x3] }
 0x218   : > { %v2117_v37 = vmax.f32 %v2085_v58, %v2101_v36  ;;  %v2119_v27 = vmax.f32 %v2087_v8, %v2103_v53  ;;  %v3311_v44 = vld [vmem:[%s4452_s4 + $0xa] sm:$0x3]  ;;  %v3314_v50 = vld [vmem:[%s4452_s4 + $0xc] sm:$0x3]  ;;  %v3317_v55 = vld [vmem:[%s4452_s4 + $0xe] sm:$0x3] }
 0x219   : > { %v4156_v38 = vpack.c.bf16 %v2116_v23, %v2112_v2  ;;  %v4158_v40 = vpack.c.bf16 %v2118_v24, %v2114_v9 }
 0x21a   : > { %v4160_v16 = vpack.c.bf16 %v2117_v37, %v2113_v25  ;;  %v4162_v39 = vpack.c.bf16 %v2119_v27, %v2115_v28 }
 0x21c   : > { %2135 = vmatprep.subr.bf16.mxu0 %v4160_v16  ;;  %2176 = vmatprep.subr.bf16.mxu1 %v4162_v39 }
 0x21d   : > { %2136 = vmatpush1.bf16.msra.mxu0 %v4156_v38  ;;  %2177 = vmatpush1.bf16.msra.mxu1 %v4158_v40 }
 0x21e   : > { %2240 = vmatprep.subr.bf16.mxu0 %v4150_v29  ;;  %2281 = vmatprep.subr.bf16.mxu1 %v4148_v52 }
 0x220   : > { %3297 = vmatmul.mubr.msk.bf16.vlgmr.msra.gmra.mrb[8].mxu0 %vm2129_vm10, %v2128_v26  ;;  %3298 = vmatmul.mubr.msk.bf16.vlgmr.msra.gmra.mrb[8].mxu1 %vm2129_vm10, %v2128_v26 }
 0x221   : > { %2241 = vmatpush1.bf16.msra.mxu0 %v4144_v30  ;;  %2282 = vmatpush1.bf16.msra.mxu1 %v4146_v51 }
 0x222   : > { %2242 = vmatprep.subr.bf16.mxu0 %v4160_v16  ;;  %2283 = vmatprep.subr.bf16.mxu1 %v4162_v39 }
 0x223   : > { %2272 = vmatprep.mubr.bf16.mxu0 %v4474_v54  ;;  %2313 = vmatprep.mubr.bf16.mxu1 %v4474_v54 }
 0x225   : > { %2243 = vmatpush1.bf16.msra.mxu0 %v4156_v38  ;;  %2284 = vmatpush1.bf16.msra.mxu1 %v4158_v40 }
 0x226   : > { %2347 = vmatprep.subr.bf16.mxu0 %v4150_v29  ;;  %2388 = vmatprep.subr.bf16.mxu1 %v4148_v52 }
 0x228   : > { %3300 = vmatmul.mubr.msk.bf16.vlgmr.msra.gmra.mrb[12].mxu0 %vm2129_vm10, %v3299_v7  ;;  %3301 = vmatmul.mubr.msk.bf16.vlgmr.msra.gmra.mrb[12].mxu1 %vm2129_vm10, %v3299_v7 }
 0x229   : > { %2348 = vmatpush1.bf16.msra.mxu0 %v4144_v30  ;;  %2389 = vmatpush1.bf16.msra.mxu1 %v4146_v51 }
 0x22a   : > { %2349 = vmatprep.subr.bf16.mxu0 %v4160_v16  ;;  %2390 = vmatprep.subr.bf16.mxu1 %v4162_v39 }
 0x22b   : > { %2379 = vmatprep.mubr.bf16.mxu0 %v4474_v54  ;;  %2420 = vmatprep.mubr.bf16.mxu1 %v4474_v54 }
 0x22d   : > { %2350 = vmatpush1.bf16.msra.mxu0 %v4156_v38  ;;  %2391 = vmatpush1.bf16.msra.mxu1 %v4158_v40 }
 0x22e   : > { %2454 = vmatprep.subr.bf16.mxu0 %v4150_v29  ;;  %2495 = vmatprep.subr.bf16.mxu1 %v4148_v52 }
 0x230   : > { %3303 = vmatmul.mubr.msk.bf16.vlgmr.msra.gmra.mrb[16].mxu0 %vm2129_vm10, %v3302_v41  ;;  %3304 = vmatmul.mubr.msk.bf16.vlgmr.msra.gmra.mrb[16].mxu1 %vm2129_vm10, %v3302_v41 }
 0x231   : > { %2455 = vmatpush1.bf16.msra.mxu0 %v4144_v30  ;;  %2496 = vmatpush1.bf16.msra.mxu1 %v4146_v51 }
 0x232   : > { %2456 = vmatprep.subr.bf16.mxu0 %v4160_v16  ;;  %2497 = vmatprep.subr.bf16.mxu1 %v4162_v39 }
 0x233   : > { %2486 = vmatprep.mubr.bf16.mxu0 %v4474_v54  ;;  %2527 = vmatprep.mubr.bf16.mxu1 %v4474_v54 }
 0x235   : > { %2457 = vmatpush1.bf16.msra.mxu0 %v4156_v38  ;;  %2498 = vmatpush1.bf16.msra.mxu1 %v4158_v40 }
 0x236   : > { %2561 = vmatprep.subr.bf16.mxu0 %v4150_v29  ;;  %2602 = vmatprep.subr.bf16.mxu1 %v4148_v52 }
 0x238   : > { %3306 = vmatmul.mubr.msk.bf16.vlgmr.msra.gmra.mrb[20].mxu0 %vm2129_vm10, %v3305_v13  ;;  %3307 = vmatmul.mubr.msk.bf16.vlgmr.msra.gmra.mrb[20].mxu1 %vm2129_vm10, %v3305_v13 }
 0x239   : > { %2562 = vmatpush1.bf16.msra.mxu0 %v4144_v30  ;;  %2603 = vmatpush1.bf16.msra.mxu1 %v4146_v51 }
 0x23a   : > { %2563 = vmatprep.subr.bf16.mxu0 %v4160_v16  ;;  %2604 = vmatprep.subr.bf16.mxu1 %v4162_v39 }
 0x23b   : > { %2593 = vmatprep.mubr.bf16.mxu0 %v4474_v54  ;;  %2634 = vmatprep.mubr.bf16.mxu1 %v4474_v54 }
 0x23d   : > { %2564 = vmatpush1.bf16.msra.mxu0 %v4156_v38  ;;  %2605 = vmatpush1.bf16.msra.mxu1 %v4158_v40 }
 0x23e   : > { %2652 = vmatprep.subr.bf16.mxu0 %v4150_v29  ;;  %2693 = vmatprep.subr.bf16.mxu1 %v4148_v52 }
 0x240   : > { %3309 = vmatmul.mubr.msk.bf16.vlgmr.msra.gmra.mrb[24].mxu0 %vm2129_vm10, %v3308_v42  ;;  %3310 = vmatmul.mubr.msk.bf16.vlgmr.msra.gmra.mrb[24].mxu1 %vm2129_vm10, %v3308_v42 }
 0x241   : > { %2653 = vmatpush1.bf16.msra.mxu0 %v4144_v30  ;;  %2694 = vmatpush1.bf16.msra.mxu1 %v4146_v51 }
 0x242   : > { %2654 = vmatprep.subr.bf16.mxu0 %v4160_v16  ;;  %2695 = vmatprep.subr.bf16.mxu1 %v4162_v39 }
 0x243   : > { %2684 = vmatprep.mubr.bf16.mxu0 %v4474_v54  ;;  %2725 = vmatprep.mubr.bf16.mxu1 %v4474_v54 }
 0x245   : > { %2655 = vmatpush1.bf16.msra.mxu0 %v4156_v38  ;;  %2696 = vmatpush1.bf16.msra.mxu1 %v4158_v40 }
 0x246   : > { %2759 = vmatprep.subr.bf16.mxu0 %v4150_v29  ;;  %2800 = vmatprep.subr.bf16.mxu1 %v4148_v52 }
 0x248   : > { %3312 = vmatmul.mubr.msk.bf16.vlgmr.msra.gmra.mrb[28].mxu0 %vm2129_vm10, %v3311_v44  ;;  %3313 = vmatmul.mubr.msk.bf16.vlgmr.msra.gmra.mrb[28].mxu1 %vm2129_vm10, %v3311_v44 }
 0x249   : > { %2760 = vmatpush1.bf16.msra.mxu0 %v4144_v30  ;;  %2801 = vmatpush1.bf16.msra.mxu1 %v4146_v51 }
 0x24a   : > { %2761 = vmatprep.subr.bf16.mxu0 %v4160_v16  ;;  %2802 = vmatprep.subr.bf16.mxu1 %v4162_v39 }
 0x24b   : > { %2791 = vmatprep.mubr.bf16.mxu0 %v4474_v54  ;;  %2832 = vmatprep.mubr.bf16.mxu1 %v4474_v54 }
 0x24d   : > { %2762 = vmatpush1.bf16.msra.mxu0 %v4156_v38  ;;  %2803 = vmatpush1.bf16.msra.mxu1 %v4158_v40 }
 0x24e   : > { %2866 = vmatprep.subr.bf16.mxu0 %v4150_v29  ;;  %2907 = vmatprep.subr.bf16.mxu1 %v4148_v52 }
 0x250   : > { %3315 = vmatmul.mubr.msk.bf16.vlgmr.msra.gmra.mrb[32].mxu0 %vm2129_vm10, %v3314_v50  ;;  %3316 = vmatmul.mubr.msk.bf16.vlgmr.msra.gmra.mrb[32].mxu1 %vm2129_vm10, %v3314_v50 }
 0x251   : > { %2867 = vmatpush1.bf16.msra.mxu0 %v4144_v30  ;;  %2908 = vmatpush1.bf16.msra.mxu1 %v4146_v51 }
 0x252   : > { %2868 = vmatprep.subr.bf16.mxu0 %v4160_v16  ;;  %2909 = vmatprep.subr.bf16.mxu1 %v4162_v39 }
 0x253   : > { %2898 = vmatprep.mubr.bf16.mxu0 %v4474_v54  ;;  %2939 = vmatprep.mubr.bf16.mxu1 %v4474_v54 }
 0x255   : > { %2869 = vmatpush1.bf16.msra.mxu0 %v4156_v38  ;;  %2910 = vmatpush1.bf16.msra.mxu1 %v4158_v40 }
 0x256   : > { %2973 = vmatprep.subr.bf16.mxu0 %v4150_v29  ;;  %3014 = vmatprep.subr.bf16.mxu1 %v4148_v52  ;;  %v3320_v52 = vld [vmem:[%s4452_s4 + $0x10] sm:$0x3] }
 0x258   : > { %3318 = vmatmul.mubr.msk.bf16.vlgmr.msra.gmra.mrb[36].mxu0 %vm2129_vm10, %v3317_v55  ;;  %3319 = vmatmul.mubr.msk.bf16.vlgmr.msra.gmra.mrb[36].mxu1 %vm2129_vm10, %v3317_v55 }
 0x259   : > { %2974 = vmatpush1.bf16.msra.mxu0 %v4144_v30  ;;  %3015 = vmatpush1.bf16.msra.mxu1 %v4146_v51 }
 0x25a   : > { %2975 = vmatprep.subr.bf16.mxu0 %v4160_v16  ;;  %3016 = vmatprep.subr.bf16.mxu1 %v4162_v39 }
 0x25b   : > { %3005 = vmatprep.mubr.bf16.mxu0 %v4474_v54  ;;  %3046 = vmatprep.mubr.bf16.mxu1 %v4474_v54 }
 0x25d   : > { %2976 = vmatpush1.bf16.msra.mxu0 %v4156_v38  ;;  %3017 = vmatpush1.bf16.msra.mxu1 %v4158_v40 }
 0x260   : > { %3321 = vmatmul.mubr.msk.bf16.vlgmr.msra.gmra.mrb[40].mxu0 %vm2129_vm10, %v3320_v52  ;;  %3322 = vmatmul.mubr.msk.bf16.vlgmr.msra.gmra.mrb[40].mxu1 %vm2129_vm10, %v3320_v52 }
 0x2f3   : > { %v2167_v30 = vpop.f32.mrb[8].mxu0  ;;  %v2208_v51 = vpop.f32.mrb[8].mxu1 }
 0x2f4   : > { %2215 = vrot.lane.b32.xlu1 %v2167_v30, %s3561_s28  ;;  %v2169_v29 = vpop.f32.mrb[9].mxu0  ;;  %v2210_v12 = vpop.f32.mrb[9].mxu1 }
 0x2f5   : > { %2217 = vrot.lane.b32.xlu0 %v2169_v29, %s3561_s28  ;;  %v2171_v56 = vpop.f32.mrb[10].mxu0  ;;  %v2212_v57 = vpop.f32.mrb[10].mxu1 }
 0x2f6   : > { %v2172_v15 = vpop.f32.mrb[11].mxu0  ;;  %v2213_v58 = vpop.f32.mrb[11].mxu1 }
 0x2f8   : > { %2219 = vrot.lane.b32.xlu1 %v2208_v51, %s3561_s28 }
 0x2f9   : > { %2221 = vrot.lane.b32.xlu0 %v2210_v12, %s3561_s28 }
 0x2fb   : > { %v2274_v8 = vpop.f32.mrb[12].mxu0  ;;  %v2315_v62 = vpop.f32.mrb[12].mxu1 }
 0x2fc   : > { %2322 = vrot.lane.b32.xlu1 %v2274_v8, %s3559_s25  ;;  %v2276_v63 = vpop.f32.mrb[13].mxu0  ;;  %v2317_v36 = vpop.f32.mrb[13].mxu1 }
 0x2fd   : > { %2324 = vrot.lane.b32.xlu0 %v2276_v63, %s3559_s25  ;;  %v2278_v53 = vpop.f32.mrb[14].mxu0  ;;  %v2319_v2 = vpop.f32.mrb[14].mxu1 }
 0x2fe   : > { %v2279_v9 = vpop.f32.mrb[15].mxu0  ;;  %v2320_v23 = vpop.f32.mrb[15].mxu1 }
 0x300   : > { %2326 = vrot.lane.b32.xlu1 %v2315_v62, %s3559_s25 }
 0x301   : > { %2328 = vrot.lane.b32.xlu0 %v2317_v36, %s3559_s25 }
 0x303   : > { %v2381_v24 = vpop.f32.mrb[16].mxu0  ;;  %v2422_v25 = vpop.f32.mrb[16].mxu1 }
 0x304   : > { %2429 = vrot.lane.b32.xlu1 %v2381_v24, %s3562_s29  ;;  %v2383_v28 = vpop.f32.mrb[17].mxu0  ;;  %v2424_v37 = vpop.f32.mrb[17].mxu1 }
 0x305   : > { %2431 = vrot.lane.b32.xlu0 %v2383_v28, %s3562_s29  ;;  %v2385_v27 = vpop.f32.mrb[18].mxu0  ;;  %v2426_v38 = vpop.f32.mrb[18].mxu1 }
 0x306   : > { %v2386_v40 = vpop.f32.mrb[19].mxu0  ;;  %v2427_v16 = vpop.f32.mrb[19].mxu1 }
 0x308   : > { %2433 = vrot.lane.b32.xlu1 %v2422_v25, %s3562_s29 }
 0x309   : > { %2435 = vrot.lane.b32.xlu0 %v2424_v37, %s3562_s29  ;;  %s313_s29 = scalar_lea.vmem %s4455_s7, %s3655_s19 }
 0x30b   : > { %v2488_v39 = vpop.f32.mrb[20].mxu0  ;;  %v2529_v26 = vpop.f32.mrb[20].mxu1 }
 0x30c   : > { %2536 = vrot.lane.b32.xlu1 %v2488_v39, %s3563_s30  ;;  %v2490_v54 = vpop.f32.mrb[21].mxu0  ;;  %v2531_v7 = vpop.f32.mrb[21].mxu1 }
 0x30d   : > { %2538 = vrot.lane.b32.xlu0 %v2490_v54, %s3563_s30  ;;  %v2492_v41 = vpop.f32.mrb[22].mxu0  ;;  %v2533_v13 = vpop.f32.mrb[22].mxu1 }
 0x30e   : > { %v2493_v42 = vpop.f32.mrb[23].mxu0  ;;  %v2534_v44 = vpop.f32.mrb[23].mxu1 }
 0x310   : > { %2540 = vrot.lane.b32.xlu1 %v2529_v26, %s3563_s30 }
 0x311   : > { %2542 = vrot.lane.b32.xlu0 %v2531_v7, %s3563_s30 }
 0x313   : > { %v4309_v50 = vpop.f32.mrb[24].mxu0  ;;  %v4311_v55 = vpop.f32.mrb[24].mxu1 }
 0x314   : > { %v4313_v52 = vpop.f32.mrb[25].mxu0  ;;  %v4315_v30 = vpop.f32.mrb[25].mxu1 }
 0x315   : > { %v2599_v51 = vpop.f32.mrb[26].mxu0  ;;  %v2640_v29 = vpop.f32.mrb[26].mxu1 }
 0x316   : > { %v2600_v12 = vpop.f32.mrb[27].mxu0  ;;  %v2641_v56 = vpop.f32.mrb[27].mxu1 }
 0x31b   : > { %v2686_v57 = vpop.f32.mrb[28].mxu0  ;;  %v2727_v15 = vpop.f32.mrb[28].mxu1 }
 0x31c   : > { %2734 = vrot.lane.b32.xlu1 %v2686_v57, %s3564_s8  ;;  %v2688_v58 = vpop.f32.mrb[29].mxu0  ;;  %v2729_v8 = vpop.f32.mrb[29].mxu1 }
 0x31d   : > { %2736 = vrot.lane.b32.xlu0 %v2688_v58, %s3564_s8  ;;  %v2690_v62 = vpop.f32.mrb[30].mxu0  ;;  %v2731_v63 = vpop.f32.mrb[30].mxu1 }
 0x31e   : > { %v2691_v36 = vpop.f32.mrb[31].mxu0  ;;  %v2732_v53 = vpop.f32.mrb[31].mxu1 }
 0x320   : > { %2738 = vrot.lane.b32.xlu1 %v2727_v15, %s3564_s8  ;;  %v4333_v15 = vpop.permute.xlu1 %3078 }
 0x321   : > { %2740 = vrot.lane.b32.xlu0 %v2729_v8, %s3564_s8  ;;  %4475 = vst [vmem:[#allocation9_spill] sm:$0xff] %v4333_v15 }
 0x323   : > { %v2793_v2 = vpop.f32.mrb[32].mxu0  ;;  %v2834_v9 = vpop.f32.mrb[32].mxu1 }
 0x324   : > { %2841 = vrot.lane.b32.xlu1 %v2793_v2, %s3565_s9  ;;  %v2795_v23 = vpop.f32.mrb[33].mxu0  ;;  %v2836_v24 = vpop.f32.mrb[33].mxu1 }
 0x325   : > { %2843 = vrot.lane.b32.xlu0 %v2795_v23, %s3565_s9  ;;  %v2797_v25 = vpop.f32.mrb[34].mxu0  ;;  %v2838_v28 = vpop.f32.mrb[34].mxu1 }
 0x326   : > { %v2798_v37 = vpop.f32.mrb[35].mxu0  ;;  %v2839_v27 = vpop.f32.mrb[35].mxu1 }
 0x328   : > { %2845 = vrot.lane.b32.xlu1 %v2834_v9, %s3565_s9 }
 0x329   : > { %2847 = vrot.lane.b32.xlu0 %v2836_v24, %s3565_s9 }
 0x32b   : > { %v2900_v38 = vpop.f32.mrb[36].mxu0  ;;  %v2941_v40 = vpop.f32.mrb[36].mxu1 }
 0x32c   : > { %2948 = vrot.lane.b32.xlu1 %v2900_v38, %s3566_s10  ;;  %v2902_v16 = vpop.f32.mrb[37].mxu0  ;;  %v2943_v39 = vpop.f32.mrb[37].mxu1 }
 0x32d   : > { %2950 = vrot.lane.b32.xlu0 %v2902_v16, %s3566_s10  ;;  %v2904_v26 = vpop.f32.mrb[38].mxu0  ;;  %v2945_v54 = vpop.f32.mrb[38].mxu1 }
 0x32e   : > { %v2905_v7 = vpop.f32.mrb[39].mxu0  ;;  %v2946_v41 = vpop.f32.mrb[39].mxu1 }
 0x330   : > { %2952 = vrot.lane.b32.xlu1 %v2941_v40, %s3566_s10 }
 0x331   : > { %2954 = vrot.lane.b32.xlu0 %v2943_v39, %s3566_s10 }
 0x333   : > { %v3007_v13 = vpop.f32.mrb[40].mxu0  ;;  %v3048_v42 = vpop.f32.mrb[40].mxu1 }
 0x334   : > { %v3009_v44 = vpop.f32.mrb[41].mxu0  ;;  %v3050_v51 = vpop.f32.mrb[41].mxu1 }
 0x335   : > { %3055 = vrot.lane.b32.xlu0 %v3007_v13, %s3567_s11  ;;  %3057 = vrot.lane.b32.xlu1 %v3009_v44, %s3567_s11  ;;  %v3011_v29 = vpop.f32.mrb[42].mxu0  ;;  %v3052_v12 = vpop.f32.mrb[42].mxu1 }
 0x336   : > { %v3012_v56 = vpop.f32.mrb[43].mxu0  ;;  %v3053_v57 = vpop.f32.mrb[43].mxu1 }
 0x339   : > { %3059 = vrot.lane.b32.xlu0 %v3048_v42, %s3567_s11  ;;  %3061 = vrot.lane.b32.xlu1 %v3050_v51, %s3567_s11 }
 0x366   : > { %v2216_v58 = vpop.permute.xlu1 %2215 }
 0x367   : > { %v2218_v8 = vpop.permute.xlu0 %2217 }
 0x368   : > { %v2225_v7 = vsel %vm337_vm1, %v2216_v58, %v2218_v8 }
 0x369   : > { %v2228_v12 = vmul.f32 %v2225_v7, %v3785_v33 }
 0x36a   : > { %v2220_v62 = vpop.permute.xlu1 %2219 }
 0x36b   : > { %v2222_v63 = vpop.permute.xlu0 %2221 }
 0x36c   : > { %v2226_v51 = vsel %vm337_vm1, %v2222_v63, %v2216_v58  ;;  %v2223_v58 = vsel %vm337_vm1, %v2220_v62, %v2222_v63 }
 0x36e   : > { %v2323_v36 = vpop.permute.xlu1 %2322 }
 0x36f   : > { %v2325_v53 = vpop.permute.xlu0 %2324 }
 0x370   : > { %v2332_v26 = vsel %vm384_vm0, %v2323_v36, %v2325_v53 }
 0x371   : > { %v2335_v42 = vmul.f32 %v2332_v26, %v3770_v22  ;;  %v2224_v26 = vsel %vm337_vm1, %v2218_v8, %v2220_v62 }
 0x372   : > { %v2327_v2 = vpop.permute.xlu1 %2326 }
 0x373   : > { %v2329_v9 = vpop.permute.xlu0 %2328  ;;  %v2331_v29 = vsel %vm384_vm0, %v2325_v53, %v2327_v2 }
 0x374   : > { %v2333_v41 = vsel %vm384_vm0, %v2329_v9, %v2323_v36  ;;  %v2330_v53 = vsel %vm384_vm0, %v2327_v2, %v2329_v9 }
 0x375   : > { %v2334_v56 = vmul.f32 %v2333_v41, %v3761_v19  ;;  %v2227_v19 = vmul.f32 %v2226_v51, %v3793_v43  ;;  %v2339_v41 = vadd.f32 %v2335_v42, %v2228_v12  ;;  %v2337_v43 = vmul.f32 %v2330_v53, %v3764_v20 }
 0x376   : > { %v2430_v23 = vpop.permute.xlu1 %2429 }
 0x377   : > { %v2432_v24 = vpop.permute.xlu0 %2431  ;;  %v2338_v9 = vadd.f32 %v2334_v56, %v2227_v19 }
 0x378   : > { %v2439_v44 = vsel %vm703_vm4, %v2430_v23, %v2432_v24 }
 0x379   : > { %v2442_v33 = vmul.f32 %v2439_v44, %v3820_v59  ;;  %v2229_v59 = vmul.f32 %v2224_v26, %v3799_v46 }
 0x37a   : > { %v2434_v25 = vpop.permute.xlu1 %2433 }
 0x37b   : > { %v2436_v28 = vpop.permute.xlu0 %2435  ;;  %v2438_v8 = vsel %vm703_vm4, %v2432_v24, %v2434_v25 }
 0x37c   : > { %v2440_v57 = vsel %vm703_vm4, %v2436_v28, %v2430_v23  ;;  %v2336_v23 = vmul.f32 %v2331_v29, %v3767_v21  ;;  %v2437_v62 = vsel %vm703_vm4, %v2434_v25, %v2436_v28  ;;  %v2446_v21 = vadd.f32 %v2442_v33, %v2339_v41 }
 0x37d   : > { %v2441_v63 = vmul.f32 %v2440_v57, %v3829_v4  ;;  %v2230_v4 = vmul.f32 %v2223_v58, %v3802_v47  ;;  %v2444_v46 = vmul.f32 %v2437_v62, %v3841_v18 }
 0x37e   : > { %v2537_v37 = vpop.permute.xlu1 %2536  ;;  %v2340_v28 = vadd.f32 %v2336_v23, %v2229_v59 }
 0x37f   : > { %v2539_v27 = vpop.permute.xlu0 %2538  ;;  %v2445_v20 = vadd.f32 %v2441_v63, %v2338_v9  ;;  %v2341_v29 = vadd.f32 %v2337_v43, %v2230_v4 }
 0x380   : > { %v2546_v36 = vsel %vm902_vm5, %v2537_v37, %v2539_v27 }
 0x381   : > { %v2549_v2 = vmul.f32 %v2546_v36, %v3856_v34  ;;  %v2443_v34 = vmul.f32 %v2438_v8, %v3838_v17  ;;  %v2448_v47 = vadd.f32 %v2444_v46, %v2341_v29 }
 0x382   : > { %v2541_v38 = vpop.permute.xlu1 %2540 }
 0x383   : > { %v2543_v40 = vpop.permute.xlu0 %2542  ;;  %v2553_v51 = vadd.f32 %v2549_v2, %v2446_v21  ;;  %v2447_v56 = vadd.f32 %v2443_v34, %v2340_v28 }
 0x384   : > { %v2547_v15 = vsel %vm902_vm5, %v2543_v40, %v2537_v37  ;;  %v2545_v37 = vsel %vm902_vm5, %v2539_v27, %v2541_v38  ;;  %v2544_v24 = vsel %vm902_vm5, %v2541_v38, %v2543_v40 }
 0x385   : > { %v2548_v44 = vmul.f32 %v2547_v15, %v3896_v60  ;;  %v2550_v12 = vmul.f32 %v2545_v37, %v3899_v61  ;;  %v2551_v27 = vmul.f32 %v2544_v24, %v3878_v49  ;;  %v2644_v61 = vadd.f32 %v4313_v52, %v2553_v51  ;;  %v4476_v24 = vld [vmem:[#allocation7_spill] sm:$0xff] }
 0x387   : > { %v2552_v60 = vadd.f32 %v2548_v44, %v2445_v20  ;;  %v2554_v26 = vadd.f32 %v2550_v12, %v2447_v56  ;;  %v2555_v58 = vadd.f32 %v2551_v27, %v2448_v47  ;;  %v4478_v27 = vld [vmem:[#allocation8_spill] sm:$0xff] }
 0x389   : > { %v2643_v19 = vadd.f32 %v4309_v50, %v2552_v60  ;;  %v2645_v62 = vadd.f32 %v4311_v55, %v2554_v26 }
 0x38e   : > { %v2735_v16 = vpop.permute.xlu1 %2734 }
 0x38f   : > { %v2737_v39 = vpop.permute.xlu0 %2736 }
 0x390   : > { %v2744_v38 = vsel %vm1260_vm6, %v2735_v16, %v2737_v39 }
 0x391   : > { %v2746_v57 = vmul.f32 %v2744_v38, %v3964_v3 }
 0x392   : > { %v2739_v54 = vpop.permute.xlu1 %2738 }
 0x393   : > { %v2741_v13 = vpop.permute.xlu0 %2740  ;;  %v2743_v17 = vsel %vm1260_vm6, %v2737_v39, %v2739_v54  ;;  %v2750_v8 = vadd.f32 %v2746_v57, %v2643_v19 }
 0x394   : > { %v2742_v49 = vsel %vm1260_vm6, %v2739_v54, %v2741_v13  ;;  %v2745_v36 = vsel %vm1260_vm6, %v2741_v13, %v2735_v16  ;;  %v2747_v3 = vmul.f32 %v2743_v17, %v3939_v35 }
 0x395   : > { %v2748_v16 = vmul.f32 %v2742_v49, %v3968_v5  ;;  %v2749_v13 = vmul.f32 %v2745_v36, %v3936_v32  ;;  %v2646_v5 = vadd.f32 %v4315_v30, %v2555_v58 }
 0x396   : > { %v2842_v22 = vpop.permute.xlu1 %2841  ;;  %v2751_v63 = vadd.f32 %v2747_v3, %v2644_v61  ;;  %v3515_v3 = vld [vmem:[%s3661_s22 + $0x8] sm:$0xff] }
 0x397   : > { %v2844_v7 = vpop.permute.xlu0 %2843  ;;  %v2752_v9 = vadd.f32 %v2748_v16, %v2645_v62 }
 0x398   : > { %v2851_v18 = vsel %vm1459_vm7, %v2842_v22, %v2844_v7 }
 0x399   : > { %v2853_v52 = vmul.f32 %v2851_v18, %v4006_v6 }
 0x39a   : > { %v2846_v42 = vpop.permute.xlu1 %2845 }
 0x39b   : > { %v2848_v25 = vpop.permute.xlu0 %2847  ;;  %v2850_v53 = vsel %vm1459_vm7, %v2844_v7, %v2846_v42  ;;  %v2857_v2 = vadd.f32 %v2853_v52, %v2750_v8 }
 0x39c   : > { %v2849_v54 = vsel %vm1459_vm7, %v2846_v42, %v2848_v25  ;;  %v2852_v7 = vsel %vm1459_vm7, %v2848_v25, %v2842_v22  ;;  %v2854_v50 = vmul.f32 %v2850_v53, %v3986_v1  ;;  %v2753_v42 = vadd.f32 %v2749_v13, %v2646_v5 }
 0x39d   : > { %v2855_v32 = vmul.f32 %v2849_v54, %v4011_v31  ;;  %v2856_v59 = vmul.f32 %v2852_v7, %v3983_v0 }
 0x39e   : > { %v2949_v40 = vpop.permute.xlu1 %2948  ;;  %v2858_v30 = vadd.f32 %v2854_v50, %v2751_v63 }
 0x39f   : > { %v2951_v15 = vpop.permute.xlu0 %2950  ;;  %v2859_v25 = vadd.f32 %v2855_v32, %v2752_v9  ;;  %v2860_v4 = vadd.f32 %v2856_v59, %v2753_v42 }
 0x3a0   : > { %v2958_v39 = vsel %vm1658_vm8, %v2949_v40, %v2951_v15 }
 0x3a1   : > { %v2960_v35 = vmul.f32 %v2958_v39, %v4049_v10  ;;  %v3514_v39 = vld [vmem:[%s3661_s22] sm:$0xff] }
 0x3a2   : > { %v2953_v33 = vpop.permute.xlu1 %2952 }
 0x3a3   : > { %v2955_v41 = vpop.permute.xlu0 %2954  ;;  %v2957_v23 = vsel %vm1658_vm8, %v2951_v15, %v2953_v33  ;;  %v2964_v31 = vadd.f32 %v2960_v35, %v2857_v2  ;;  %v4480_v15 = vld [vmem:[#allocation9_spill] sm:$0xff] }
 0x3a4   : > { %v2956_v6 = vsel %vm1658_vm8, %v2953_v33, %v2955_v41  ;;  %v2959_v22 = vsel %vm1658_vm8, %v2955_v41, %v2949_v40  ;;  %v2961_v1 = vmul.f32 %v2957_v23, %v4029_v48  ;;  %v4479_v40 = vld [vmem:[#allocation5_spill] sm:$0xff] }
 0x3a5   : > { %v2962_v21 = vmul.f32 %v2956_v6, %v4054_v14  ;;  %v2963_v37 = vmul.f32 %v2959_v22, %v4026_v45  ;;  %v4477_v45 = vld [vmem:[#allocation6_spill] sm:$0xff] }
 0x3a6   : > { %v2965_v0 = vadd.f32 %v2961_v1, %v2858_v30 }
 0x3a7   : > { %v3056_v43 = vpop.permute.xlu0 %3055  ;;  %v3058_v10 = vpop.permute.xlu1 %3057  ;;  %v2966_v28 = vadd.f32 %v2962_v21, %v2859_v25  ;;  %v2967_v29 = vadd.f32 %v2963_v37, %v2860_v4 }
 0x3a8   : > { %v3065_v55 = vsel %vm1857_vm9, %v3056_v43, %v3058_v10 }
 0x3a9   : > { %v3067_v44 = vmul.f32 %v3065_v55, %v4476_v24 }
 0x3ab   : > { %v3071_v34 = vadd.f32 %v3067_v44, %v2964_v31  ;;  %v3060_v48 = vpop.permute.xlu0 %3059  ;;  %v3062_v46 = vpop.permute.xlu1 %3061 }
 0x3ac   : > { %v3064_v20 = vsel %vm1857_vm9, %v3058_v10, %v3060_v48  ;;  %v3063_v14 = vsel %vm1857_vm9, %v3060_v48, %v3062_v46  ;;  %v3066_v51 = vsel %vm1857_vm9, %v3062_v46, %v3056_v43 }
 0x3ad   : > { %v3068_v12 = vmul.f32 %v3064_v20, %v4477_v45  ;;  %v3069_v38 = vmul.f32 %v3063_v14, %v4478_v27  ;;  %v3070_v60 = vmul.f32 %v3066_v51, %v4479_v40  ;;  %v3081_v56 = vadd.f32 %v4480_v15, %v3071_v34 }
 0x3af   : > { %v3072_v47 = vadd.f32 %v3068_v12, %v2965_v0  ;;  %v3073_v17 = vadd.f32 %v3069_v38, %v2966_v28  ;;  %v3074_v18 = vadd.f32 %v3070_v60, %v2967_v29  ;;  %3506 = vtanh.f32 %v3081_v56 }
 0x3b1   : > { %v3082_v57 = vadd.f32 %v4480_v15, %v3072_v47  ;;  %v3083_v61 = vadd.f32 %v4480_v15, %v3073_v17  ;;  %v3084_v11 = vadd.f32 %v4480_v15, %v3074_v18 }
 0x3b3   : > { %3508 = vtanh.f32 %v3082_v57 }
 0x3b4   : > { %3510 = vtanh.f32 %v3083_v61 }
 0x3b5   : > { %3512 = vtanh.f32 %v3084_v11 }
 0x3b9   : > { %v3507_v49 = vpop.eup %3506 }
 0x3bd   : > { %v3509_v36 = vpop.eup %3508 }
 0x3be   : > { %v3511_v26 = vpop.eup %3510  ;;  %v3093_v58 = vcombine.low %v3507_v49, %v3509_v36 }
 0x3bf   : > { %v3513_v53 = vpop.eup %3512 }
 0x3c0   : > { %v3097_v33 = vadd.f32 %v3514_v39, %v3093_v58  ;;  %v3094_v19 = vcombine.low %v3511_v26, %v3513_v53 }
 0x3c2   : > { %3099 = vst [vmem:[%s313_s29] sm:$0xff] %v3097_v33  ;;  %v3098_v52 = vadd.f32 %v3515_v3, %v3094_v19 }
 0x3c4   : > { %3100 = vst [vmem:[%s313_s29 + $0x8] sm:$0xff] %v3098_v52 }
 0x3c5 PF: > { %s18_s24 = sadd.s32 1, %s3554_s24  }
 0x3c6   : > { %p15_p3 = scmp.ge.s32.totalorder %s18_s24, 4  }
 0x3c8   :  { %17 = sbr.rel (!%p15_p3) target bundleno = 1 (0x1), region = 109 }
 0x3cf   :  { %3122 = vsyncpa [#allocation3], 1 }
 0x3d0   :  { %3124 = vsyncpa [#allocation3 + $0x1], 1 }

// kernel: multi_scale_sg_gen_view_forward.5
= control target key start
LH: loop header
LB: loop body
LE: loop exit
PB: predicated region body
PF: predicated region fallthrough
CT: control target
= control target key end

     0   :  { %12 = vsyncpa [#allocation3], 0  ;;  %s2258_s24 = smov 0   ;;  %s2768_s0 = inlined_call_operand.vmem [shape: f32[2,4,256], index: 0, kind: input, shape index: {}]   ;;  %s2769_s1 = inlined_call_operand.vmem [shape: f32[2,4,256], index: 1, kind: input, shape index: {}]   ;;  %s2770_s2 = inlined_call_operand.vmem [shape: bf16[9,32,4], index: 2, kind: input, shape index: {}]   ;;  %s2771_s3 = inlined_call_operand.vmem [shape: f32[32,1], index: 3, kind: input, shape index: {}]   ;;  %s2772_s4 = inlined_call_operand.vmem [shape: bf16[9,4,32], index: 4, kind: input, shape index: {}]   ;;  %s2773_s5 = inlined_call_operand.vmem [shape: f32[4,1], index: 5, kind: input, shape index: {}]   ;;  %s2774_s6 = inlined_call_operand.hbm [shape: f32[9,1,256], index: 6, kind: input, shape index: {}]   ;;  %s2775_s7 = inlined_call_operand.vmem [shape: f32[2,4,256], index: 7, kind: output, shape index: {}]  }
   0x1 LB: > { %s2264_s25 = sadd.s32 4294967295, %s2204_s24   ;;  %p1938_p0 = scmp.ge.s32.totalorder %s2204_s24, 1  ;;  %s2204_s24 = sphi %s2258_s24, %s18_s24  }
   0x2   : > { %p206_p1 = scmp.lt.s32.totalorder %s2204_s24, 3  ;;  %s2206_s26 = smov [#allocation2]  }
   0x3   : > { %s230_s27 = sshll.u32 %s2206_s26, 4  ;;  %p2776_p3 = scmp.eq.s32.totalorder %s2264_s25, 0  ;;  %s231_s27 = int_to_ptr.vmem [resolvable:$true] %s230_s27 }
   0x4   : > { %p2268_p2 = pnand %p1938_p0, %p206_p1  ;;  %s2166_s9 = scalar_lea.hbm %s2774_s6, 288 }
   0x5   : > { %p2167_p6 = scmp.ne.s32.totalorder %s2774_s6, %s2166_s9  ;;  %p2173_p10 = scmp.lt.u32.totalorder %s2166_s9, %s2774_s6 }
   0x6   : > { %s2778_s28 = scalar_select %p2268_p2, 1, 0 }
   0x7   : > { %p2116_p4 = pneg %p2268_p2 }
   0x9   : > { %p2277_p5 = pnand %p2776_p3, %p2116_p4 }
   0xb   : > { %p2168_p7 = pneg %p2277_p5 }
   0xd   : > { %p2169_p8 = pnand %p2168_p7, %p2167_p6 }
   0xf   : > { %p2170_p9 = pneg %p2169_p8 }
  0x11   : > { %p2175_p11 = pnand %p2173_p10, %p2170_p9 }
  0x13   : > { %2178 = shalt.err (!%p2175_p11)
}
  0x14   : > { %s2179_s14 = scalar_lea.vmem %s231_s27, 288  ;;  %p2187_p1 = scmp.lt.s32.totalorder %s231_s27, %s231_s27 }
  0x15   : > { %p2180_p12 = scmp.ne.s32.totalorder %s231_s27, %s2179_s14  ;;  %p2188_p4 = scmp.lt.s32.totalorder %s2179_s14, %s2179_s14 }
  0x17   : > { %p2182_p13 = pnand %p2180_p12, %p2168_p7  ;;  %p2189_p3 = por %p2188_p4, %p2187_p1 }
  0x19   : > { %p2183_p0 = pneg %p2182_p13 }
  0x1b   : > { %p2190_p2 = pnand %p2189_p3, %p2183_p0 }
  0x1d   : > { %2193 = shalt.err (!%p2190_p2)
}
  0x1e   : > { %s2207_s15 = smov 32   ;;  %s2208_s16 = smov 2  }
  0x1f   : > { %2119 = dma.hbm_to_vmem [thread:$0]  (!%p2277_p5), %s2774_s6, 288, %s231_s27, [#allocation3], %s2207_s15, %s2207_s15, %s2208_s16  }
  0x20   : > { %p2780_p6 = scmp.ne.s32.totalorder %s2778_s28, 0 }
  0x21   : > { %p2781_p8 = scmp.eq.s32.totalorder (!%p2780_p6), %s2264_s25, 0 }
  0x22   : > { %262 = sbr.rel (%p2780_p6) target bundleno = 928 (0x3a0), region = 48 }
  0x29   : > { %2199 = dma.done.wait (%p2781_p8), [#allocation3], 288   ;;  %p2782_p7 = pmov %p2781_p8 }
  0x2a   : > { %p299_p2 = scmp.lt.s32.totalorder %s2264_s25, 1  ;;  %v2209_v3 = vmov 0   ;;  %s2211_s28 = smov 1   ;;  %v325_v5 = vlaneseq  ;;  %v1294_v6 = vld [vmem:[%s2771_s3 + $0x8] sm:$0xff]  ;;  %v1293_v7 = vld [vmem:[%s2771_s3] sm:$0xff]  ;;  %v1295_v8 = vld [vmem:[%s2771_s3 + $0x10] sm:$0xff] }
  0x2b   : > { %2201 = vsyncadd (%p2782_p7), [#allocation3], 4294967008  ;;  %614 = vmatprep.mubr.bf16.mxu0 %v2209_v3  ;;  %435 = vmatprep.mubr.bf16.mxu1 %v2209_v3  ;;  %s2212_s29 = smov 127   ;;  %s2213_s30 = smov 113   ;;  %v1296_v9 = vld [vmem:[%s2771_s3 + $0x18] sm:$0xff]  ;;  %vm396_vm2 = vcmask 1041408  }
  0x2c   : > { %s2784_s25 = smov (!%p299_p2, %s2264_s25), 1  ;;  %2143 = vset.pattern.permute.xlu1 %v2209_v3  ;;  %2142 = vset.pattern.permute.xlu0 %v2209_v3  ;;  %s2214_s8 = smov 16   ;;  %v333_v10 = vshrl.u32 %v325_v5, 7  ;;  %v1841_v11 = vld [vmem:[%s2773_s5] sm:$0xf]  ;;  %v2375_v12 = vand.u32 127, %v325_v5 }
  0x2d   : > { %s2305_s19 = sshll.u32 %s2784_s25, 3  ;;  %s2210_s25 = smov 15   ;;  %v539_v15 = vld [vmem:[#allocation2 + $0x4] sm:$0x3]  ;;  %v651_v16 = vld [vmem:[#allocation2 + $0x6] sm:$0x3] }
  0x2e   : > { %s303_s22 = scalar_lea.vmem %s2768_s0, %s2305_s19  ;;  %s308_s27 = scalar_lea.vmem %s2769_s1, %s2305_s19  ;;  %v2377_v13 = vsub.s32 0, %v333_v10  ;;  %v2379_v14 = vsub.s32 1, %v333_v10  ;;  %vm535_vm0 = vcmp.lt.s32.totalorder %v2375_v12, 15  ;;  %vm647_vm1 = vcmp.lt.s32.totalorder %v2375_v12, 1  ;;  %v2144_v40 = vld [vmem:[%s2770_s2 + $0x20] sm:$0xff]   ;;  %v2145_v53 = vld [vmem:[%s2770_s2 + $0x28] sm:$0xff]  }
  0x2f   : > { %v2315_v0 = vld [vmem:[%s303_s22] sm:$0xff]  ;;  %s2215_s9 = smov 112   ;;  %s2216_s10 = smov 17   ;;  %vm389_vm3 = vcmask 31744   ;;  %vm354_vm4 = vcmp.lt.s32.totalorder %v2375_v12, 16  ;;  %vm849_vm5 = vcmp.lt.s32.totalorder %v2375_v12, 127 }
  0x30   : > { %v316_v1 = vld [vmem:[%s308_s27] sm:$0xff]  ;;  %s2217_s11 = smov 111   ;;  %v2384_v19 = vrot.slane %v539_v15, %v2377_v13  ;;  %v2387_v20 = vrot.slane %v651_v16, %v2377_v13  ;;  %v2390_v21 = vrot.slane %v651_v16, %v2379_v14  ;;  %v2393_v22 = vrot.slane %v539_v15, %v2379_v14  ;;  %v853_v50 = vld [vmem:[#allocation2 + $0xa] sm:$0x3]  ;;  %v2146_v15 = vld [vmem:[%s2770_s2 + $0x30] sm:$0xff]  }
  0x31   : > { %v2318_v2 = vadd.f32 %v316_v1, %v2315_v0  ;;  %v358_v41 = vld [vmem:[#allocation2 + $0x2] sm:$0x3]  ;;  %v330_v56 = vld [vmem:[#allocation2] sm:$0x3]  ;;  %v2445_v57 = vrot.slane %v853_v50, %v2379_v14  ;;  %v2152_v1 = vld [vmem:[%s2770_s2 + $0x10] sm:$0xff]   ;;  %vm327_vm6 = vcmp.lt.s32.totalorder %v2375_v12, 17 }
  0x32   : > { %v2427_v46 = vrot.slane %v358_v41, %v2377_v13  ;;  %v2430_v47 = vrot.slane %v358_v41, %v2379_v14  ;;  %v2466_v5 = vrot.slane %v330_v56, %v2379_v14  ;;  %vm961_vm7 = vcmp.lt.s32.totalorder %v2375_v12, 113 }
  0x33   : > { %531 = vrot.lane.b32.xlu0 %v2318_v2, %s2210_s25  ;;  %643 = vrot.lane.b32.xlu1 %v2318_v2, %s2211_s28  ;;  %v2330_v4 = vcombine.high %v2318_v2, %v2318_v2  ;;  %vm1073_vm8 = vcmp.lt.s32.totalorder %v2375_v12, 112  ;;  %vm1185_vm9 = vcmp.lt.s32.totalorder %v2375_v12, 111  ;;  %vm1346_vm10 = vcmask 261120  }
  0x35   : > { %v761_v43 = vpack.c.bf16 %v2330_v4, %v2330_v4 }
  0x37   : > { %533 = vrot.lane.b32.xlu0 %v2330_v4, %s2210_s25  ;;  %645 = vrot.lane.b32.xlu1 %v2330_v4, %s2211_s28 }
  0x3b   : > { %847 = vrot.lane.b32.xlu1 %v2330_v4, %s2212_s29  ;;  %845 = vrot.lane.b32.xlu0 %v2318_v2, %s2212_s29 }
  0x3f   : > { %959 = vrot.lane.b32.xlu1 %v2330_v4, %s2213_s30  ;;  %957 = vrot.lane.b32.xlu0 %v2318_v2, %s2213_s30 }
  0x43   : > { %352 = vrot.lane.b32.xlu1 %v2330_v4, %s2214_s8  ;;  %350 = vrot.lane.b32.xlu0 %v2318_v2, %s2214_s8 }
  0x47   : > { %1071 = vrot.lane.b32.xlu1 %v2330_v4, %s2215_s9  ;;  %1069 = vrot.lane.b32.xlu0 %v2318_v2, %s2215_s9 }
  0x4b   : > { %323 = vrot.lane.b32.xlu1 %v2330_v4, %s2216_s10  ;;  %321 = vrot.lane.b32.xlu0 %v2318_v2, %s2216_s10 }
  0x4f   : > { %1183 = vrot.lane.b32.xlu1 %v2330_v4, %s2217_s11  ;;  %1181 = vrot.lane.b32.xlu0 %v2318_v2, %s2217_s11  ;;  %v2463_v4 = vrot.slane %v330_v56, %v2377_v13 }
  0x53   : > { %1304 = vperm.xlu1 %2143, %v1294_v6   ;;  %1299 = vperm.xlu0 %2142, %v1293_v7   ;;  %v760_v6 = vpack.c.bf16 %v2318_v2, %v2318_v2 }
  0x57   : > { %1309 = vperm.xlu1 %2143, %v1295_v8   ;;  %1314 = vperm.xlu0 %2142, %v1296_v9  }
  0x5b   : > { %1844 = vperm.xlu1 %2143, %v1841_v11  }
  0xa5   : > { %v532_v17 = vpop.permute.xlu0 %531  ;;  %v644_v18 = vpop.permute.xlu1 %643 }
  0xa9   : > { %v534_v23 = vpop.permute.xlu0 %533  ;;  %v646_v24 = vpop.permute.xlu1 %645 }
  0xaa   : > { %v536_v25 = vsel %vm535_vm0, %v532_v17, %v534_v23  ;;  %v537_v26 = vsel %vm535_vm0, %v534_v23, %v532_v17  ;;  %v648_v27 = vsel %vm647_vm1, %v644_v18, %v646_v24  ;;  %v649_v28 = vsel %vm647_vm1, %v646_v24, %v644_v18 }
  0xab   : > { %v551_v29 = vmul.f32 %v2384_v19, %v537_v26  ;;  %v663_v30 = vmul.f32 %v2387_v20, %v649_v28  ;;  %v664_v31 = vmul.f32 %v2390_v21, %v648_v27  ;;  %v552_v32 = vmul.f32 %v2393_v22, %v536_v25  ;;  %v2154_v25 = vld [vmem:[%s2770_s2 + $0x18] sm:$0xff]  }
  0xac   : > { %v779_v17 = vsel %vm396_vm2, %v760_v6, 0  ;;  %v2492_v27 = vrot.slane %v853_v50, %v2377_v13 }
  0xad   : > { %v670_v33 = vpack.c.bf16 %v663_v30, %v663_v30  ;;  %v671_v34 = vpack.c.bf16 %v664_v31, %v664_v31  ;;  %v559_v35 = vpack.c.bf16 %v552_v32, %v552_v32  ;;  %v558_v36 = vpack.c.bf16 %v551_v29, %v551_v29  ;;  %v2407_v37 = vpop.permute.xlu1 %847  ;;  %v2409_v38 = vpop.permute.xlu0 %845  ;;  %v965_v29 = vld [vmem:[#allocation2 + $0xc] sm:$0x3]  ;;  %v2147_v30 = vld [vmem:[%s2770_s2 + $0x38] sm:$0xff]  }
  0xae   : > { %v851_v62 = vsel %vm849_vm5, %v2407_v37, %v2409_v38  ;;  %v850_v28 = vsel %vm849_vm5, %v2409_v38, %v2407_v37  ;;  %v2507_v32 = vrot.slane %v965_v29, %v2379_v14  ;;  %v2148_v37 = vld [vmem:[%s2770_s2 + $0x40] sm:$0xff]   ;;  %v2531_v41 = vrot.slane %v965_v29, %v2377_v13 }
  0xaf   : > { %1969 = vmatprep.subr.msk.bf16.mxu0 %vm396_vm2, %v559_v35  ;;  %v577_v39 = vsel %vm396_vm2, %v558_v36, 0  ;;  %v689_v42 = vsel %vm396_vm2, %v670_v33, 0  ;;  %v866_v7 = vmul.f32 %v2445_v57, %v851_v62  ;;  %v865_v31 = vmul.f32 %v2492_v27, %v850_v28 }
  0xb0   : > { %583 = vmatpush1.bf16.msra.mxu0 %v577_v39 }
  0xb1   : > { %1978 = vmatprep.subr.msk.bf16.mxu0 %vm396_vm2, %v671_v34  ;;  %v2420_v44 = vpop.permute.xlu1 %959  ;;  %v2422_v45 = vpop.permute.xlu0 %957  ;;  %v873_v18 = vpack.c.bf16 %v866_v7, %v866_v7  ;;  %v2156_v34 = vld [vmem:[%s2770_s2] sm:$0xff]   ;;  %v872_v35 = vpack.c.bf16 %v865_v31, %v865_v31 }
  0xb2   : > { %v963_v33 = vsel %vm961_vm7, %v2420_v44, %v2422_v45 }
  0xb3   : > { %1970 = vmatmul.mubr.msk.bf16.vlgmr.msra.gmra.mrb[0].mxu0 %vm389_vm3, %v2144_v40  ;;  %v978_v36 = vmul.f32 %v2507_v32, %v963_v33  ;;  %v891_v38 = vsel %vm396_vm2, %v872_v35, 0  ;;  %v2158_v40 = vld [vmem:[%s2770_s2 + $0x8] sm:$0xff]  }
  0xb4   : > { %695 = vmatpush1.bf16.msra.mxu0 %v689_v42  ;;  %624 = vmatprep.mubr.bf16.mxu0 %v2209_v3  ;;  %v962_v42 = vsel %vm961_vm7, %v2422_v45, %v2420_v44 }
  0xb5   : > { %1987 = vmatprep.subr.msk.bf16.mxu0 %vm396_vm2, %v761_v43  ;;  %v353_v48 = vpop.permute.xlu1 %352  ;;  %v351_v49 = vpop.permute.xlu0 %350  ;;  %v985_v39 = vpack.c.bf16 %v978_v36, %v978_v36  ;;  %v1077_v43 = vld [vmem:[#allocation2 + $0xe] sm:$0x3] }
  0xb6   : > { %v355_v51 = vsel %vm354_vm4, %v351_v49, %v353_v48  ;;  %v356_v52 = vsel %vm354_vm4, %v353_v48, %v351_v49  ;;  %v2149_v48 = vld [vmem:[%s2770_s2 + $0x48] sm:$0xff]   ;;  %v977_v49 = vmul.f32 %v2531_v41, %v962_v42  ;;  %v2546_v50 = vrot.slane %v1077_v43, %v2379_v14 }
  0xb7   : > { %v370_v54 = vmul.f32 %v2427_v46, %v356_v52  ;;  %v371_v55 = vmul.f32 %v2430_v47, %v355_v51  ;;  %v2150_v52 = vld [vmem:[%s2770_s2 + $0x50] sm:$0xff]  }
  0xb8   : > { %v984_v45 = vpack.c.bf16 %v977_v49, %v977_v49 }
  0xb9   : > { %v378_v58 = vpack.c.bf16 %v371_v55, %v371_v55  ;;  %v377_v59 = vpack.c.bf16 %v370_v54, %v370_v54  ;;  %v2447_v60 = vpop.permute.xlu1 %1071  ;;  %v2449_v61 = vpop.permute.xlu0 %1069  ;;  %v2562_v55 = vrot.slane %v1077_v43, %v2377_v13 }
  0xba   : > { %v1075_v44 = vsel %vm1073_vm8, %v2447_v60, %v2449_v61  ;;  %v1074_v56 = vsel %vm1073_vm8, %v2449_v61, %v2447_v60 }
  0xbb   : > { %1971 = vmatmul.mubr.msk.bf16.gmra.mrb[4].mxu0 %vm389_vm3, %v2145_v53  ;;  %1955 = vmatprep.subr.msk.bf16.mxu1 %vm396_vm2, %v378_v58  ;;  %v398_v63 = vsel %vm396_vm2, %v377_v59, 0  ;;  %v1090_v51 = vmul.f32 %v2546_v50, %v1075_v44  ;;  %v1003_v53 = vsel %vm396_vm2, %v984_v45, 0  ;;  %v1189_v58 = vld [vmem:[#allocation2 + $0x10] sm:$0x3]  ;;  %v2151_v59 = vld [vmem:[%s2770_s2 + $0x58] sm:$0xff]  }
  0xbc   : > { %726 = vmatprep.mubr.bf16.mxu0 %v2209_v3  ;;  %404 = vmatpush1.bf16.msra.mxu1 %v398_v63  ;;  %v2575_v6 = vrot.slane %v1189_v58, %v2379_v14  ;;  %v2589_v14 = vrot.slane %v1189_v58, %v2377_v13  ;;  %v2157_v13 = vld [vmem:[%s2770_s2 + $0x70] sm:$0xff]  }
  0xbd   : > { %v324_v8 = vpop.permute.xlu1 %323  ;;  %v322_v9 = vpop.permute.xlu0 %321  ;;  %v1097_v54 = vpack.c.bf16 %v1090_v51, %v1090_v51 }
  0xbe   : > { %v328_v10 = vsel %vm327_vm6, %v322_v9, %v324_v8  ;;  %v329_v11 = vsel %vm327_vm6, %v324_v8, %v322_v9  ;;  %v2153_v8 = vld [vmem:[%s2770_s2 + $0x60] sm:$0xff]  }
  0xbf   : > { %1956 = vmatmul.mubr.msk.bf16.vlgmr.msra.gmra.mrb[0].mxu1 %vm389_vm3, %v2152_v1  ;;  %v342_v16 = vmul.f32 %v2463_v4, %v329_v11  ;;  %v343_v2 = vmul.f32 %v2466_v5, %v328_v10  ;;  %v1089_v1 = vmul.f32 %v2562_v55, %v1074_v56 }
  0xc0   : > { %445 = vmatprep.mubr.bf16.mxu1 %v2209_v3 }
  0xc1   : > { %v348_v23 = vpack.c.bf16 %v342_v16, %v342_v16  ;;  %v349_v24 = vpack.c.bf16 %v343_v2, %v343_v2  ;;  %v1184_v62 = vpop.permute.xlu1 %1183  ;;  %v1182_v63 = vpop.permute.xlu0 %1181  ;;  %v1096_v60 = vpack.c.bf16 %v1089_v1, %v1089_v1 }
  0xc2   : > { %v1187_v7 = vsel %vm1185_vm9, %v1184_v62, %v1182_v63  ;;  %v1186_v11 = vsel %vm1185_vm9, %v1182_v63, %v1184_v62 }
  0xc3   : > { %1979 = vmatmul.mubr.msk.bf16.vlgmr.msra.gmra.mrb[0].mxu0 %vm389_vm3, %v2146_v15  ;;  %1960 = vmatprep.subr.msk.bf16.mxu1 %vm396_vm2, %v349_v24  ;;  %v473_v26 = vsel %vm396_vm2, %v348_v23, 0  ;;  %v1202_v61 = vmul.f32 %v2575_v6, %v1187_v7  ;;  %v1115_v9 = vsel %vm396_vm2, %v1096_v60, 0  ;;  %v2155_v15 = vld [vmem:[%s2770_s2 + $0x68] sm:$0xff]   ;;  %v1201_v16 = vmul.f32 %v2589_v14, %v1186_v11  ;;  %v2160_v23 = vld [vmem:[%s2770_s2 + $0x80] sm:$0xff]  }
  0xc4   : > { %785 = vmatpush1.bf16.msra.mxu0 %v779_v17  ;;  %736 = vmatprep.mubr.bf16.mxu0 %v2209_v3  ;;  %v2161_v24 = vld [vmem:[%s2770_s2 + $0x88] sm:$0xff]  }
  0xc5   : > { %1996 = vmatprep.subr.msk.bf16.mxu0 %vm396_vm2, %v873_v18  ;;  %479 = vmatpush1.bf16.msra.mxu1 %v473_v26  ;;  %v1209_v10 = vpack.c.bf16 %v1202_v61, %v1202_v61  ;;  %v1208_v2 = vpack.c.bf16 %v1201_v16, %v1201_v16  ;;  %v2159_v18 = vld [vmem:[%s2770_s2 + $0x78] sm:$0xff]  }
  0xc7   : > { %1957 = vmatmul.mubr.msk.bf16.gmra.mrb[4].mxu1 %vm389_vm3, %v2154_v25  ;;  %v1227_v17 = vsel %vm396_vm2, %v1208_v2, 0 }
  0xc8   : > { %510 = vmatprep.mubr.bf16.mxu1 %v2209_v3 }
  0xcb   : > { %1980 = vmatmul.mubr.msk.bf16.gmra.mrb[4].mxu0 %vm389_vm3, %v2147_v30 }
  0xcc   : > { %816 = vmatprep.mubr.bf16.mxu0 %v2209_v3 }
  0xcf   : > { %1961 = vmatmul.mubr.msk.bf16.vlgmr.msra.gmra.mrb[0].mxu1 %vm389_vm3, %v2156_v34 }
  0xd0   : > { %520 = vmatprep.mubr.bf16.mxu1 %v2209_v3 }
  0xd2   : > { %v1300_v36 = vpop.permute.xlu0 %1299  ;;  %v1305_v49 = vpop.permute.xlu1 %1304 }
  0xd3   : > { %1988 = vmatmul.mubr.msk.bf16.vlgmr.msra.gmra.mrb[0].mxu0 %vm389_vm3, %v2148_v37 }
  0xd4   : > { %897 = vmatpush1.bf16.msra.mxu0 %v891_v38  ;;  %826 = vmatprep.mubr.bf16.mxu0 %v2209_v3 }
  0xd5   : > { %2005 = vmatprep.subr.msk.bf16.mxu0 %vm396_vm2, %v985_v39 }
  0xd6   : > { %v1310_v60 = vpop.permute.xlu1 %1309 }
  0xd7   : > { %1962 = vmatmul.mubr.msk.bf16.gmra.mrb[4].mxu1 %vm389_vm3, %v2158_v40 }
  0xd8   : > { %1382 = vmatprep.mubr.bf16.mxu1 %v2209_v3 }
  0xdb   : > { %1989 = vmatmul.mubr.msk.bf16.gmra.mrb[4].mxu0 %vm389_vm3, %v2149_v48 }
  0xdc   : > { %928 = vmatprep.mubr.bf16.mxu0 %v2209_v3 }
  0xe3   : > { %1997 = vmatmul.mubr.msk.bf16.vlgmr.msra.gmra.mrb[0].mxu0 %vm389_vm3, %v2150_v52 }
  0xe4   : > { %1009 = vmatpush1.bf16.msra.mxu0 %v1003_v53  ;;  %938 = vmatprep.mubr.bf16.mxu0 %v2209_v3 }
  0xe5   : > { %2014 = vmatprep.subr.msk.bf16.mxu0 %vm396_vm2, %v1097_v54 }
  0xeb   : > { %1998 = vmatmul.mubr.msk.bf16.gmra.mrb[4].mxu0 %vm389_vm3, %v2151_v59 }
  0xec   : > { %1040 = vmatprep.mubr.bf16.mxu0 %v2209_v3 }
  0xf3   : > { %2006 = vmatmul.mubr.msk.bf16.vlgmr.msra.gmra.mrb[0].mxu0 %vm389_vm3, %v2153_v8 }
  0xf4   : > { %1121 = vmatpush1.bf16.msra.mxu0 %v1115_v9  ;;  %1050 = vmatprep.mubr.bf16.mxu0 %v2209_v3 }
  0xf5   : > { %2023 = vmatprep.subr.msk.bf16.mxu0 %vm396_vm2, %v1209_v10 }
  0xfb   : > { %2007 = vmatmul.mubr.msk.bf16.gmra.mrb[4].mxu0 %vm389_vm3, %v2155_v15 }
  0xfc   : > { %1152 = vmatprep.mubr.bf16.mxu0 %v2209_v3 }
 0x103   : > { %2015 = vmatmul.mubr.msk.bf16.vlgmr.msra.gmra.mrb[0].mxu0 %vm389_vm3, %v2157_v13 }
 0x104   : > { %1233 = vmatpush1.bf16.msra.mxu0 %v1227_v17  ;;  %1162 = vmatprep.mubr.bf16.mxu0 %v2209_v3  ;;  %v1315_v17 = vpop.permute.xlu0 %1314 }
 0x10b   : > { %2016 = vmatmul.mubr.msk.bf16.gmra.mrb[4].mxu0 %vm389_vm3, %v2159_v18 }
 0x10c   : > { %1264 = vmatprep.mubr.bf16.mxu0 %v2209_v3 }
 0x113   : > { %2024 = vmatmul.mubr.msk.bf16.vlgmr.msra.gmra.mrb[0].mxu0 %vm389_vm3, %v2160_v23 }
 0x114   : > { %1274 = vmatprep.mubr.bf16.mxu0 %v2209_v3 }
 0x11b   : > { %2025 = vmatmul.mubr.msk.bf16.gmra.mrb[4].mxu0 %vm389_vm3, %v2161_v24 }
 0x1a2   : > { %v512_v25 = vpop.f32.mrb[0].mxu1 }
 0x1a3   : > { %v514_v26 = vpop.f32.mrb[1].mxu1 }
 0x1a4   : > { %v516_v28 = vpop.f32.mrb[2].mxu1 }
 0x1a5   : > { %v518_v29 = vpop.f32.mrb[3].mxu1 }
 0x1aa   : > { %v522_v30 = vpop.f32.mrb[4].mxu1 }
 0x1ab   : > { %v524_v31 = vpop.f32.mrb[5].mxu1 }
 0x1ac   : > { %v526_v33 = vpop.f32.mrb[6].mxu1 }
 0x1ad   : > { %v528_v34 = vpop.f32.mrb[7].mxu1 }
 0x1e6   : > { %v1266_v35 = vpop.f32.mrb[0].mxu0 }
 0x1e7   : > { %v2048_v37 = vadd.f32 %v1266_v35, %v512_v25  ;;  %v1268_v38 = vpop.f32.mrb[1].mxu0 }
 0x1e8   : > { %v2049_v39 = vadd.f32 %v1268_v38, %v514_v26  ;;  %v1270_v40 = vpop.f32.mrb[2].mxu0 }
 0x1e9   : > { %v1317_v42 = vadd.f32 %v2048_v37, %v1300_v36  ;;  %v2050_v43 = vadd.f32 %v1270_v40, %v516_v28  ;;  %v1272_v48 = vpop.f32.mrb[3].mxu0  ;;  %v2029_v40 = vld [vmem:[%s2772_s4 + $0x4] sm:$0x3] }
 0x1ea   : > { %v1318_v44 = vadd.f32 %v2049_v39, %v1300_v36  ;;  %v2051_v45 = vadd.f32 %v1272_v48, %v518_v29  ;;  %v2027_v39 = vld [vmem:[%s2772_s4 + $0x2] sm:$0x3]  ;;  %v2035_v48 = vld [vmem:[%s2772_s4 + $0xa] sm:$0x3] }
 0x1eb   : > { %v1325_v51 = vmul.f32 0.2, %v1317_v42  ;;  %v1319_v52 = vadd.f32 %v2050_v43, %v1305_v49  ;;  %v2033_v43 = vld [vmem:[%s2772_s4 + $0x8] sm:$0x3] }
 0x1ec   : > { %v1326_v53 = vmul.f32 0.2, %v1318_v44  ;;  %v1320_v54 = vadd.f32 %v2051_v45, %v1305_v49  ;;  %v2037_v49 = vld [vmem:[%s2772_s4 + $0xc] sm:$0x3]  ;;  %v2041_v45 = vld [vmem:[%s2772_s4 + $0x10] sm:$0x3] }
 0x1ed   : > { %v1327_v56 = vmul.f32 0.2, %v1319_v52  ;;  %v1333_v62 = vmax.f32 %v1317_v42, %v1325_v51  ;;  %v2031_v42 = vld [vmem:[%s2772_s4 + $0x6] sm:$0x3] }
 0x1ee   : > { %v1328_v58 = vmul.f32 0.2, %v1320_v54  ;;  %v1276_v59 = vpop.f32.mrb[4].mxu0  ;;  %v1334_v61 = vmax.f32 %v1318_v44, %v1326_v53  ;;  %v2039_v44 = vld [vmem:[%s2772_s4 + $0xe] sm:$0x3] }
 0x1ef   : > { %v1335_v63 = vmax.f32 %v1319_v52, %v1327_v56  ;;  %v2052_v1 = vadd.f32 %v1276_v59, %v522_v30  ;;  %v1278_v7 = vpop.f32.mrb[5].mxu0 }
 0x1f0   : > { %v1336_v8 = vmax.f32 %v1320_v54, %v1328_v58  ;;  %v2053_v9 = vadd.f32 %v1278_v7, %v524_v31  ;;  %v1280_v10 = vpop.f32.mrb[6].mxu0 }
 0x1f1   : > { %v2620_v11 = vpack.c.bf16 %v1335_v63, %v1333_v62  ;;  %v1321_v15 = vadd.f32 %v2052_v1, %v1310_v60  ;;  %v2054_v16 = vadd.f32 %v1280_v10, %v526_v33  ;;  %v1282_v2 = vpop.f32.mrb[7].mxu0 }
 0x1f2   : > { %v2622_v13 = vpack.c.bf16 %v1336_v8, %v1334_v61  ;;  %v1322_v18 = vadd.f32 %v2053_v9, %v1310_v60  ;;  %v2055_v23 = vadd.f32 %v1282_v2, %v528_v34  ;;  %v1345_v34 = vld [vmem:[%s2772_s4] sm:$0x3] }
 0x1f3   : > { %v1329_v24 = vmul.f32 0.2, %v1321_v15  ;;  %v1323_v25 = vadd.f32 %v2054_v16, %v1315_v17 }
 0x1f4   : > { %v1330_v26 = vmul.f32 0.2, %v1322_v18  ;;  %v1324_v28 = vadd.f32 %v2055_v23, %v1315_v17  ;;  %1350 = vmatprep.subr.bf16.mxu1 %v2622_v13 }
 0x1f5   : > { %v1331_v29 = vmul.f32 0.2, %v1323_v25  ;;  %1351 = vmatpush1.bf16.msra.mxu1 %v2620_v11  ;;  %v1337_v31 = vmax.f32 %v1321_v15, %v1329_v24 }
 0x1f6   : > { %v1332_v30 = vmul.f32 0.2, %v1324_v28  ;;  %v1338_v36 = vmax.f32 %v1322_v18, %v1330_v26 }
 0x1f7   : > { %v1339_v35 = vmax.f32 %v1323_v25, %v1331_v29 }
 0x1f8   : > { %v1340_v33 = vmax.f32 %v1324_v28, %v1332_v30 }
 0x1f9   : > { %v1343_v37 = vpack.c.bf16 %v1339_v35, %v1337_v31 }
 0x1fa   : > { %v1344_v38 = vpack.c.bf16 %v1340_v33, %v1338_v36 }
 0x1fc   : > { %1352 = vmatprep.subr.bf16.mxu1 %v1344_v38 }
 0x1fd   : > { %1353 = vmatpush1.bf16.msra.mxu1 %v1343_v37 }
 0x1fe   : > { %1406 = vmatprep.subr.bf16.mxu1 %v2622_v13 }
 0x200   : > { %2026 = vmatmul.mubr.msk.bf16.vlgmr.msra.gmra.mrb[8].mxu1 %vm1346_vm10, %v1345_v34 }
 0x201   : > { %1407 = vmatpush1.bf16.msra.mxu1 %v2620_v11  ;;  %1438 = vmatprep.mubr.bf16.mxu1 %v2209_v3 }
 0x202   : > { %1408 = vmatprep.subr.bf16.mxu1 %v1344_v38 }
 0x205   : > { %1409 = vmatpush1.bf16.msra.mxu1 %v1343_v37 }
 0x206   : > { %1462 = vmatprep.subr.bf16.mxu1 %v2622_v13 }
 0x208   : > { %2028 = vmatmul.mubr.msk.bf16.vlgmr.msra.gmra.mrb[12].mxu1 %vm1346_vm10, %v2027_v39 }
 0x209   : > { %1463 = vmatpush1.bf16.msra.mxu1 %v2620_v11  ;;  %1494 = vmatprep.mubr.bf16.mxu1 %v2209_v3 }
 0x20a   : > { %1464 = vmatprep.subr.bf16.mxu1 %v1344_v38 }
 0x20d   : > { %1465 = vmatpush1.bf16.msra.mxu1 %v1343_v37 }
 0x20e   : > { %1518 = vmatprep.subr.bf16.mxu1 %v2622_v13 }
 0x210   : > { %2030 = vmatmul.mubr.msk.bf16.vlgmr.msra.gmra.mrb[16].mxu1 %vm1346_vm10, %v2029_v40 }
 0x211   : > { %1519 = vmatpush1.bf16.msra.mxu1 %v2620_v11  ;;  %1550 = vmatprep.mubr.bf16.mxu1 %v2209_v3 }
 0x212   : > { %1520 = vmatprep.subr.bf16.mxu1 %v1344_v38 }
 0x215   : > { %1521 = vmatpush1.bf16.msra.mxu1 %v1343_v37 }
 0x216   : > { %1574 = vmatprep.subr.bf16.mxu1 %v2622_v13 }
 0x218   : > { %2032 = vmatmul.mubr.msk.bf16.vlgmr.msra.gmra.mrb[20].mxu1 %vm1346_vm10, %v2031_v42 }
 0x219   : > { %1575 = vmatpush1.bf16.msra.mxu1 %v2620_v11  ;;  %1606 = vmatprep.mubr.bf16.mxu1 %v2209_v3 }
 0x21a   : > { %1576 = vmatprep.subr.bf16.mxu1 %v1344_v38 }
 0x21d   : > { %1577 = vmatpush1.bf16.msra.mxu1 %v1343_v37 }
 0x21e   : > { %1622 = vmatprep.subr.bf16.mxu1 %v2622_v13 }
 0x220   : > { %2034 = vmatmul.mubr.msk.bf16.vlgmr.msra.gmra.mrb[24].mxu1 %vm1346_vm10, %v2033_v43 }
 0x221   : > { %1623 = vmatpush1.bf16.msra.mxu1 %v2620_v11  ;;  %1654 = vmatprep.mubr.bf16.mxu1 %v2209_v3 }
 0x222   : > { %1624 = vmatprep.subr.bf16.mxu1 %v1344_v38 }
 0x225   : > { %1625 = vmatpush1.bf16.msra.mxu1 %v1343_v37 }
 0x226   : > { %1678 = vmatprep.subr.bf16.mxu1 %v2622_v13 }
 0x228   : > { %2036 = vmatmul.mubr.msk.bf16.vlgmr.msra.gmra.mrb[28].mxu1 %vm1346_vm10, %v2035_v48 }
 0x229   : > { %1679 = vmatpush1.bf16.msra.mxu1 %v2620_v11  ;;  %1710 = vmatprep.mubr.bf16.mxu1 %v2209_v3 }
 0x22a   : > { %1680 = vmatprep.subr.bf16.mxu1 %v1344_v38 }
 0x22d   : > { %1681 = vmatpush1.bf16.msra.mxu1 %v1343_v37 }
 0x22e   : > { %1734 = vmatprep.subr.bf16.mxu1 %v2622_v13 }
 0x230   : > { %2038 = vmatmul.mubr.msk.bf16.vlgmr.msra.gmra.mrb[32].mxu1 %vm1346_vm10, %v2037_v49 }
 0x231   : > { %1735 = vmatpush1.bf16.msra.mxu1 %v2620_v11  ;;  %1766 = vmatprep.mubr.bf16.mxu1 %v2209_v3 }
 0x232   : > { %1736 = vmatprep.subr.bf16.mxu1 %v1344_v38 }
 0x235   : > { %1737 = vmatpush1.bf16.msra.mxu1 %v1343_v37 }
 0x236   : > { %1790 = vmatprep.subr.bf16.mxu1 %v2622_v13 }
 0x238   : > { %2040 = vmatmul.mubr.msk.bf16.vlgmr.msra.gmra.mrb[36].mxu1 %vm1346_vm10, %v2039_v44 }
 0x239   : > { %1791 = vmatpush1.bf16.msra.mxu1 %v2620_v11  ;;  %1822 = vmatprep.mubr.bf16.mxu1 %v2209_v3 }
 0x23a   : > { %1792 = vmatprep.subr.bf16.mxu1 %v1344_v38  ;;  %v2706_v38 = vpop.permute.xlu1 %1844 }
 0x23d   : > { %1793 = vmatpush1.bf16.msra.mxu1 %v1343_v37 }
 0x240   : > { %2042 = vmatmul.mubr.msk.bf16.vlgmr.msra.gmra.mrb[40].mxu1 %vm1346_vm10, %v2041_v45 }
 0x2d3   : > { %v1384_v51 = vpop.f32.mrb[8].mxu1 }
 0x2d4   : > { %v1386_v52 = vpop.f32.mrb[9].mxu1  ;;  %1391 = vrot.lane.b32.xlu1 %v1384_v51, %s2216_s10 }
 0x2d5   : > { %v1388_v53 = vpop.f32.mrb[10].mxu1  ;;  %1393 = vrot.lane.b32.xlu0 %v1386_v52, %s2216_s10 }
 0x2d6   : > { %v1389_v54 = vpop.f32.mrb[11].mxu1 }
 0x2db   : > { %v1440_v56 = vpop.f32.mrb[12].mxu1 }
 0x2dc   : > { %v1442_v58 = vpop.f32.mrb[13].mxu1  ;;  %1447 = vrot.lane.b32.xlu1 %v1440_v56, %s2214_s8 }
 0x2dd   : > { %1449 = vrot.lane.b32.xlu0 %v1442_v58, %s2214_s8  ;;  %v1444_v3 = vpop.f32.mrb[14].mxu1 }
 0x2de   : > { %v1445_v59 = vpop.f32.mrb[15].mxu1 }
 0x2e3   : > { %v1496_v62 = vpop.f32.mrb[16].mxu1 }
 0x2e4   : > { %v1498_v63 = vpop.f32.mrb[17].mxu1  ;;  %1503 = vrot.lane.b32.xlu1 %v1496_v62, %s2210_s25 }
 0x2e5   : > { %1505 = vrot.lane.b32.xlu0 %v1498_v63, %s2210_s25  ;;  %v1500_v1 = vpop.f32.mrb[18].mxu1 }
 0x2e6   : > { %v1501_v7 = vpop.f32.mrb[19].mxu1 }
 0x2eb   : > { %v1552_v60 = vpop.f32.mrb[20].mxu1 }
 0x2ec   : > { %v1554_v61 = vpop.f32.mrb[21].mxu1  ;;  %1559 = vrot.lane.b32.xlu1 %v1552_v60, %s2211_s28 }
 0x2ed   : > { %1561 = vrot.lane.b32.xlu0 %v1554_v61, %s2211_s28  ;;  %v1556_v8 = vpop.f32.mrb[22].mxu1 }
 0x2ee   : > { %v1557_v9 = vpop.f32.mrb[23].mxu1 }
 0x2f3   : > { %v2694_v10 = vpop.f32.mrb[24].mxu1 }
 0x2f4   : > { %v2696_v11 = vpop.f32.mrb[25].mxu1 }
 0x2f5   : > { %v1612_v15 = vpop.f32.mrb[26].mxu1 }
 0x2f6   : > { %v1613_v16 = vpop.f32.mrb[27].mxu1 }
 0x2fb   : > { %v1656_v2 = vpop.f32.mrb[28].mxu1 }
 0x2fc   : > { %v1658_v13 = vpop.f32.mrb[29].mxu1  ;;  %1663 = vrot.lane.b32.xlu1 %v1656_v2, %s2212_s29 }
 0x2fd   : > { %1665 = vrot.lane.b32.xlu0 %v1658_v13, %s2212_s29  ;;  %v1660_v17 = vpop.f32.mrb[30].mxu1  ;;  %s313_s29 = scalar_lea.vmem %s2775_s7, %s2305_s19 }
 0x2fe   : > { %v1661_v18 = vpop.f32.mrb[31].mxu1 }
 0x303   : > { %v1712_v23 = vpop.f32.mrb[32].mxu1 }
 0x304   : > { %v1714_v24 = vpop.f32.mrb[33].mxu1  ;;  %1719 = vrot.lane.b32.xlu1 %v1712_v23, %s2213_s30 }
 0x305   : > { %1721 = vrot.lane.b32.xlu0 %v1714_v24, %s2213_s30  ;;  %v1716_v25 = vpop.f32.mrb[34].mxu1 }
 0x306   : > { %v1717_v26 = vpop.f32.mrb[35].mxu1 }
 0x30b   : > { %v1768_v28 = vpop.f32.mrb[36].mxu1 }
 0x30c   : > { %v1770_v29 = vpop.f32.mrb[37].mxu1  ;;  %1775 = vrot.lane.b32.xlu1 %v1768_v28, %s2215_s9 }
 0x30d   : > { %1777 = vrot.lane.b32.xlu0 %v1770_v29, %s2215_s9  ;;  %v1772_v30 = vpop.f32.mrb[38].mxu1 }
 0x30e   : > { %v1773_v31 = vpop.f32.mrb[39].mxu1 }
 0x313   : > { %v1824_v35 = vpop.f32.mrb[40].mxu1 }
 0x314   : > { %v1826_v36 = vpop.f32.mrb[41].mxu1  ;;  %1831 = vrot.lane.b32.xlu0 %v1824_v35, %s2217_s11 }
 0x315   : > { %1833 = vrot.lane.b32.xlu1 %v1826_v36, %s2217_s11  ;;  %v1828_v33 = vpop.f32.mrb[42].mxu1 }
 0x316   : > { %v1829_v37 = vpop.f32.mrb[43].mxu1 }
 0x346   : > { %v1392_v34 = vpop.permute.xlu1 %1391 }
 0x347   : > { %v1394_v39 = vpop.permute.xlu0 %1393 }
 0x348   : > { %v1395_v52 = vsel %vm327_vm6, %v1392_v34, %v1394_v39  ;;  %v1396_v53 = vsel %vm327_vm6, %v1394_v39, %v1392_v34 }
 0x349   : > { %v1397_v7 = vmul.f32 %v1396_v53, %v2463_v4  ;;  %v1398_v60 = vmul.f32 %v1395_v52, %v2466_v5 }
 0x34e   : > { %v1448_v40 = vpop.permute.xlu1 %1447 }
 0x34f   : > { %v1450_v42 = vpop.permute.xlu0 %1449 }
 0x350   : > { %v1451_v45 = vsel %vm354_vm4, %v1448_v40, %v1450_v42  ;;  %v1452_v51 = vsel %vm354_vm4, %v1450_v42, %v1448_v40 }
 0x351   : > { %v1453_v58 = vmul.f32 %v1452_v51, %v2427_v46  ;;  %v1454_v3 = vmul.f32 %v1451_v45, %v2430_v47 }
 0x353   : > { %v1455_v9 = vadd.f32 %v1453_v58, %v1397_v7  ;;  %v1456_v46 = vadd.f32 %v1454_v3, %v1398_v60 }
 0x356   : > { %v1504_v43 = vpop.permute.xlu1 %1503 }
 0x357   : > { %v1506_v48 = vpop.permute.xlu0 %1505 }
 0x358   : > { %v1507_v54 = vsel %vm535_vm0, %v1504_v43, %v1506_v48  ;;  %v1508_v56 = vsel %vm535_vm0, %v1506_v48, %v1504_v43 }
 0x359   : > { %v1509_v61 = vmul.f32 %v1508_v56, %v2384_v19  ;;  %v1510_v8 = vmul.f32 %v1507_v54, %v2393_v22 }
 0x35b   : > { %v1511_v13 = vadd.f32 %v1509_v61, %v1455_v9  ;;  %v1512_v17 = vadd.f32 %v1510_v8, %v1456_v46 }
 0x35e   : > { %v1560_v49 = vpop.permute.xlu1 %1559 }
 0x35f   : > { %v1562_v44 = vpop.permute.xlu0 %1561 }
 0x360   : > { %v1563_v63 = vsel %vm647_vm1, %v1560_v49, %v1562_v44  ;;  %v1564_v1 = vsel %vm647_vm1, %v1562_v44, %v1560_v49 }
 0x361   : > { %v1565_v47 = vmul.f32 %v1564_v1, %v2387_v20  ;;  %v1566_v15 = vmul.f32 %v1563_v63, %v2390_v21 }
 0x363   : > { %v1567_v5 = vadd.f32 %v1565_v47, %v1511_v13  ;;  %v1568_v19 = vadd.f32 %v1566_v15, %v1512_v17 }
 0x365   : > { %v1615_v29 = vadd.f32 %v2694_v10, %v1567_v5  ;;  %v1616_v30 = vadd.f32 %v2696_v11, %v1568_v19 }
 0x36e   : > { %v1664_v59 = vpop.permute.xlu1 %1663 }
 0x36f   : > { %v1666_v62 = vpop.permute.xlu0 %1665 }
 0x370   : > { %v1667_v18 = vsel %vm849_vm5, %v1664_v59, %v1666_v62  ;;  %v1668_v4 = vsel %vm849_vm5, %v1666_v62, %v1664_v59 }
 0x371   : > { %v1669_v21 = vmul.f32 %v1667_v18, %v2492_v27  ;;  %v1670_v25 = vmul.f32 %v1668_v4, %v2445_v57 }
 0x373   : > { %v1671_v36 = vadd.f32 %v1669_v21, %v1615_v29  ;;  %v1672_v33 = vadd.f32 %v1670_v25, %v1616_v30 }
 0x376   : > { %v1720_v16 = vpop.permute.xlu1 %1719 }
 0x377   : > { %v1722_v2 = vpop.permute.xlu0 %1721 }
 0x378   : > { %v1723_v24 = vsel %vm961_vm7, %v1720_v16, %v1722_v2  ;;  %v1724_v20 = vsel %vm961_vm7, %v1722_v2, %v1720_v16 }
 0x379   : > { %v1725_v31 = vmul.f32 %v1723_v24, %v2531_v41  ;;  %v1726_v35 = vmul.f32 %v1724_v20, %v2507_v32 }
 0x37b   : > { %v1727_v34 = vadd.f32 %v1725_v31, %v1671_v36  ;;  %v1728_v39 = vadd.f32 %v1726_v35, %v1672_v33 }
 0x37e   : > { %v1776_v23 = vpop.permute.xlu1 %1775 }
 0x37f   : > { %v1778_v22 = vpop.permute.xlu0 %1777 }
 0x380   : > { %v1779_v26 = vsel %vm1073_vm8, %v1776_v23, %v1778_v22  ;;  %v1780_v28 = vsel %vm1073_vm8, %v1778_v22, %v1776_v23 }
 0x381   : > { %v1781_v27 = vmul.f32 %v1779_v26, %v2562_v55  ;;  %v1782_v57 = vmul.f32 %v1780_v28, %v2546_v50 }
 0x383   : > { %v1783_v41 = vadd.f32 %v1781_v27, %v1727_v34  ;;  %v1784_v42 = vadd.f32 %v1782_v57, %v1728_v39 }
 0x386   : > { %v1832_v37 = vpop.permute.xlu0 %1831 }
 0x387   : > { %v1834_v40 = vpop.permute.xlu1 %1833 }
 0x388   : > { %v1835_v10 = vsel %vm1185_vm9, %v1832_v37, %v1834_v40  ;;  %v1836_v11 = vsel %vm1185_vm9, %v1834_v40, %v1832_v37 }
 0x389   : > { %v1837_v32 = vmul.f32 %v1835_v10, %v2589_v14  ;;  %v1838_v43 = vmul.f32 %v1836_v11, %v2575_v6 }
 0x38b   : > { %v1839_v55 = vadd.f32 %v1837_v32, %v1783_v41  ;;  %v1840_v48 = vadd.f32 %v1838_v43, %v1784_v42 }
 0x38d   : > { %v1847_v50 = vadd.f32 %v2706_v38, %v1839_v55  ;;  %v1848_v49 = vadd.f32 %v2706_v38, %v1840_v48 }
 0x38f   : > { %2162 = vtanh.f32 %v1847_v50 }
 0x390   : > { %2164 = vtanh.f32 %v1848_v49 }
 0x399   : > { %v2163_v44 = vpop.eup %2162 }
 0x39a   : > { %v2165_v45 = vpop.eup %2164 }
 0x39b   : > { %v1853_v51 = vcombine.low %v2163_v44, %v2165_v45 }
 0x39d   : > { %v1855_v12 = vadd.f32 %v1853_v51, %v2315_v0 }
 0x39f   : > { %1856 = vst [vmem:[%s313_s29] sm:$0xff] %v1855_v12 }
 0x3a0 PF: > { %s18_s24 = sadd.s32 1, %s2204_s24  }
 0x3a1   : > { %p15_p3 = scmp.ge.s32.totalorder %s18_s24, 4  }
 0x3a3   :  { %17 = sbr.rel (!%p15_p3) target bundleno = 1 (0x1), region = 109 }
 0x3aa   :  { %1878 = vsyncpa [#allocation3], 1 }
 0x3ab   :  { %1880 = vsyncpa [#allocation3 + $0x1], 1 }

// kernel: multi_scale_sg_gen_view_forward.8
= control target key start
LH: loop header
LB: loop body
LE: loop exit
PB: predicated region body
PF: predicated region fallthrough
CT: control target
= control target key end

     0   :  { %7 = vsyncpa [#allocation3], 0  ;;  %s1885_s9 = smov 0   ;;  %s1979_s0 = inlined_call_operand.vmem [shape: f32[2,4,512], index: 0, kind: input, shape index: {}]   ;;  %s1980_s1 = inlined_call_operand.hbm [shape: f32[512,896], index: 1, kind: input, shape index: {}]   ;;  %s1981_s2 = inlined_call_operand.vmem [shape: f32[2,4,896], index: 2, kind: output, shape index: {}]  }
   0x1 LB: > { %s1891_s10 = sadd.s32 4294967295, %s1865_s9   ;;  %p1266_p0 = scmp.ge.s32.totalorder %s1865_s9, 1  ;;  %s1865_s9 = sphi %s1885_s9, %s13_s9  }
   0x2   : > { %p91_p1 = scmp.lt.s32.totalorder %s1865_s9, 3  ;;  %s1867_s11 = smov [#allocation2]  }
   0x3   : > { %s103_s12 = sshll.u32 %s1867_s11, 4  ;;  %p1982_p3 = scmp.eq.s32.totalorder %s1891_s10, 0  ;;  %s104_s12 = int_to_ptr.vmem [resolvable:$true] %s103_s12 }
   0x4   : > { %p1895_p2 = pnand %p1266_p0, %p91_p1  ;;  %s1827_s17 = scalar_lea.hbm %s1980_s1, 57344 }
   0x5   : > { %p1828_p6 = scmp.ne.s32.totalorder %s1980_s1, %s1827_s17  ;;  %p1834_p10 = scmp.lt.u32.totalorder %s1827_s17, %s1980_s1 }
   0x6   : > { %s1984_s13 = scalar_select %p1895_p2, 1, 0 }
   0x7   : > { %p1806_p4 = pneg %p1895_p2 }
   0x9   : > { %p1904_p5 = pnand %p1982_p3, %p1806_p4 }
   0xb   : > { %p1829_p7 = pneg %p1904_p5 }
   0xd   : > { %p1830_p8 = pnand %p1829_p7, %p1828_p6 }
   0xf   : > { %p1831_p9 = pneg %p1830_p8 }
  0x11   : > { %p1836_p11 = pnand %p1834_p10, %p1831_p9 }
  0x13   : > { %1839 = shalt.err (!%p1836_p11)
}
  0x14   : > { %s1840_s22 = scalar_lea.vmem %s104_s12, 57344  ;;  %p1848_p1 = scmp.lt.s32.totalorder %s104_s12, %s104_s12 }
  0x15   : > { %p1841_p12 = scmp.ne.s32.totalorder %s104_s12, %s1840_s22  ;;  %p1849_p4 = scmp.lt.s32.totalorder %s1840_s22, %s1840_s22 }
  0x17   : > { %p1843_p13 = pnand %p1841_p12, %p1829_p7  ;;  %p1850_p3 = por %p1849_p4, %p1848_p1 }
  0x19   : > { %p1844_p0 = pneg %p1843_p13 }
  0x1b   : > { %p1851_p2 = pnand %p1850_p3, %p1844_p0 }
  0x1d   : > { %1854 = shalt.err (!%p1851_p2)
}
  0x1e   : > { %s1868_s23 = smov 896   ;;  %s1869_s24 = smov 56  }
  0x1f   : > { %1809 = dma.hbm_to_vmem [thread:$0]  (!%p1904_p5), %s1980_s1, 57344, %s104_s12, [#allocation3], %s1868_s23, %s1868_s23, %s1869_s24  }
  0x20   : > { %p1986_p6 = scmp.ne.s32.totalorder %s1984_s13, 0 }
  0x21   : > { %p1987_p8 = scmp.eq.s32.totalorder (!%p1986_p6), %s1891_s10, 0 }
  0x22   : > { %127 = sbr.rel (%p1986_p6) target bundleno = 518 (0x206), region = 28 }
  0x29   : > { %1860 = dma.done.wait (%p1987_p8), [#allocation3], 57344   ;;  %p1988_p7 = pmov %p1987_p8 }
  0x2a   : > { %v162_v0 = vld [vmem:[#allocation2 + $0x8] sm:$0xff]  ;;  %v169_v1 = vld [vmem:[#allocation2 + $0x40] sm:$0xff]  ;;  %v164_v2 = vld [vmem:[#allocation2 + $0x18] sm:$0xff]  ;;  %p149_p2 = scmp.lt.s32.totalorder %s1891_s10, 1 }
  0x2b   : > { %1862 = vsyncadd (%p1988_p7), [#allocation3], 4294909952  ;;  %v1347_v3 = vpack.c.bf16 %v169_v1, %v162_v0  ;;  %v171_v4 = vld [vmem:[#allocation2 + $0x50] sm:$0xff]  ;;  %v161_v5 = vld [vmem:[#allocation2] sm:$0xff] }
  0x2c   : > { %v168_v6 = vld [vmem:[#allocation2 + $0x38] sm:$0xff]  ;;  %v1475_v7 = vpack.c.bf16 %v171_v4, %v164_v2  ;;  %v163_v9 = vld [vmem:[#allocation2 + $0x10] sm:$0xff]  ;;  %v170_v10 = vld [vmem:[#allocation2 + $0x48] sm:$0xff]  ;;  %s1990_s10 = smov (!%p149_p2, %s1891_s10), 1 }
  0x2d   : > { %v1349_v8 = vpack.c.bf16 %v168_v6, %v161_v5  ;;  %v176_v11 = vld [vmem:[#allocation2 + $0x78] sm:$0xff]  ;;  %1348 = vmatprep.subr.bf16.mxu0 %v1347_v3  ;;  %v1477_v12 = vpack.c.bf16 %v170_v10, %v163_v9  ;;  %v183_v13 = vld [vmem:[#allocation2 + $0xb0] sm:$0xff]  ;;  %v178_v14 = vld [vmem:[#allocation2 + $0x88] sm:$0xff]  ;;  %s1276_s27 = sshll.u32 %s1990_s10, 4  ;;  %s1801_s3 = smul.u32 28, %s1990_s10 }
  0x2e   : > { %v185_v15 = vld [vmem:[#allocation2 + $0xc0] sm:$0xff]  ;;  %1476 = vmatprep.subr.bf16.mxu1 %v1475_v7  ;;  %v1351_v16 = vpack.c.bf16 %v183_v13, %v176_v11  ;;  %v175_v18 = vld [vmem:[#allocation2 + $0x70] sm:$0xff]  ;;  %v182_v19 = vld [vmem:[#allocation2 + $0xa8] sm:$0xff]  ;;  %s1940_s30 = scalar_lea.vmem %s1979_s0, %s1276_s27 }
  0x2f   : > { %1350 = vmatpush1.bf16.msra.mxu0 %v1349_v8  ;;  %v1479_v17 = vpack.c.bf16 %v185_v15, %v178_v14  ;;  %v177_v20 = vld [vmem:[#allocation2 + $0x80] sm:$0xff]  ;;  %1478 = vmatpush1.bf16.msra.mxu1 %v1477_v12  ;;  %v1353_v21 = vpack.c.bf16 %v182_v19, %v175_v18  ;;  %v184_v22 = vld [vmem:[#allocation2 + $0xb8] sm:$0xff]  ;;  %v190_v23 = vld [vmem:[#allocation2 + $0xe8] sm:$0xff]  ;;  %s158_s6 = scalar_lea.vmem %s1981_s2, %s1801_s3 }
  0x30   : > { %v197_v24 = vld [vmem:[#allocation2 + $0x120] sm:$0xff]  ;;  %1352 = vmatprep.subr.bf16.mxu0 %v1351_v16  ;;  %v1481_v25 = vpack.c.bf16 %v184_v22, %v177_v20  ;;  %v192_v27 = vld [vmem:[#allocation2 + $0xf8] sm:$0xff]  ;;  %v199_v28 = vld [vmem:[#allocation2 + $0x130] sm:$0xff] }
  0x31   : > { %1480 = vmatprep.subr.bf16.mxu1 %v1479_v17  ;;  %v1355_v26 = vpack.c.bf16 %v197_v24, %v190_v23  ;;  %v189_v29 = vld [vmem:[#allocation2 + $0xe0] sm:$0xff]  ;;  %v1483_v30 = vpack.c.bf16 %v199_v28, %v192_v27  ;;  %v196_v31 = vld [vmem:[#allocation2 + $0x118] sm:$0xff]  ;;  %v191_v32 = vld [vmem:[#allocation2 + $0xf0] sm:$0xff] }
  0x32   : > { %v198_v33 = vld [vmem:[#allocation2 + $0x128] sm:$0xff]  ;;  %v1357_v34 = vpack.c.bf16 %v196_v31, %v189_v29  ;;  %v204_v35 = vld [vmem:[#allocation2 + $0x158] sm:$0xff]  ;;  %v211_v36 = vld [vmem:[#allocation2 + $0x190] sm:$0xff] }
  0x33   : > { %1354 = vmatpush1.bf16.msra.mxu0 %v1353_v21  ;;  %v206_v37 = vld [vmem:[#allocation2 + $0x168] sm:$0xff]  ;;  %1482 = vmatpush1.bf16.msra.mxu1 %v1481_v25  ;;  %v1485_v38 = vpack.c.bf16 %v198_v33, %v191_v32  ;;  %v1359_v39 = vpack.c.bf16 %v211_v36, %v204_v35  ;;  %v213_v40 = vld [vmem:[#allocation2 + $0x1a0] sm:$0xff]  ;;  %v203_v41 = vld [vmem:[#allocation2 + $0x150] sm:$0xff] }
  0x34   : > { %1356 = vmatprep.subr.bf16.mxu0 %v1355_v26  ;;  %v210_v42 = vld [vmem:[#allocation2 + $0x188] sm:$0xff]  ;;  %1484 = vmatprep.subr.bf16.mxu1 %v1483_v30  ;;  %v1487_v43 = vpack.c.bf16 %v213_v40, %v206_v37  ;;  %v205_v44 = vld [vmem:[#allocation2 + $0x160] sm:$0xff]  ;;  %v212_v45 = vld [vmem:[#allocation2 + $0x198] sm:$0xff] }
  0x35   : > { %v218_v46 = vld [vmem:[#allocation2 + $0x1c8] sm:$0xff]  ;;  %v225_v47 = vld [vmem:[#allocation2 + $0x200] sm:$0xff]  ;;  %v220_v48 = vld [vmem:[#allocation2 + $0x1d8] sm:$0xff]  ;;  %v1361_v50 = vpack.c.bf16 %v210_v42, %v203_v41  ;;  %v1489_v51 = vpack.c.bf16 %v212_v45, %v205_v44 }
  0x36   : > { %v227_v49 = vld [vmem:[#allocation2 + $0x210] sm:$0xff]  ;;  %v1363_v52 = vpack.c.bf16 %v225_v47, %v218_v46  ;;  %v217_v53 = vld [vmem:[#allocation2 + $0x1c0] sm:$0xff]  ;;  %v224_v54 = vld [vmem:[#allocation2 + $0x1f8] sm:$0xff] }
  0x37   : > { %1358 = vmatpush1.bf16.msra.mxu0 %v1357_v34  ;;  %1486 = vmatpush1.bf16.msra.mxu1 %v1485_v38  ;;  %v219_v55 = vld [vmem:[#allocation2 + $0x1d0] sm:$0xff]  ;;  %v1491_v56 = vpack.c.bf16 %v227_v49, %v220_v48  ;;  %v226_v57 = vld [vmem:[#allocation2 + $0x208] sm:$0xff]  ;;  %v232_v58 = vld [vmem:[#allocation2 + $0x238] sm:$0xff]  ;;  %v1365_v62 = vpack.c.bf16 %v224_v54, %v217_v53 }
  0x38   : > { %1360 = vmatprep.subr.bf16.mxu0 %v1359_v39  ;;  %1488 = vmatprep.subr.bf16.mxu1 %v1487_v43  ;;  %v239_v59 = vld [vmem:[#allocation2 + $0x270] sm:$0xff]  ;;  %v234_v60 = vld [vmem:[#allocation2 + $0x248] sm:$0xff]  ;;  %v241_v61 = vld [vmem:[#allocation2 + $0x280] sm:$0xff]  ;;  %v1493_v63 = vpack.c.bf16 %v226_v57, %v219_v55 }
  0x39   : > { %v1367_v0 = vpack.c.bf16 %v239_v59, %v232_v58  ;;  %v231_v1 = vld [vmem:[#allocation2 + $0x230] sm:$0xff]  ;;  %v238_v2 = vld [vmem:[#allocation2 + $0x268] sm:$0xff]  ;;  %v233_v3 = vld [vmem:[#allocation2 + $0x240] sm:$0xff]  ;;  %v1495_v4 = vpack.c.bf16 %v241_v61, %v234_v60 }
  0x3a   : > { %v240_v5 = vld [vmem:[#allocation2 + $0x278] sm:$0xff]  ;;  %v246_v6 = vld [vmem:[#allocation2 + $0x2a8] sm:$0xff]  ;;  %v253_v7 = vld [vmem:[#allocation2 + $0x2e0] sm:$0xff]  ;;  %v1369_v10 = vpack.c.bf16 %v238_v2, %v231_v1 }
  0x3b   : > { %1362 = vmatpush1.bf16.msra.mxu0 %v1361_v50  ;;  %1490 = vmatpush1.bf16.msra.mxu1 %v1489_v51  ;;  %v248_v8 = vld [vmem:[#allocation2 + $0x2b8] sm:$0xff]  ;;  %v255_v9 = vld [vmem:[#allocation2 + $0x2f0] sm:$0xff]  ;;  %v1497_v11 = vpack.c.bf16 %v240_v5, %v233_v3  ;;  %v1371_v12 = vpack.c.bf16 %v253_v7, %v246_v6  ;;  %v245_v13 = vld [vmem:[#allocation2 + $0x2a0] sm:$0xff] }
  0x3c   : > { %1364 = vmatprep.subr.bf16.mxu0 %v1363_v52  ;;  %1492 = vmatprep.subr.bf16.mxu1 %v1491_v56  ;;  %v252_v14 = vld [vmem:[#allocation2 + $0x2d8] sm:$0xff]  ;;  %v247_v15 = vld [vmem:[#allocation2 + $0x2b0] sm:$0xff]  ;;  %v1499_v16 = vpack.c.bf16 %v255_v9, %v248_v8  ;;  %v254_v17 = vld [vmem:[#allocation2 + $0x2e8] sm:$0xff] }
  0x3d   : > { %v260_v18 = vld [vmem:[#allocation2 + $0x318] sm:$0xff]  ;;  %v267_v19 = vld [vmem:[#allocation2 + $0x350] sm:$0xff]  ;;  %v262_v20 = vld [vmem:[#allocation2 + $0x328] sm:$0xff]  ;;  %v1373_v22 = vpack.c.bf16 %v252_v14, %v245_v13  ;;  %v1501_v23 = vpack.c.bf16 %v254_v17, %v247_v15 }
  0x3e   : > { %v269_v21 = vld [vmem:[#allocation2 + $0x360] sm:$0xff]  ;;  %v1375_v24 = vpack.c.bf16 %v267_v19, %v260_v18  ;;  %v259_v25 = vld [vmem:[#allocation2 + $0x310] sm:$0xff]  ;;  %v266_v26 = vld [vmem:[#allocation2 + $0x348] sm:$0xff] }
  0x3f   : > { %1366 = vmatpush1.bf16.msra.mxu0 %v1365_v62  ;;  %1494 = vmatpush1.bf16.msra.mxu1 %v1493_v63  ;;  %v261_v27 = vld [vmem:[#allocation2 + $0x320] sm:$0xff]  ;;  %v1503_v28 = vpack.c.bf16 %v269_v21, %v262_v20  ;;  %v268_v29 = vld [vmem:[#allocation2 + $0x358] sm:$0xff]  ;;  %v274_v30 = vld [vmem:[#allocation2 + $0x388] sm:$0xff]  ;;  %v1377_v34 = vpack.c.bf16 %v266_v26, %v259_v25 }
  0x40   : > { %1368 = vmatprep.subr.bf16.mxu0 %v1367_v0  ;;  %1496 = vmatprep.subr.bf16.mxu1 %v1495_v4  ;;  %v281_v31 = vld [vmem:[#allocation2 + $0x3c0] sm:$0xff]  ;;  %v276_v32 = vld [vmem:[#allocation2 + $0x398] sm:$0xff]  ;;  %v283_v33 = vld [vmem:[#allocation2 + $0x3d0] sm:$0xff]  ;;  %v1505_v35 = vpack.c.bf16 %v268_v29, %v261_v27 }
  0x41   : > { %v1379_v36 = vpack.c.bf16 %v281_v31, %v274_v30  ;;  %v273_v37 = vld [vmem:[#allocation2 + $0x380] sm:$0xff]  ;;  %v280_v38 = vld [vmem:[#allocation2 + $0x3b8] sm:$0xff]  ;;  %v275_v39 = vld [vmem:[#allocation2 + $0x390] sm:$0xff]  ;;  %v1507_v40 = vpack.c.bf16 %v283_v33, %v276_v32 }
  0x42   : > { %v282_v41 = vld [vmem:[#allocation2 + $0x3c8] sm:$0xff]  ;;  %v288_v42 = vld [vmem:[#allocation2 + $0x3f8] sm:$0xff]  ;;  %v295_v43 = vld [vmem:[#allocation2 + $0x430] sm:$0xff]  ;;  %v1381_v46 = vpack.c.bf16 %v280_v38, %v273_v37 }
  0x43   : > { %1370 = vmatpush1.bf16.msra.mxu0 %v1369_v10  ;;  %1498 = vmatpush1.bf16.msra.mxu1 %v1497_v11  ;;  %v290_v44 = vld [vmem:[#allocation2 + $0x408] sm:$0xff]  ;;  %v297_v45 = vld [vmem:[#allocation2 + $0x440] sm:$0xff]  ;;  %v1509_v47 = vpack.c.bf16 %v282_v41, %v275_v39  ;;  %v1383_v48 = vpack.c.bf16 %v295_v43, %v288_v42  ;;  %v287_v49 = vld [vmem:[#allocation2 + $0x3f0] sm:$0xff] }
  0x44   : > { %1372 = vmatprep.subr.bf16.mxu0 %v1371_v12  ;;  %1500 = vmatprep.subr.bf16.mxu1 %v1499_v16  ;;  %v294_v50 = vld [vmem:[#allocation2 + $0x428] sm:$0xff]  ;;  %v289_v51 = vld [vmem:[#allocation2 + $0x400] sm:$0xff]  ;;  %v1511_v52 = vpack.c.bf16 %v297_v45, %v290_v44  ;;  %v296_v53 = vld [vmem:[#allocation2 + $0x438] sm:$0xff] }
  0x45   : > { %v302_v54 = vld [vmem:[#allocation2 + $0x468] sm:$0xff]  ;;  %v309_v55 = vld [vmem:[#allocation2 + $0x4a0] sm:$0xff]  ;;  %v304_v56 = vld [vmem:[#allocation2 + $0x478] sm:$0xff]  ;;  %v1385_v58 = vpack.c.bf16 %v294_v50, %v287_v49  ;;  %v1513_v59 = vpack.c.bf16 %v296_v53, %v289_v51 }
  0x46   : > { %v311_v57 = vld [vmem:[#allocation2 + $0x4b0] sm:$0xff]  ;;  %v1387_v60 = vpack.c.bf16 %v309_v55, %v302_v54  ;;  %v301_v61 = vld [vmem:[#allocation2 + $0x460] sm:$0xff]  ;;  %v308_v62 = vld [vmem:[#allocation2 + $0x498] sm:$0xff] }
  0x47   : > { %1374 = vmatpush1.bf16.msra.mxu0 %v1373_v22  ;;  %1502 = vmatpush1.bf16.msra.mxu1 %v1501_v23  ;;  %v303_v63 = vld [vmem:[#allocation2 + $0x470] sm:$0xff]  ;;  %v1515_v0 = vpack.c.bf16 %v311_v57, %v304_v56  ;;  %v310_v1 = vld [vmem:[#allocation2 + $0x4a8] sm:$0xff]  ;;  %v316_v2 = vld [vmem:[#allocation2 + $0x4d8] sm:$0xff]  ;;  %v1389_v6 = vpack.c.bf16 %v308_v62, %v301_v61 }
  0x48   : > { %1376 = vmatprep.subr.bf16.mxu0 %v1375_v24  ;;  %1504 = vmatprep.subr.bf16.mxu1 %v1503_v28  ;;  %v323_v3 = vld [vmem:[#allocation2 + $0x510] sm:$0xff]  ;;  %v318_v4 = vld [vmem:[#allocation2 + $0x4e8] sm:$0xff]  ;;  %v325_v5 = vld [vmem:[#allocation2 + $0x520] sm:$0xff]  ;;  %v1517_v8 = vpack.c.bf16 %v310_v1, %v303_v63 }
  0x49   : > { %v315_v7 = vld [vmem:[#allocation2 + $0x4d0] sm:$0xff]  ;;  %v1391_v9 = vpack.c.bf16 %v323_v3, %v316_v2  ;;  %v322_v10 = vld [vmem:[#allocation2 + $0x508] sm:$0xff]  ;;  %v317_v11 = vld [vmem:[#allocation2 + $0x4e0] sm:$0xff]  ;;  %v1519_v13 = vpack.c.bf16 %v325_v5, %v318_v4 }
  0x4a   : > { %v324_v12 = vld [vmem:[#allocation2 + $0x518] sm:$0xff]  ;;  %v330_v14 = vld [vmem:[#allocation2 + $0x548] sm:$0xff]  ;;  %v337_v15 = vld [vmem:[#allocation2 + $0x580] sm:$0xff]  ;;  %v1393_v20 = vpack.c.bf16 %v322_v10, %v315_v7 }
  0x4b   : > { %1378 = vmatpush1.bf16.msra.mxu0 %v1377_v34  ;;  %1506 = vmatpush1.bf16.msra.mxu1 %v1505_v35  ;;  %v1943_v16 = vld [vmem:[%s1940_s30] sm:$0xff]  ;;  %v332_v17 = vld [vmem:[#allocation2 + $0x558] sm:$0xff]  ;;  %v339_v18 = vld [vmem:[#allocation2 + $0x590] sm:$0xff]  ;;  %v1521_v21 = vpack.c.bf16 %v324_v12, %v317_v11  ;;  %v1395_v22 = vpack.c.bf16 %v337_v15, %v330_v14 }
  0x4c   : > { %1380 = vmatprep.subr.bf16.mxu0 %v1379_v36  ;;  %1508 = vmatprep.subr.bf16.mxu1 %v1507_v40  ;;  %v1947_v19 = vcombine.high %v1943_v16, %v1943_v16  ;;  %v329_v23 = vld [vmem:[#allocation2 + $0x540] sm:$0xff]  ;;  %v336_v24 = vld [vmem:[#allocation2 + $0x578] sm:$0xff]  ;;  %v331_v25 = vld [vmem:[#allocation2 + $0x550] sm:$0xff]  ;;  %v1523_v26 = vpack.c.bf16 %v339_v18, %v332_v17 }
  0x4d   : > { %v338_v27 = vld [vmem:[#allocation2 + $0x588] sm:$0xff]  ;;  %v344_v28 = vld [vmem:[#allocation2 + $0x5b8] sm:$0xff]  ;;  %v351_v29 = vld [vmem:[#allocation2 + $0x5f0] sm:$0xff]  ;;  %v1397_v32 = vpack.c.bf16 %v336_v24, %v329_v23 }
  0x4e   : > { %679 = vmatprep.mubr.f32.mxu0 %v1947_v19  ;;  %v346_v30 = vld [vmem:[#allocation2 + $0x5c8] sm:$0xff]  ;;  %v353_v31 = vld [vmem:[#allocation2 + $0x600] sm:$0xff]  ;;  %821 = vmatprep.mubr.f32.mxu1 %v1947_v19  ;;  %v1525_v33 = vpack.c.bf16 %v338_v27, %v331_v25  ;;  %v1399_v34 = vpack.c.bf16 %v351_v29, %v344_v28  ;;  %v343_v35 = vld [vmem:[#allocation2 + $0x5b0] sm:$0xff] }
  0x4f   : > { %1382 = vmatpush1.bf16.msra.mxu0 %v1381_v46  ;;  %1510 = vmatpush1.bf16.msra.mxu1 %v1509_v47  ;;  %v350_v36 = vld [vmem:[#allocation2 + $0x5e8] sm:$0xff]  ;;  %v345_v37 = vld [vmem:[#allocation2 + $0x5c0] sm:$0xff]  ;;  %v1527_v38 = vpack.c.bf16 %v353_v31, %v346_v30  ;;  %v352_v39 = vld [vmem:[#allocation2 + $0x5f8] sm:$0xff] }
  0x50   : > { %1384 = vmatprep.subr.bf16.mxu0 %v1383_v48  ;;  %1512 = vmatprep.subr.bf16.mxu1 %v1511_v52  ;;  %v358_v40 = vld [vmem:[#allocation2 + $0x628] sm:$0xff]  ;;  %v365_v41 = vld [vmem:[#allocation2 + $0x660] sm:$0xff]  ;;  %v360_v42 = vld [vmem:[#allocation2 + $0x638] sm:$0xff]  ;;  %v1401_v44 = vpack.c.bf16 %v350_v36, %v343_v35  ;;  %v1529_v45 = vpack.c.bf16 %v352_v39, %v345_v37 }
  0x51   : > { %v367_v43 = vld [vmem:[#allocation2 + $0x670] sm:$0xff]  ;;  %v1403_v46 = vpack.c.bf16 %v365_v41, %v358_v40  ;;  %v357_v47 = vld [vmem:[#allocation2 + $0x620] sm:$0xff]  ;;  %v364_v48 = vld [vmem:[#allocation2 + $0x658] sm:$0xff] }
  0x52   : > { %v359_v49 = vld [vmem:[#allocation2 + $0x630] sm:$0xff]  ;;  %v1531_v50 = vpack.c.bf16 %v367_v43, %v360_v42  ;;  %v366_v51 = vld [vmem:[#allocation2 + $0x668] sm:$0xff]  ;;  %v372_v52 = vld [vmem:[#allocation2 + $0x698] sm:$0xff]  ;;  %v1405_v56 = vpack.c.bf16 %v364_v48, %v357_v47 }
  0x53   : > { %1386 = vmatpush1.bf16.msra.mxu0 %v1385_v58  ;;  %1514 = vmatpush1.bf16.msra.mxu1 %v1513_v59  ;;  %v379_v53 = vld [vmem:[#allocation2 + $0x6d0] sm:$0xff]  ;;  %v374_v54 = vld [vmem:[#allocation2 + $0x6a8] sm:$0xff]  ;;  %v381_v55 = vld [vmem:[#allocation2 + $0x6e0] sm:$0xff]  ;;  %v1533_v57 = vpack.c.bf16 %v366_v51, %v359_v49 }
  0x54   : > { %1388 = vmatprep.subr.bf16.mxu0 %v1387_v60  ;;  %1516 = vmatprep.subr.bf16.mxu1 %v1515_v0  ;;  %v1407_v58 = vpack.c.bf16 %v379_v53, %v372_v52  ;;  %v371_v59 = vld [vmem:[#allocation2 + $0x690] sm:$0xff]  ;;  %v378_v60 = vld [vmem:[#allocation2 + $0x6c8] sm:$0xff]  ;;  %v373_v61 = vld [vmem:[#allocation2 + $0x6a0] sm:$0xff]  ;;  %v1535_v62 = vpack.c.bf16 %v381_v55, %v374_v54 }
  0x55   : > { %v380_v63 = vld [vmem:[#allocation2 + $0x6d8] sm:$0xff]  ;;  %v386_v0 = vld [vmem:[#allocation2 + $0x708] sm:$0xff]  ;;  %v393_v1 = vld [vmem:[#allocation2 + $0x740] sm:$0xff]  ;;  %v1409_v4 = vpack.c.bf16 %v378_v60, %v371_v59 }
  0x56   : > { %v388_v2 = vld [vmem:[#allocation2 + $0x718] sm:$0xff]  ;;  %v395_v3 = vld [vmem:[#allocation2 + $0x750] sm:$0xff]  ;;  %v1537_v5 = vpack.c.bf16 %v380_v63, %v373_v61  ;;  %v385_v7 = vld [vmem:[#allocation2 + $0x700] sm:$0xff] }
  0x57   : > { %1390 = vmatpush1.bf16.msra.mxu0 %v1389_v6  ;;  %1518 = vmatpush1.bf16.msra.mxu1 %v1517_v8  ;;  %v1411_v6 = vpack.c.bf16 %v393_v1, %v386_v0  ;;  %v392_v8 = vld [vmem:[#allocation2 + $0x738] sm:$0xff]  ;;  %v1539_v10 = vpack.c.bf16 %v395_v3, %v388_v2  ;;  %v394_v11 = vld [vmem:[#allocation2 + $0x748] sm:$0xff]  ;;  %v409_v15 = vld [vmem:[#allocation2 + $0x7c0] sm:$0xff] }
  0x58   : > { %1392 = vmatprep.subr.bf16.mxu0 %v1391_v9  ;;  %1520 = vmatprep.subr.bf16.mxu1 %v1519_v13  ;;  %v387_v9 = vld [vmem:[#allocation2 + $0x710] sm:$0xff]  ;;  %v400_v12 = vld [vmem:[#allocation2 + $0x778] sm:$0xff]  ;;  %v402_v14 = vld [vmem:[#allocation2 + $0x788] sm:$0xff]  ;;  %v1413_v17 = vpack.c.bf16 %v392_v8, %v385_v7 }
  0x59   : > { %v407_v13 = vld [vmem:[#allocation2 + $0x7b0] sm:$0xff]  ;;  %v1541_v18 = vpack.c.bf16 %v394_v11, %v387_v9  ;;  %v401_v23 = vld [vmem:[#allocation2 + $0x780] sm:$0xff]  ;;  %v1543_v24 = vpack.c.bf16 %v409_v15, %v402_v14  ;;  %v408_v25 = vld [vmem:[#allocation2 + $0x7b8] sm:$0xff] }
  0x5a   : > { %v421_v27 = vld [vmem:[#allocation2 + $0x820] sm:$0xff]  ;;  %v416_v28 = vld [vmem:[#allocation2 + $0x7f8] sm:$0xff]  ;;  %v423_v29 = vld [vmem:[#allocation2 + $0x830] sm:$0xff]  ;;  %v1545_v31 = vpack.c.bf16 %v408_v25, %v401_v23 }
  0x5b   : > { %1394 = vmatpush1.bf16.msra.mxu0 %v1393_v20  ;;  %1522 = vmatpush1.bf16.msra.mxu1 %v1521_v21  ;;  %v1415_v20 = vpack.c.bf16 %v407_v13, %v400_v12  ;;  %v399_v21 = vld [vmem:[#allocation2 + $0x770] sm:$0xff]  ;;  %v1547_v36 = vpack.c.bf16 %v423_v29, %v416_v28  ;;  %v422_v37 = vld [vmem:[#allocation2 + $0x828] sm:$0xff]  ;;  %v437_v41 = vld [vmem:[#allocation2 + $0x8a0] sm:$0xff] }
  0x5c   : > { %1396 = vmatprep.subr.bf16.mxu0 %v1395_v22  ;;  %1524 = vmatprep.subr.bf16.mxu1 %v1523_v26  ;;  %v406_v22 = vld [vmem:[#allocation2 + $0x7a8] sm:$0xff]  ;;  %v415_v35 = vld [vmem:[#allocation2 + $0x7f0] sm:$0xff]  ;;  %v429_v47 = vld [vmem:[#allocation2 + $0x860] sm:$0xff] }
  0x5d   : > { %v414_v26 = vld [vmem:[#allocation2 + $0x7e8] sm:$0xff]  ;;  %v1417_v30 = vpack.c.bf16 %v406_v22, %v399_v21  ;;  %v435_v39 = vld [vmem:[#allocation2 + $0x890] sm:$0xff]  ;;  %v1549_v43 = vpack.c.bf16 %v422_v37, %v415_v35  ;;  %v436_v49 = vld [vmem:[#allocation2 + $0x898] sm:$0xff] }
  0x5e   : > { %v430_v40 = vld [vmem:[#allocation2 + $0x868] sm:$0xff]  ;;  %v449_v51 = vld [vmem:[#allocation2 + $0x900] sm:$0xff]  ;;  %v444_v52 = vld [vmem:[#allocation2 + $0x8d8] sm:$0xff]  ;;  %v1553_v55 = vpack.c.bf16 %v436_v49, %v429_v47 }
  0x5f   : > { %1398 = vmatpush1.bf16.msra.mxu0 %v1397_v32  ;;  %1526 = vmatpush1.bf16.msra.mxu1 %v1525_v33  ;;  %v1419_v32 = vpack.c.bf16 %v421_v27, %v414_v26  ;;  %v413_v33 = vld [vmem:[#allocation2 + $0x7e0] sm:$0xff]  ;;  %v1551_v48 = vpack.c.bf16 %v437_v41, %v430_v40  ;;  %v451_v53 = vld [vmem:[#allocation2 + $0x910] sm:$0xff]  ;;  %v450_v61 = vld [vmem:[#allocation2 + $0x908] sm:$0xff] }
  0x60   : > { %1400 = vmatprep.subr.bf16.mxu0 %v1399_v34  ;;  %1528 = vmatprep.subr.bf16.mxu1 %v1527_v38  ;;  %v420_v34 = vld [vmem:[#allocation2 + $0x818] sm:$0xff]  ;;  %v443_v59 = vld [vmem:[#allocation2 + $0x8d0] sm:$0xff]  ;;  %v1555_v60 = vpack.c.bf16 %v451_v53, %v444_v52  ;;  %v458_v0 = vld [vmem:[#allocation2 + $0x948] sm:$0xff] }
  0x61   : > { %v428_v38 = vld [vmem:[#allocation2 + $0x858] sm:$0xff]  ;;  %v1421_v42 = vpack.c.bf16 %v420_v34, %v413_v33  ;;  %v463_v63 = vld [vmem:[#allocation2 + $0x970] sm:$0xff]  ;;  %v465_v1 = vld [vmem:[#allocation2 + $0x980] sm:$0xff]  ;;  %v1557_v3 = vpack.c.bf16 %v450_v61, %v443_v59 }
  0x62   : > { %v457_v7 = vld [vmem:[#allocation2 + $0x940] sm:$0xff]  ;;  %v1559_v8 = vpack.c.bf16 %v465_v1, %v458_v0  ;;  %v464_v9 = vld [vmem:[#allocation2 + $0x978] sm:$0xff]  ;;  %v479_v13 = vld [vmem:[#allocation2 + $0x9f0] sm:$0xff] }
  0x63   : > { %1402 = vmatpush1.bf16.msra.mxu0 %v1401_v44  ;;  %1530 = vmatpush1.bf16.msra.mxu1 %v1529_v45  ;;  %v1423_v44 = vpack.c.bf16 %v435_v39, %v428_v38  ;;  %v427_v45 = vld [vmem:[#allocation2 + $0x850] sm:$0xff]  ;;  %v477_v11 = vld [vmem:[#allocation2 + $0x9e0] sm:$0xff]  ;;  %v472_v12 = vld [vmem:[#allocation2 + $0x9b8] sm:$0xff] }
  0x64   : > { %1404 = vmatprep.subr.bf16.mxu0 %v1403_v46  ;;  %1532 = vmatprep.subr.bf16.mxu1 %v1531_v50  ;;  %v434_v46 = vld [vmem:[#allocation2 + $0x888] sm:$0xff]  ;;  %v469_v15 = vld [vmem:[#allocation2 + $0x9a0] sm:$0xff]  ;;  %v471_v21 = vld [vmem:[#allocation2 + $0x9b0] sm:$0xff]  ;;  %v1563_v23 = vpack.c.bf16 %v479_v13, %v472_v12 }
  0x65   : > { %v442_v50 = vld [vmem:[#allocation2 + $0x8c8] sm:$0xff]  ;;  %v1425_v54 = vpack.c.bf16 %v434_v46, %v427_v45  ;;  %v484_v25 = vld [vmem:[#allocation2 + $0xa18] sm:$0xff]  ;;  %v491_v26 = vld [vmem:[#allocation2 + $0xa50] sm:$0xff] }
  0x66   : > { %v1954_v22 = vld [vmem:[%s1940_s30 + $0x8] sm:$0xff]  ;;  %v493_v29 = vld [vmem:[#allocation2 + $0xa60] sm:$0xff]  ;;  %v483_v33 = vld [vmem:[#allocation2 + $0xa10] sm:$0xff] }
  0x67   : > { %1406 = vmatpush1.bf16.msra.mxu0 %v1405_v56  ;;  %1534 = vmatpush1.bf16.msra.mxu1 %v1533_v57  ;;  %v1427_v56 = vpack.c.bf16 %v449_v51, %v442_v50  ;;  %v441_v57 = vld [vmem:[#allocation2 + $0x8c0] sm:$0xff]  ;;  %v1958_v27 = vcombine.high %v1954_v22, %v1954_v22  ;;  %v486_v28 = vld [vmem:[#allocation2 + $0xa28] sm:$0xff]  ;;  %v492_v37 = vld [vmem:[#allocation2 + $0xa58] sm:$0xff] }
  0x68   : > { %1408 = vmatprep.subr.bf16.mxu0 %v1407_v58  ;;  %1536 = vmatprep.subr.bf16.mxu1 %v1535_v62  ;;  %v448_v58 = vld [vmem:[#allocation2 + $0x8f8] sm:$0xff]  ;;  %v490_v34 = vld [vmem:[#allocation2 + $0xa48] sm:$0xff]  ;;  %v485_v35 = vld [vmem:[#allocation2 + $0xa20] sm:$0xff] }
  0x69   : > { %v456_v62 = vld [vmem:[#allocation2 + $0x938] sm:$0xff]  ;;  %v1429_v2 = vpack.c.bf16 %v448_v58, %v441_v57  ;;  %v498_v38 = vld [vmem:[#allocation2 + $0xa88] sm:$0xff]  ;;  %v505_v39 = vld [vmem:[#allocation2 + $0xac0] sm:$0xff] }
  0x6a   : > { %v500_v40 = vld [vmem:[#allocation2 + $0xa98] sm:$0xff]  ;;  %v507_v41 = vld [vmem:[#allocation2 + $0xad0] sm:$0xff]  ;;  %v497_v45 = vld [vmem:[#allocation2 + $0xa80] sm:$0xff] }
  0x6b   : > { %1410 = vmatpush1.bf16.msra.mxu0 %v1409_v4  ;;  %1538 = vmatpush1.bf16.msra.mxu1 %v1537_v5  ;;  %v1431_v4 = vpack.c.bf16 %v463_v63, %v456_v62  ;;  %v455_v5 = vld [vmem:[#allocation2 + $0x930] sm:$0xff]  ;;  %v504_v46 = vld [vmem:[#allocation2 + $0xab8] sm:$0xff]  ;;  %v506_v49 = vld [vmem:[#allocation2 + $0xac8] sm:$0xff] }
  0x6c   : > { %1412 = vmatprep.subr.bf16.mxu0 %v1411_v6  ;;  %1540 = vmatprep.subr.bf16.mxu1 %v1539_v10  ;;  %v462_v6 = vld [vmem:[#allocation2 + $0x968] sm:$0xff]  ;;  %v499_v47 = vld [vmem:[#allocation2 + $0xa90] sm:$0xff]  ;;  %v512_v50 = vld [vmem:[#allocation2 + $0xaf8] sm:$0xff] }
  0x6d   : > { %v470_v10 = vld [vmem:[#allocation2 + $0x9a8] sm:$0xff]  ;;  %v1433_v14 = vpack.c.bf16 %v462_v6, %v455_v5  ;;  %v519_v51 = vld [vmem:[#allocation2 + $0xb30] sm:$0xff]  ;;  %v521_v53 = vld [vmem:[#allocation2 + $0xb40] sm:$0xff] }
  0x6e   : > { %680 = vmatmul.mubr.f32.vlgmr.msra.gmra.mrb[0].mxu0 %v1943_v16  ;;  %822 = vmatmul.mubr.f32.vlgmr.msra.gmra.mrb[0].mxu1 %v1943_v16  ;;  %v514_v52 = vld [vmem:[#allocation2 + $0xb08] sm:$0xff]  ;;  %v511_v57 = vld [vmem:[#allocation2 + $0xaf0] sm:$0xff]  ;;  %v513_v59 = vld [vmem:[#allocation2 + $0xb00] sm:$0xff] }
  0x6f   : > { %1414 = vmatpush1.bf16.msra.mxu0 %v1413_v17  ;;  %1542 = vmatpush1.bf16.msra.mxu1 %v1541_v18  ;;  %v1561_v17 = vpack.c.bf16 %v464_v9, %v457_v7  ;;  %v1435_v18 = vpack.c.bf16 %v477_v11, %v470_v10  ;;  %v518_v58 = vld [vmem:[#allocation2 + $0xb28] sm:$0xff]  ;;  %v520_v61 = vld [vmem:[#allocation2 + $0xb38] sm:$0xff]  ;;  %v533_v63 = vld [vmem:[#allocation2 + $0xba0] sm:$0xff] }
  0x70   : > { %1416 = vmatprep.subr.bf16.mxu0 %v1415_v20  ;;  %1544 = vmatprep.subr.bf16.mxu1 %v1543_v24  ;;  %v476_v20 = vld [vmem:[#allocation2 + $0x9d8] sm:$0xff]  ;;  %v478_v24 = vld [vmem:[#allocation2 + $0x9e8] sm:$0xff]  ;;  %v535_v1 = vld [vmem:[#allocation2 + $0xbb0] sm:$0xff] }
  0x71   : > { %750 = vmatprep.mubr.f32.mxu0 %v1958_v27  ;;  %892 = vmatprep.mubr.f32.mxu1 %v1958_v27  ;;  %v526_v62 = vld [vmem:[#allocation2 + $0xb68] sm:$0xff]  ;;  %v528_v0 = vld [vmem:[#allocation2 + $0xb78] sm:$0xff]  ;;  %v525_v5 = vld [vmem:[#allocation2 + $0xb60] sm:$0xff] }
  0x72   : > { %v532_v6 = vld [vmem:[#allocation2 + $0xb98] sm:$0xff]  ;;  %v527_v7 = vld [vmem:[#allocation2 + $0xb70] sm:$0xff]  ;;  %v534_v9 = vld [vmem:[#allocation2 + $0xba8] sm:$0xff] }
  0x73   : > { %1418 = vmatpush1.bf16.msra.mxu0 %v1417_v30  ;;  %1546 = vmatpush1.bf16.msra.mxu1 %v1545_v31  ;;  %v1437_v30 = vpack.c.bf16 %v476_v20, %v469_v15  ;;  %v1565_v31 = vpack.c.bf16 %v478_v24, %v471_v21  ;;  %v540_v10 = vld [vmem:[#allocation2 + $0xbd8] sm:$0xff]  ;;  %v547_v11 = vld [vmem:[#allocation2 + $0xc10] sm:$0xff]  ;;  %v542_v12 = vld [vmem:[#allocation2 + $0xbe8] sm:$0xff]  ;;  %v1581_v15 = vpack.c.bf16 %v534_v9, %v527_v7 }
  0x74   : > { %1420 = vmatprep.subr.bf16.mxu0 %v1419_v32  ;;  %1548 = vmatprep.subr.bf16.mxu1 %v1547_v36  ;;  %v1439_v32 = vpack.c.bf16 %v491_v26, %v484_v25  ;;  %v1567_v36 = vpack.c.bf16 %v493_v29, %v486_v28  ;;  %v549_v13 = vld [vmem:[#allocation2 + $0xc20] sm:$0xff]  ;;  %v546_v20 = vld [vmem:[#allocation2 + $0xc08] sm:$0xff]  ;;  %v548_v24 = vld [vmem:[#allocation2 + $0xc18] sm:$0xff] }
  0x75   : > { %v541_v21 = vld [vmem:[#allocation2 + $0xbe0] sm:$0xff]  ;;  %v554_v25 = vld [vmem:[#allocation2 + $0xc48] sm:$0xff]  ;;  %v556_v28 = vld [vmem:[#allocation2 + $0xc58] sm:$0xff] }
  0x76   : > { %v561_v26 = vld [vmem:[#allocation2 + $0xc80] sm:$0xff]  ;;  %v563_v29 = vld [vmem:[#allocation2 + $0xc90] sm:$0xff]  ;;  %v604_v9 = vld [vmem:[#allocation2 + $0xdd8] sm:$0xff] }
  0x77   : > { %1422 = vmatpush1.bf16.msra.mxu0 %v1421_v42  ;;  %1550 = vmatpush1.bf16.msra.mxu1 %v1549_v43  ;;  %v1441_v42 = vpack.c.bf16 %v490_v34, %v483_v33  ;;  %v1569_v43 = vpack.c.bf16 %v492_v37, %v485_v35  ;;  %v553_v33 = vld [vmem:[#allocation2 + $0xc40] sm:$0xff]  ;;  %v560_v34 = vld [vmem:[#allocation2 + $0xc78] sm:$0xff]  ;;  %v555_v35 = vld [vmem:[#allocation2 + $0xc50] sm:$0xff] }
  0x78   : > { %1424 = vmatprep.subr.bf16.mxu0 %v1423_v44  ;;  %1552 = vmatprep.subr.bf16.mxu1 %v1551_v48  ;;  %v1443_v44 = vpack.c.bf16 %v505_v39, %v498_v38  ;;  %v1571_v48 = vpack.c.bf16 %v507_v41, %v500_v40  ;;  %v562_v37 = vld [vmem:[#allocation2 + $0xc88] sm:$0xff]  ;;  %v568_v38 = vld [vmem:[#allocation2 + $0xcb8] sm:$0xff]  ;;  %v575_v39 = vld [vmem:[#allocation2 + $0xcf0] sm:$0xff] }
  0x79   : > { %v570_v40 = vld [vmem:[#allocation2 + $0xcc8] sm:$0xff]  ;;  %v577_v41 = vld [vmem:[#allocation2 + $0xd00] sm:$0xff] }
  0x7a   : > { %v597_v7 = vld [vmem:[#allocation2 + $0xda0] sm:$0xff] }
  0x7b   : > { %1426 = vmatpush1.bf16.msra.mxu0 %v1425_v54  ;;  %1554 = vmatpush1.bf16.msra.mxu1 %v1553_v55  ;;  %v1445_v54 = vpack.c.bf16 %v504_v46, %v497_v45  ;;  %v1573_v55 = vpack.c.bf16 %v506_v49, %v499_v47  ;;  %v567_v45 = vld [vmem:[#allocation2 + $0xcb0] sm:$0xff]  ;;  %v574_v46 = vld [vmem:[#allocation2 + $0xce8] sm:$0xff]  ;;  %v569_v47 = vld [vmem:[#allocation2 + $0xcc0] sm:$0xff] }
  0x7c   : > { %1428 = vmatprep.subr.bf16.mxu0 %v1427_v56  ;;  %1556 = vmatprep.subr.bf16.mxu1 %v1555_v60  ;;  %v1447_v56 = vpack.c.bf16 %v519_v51, %v512_v50  ;;  %v1575_v60 = vpack.c.bf16 %v521_v53, %v514_v52  ;;  %v576_v49 = vld [vmem:[#allocation2 + $0xcf8] sm:$0xff]  ;;  %v582_v50 = vld [vmem:[#allocation2 + $0xd28] sm:$0xff]  ;;  %v589_v51 = vld [vmem:[#allocation2 + $0xd60] sm:$0xff] }
  0x7d   : > { %v584_v52 = vld [vmem:[#allocation2 + $0xd38] sm:$0xff]  ;;  %v591_v53 = vld [vmem:[#allocation2 + $0xd70] sm:$0xff] }
  0x7f   : > { %1430 = vmatpush1.bf16.msra.mxu0 %v1429_v2  ;;  %1558 = vmatpush1.bf16.msra.mxu1 %v1557_v3  ;;  %v1449_v2 = vpack.c.bf16 %v518_v58, %v511_v57  ;;  %v1577_v3 = vpack.c.bf16 %v520_v61, %v513_v59  ;;  %v581_v57 = vld [vmem:[#allocation2 + $0xd20] sm:$0xff]  ;;  %v588_v58 = vld [vmem:[#allocation2 + $0xd58] sm:$0xff]  ;;  %v583_v59 = vld [vmem:[#allocation2 + $0xd30] sm:$0xff] }
  0x80   : > { %1432 = vmatprep.subr.bf16.mxu0 %v1431_v4  ;;  %1560 = vmatprep.subr.bf16.mxu1 %v1559_v8  ;;  %v1451_v4 = vpack.c.bf16 %v533_v63, %v526_v62  ;;  %v1579_v8 = vpack.c.bf16 %v535_v1, %v528_v0  ;;  %v590_v61 = vld [vmem:[#allocation2 + $0xd68] sm:$0xff]  ;;  %v596_v62 = vld [vmem:[#allocation2 + $0xd98] sm:$0xff]  ;;  %v603_v63 = vld [vmem:[#allocation2 + $0xdd0] sm:$0xff] }
  0x81   : > { %v598_v0 = vld [vmem:[#allocation2 + $0xda8] sm:$0xff]  ;;  %v605_v1 = vld [vmem:[#allocation2 + $0xde0] sm:$0xff] }
  0x83   : > { %1434 = vmatpush1.bf16.msra.mxu0 %v1433_v14  ;;  %1562 = vmatpush1.bf16.msra.mxu1 %v1561_v17  ;;  %v1453_v14 = vpack.c.bf16 %v532_v6, %v525_v5  ;;  %v1455_v17 = vpack.c.bf16 %v547_v11, %v540_v10  ;;  %v595_v5 = vld [vmem:[#allocation2 + $0xd90] sm:$0xff]  ;;  %v602_v6 = vld [vmem:[#allocation2 + $0xdc8] sm:$0xff]  ;;  %v173_v11 = vld [vmem:[#allocation2 + $0x60] sm:$0xff] }
  0x84   : > { %1436 = vmatprep.subr.bf16.mxu0 %v1435_v18  ;;  %1564 = vmatprep.subr.bf16.mxu1 %v1563_v23  ;;  %v539_v18 = vld [vmem:[#allocation2 + $0xbd0] sm:$0xff]  ;;  %v1583_v23 = vpack.c.bf16 %v549_v13, %v542_v12  ;;  %v166_v10 = vld [vmem:[#allocation2 + $0x28] sm:$0xff] }
  0x85   : > { %v279_v12 = vld [vmem:[#allocation2 + $0x3b0] sm:$0xff]  ;;  %v286_v13 = vld [vmem:[#allocation2 + $0x3e8] sm:$0xff] }
  0x87   : > { %1438 = vmatpush1.bf16.msra.mxu0 %v1437_v30  ;;  %1566 = vmatpush1.bf16.msra.mxu1 %v1565_v31  ;;  %v1457_v30 = vpack.c.bf16 %v546_v20, %v539_v18  ;;  %v1585_v31 = vpack.c.bf16 %v548_v24, %v541_v21  ;;  %v165_v18 = vld [vmem:[#allocation2 + $0x20] sm:$0xff]  ;;  %v172_v20 = vld [vmem:[#allocation2 + $0x58] sm:$0xff]  ;;  %v1731_v24 = vpack.c.bf16 %v286_v13, %v279_v12 }
  0x88   : > { %1440 = vmatprep.subr.bf16.mxu0 %v1439_v32  ;;  %1568 = vmatprep.subr.bf16.mxu1 %v1567_v36  ;;  %v1459_v32 = vpack.c.bf16 %v561_v26, %v554_v25  ;;  %v1587_v36 = vpack.c.bf16 %v563_v29, %v556_v28  ;;  %v180_v21 = vld [vmem:[#allocation2 + $0x98] sm:$0xff]  ;;  %v167_v25 = vld [vmem:[#allocation2 + $0x30] sm:$0xff]  ;;  %v174_v26 = vld [vmem:[#allocation2 + $0x68] sm:$0xff] }
  0x89   : > { %v293_v28 = vld [vmem:[#allocation2 + $0x420] sm:$0xff]  ;;  %v300_v29 = vld [vmem:[#allocation2 + $0x458] sm:$0xff] }
  0x8a   : > { %v356_v12 = vld [vmem:[#allocation2 + $0x618] sm:$0xff] }
  0x8b   : > { %1442 = vmatpush1.bf16.msra.mxu0 %v1441_v42  ;;  %1570 = vmatpush1.bf16.msra.mxu1 %v1569_v43  ;;  %v1461_v42 = vpack.c.bf16 %v560_v34, %v553_v33  ;;  %v1589_v43 = vpack.c.bf16 %v562_v37, %v555_v35  ;;  %v186_v33 = vld [vmem:[#allocation2 + $0xc8] sm:$0xff]  ;;  %v1733_v35 = vpack.c.bf16 %v174_v26, %v167_v25  ;;  %v244_v25 = vld [vmem:[#allocation2 + $0x298] sm:$0xff]  ;;  %v363_v26 = vld [vmem:[#allocation2 + $0x650] sm:$0xff] }
  0x8c   : > { %1444 = vmatprep.subr.bf16.mxu0 %v1443_v44  ;;  %1572 = vmatprep.subr.bf16.mxu1 %v1571_v48  ;;  %v1463_v44 = vpack.c.bf16 %v575_v39, %v568_v38  ;;  %v1591_v48 = vpack.c.bf16 %v577_v41, %v570_v40  ;;  %v194_v34 = vld [vmem:[#allocation2 + $0x108] sm:$0xff]  ;;  %v1735_v37 = vpack.c.bf16 %v300_v29, %v293_v28  ;;  %v181_v38 = vld [vmem:[#allocation2 + $0xa0] sm:$0xff]  ;;  %v188_v39 = vld [vmem:[#allocation2 + $0xd8] sm:$0xff] }
  0x8d   : > { %v307_v40 = vld [vmem:[#allocation2 + $0x490] sm:$0xff]  ;;  %v314_v41 = vld [vmem:[#allocation2 + $0x4c8] sm:$0xff] }
  0x8e   : > { %v370_v28 = vld [vmem:[#allocation2 + $0x688] sm:$0xff] }
  0x8f   : > { %1446 = vmatpush1.bf16.msra.mxu0 %v1445_v54  ;;  %1574 = vmatpush1.bf16.msra.mxu1 %v1573_v55  ;;  %v1465_v54 = vpack.c.bf16 %v574_v46, %v567_v45  ;;  %v1593_v55 = vpack.c.bf16 %v576_v49, %v569_v47  ;;  %v200_v45 = vld [vmem:[#allocation2 + $0x138] sm:$0xff]  ;;  %v1737_v47 = vpack.c.bf16 %v188_v39, %v181_v38  ;;  %v258_v38 = vld [vmem:[#allocation2 + $0x308] sm:$0xff]  ;;  %v377_v39 = vld [vmem:[#allocation2 + $0x6c0] sm:$0xff] }
  0x90   : > { %1448 = vmatprep.subr.bf16.mxu0 %v1447_v56  ;;  %1576 = vmatprep.subr.bf16.mxu1 %v1575_v60  ;;  %v1467_v56 = vpack.c.bf16 %v589_v51, %v582_v50  ;;  %v1595_v60 = vpack.c.bf16 %v591_v53, %v584_v52  ;;  %v208_v46 = vld [vmem:[#allocation2 + $0x178] sm:$0xff]  ;;  %v1739_v49 = vpack.c.bf16 %v314_v41, %v307_v40  ;;  %v195_v50 = vld [vmem:[#allocation2 + $0x110] sm:$0xff]  ;;  %v202_v51 = vld [vmem:[#allocation2 + $0x148] sm:$0xff] }
  0x91   : > { %v321_v52 = vld [vmem:[#allocation2 + $0x500] sm:$0xff]  ;;  %v328_v53 = vld [vmem:[#allocation2 + $0x538] sm:$0xff] }
  0x92   : > { %v384_v40 = vld [vmem:[#allocation2 + $0x6f8] sm:$0xff] }
  0x93   : > { %1450 = vmatpush1.bf16.msra.mxu0 %v1449_v2  ;;  %1578 = vmatpush1.bf16.msra.mxu1 %v1577_v3  ;;  %v1469_v2 = vpack.c.bf16 %v588_v58, %v581_v57  ;;  %v1597_v3 = vpack.c.bf16 %v590_v61, %v583_v59  ;;  %v214_v57 = vld [vmem:[#allocation2 + $0x1a8] sm:$0xff]  ;;  %v1741_v59 = vpack.c.bf16 %v202_v51, %v195_v50  ;;  %v272_v50 = vld [vmem:[#allocation2 + $0x378] sm:$0xff]  ;;  %v503_v51 = vld [vmem:[#allocation2 + $0xab0] sm:$0xff] }
  0x94   : > { %1452 = vmatprep.subr.bf16.mxu0 %v1451_v4  ;;  %1580 = vmatprep.subr.bf16.mxu1 %v1579_v8  ;;  %v1471_v4 = vpack.c.bf16 %v603_v63, %v596_v62  ;;  %v1599_v8 = vpack.c.bf16 %v605_v1, %v598_v0  ;;  %v222_v58 = vld [vmem:[#allocation2 + $0x1e8] sm:$0xff]  ;;  %v1743_v61 = vpack.c.bf16 %v328_v53, %v321_v52  ;;  %v209_v62 = vld [vmem:[#allocation2 + $0x180] sm:$0xff]  ;;  %v216_v63 = vld [vmem:[#allocation2 + $0x1b8] sm:$0xff] }
  0x95   : > { %v335_v0 = vld [vmem:[#allocation2 + $0x570] sm:$0xff]  ;;  %v342_v1 = vld [vmem:[#allocation2 + $0x5a8] sm:$0xff] }
  0x96   : > { %v510_v52 = vld [vmem:[#allocation2 + $0xae8] sm:$0xff] }
  0x97   : > { %1454 = vmatpush1.bf16.msra.mxu0 %v1453_v14  ;;  %1582 = vmatpush1.bf16.msra.mxu1 %v1581_v15  ;;  %v1473_v14 = vpack.c.bf16 %v602_v6, %v595_v5  ;;  %v1601_v15 = vpack.c.bf16 %v604_v9, %v597_v7  ;;  %v236_v5 = vld [vmem:[#allocation2 + $0x258] sm:$0xff]  ;;  %v1745_v6 = vpack.c.bf16 %v216_v63, %v209_v62  ;;  %v243_v7 = vld [vmem:[#allocation2 + $0x290] sm:$0xff]  ;;  %v398_v62 = vld [vmem:[#allocation2 + $0x768] sm:$0xff] }
  0x98   : > { %1456 = vmatprep.subr.bf16.mxu0 %v1455_v17  ;;  %1584 = vmatprep.subr.bf16.mxu1 %v1583_v23  ;;  %v1603_v17 = vpack.c.bf16 %v173_v11, %v166_v10  ;;  %v187_v23 = vld [vmem:[#allocation2 + $0xd0] sm:$0xff]  ;;  %v230_v10 = vld [vmem:[#allocation2 + $0x228] sm:$0xff]  ;;  %v349_v11 = vld [vmem:[#allocation2 + $0x5e0] sm:$0xff] }
  0x99   : > { %v223_v9 = vld [vmem:[#allocation2 + $0x1f0] sm:$0xff]  ;;  %v517_v63 = vld [vmem:[#allocation2 + $0xb20] sm:$0xff] }
  0x9b   : > { %1458 = vmatpush1.bf16.msra.mxu0 %v1457_v30  ;;  %1586 = vmatpush1.bf16.msra.mxu1 %v1585_v31  ;;  %v1605_v30 = vpack.c.bf16 %v172_v20, %v165_v18  ;;  %v1607_v31 = vpack.c.bf16 %v187_v23, %v180_v21  ;;  %v250_v18 = vld [vmem:[#allocation2 + $0x2c8] sm:$0xff]  ;;  %v1749_v20 = vpack.c.bf16 %v230_v10, %v223_v9  ;;  %v257_v21 = vld [vmem:[#allocation2 + $0x300] sm:$0xff]  ;;  %v412_v9 = vld [vmem:[#allocation2 + $0x7d8] sm:$0xff] }
  0x9c   : > { %1460 = vmatprep.subr.bf16.mxu0 %v1459_v32  ;;  %1588 = vmatprep.subr.bf16.mxu1 %v1587_v36  ;;  %v179_v32 = vld [vmem:[#allocation2 + $0x90] sm:$0xff]  ;;  %v201_v36 = vld [vmem:[#allocation2 + $0x140] sm:$0xff]  ;;  %v1751_v23 = vpack.c.bf16 %v356_v12, %v349_v11  ;;  %v538_v11 = vld [vmem:[#allocation2 + $0xbc8] sm:$0xff] }
  0x9d   : > { %v531_v10 = vld [vmem:[#allocation2 + $0xb90] sm:$0xff] }
  0x9f   : > { %1462 = vmatpush1.bf16.msra.mxu0 %v1461_v42  ;;  %1590 = vmatpush1.bf16.msra.mxu1 %v1589_v43  ;;  %v1609_v42 = vpack.c.bf16 %v186_v33, %v179_v32  ;;  %v1611_v43 = vpack.c.bf16 %v201_v36, %v194_v34  ;;  %v256_v32 = vld [vmem:[#allocation2 + $0x2f8] sm:$0xff]  ;;  %v1755_v36 = vpack.c.bf16 %v370_v28, %v363_v26 }
  0xa0   : > { %1464 = vmatprep.subr.bf16.mxu0 %v1463_v44  ;;  %1592 = vmatprep.subr.bf16.mxu1 %v1591_v48  ;;  %v193_v44 = vld [vmem:[#allocation2 + $0x100] sm:$0xff]  ;;  %v215_v48 = vld [vmem:[#allocation2 + $0x1b0] sm:$0xff]  ;;  %v264_v33 = vld [vmem:[#allocation2 + $0x338] sm:$0xff] }
  0xa1   : > { %v552_v26 = vld [vmem:[#allocation2 + $0xc38] sm:$0xff] }
  0xa3   : > { %1466 = vmatpush1.bf16.msra.mxu0 %v1465_v54  ;;  %1594 = vmatpush1.bf16.msra.mxu1 %v1593_v55  ;;  %v1613_v54 = vpack.c.bf16 %v200_v45, %v193_v44  ;;  %v1615_v55 = vpack.c.bf16 %v215_v48, %v208_v46  ;;  %v270_v44 = vld [vmem:[#allocation2 + $0x368] sm:$0xff]  ;;  %v1759_v48 = vpack.c.bf16 %v384_v40, %v377_v39 }
  0xa4   : > { %1468 = vmatprep.subr.bf16.mxu0 %v1467_v56  ;;  %1596 = vmatprep.subr.bf16.mxu1 %v1595_v60  ;;  %v207_v56 = vld [vmem:[#allocation2 + $0x170] sm:$0xff]  ;;  %v229_v60 = vld [vmem:[#allocation2 + $0x220] sm:$0xff]  ;;  %v278_v45 = vld [vmem:[#allocation2 + $0x3a8] sm:$0xff] }
  0xa7   : > { %1470 = vmatpush1.bf16.msra.mxu0 %v1469_v2  ;;  %1598 = vmatpush1.bf16.msra.mxu1 %v1597_v3  ;;  %v1617_v2 = vpack.c.bf16 %v214_v57, %v207_v56  ;;  %v221_v3 = vld [vmem:[#allocation2 + $0x1e0] sm:$0xff]  ;;  %v284_v56 = vld [vmem:[#allocation2 + $0x3d8] sm:$0xff] }
  0xa8   : > { %1472 = vmatprep.subr.bf16.mxu0 %v1471_v4  ;;  %1600 = vmatprep.subr.bf16.mxu1 %v1599_v8  ;;  %v228_v4 = vld [vmem:[#allocation2 + $0x218] sm:$0xff]  ;;  %v1747_v8 = vpack.c.bf16 %v342_v1, %v335_v0 }
  0xa9   : > { %v1621_v13 = vpack.c.bf16 %v228_v4, %v221_v3  ;;  %v292_v57 = vld [vmem:[#allocation2 + $0x418] sm:$0xff]  ;;  %v298_v3 = vld [vmem:[#allocation2 + $0x448] sm:$0xff] }
  0xaa   : > { %v524_v0 = vld [vmem:[#allocation2 + $0xb58] sm:$0xff]  ;;  %v306_v4 = vld [vmem:[#allocation2 + $0x488] sm:$0xff] }
  0xab   : > { %1474 = vmatpush1.bf16.msra.mxu0 %v1473_v14  ;;  %1602 = vmatpush1.bf16.msra.mxu1 %v1601_v15  ;;  %v1623_v14 = vpack.c.bf16 %v243_v7, %v236_v5  ;;  %v235_v15 = vld [vmem:[#allocation2 + $0x250] sm:$0xff]  ;;  %v1767_v7 = vpack.c.bf16 %v524_v0, %v517_v63 }
  0xac   : > { %1604 = vmatprep.subr.bf16.mxu0 %v1603_v17  ;;  %1732 = vmatprep.subr.bf16.mxu1 %v1731_v24  ;;  %v242_v17 = vld [vmem:[#allocation2 + $0x288] sm:$0xff]  ;;  %v237_v24 = vld [vmem:[#allocation2 + $0x260] sm:$0xff] }
  0xad   : > { %v1625_v29 = vpack.c.bf16 %v242_v17, %v235_v15  ;;  %v1753_v34 = vpack.c.bf16 %v244_v25, %v237_v24  ;;  %v312_v15 = vld [vmem:[#allocation2 + $0x4b8] sm:$0xff]  ;;  %v426_v24 = vld [vmem:[#allocation2 + $0x848] sm:$0xff]  ;;  %v545_v25 = vld [vmem:[#allocation2 + $0xc00] sm:$0xff] }
  0xae   : > { %751 = vmatmul.mubr.f32.vlgmr.msra.gmra.mrb[0].mxu0 %v1954_v22  ;;  %893 = vmatmul.mubr.f32.vlgmr.msra.gmra.mrb[0].mxu1 %v1954_v22  ;;  %v320_v17 = vld [vmem:[#allocation2 + $0x4f8] sm:$0xff] }
  0xaf   : > { %1606 = vmatpush1.bf16.msra.mxu0 %v1605_v30  ;;  %1734 = vmatpush3.bf16.msra.mxu1 %v1733_v35  ;;  %v1627_v30 = vpack.c.bf16 %v257_v21, %v250_v18  ;;  %v271_v35 = vld [vmem:[#allocation2 + $0x370] sm:$0xff]  ;;  %v1771_v21 = vpack.c.bf16 %v538_v11, %v531_v10 }
  0xb0   : > { %1608 = vmatprep.subr.bf16.mxu0 %v1607_v31  ;;  %1736 = vmatprep.subr.bf16.mxu1 %v1735_v37  ;;  %v249_v31 = vld [vmem:[#allocation2 + $0x2c0] sm:$0xff]  ;;  %v251_v37 = vld [vmem:[#allocation2 + $0x2d0] sm:$0xff] }
  0xb1   : > { %1105 = vmatprep.mubr.f32.mxu1 %v1947_v19  ;;  %963 = vmatprep.mubr.f32.mxu0 %v1947_v19  ;;  %v1619_v19 = vpack.c.bf16 %v229_v60, %v222_v58  ;;  %v1629_v41 = vpack.c.bf16 %v256_v32, %v249_v31  ;;  %v1757_v46 = vpack.c.bf16 %v258_v38, %v251_v37  ;;  %v334_v31 = vld [vmem:[#allocation2 + $0x568] sm:$0xff]  ;;  %v559_v37 = vld [vmem:[#allocation2 + $0xc70] sm:$0xff] }
  0xb2   : > { %v1763_v60 = vpack.c.bf16 %v510_v52, %v503_v51  ;;  %v566_v38 = vld [vmem:[#allocation2 + $0xca8] sm:$0xff] }
  0xb3   : > { %1610 = vmatpush1.bf16.msra.mxu0 %v1609_v42  ;;  %1738 = vmatpush3.bf16.msra.mxu1 %v1737_v47  ;;  %v1631_v42 = vpack.c.bf16 %v271_v35, %v264_v33  ;;  %v285_v47 = vld [vmem:[#allocation2 + $0x3e0] sm:$0xff] }
  0xb4   : > { %1612 = vmatprep.subr.bf16.mxu0 %v1611_v43  ;;  %1740 = vmatprep.subr.bf16.mxu1 %v1739_v49  ;;  %v263_v43 = vld [vmem:[#allocation2 + $0x330] sm:$0xff]  ;;  %v265_v49 = vld [vmem:[#allocation2 + $0x340] sm:$0xff] }
  0xb5   : > { %v1633_v53 = vpack.c.bf16 %v270_v44, %v263_v43  ;;  %v1761_v58 = vpack.c.bf16 %v272_v50, %v265_v49  ;;  %v341_v33 = vld [vmem:[#allocation2 + $0x5a0] sm:$0xff]  ;;  %v348_v43 = vld [vmem:[#allocation2 + $0x5d8] sm:$0xff] }
  0xb6   : > { %v433_v35 = vld [vmem:[#allocation2 + $0x880] sm:$0xff]  ;;  %v1651_v40 = vpack.c.bf16 %v341_v33, %v334_v31  ;;  %v580_v50 = vld [vmem:[#allocation2 + $0xd18] sm:$0xff]  ;;  %v410_v33 = vld [vmem:[#allocation2 + $0x7c8] sm:$0xff] }
  0xb7   : > { %1614 = vmatpush1.bf16.msra.mxu0 %v1613_v54  ;;  %1742 = vmatpush3.bf16.msra.mxu1 %v1741_v59  ;;  %v1635_v54 = vpack.c.bf16 %v285_v47, %v278_v45  ;;  %v299_v59 = vld [vmem:[#allocation2 + $0x450] sm:$0xff]  ;;  %v573_v49 = vld [vmem:[#allocation2 + $0xce0] sm:$0xff] }
  0xb8   : > { %1616 = vmatprep.subr.bf16.mxu0 %v1615_v55  ;;  %1744 = vmatprep.subr.bf16.mxu1 %v1743_v61  ;;  %v277_v55 = vld [vmem:[#allocation2 + $0x3a0] sm:$0xff]  ;;  %v391_v61 = vld [vmem:[#allocation2 + $0x730] sm:$0xff] }
  0xb9   : > { %v1637_v1 = vpack.c.bf16 %v284_v56, %v277_v55  ;;  %v1765_v5 = vpack.c.bf16 %v398_v62, %v391_v61  ;;  %v355_v45 = vld [vmem:[#allocation2 + $0x610] sm:$0xff]  ;;  %v362_v55 = vld [vmem:[#allocation2 + $0x648] sm:$0xff] }
  0xba   : > { %v447_v47 = vld [vmem:[#allocation2 + $0x8f0] sm:$0xff]  ;;  %v1655_v52 = vpack.c.bf16 %v355_v45, %v348_v43  ;;  %v594_v62 = vld [vmem:[#allocation2 + $0xd88] sm:$0xff] }
  0xbb   : > { %1618 = vmatpush1.bf16.msra.mxu0 %v1617_v2  ;;  %1746 = vmatpush3.bf16.msra.mxu1 %v1745_v6  ;;  %v1639_v2 = vpack.c.bf16 %v299_v59, %v292_v57  ;;  %v313_v6 = vld [vmem:[#allocation2 + $0x4c0] sm:$0xff]  ;;  %v587_v61 = vld [vmem:[#allocation2 + $0xd50] sm:$0xff] }
  0xbc   : > { %1620 = vmatprep.subr.bf16.mxu0 %v1619_v19  ;;  %1748 = vmatprep.subr.bf16.mxu1 %v1747_v8  ;;  %v291_v19 = vld [vmem:[#allocation2 + $0x410] sm:$0xff]  ;;  %v405_v8 = vld [vmem:[#allocation2 + $0x7a0] sm:$0xff] }
  0xbd   : > { %v1641_v12 = vpack.c.bf16 %v298_v3, %v291_v19  ;;  %v1769_v18 = vpack.c.bf16 %v412_v9, %v405_v8  ;;  %v369_v57 = vld [vmem:[#allocation2 + $0x680] sm:$0xff]  ;;  %v376_v19 = vld [vmem:[#allocation2 + $0x6b8] sm:$0xff]  ;;  %v431_v45 = vld [vmem:[#allocation2 + $0x870] sm:$0xff] }
  0xbe   : > { %v461_v59 = vld [vmem:[#allocation2 + $0x960] sm:$0xff]  ;;  %v1659_v0 = vpack.c.bf16 %v369_v57, %v362_v55  ;;  %v608_v9 = vld [vmem:[#allocation2 + $0xdf8] sm:$0xff]  ;;  %v459_v55 = vld [vmem:[#allocation2 + $0x950] sm:$0xff] }
  0xbf   : > { %1622 = vmatpush1.bf16.msra.mxu0 %v1621_v13  ;;  %1750 = vmatpush3.bf16.msra.mxu1 %v1749_v20  ;;  %v1643_v13 = vpack.c.bf16 %v313_v6, %v306_v4  ;;  %v327_v20 = vld [vmem:[#allocation2 + $0x530] sm:$0xff]  ;;  %v601_v8 = vld [vmem:[#allocation2 + $0xdc0] sm:$0xff]  ;;  %v474_v57 = vld [vmem:[#allocation2 + $0x9c8] sm:$0xff] }
  0xc0   : > { %1624 = vmatprep.subr.bf16.mxu0 %v1623_v14  ;;  %1752 = vmatprep.subr.bf16.mxu1 %v1751_v23  ;;  %v305_v14 = vld [vmem:[#allocation2 + $0x480] sm:$0xff]  ;;  %v419_v23 = vld [vmem:[#allocation2 + $0x810] sm:$0xff] }
  0xc1   : > { %v1645_v28 = vpack.c.bf16 %v312_v15, %v305_v14  ;;  %v1773_v32 = vpack.c.bf16 %v426_v24, %v419_v23  ;;  %v383_v4 = vld [vmem:[#allocation2 + $0x6f0] sm:$0xff]  ;;  %v390_v14 = vld [vmem:[#allocation2 + $0x728] sm:$0xff] }
  0xc2   : > { %v475_v6 = vld [vmem:[#allocation2 + $0x9d0] sm:$0xff]  ;;  %v1663_v11 = vpack.c.bf16 %v383_v4, %v376_v19  ;;  %v502_v4 = vld [vmem:[#allocation2 + $0xaa8] sm:$0xff] }
  0xc3   : > { %1626 = vmatpush1.bf16.msra.mxu0 %v1625_v29  ;;  %1754 = vmatpush3.bf16.msra.mxu1 %v1753_v34  ;;  %v319_v29 = vld [vmem:[#allocation2 + $0x4f0] sm:$0xff]  ;;  %v1775_v34 = vpack.c.bf16 %v552_v26, %v545_v25  ;;  %v389_v25 = vld [vmem:[#allocation2 + $0x720] sm:$0xff]  ;;  %v396_v26 = vld [vmem:[#allocation2 + $0x758] sm:$0xff] }
  0xc4   : > { %1628 = vmatprep.subr.bf16.mxu0 %v1627_v30  ;;  %1756 = vmatprep.subr.bf16.mxu1 %v1755_v36  ;;  %v326_v30 = vld [vmem:[#allocation2 + $0x528] sm:$0xff]  ;;  %v440_v36 = vld [vmem:[#allocation2 + $0x8b8] sm:$0xff]  ;;  %v487_v19 = vld [vmem:[#allocation2 + $0xa30] sm:$0xff] }
  0xc5   : > { %v1649_v39 = vpack.c.bf16 %v326_v30, %v319_v29  ;;  %v1777_v44 = vpack.c.bf16 %v440_v36, %v433_v35  ;;  %v411_v29 = vld [vmem:[#allocation2 + $0x7d0] sm:$0xff]  ;;  %v1669_v30 = vpack.c.bf16 %v396_v26, %v389_v25  ;;  %v425_v35 = vld [vmem:[#allocation2 + $0x840] sm:$0xff]  ;;  %v544_v25 = vld [vmem:[#allocation2 + $0xbf8] sm:$0xff] }
  0xc6   : > { %v1825_v36 = vld [vmem:[%s1940_s30] sm:$0xff]  ;;  %v551_v26 = vld [vmem:[#allocation2 + $0xc30] sm:$0xff] }
  0xc7   : > { %1630 = vmatpush1.bf16.msra.mxu0 %v1629_v41  ;;  %1758 = vmatpush3.bf16.msra.mxu1 %v1757_v46  ;;  %v333_v41 = vld [vmem:[#allocation2 + $0x560] sm:$0xff]  ;;  %v1779_v46 = vpack.c.bf16 %v566_v38, %v559_v37 }
  0xc8   : > { %1632 = vmatprep.subr.bf16.mxu0 %v1631_v42  ;;  %1760 = vmatprep.subr.bf16.mxu1 %v1759_v48  ;;  %v340_v42 = vld [vmem:[#allocation2 + $0x598] sm:$0xff]  ;;  %v454_v48 = vld [vmem:[#allocation2 + $0x928] sm:$0xff] }
  0xc9   : > { %v1653_v51 = vpack.c.bf16 %v340_v42, %v333_v41  ;;  %v1781_v56 = vpack.c.bf16 %v454_v48, %v447_v47  ;;  %v432_v41 = vld [vmem:[#allocation2 + $0x878] sm:$0xff]  ;;  %v439_v42 = vld [vmem:[#allocation2 + $0x8b0] sm:$0xff]  ;;  %v446_v47 = vld [vmem:[#allocation2 + $0x8e8] sm:$0xff] }
  0xca   : > { %v453_v48 = vld [vmem:[#allocation2 + $0x920] sm:$0xff] }
  0xcb   : > { %1634 = vmatpush1.bf16.msra.mxu0 %v1633_v53  ;;  %1762 = vmatpush3.bf16.msra.mxu1 %v1761_v58  ;;  %v347_v53 = vld [vmem:[#allocation2 + $0x5d0] sm:$0xff]  ;;  %v1783_v58 = vpack.c.bf16 %v580_v50, %v573_v49  ;;  %v445_v50 = vld [vmem:[#allocation2 + $0x8e0] sm:$0xff] }
  0xcc   : > { %1636 = vmatprep.subr.bf16.mxu0 %v1635_v54  ;;  %1764 = vmatprep.subr.bf16.mxu1 %v1763_v60  ;;  %v354_v54 = vld [vmem:[#allocation2 + $0x608] sm:$0xff]  ;;  %v468_v60 = vld [vmem:[#allocation2 + $0x998] sm:$0xff] }
  0xcd   : > { %v1657_v63 = vpack.c.bf16 %v354_v54, %v347_v53  ;;  %v1785_v3 = vpack.c.bf16 %v468_v60, %v461_v59  ;;  %v467_v53 = vld [vmem:[#allocation2 + $0x990] sm:$0xff] }
  0xce   : > { %1106 = vmatmul.mubr.f32.vlgmr.msra.gmra.mrb[2].mxu1 %v1943_v16  ;;  %v1647_v16 = vpack.c.bf16 %v327_v20, %v320_v17  ;;  %v397_v17 = vld [vmem:[#allocation2 + $0x760] sm:$0xff] }
  0xcf   : > { %1638 = vmatpush1.bf16.msra.mxu0 %v1637_v1  ;;  %1766 = vmatpush3.bf16.msra.mxu1 %v1765_v5  ;;  %v361_v1 = vld [vmem:[#allocation2 + $0x640] sm:$0xff]  ;;  %v1787_v5 = vpack.c.bf16 %v594_v62, %v587_v61  ;;  %v1667_v24 = vpack.c.bf16 %v397_v17, %v390_v14  ;;  %v480_v62 = vld [vmem:[#allocation2 + $0x9f8] sm:$0xff]  ;;  %v515_v14 = vld [vmem:[#allocation2 + $0xb10] sm:$0xff] }
  0xd0   : > { %1640 = vmatprep.subr.bf16.mxu0 %v1639_v2  ;;  %1768 = vmatprep.subr.bf16.mxu1 %v1767_v7  ;;  %v368_v2 = vld [vmem:[#allocation2 + $0x678] sm:$0xff]  ;;  %v482_v7 = vld [vmem:[#allocation2 + $0xa08] sm:$0xff]  ;;  %v489_v20 = vld [vmem:[#allocation2 + $0xa40] sm:$0xff] }
  0xd1   : > { %1175 = vmatprep.mubr.f32.mxu1 %v1958_v27  ;;  %v1661_v10 = vpack.c.bf16 %v368_v2, %v361_v1  ;;  %v1789_v15 = vpack.c.bf16 %v482_v7, %v475_v6  ;;  %v473_v61 = vld [vmem:[#allocation2 + $0x9c0] sm:$0xff]  ;;  %v530_v17 = vld [vmem:[#allocation2 + $0xb88] sm:$0xff] }
  0xd2   : > { %v1693_v1 = vpack.c.bf16 %v480_v62, %v473_v61 }
  0xd3   : > { %1642 = vmatpush1.bf16.msra.mxu0 %v1641_v12  ;;  %1770 = vmatpush3.bf16.msra.mxu1 %v1769_v18  ;;  %v375_v12 = vld [vmem:[#allocation2 + $0x6b0] sm:$0xff]  ;;  %v1791_v18 = vpack.c.bf16 %v608_v9, %v601_v8  ;;  %v501_v8 = vld [vmem:[#allocation2 + $0xaa0] sm:$0xff]  ;;  %v508_v9 = vld [vmem:[#allocation2 + $0xad8] sm:$0xff] }
  0xd4   : > { %1644 = vmatprep.subr.bf16.mxu0 %v1643_v13  ;;  %1772 = vmatprep.subr.bf16.mxu1 %v1771_v21  ;;  %v382_v13 = vld [vmem:[#allocation2 + $0x6e8] sm:$0xff]  ;;  %v496_v21 = vld [vmem:[#allocation2 + $0xa78] sm:$0xff] }
  0xd5   : > { %v1665_v23 = vpack.c.bf16 %v382_v13, %v375_v12  ;;  %v1701_v12 = vpack.c.bf16 %v508_v9, %v501_v8 }
  0xd7   : > { %1646 = vmatpush1.bf16.msra.mxu0 %v1645_v28  ;;  %1774 = vmatpush3.bf16.msra.mxu1 %v1773_v32  ;;  %v1793_v28 = vpack.c.bf16 %v496_v21, %v489_v20  ;;  %v403_v32 = vld [vmem:[#allocation2 + $0x790] sm:$0xff] }
  0xd8   : > { %1648 = vmatprep.subr.bf16.mxu0 %v1647_v16  ;;  %1776 = vmatprep.subr.bf16.mxu1 %v1775_v34  ;;  %v404_v16 = vld [vmem:[#allocation2 + $0x798] sm:$0xff]  ;;  %v418_v34 = vld [vmem:[#allocation2 + $0x808] sm:$0xff]  ;;  %v1673_v37 = vpack.c.bf16 %v410_v33, %v403_v32  ;;  %v565_v32 = vld [vmem:[#allocation2 + $0xca0] sm:$0xff] }
  0xd9   : > { %v1671_v31 = vpack.c.bf16 %v411_v29, %v404_v16  ;;  %v1675_v38 = vpack.c.bf16 %v425_v35, %v418_v34  ;;  %v1711_v16 = vpack.c.bf16 %v551_v26, %v544_v25  ;;  %v543_v29 = vld [vmem:[#allocation2 + $0xbf0] sm:$0xff]  ;;  %v557_v35 = vld [vmem:[#allocation2 + $0xc60] sm:$0xff] }
  0xdb   : > { %1650 = vmatpush1.bf16.msra.mxu0 %v1649_v39  ;;  %1778 = vmatpush3.bf16.msra.mxu1 %v1777_v44  ;;  %v417_v39 = vld [vmem:[#allocation2 + $0x800] sm:$0xff]  ;;  %v1679_v44 = vpack.c.bf16 %v439_v42, %v432_v41  ;;  %v571_v41 = vld [vmem:[#allocation2 + $0xcd0] sm:$0xff]  ;;  %v578_v42 = vld [vmem:[#allocation2 + $0xd08] sm:$0xff] }
  0xdc   : > { %1652 = vmatprep.subr.bf16.mxu0 %v1651_v40  ;;  %1780 = vmatprep.subr.bf16.mxu1 %v1779_v46  ;;  %v424_v40 = vld [vmem:[#allocation2 + $0x838] sm:$0xff]  ;;  %v438_v46 = vld [vmem:[#allocation2 + $0x8a8] sm:$0xff] }
  0xdd   : > { %v1677_v43 = vpack.c.bf16 %v424_v40, %v417_v39  ;;  %v1681_v49 = vpack.c.bf16 %v438_v46, %v431_v45  ;;  %v1721_v45 = vpack.c.bf16 %v578_v42, %v571_v41 }
  0xdf   : > { %1654 = vmatpush1.bf16.msra.mxu0 %v1653_v51  ;;  %1782 = vmatpush3.bf16.msra.mxu1 %v1781_v56  ;;  %v452_v51 = vld [vmem:[#allocation2 + $0x918] sm:$0xff]  ;;  %v466_v56 = vld [vmem:[#allocation2 + $0x988] sm:$0xff] }
  0xe0   : > { %1656 = vmatprep.subr.bf16.mxu0 %v1655_v52  ;;  %1784 = vmatprep.subr.bf16.mxu1 %v1783_v58  ;;  %v460_v52 = vld [vmem:[#allocation2 + $0x958] sm:$0xff]  ;;  %v481_v58 = vld [vmem:[#allocation2 + $0xa00] sm:$0xff]  ;;  %v1689_v59 = vpack.c.bf16 %v466_v56, %v459_v55 }
  0xe1   : > { %v1687_v54 = vpack.c.bf16 %v467_v53, %v460_v52  ;;  %v1691_v60 = vpack.c.bf16 %v481_v58, %v474_v57  ;;  %v599_v52 = vld [vmem:[#allocation2 + $0xdb0] sm:$0xff]  ;;  %v606_v53 = vld [vmem:[#allocation2 + $0xde8] sm:$0xff] }
  0xe3   : > { %1658 = vmatpush1.bf16.msra.mxu0 %v1657_v63  ;;  %1786 = vmatpush3.bf16.msra.mxu1 %v1785_v3  ;;  %v488_v63 = vld [vmem:[#allocation2 + $0xa38] sm:$0xff]  ;;  %v494_v3 = vld [vmem:[#allocation2 + $0xa68] sm:$0xff] }
  0xe4   : > { %1660 = vmatprep.subr.bf16.mxu0 %v1659_v0  ;;  %1788 = vmatprep.subr.bf16.mxu1 %v1787_v5  ;;  %v495_v0 = vld [vmem:[#allocation2 + $0xa70] sm:$0xff]  ;;  %v509_v5 = vld [vmem:[#allocation2 + $0xae0] sm:$0xff]  ;;  %v1697_v6 = vpack.c.bf16 %v494_v3, %v487_v19 }
  0xe5   : > { %v1695_v2 = vpack.c.bf16 %v495_v0, %v488_v63  ;;  %v1699_v7 = vpack.c.bf16 %v509_v5, %v502_v4 }
  0xe7   : > { %1662 = vmatpush1.bf16.msra.mxu0 %v1661_v10  ;;  %1790 = vmatpush3.bf16.msra.mxu1 %v1789_v15  ;;  %v516_v10 = vld [vmem:[#allocation2 + $0xb18] sm:$0xff]  ;;  %v522_v15 = vld [vmem:[#allocation2 + $0xb48] sm:$0xff] }
  0xe8   : > { %1664 = vmatprep.subr.bf16.mxu0 %v1663_v11  ;;  %1792 = vmatprep.subr.bf16.mxu1 %v1791_v18  ;;  %v523_v11 = vld [vmem:[#allocation2 + $0xb50] sm:$0xff]  ;;  %v537_v18 = vld [vmem:[#allocation2 + $0xbc0] sm:$0xff]  ;;  %v1705_v20 = vpack.c.bf16 %v522_v15, %v515_v14 }
  0xe9   : > { %v1703_v13 = vpack.c.bf16 %v523_v11, %v516_v10  ;;  %v1707_v21 = vpack.c.bf16 %v537_v18, %v530_v17 }
  0xeb   : > { %1666 = vmatpush1.bf16.msra.mxu0 %v1665_v23  ;;  %1794 = vmatpush3.bf16.msra.mxu1 %v1793_v28  ;;  %v529_v23 = vld [vmem:[#allocation2 + $0xb80] sm:$0xff] }
  0xec   : > { %1668 = vmatprep.subr.bf16.mxu0 %v1667_v24  ;;  %v536_v24 = vld [vmem:[#allocation2 + $0xbb8] sm:$0xff] }
  0xed   : > { %v1709_v28 = vpack.c.bf16 %v536_v24, %v529_v23 }
  0xee   : > { %964 = vmatmul.mubr.f32.vlgmr.msra.gmra.mrb[2].mxu0 %v1825_v36  ;;  %1176 = vmatmul.mubr.f32.vlgmr.msra.gmra.mrb[4].mxu1 %v1954_v22  ;;  %v1683_v22 = vpack.c.bf16 %v453_v48, %v446_v47  ;;  %v564_v36 = vld [vmem:[#allocation2 + $0xc98] sm:$0xff]  ;;  %v585_v47 = vld [vmem:[#allocation2 + $0xd40] sm:$0xff] }
  0xef   : > { %1670 = vmatpush1.bf16.msra.mxu0 %v1669_v30  ;;  %1034 = vmatprep.mubr.f32.mxu0 %v1958_v27  ;;  %v1685_v27 = vpack.c.bf16 %v452_v51, %v445_v50  ;;  %v550_v30 = vld [vmem:[#allocation2 + $0xc28] sm:$0xff]  ;;  %v1717_v39 = vpack.c.bf16 %v564_v36, %v557_v35  ;;  %v592_v48 = vld [vmem:[#allocation2 + $0xd78] sm:$0xff] }
  0xf0   : > { %1672 = vmatprep.subr.bf16.mxu0 %v1671_v31  ;;  %v558_v31 = vld [vmem:[#allocation2 + $0xc68] sm:$0xff]  ;;  %v1713_v33 = vpack.c.bf16 %v550_v30, %v543_v29  ;;  %v1725_v50 = vpack.c.bf16 %v592_v48, %v585_v47 }
  0xf1   : > { %v1715_v34 = vpack.c.bf16 %v565_v32, %v558_v31 }
  0xf3   : > { %1674 = vmatpush1.bf16.msra.mxu0 %v1673_v37  ;;  %v572_v37 = vld [vmem:[#allocation2 + $0xcd8] sm:$0xff] }
  0xf4   : > { %1676 = vmatprep.subr.bf16.mxu0 %v1675_v38  ;;  %v579_v38 = vld [vmem:[#allocation2 + $0xd10] sm:$0xff] }
  0xf5   : > { %v1719_v40 = vpack.c.bf16 %v579_v38, %v572_v37 }
  0xf7   : > { %1678 = vmatpush1.bf16.msra.mxu0 %v1677_v43  ;;  %v586_v43 = vld [vmem:[#allocation2 + $0xd48] sm:$0xff] }
  0xf8   : > { %1680 = vmatprep.subr.bf16.mxu0 %v1679_v44  ;;  %v593_v44 = vld [vmem:[#allocation2 + $0xd80] sm:$0xff] }
  0xf9   : > { %v1723_v46 = vpack.c.bf16 %v593_v44, %v586_v43 }
  0xfb   : > { %1682 = vmatpush1.bf16.msra.mxu0 %v1681_v49  ;;  %v600_v49 = vld [vmem:[#allocation2 + $0xdb8] sm:$0xff] }
  0xfc   : > { %1684 = vmatprep.subr.bf16.mxu0 %v1683_v22  ;;  %v607_v22 = vld [vmem:[#allocation2 + $0xdf0] sm:$0xff] }
  0xfd   : > { %v1727_v51 = vpack.c.bf16 %v607_v22, %v600_v49 }
  0xff   : > { %1686 = vmatpush1.bf16.msra.mxu0 %v1685_v27  ;;  %v1729_v27 = vpack.c.bf16 %v606_v53, %v599_v52 }
 0x100   : > { %1688 = vmatprep.subr.bf16.mxu0 %v1687_v54  ;;  %v1826_v54 = vld [vmem:[%s1940_s30 + $0x8] sm:$0xff] }
 0x103   : > { %1690 = vmatpush1.bf16.msra.mxu0 %v1689_v59 }
 0x104   : > { %1692 = vmatprep.subr.bf16.mxu0 %v1691_v60 }
 0x107   : > { %1694 = vmatpush1.bf16.msra.mxu0 %v1693_v1 }
 0x108   : > { %1696 = vmatprep.subr.bf16.mxu0 %v1695_v2 }
 0x10b   : > { %1698 = vmatpush1.bf16.msra.mxu0 %v1697_v6 }
 0x10c   : > { %1700 = vmatprep.subr.bf16.mxu0 %v1699_v7 }
 0x10f   : > { %1702 = vmatpush1.bf16.msra.mxu0 %v1701_v12 }
 0x110   : > { %1704 = vmatprep.subr.bf16.mxu0 %v1703_v13 }
 0x113   : > { %1706 = vmatpush1.bf16.msra.mxu0 %v1705_v20 }
 0x114   : > { %1708 = vmatprep.subr.bf16.mxu0 %v1707_v21 }
 0x117   : > { %1710 = vmatpush1.bf16.msra.mxu0 %v1709_v28 }
 0x118   : > { %1712 = vmatprep.subr.bf16.mxu0 %v1711_v16 }
 0x11b   : > { %1714 = vmatpush1.bf16.msra.mxu0 %v1713_v33 }
 0x11c   : > { %1716 = vmatprep.subr.bf16.mxu0 %v1715_v34 }
 0x11f   : > { %1718 = vmatpush1.bf16.msra.mxu0 %v1717_v39 }
 0x120   : > { %1720 = vmatprep.subr.bf16.mxu0 %v1719_v40 }
 0x123   : > { %1722 = vmatpush1.bf16.msra.mxu0 %v1721_v45 }
 0x124   : > { %1724 = vmatprep.subr.bf16.mxu0 %v1723_v46 }
 0x127   : > { %1726 = vmatpush1.bf16.msra.mxu0 %v1725_v50 }
 0x128   : > { %1728 = vmatprep.subr.bf16.mxu0 %v1727_v51 }
 0x12b   : > { %1730 = vmatpush1.bf16.msra.mxu0 %v1729_v27 }
 0x12e   : > { %1035 = vmatmul.mubr.f32.vlgmr.msra.gmra.mrb[2].mxu0 %v1826_v54 }
 0x181   : > { %v752_v55 = vpop.f32.mrb[0].mxu0  ;;  %v894_v56 = vpop.f32.mrb[0].mxu1 }
 0x182   : > { %v754_v57 = vpop.f32.mrb[1].mxu0  ;;  %v896_v59 = vpop.f32.mrb[1].mxu1 }
 0x183   : > { %v1187_v58 = vcombine.low %v752_v55, %v754_v57  ;;  %v1188_v60 = vcombine.low %v894_v56, %v896_v59 }
 0x185   : > { %1193 = vst [vmem:[%s158_s6] sm:$0xff] %v1187_v58  ;;  %1194 = vst [vmem:[%s158_s6 + $0x8] sm:$0xff] %v1188_v60 }
 0x1a1   : > { %v1309_v61 = vpop.f32.mrb[2].mxu1 }
 0x1a2   : > { %v1310_v62 = vpop.f32.mrb[3].mxu1 }
 0x1a3   : > { %v1311_v63 = vadd.f32 %v1310_v62, %v1309_v61 }
 0x1c1   : > { %v1344_v0 = vpop.f32.mrb[4].mxu1 }
 0x1c2   : > { %v1345_v1 = vpop.f32.mrb[5].mxu1 }
 0x1c3   : > { %v1346_v2 = vadd.f32 %v1345_v1, %v1344_v0 }
 0x1c5   : > { %v1178_v19 = vadd.f32 %v1346_v2, %v1311_v63 }
 0x1c7   : > { %1196 = vst [vmem:[%s158_s6 + $0x18] sm:$0xf] %v1178_v19 }
 0x201   : > { %v1036_v3 = vpop.f32.mrb[2].mxu0 }
 0x202   : > { %v1038_v4 = vpop.f32.mrb[3].mxu0 }
 0x203   : > { %v1189_v5 = vcombine.low %v1036_v3, %v1038_v4 }
 0x205   : > { %1195 = vst [vmem:[%s158_s6 + $0x10] sm:$0xff] %v1189_v5 }
 0x206 PF: > { %s13_s9 = sadd.s32 1, %s1865_s9  }
 0x207   : > { %p10_p3 = scmp.ge.s32.totalorder %s13_s9, 4  }
 0x209   :  { %12 = sbr.rel (!%p10_p3) target bundleno = 1 (0x1), region = 63 }
 0x210   :  { %1218 = vsyncpa [#allocation3], 1 }
 0x211   :  { %1220 = vsyncpa [#allocation3 + $0x1], 1 }

// kernel: multi_scale_sg_gen_view_forward.9
= control target key start
LH: loop header
LB: loop body
LE: loop exit
PB: predicated region body
PF: predicated region fallthrough
CT: control target
= control target key end

     0   :  { %s6136_s24 = smov 0   ;;  %s7964_s0 = inlined_call_operand.vmem [shape: f32[2,4,896], index: 0, kind: input, shape index: {}]   ;;  %s7965_s1 = inlined_call_operand.vmem [shape: f32[2,4,896], index: 1, kind: input, shape index: {}]   ;;  %s7966_s2 = inlined_call_operand.vmem [shape: bf16[9,32,4], index: 2, kind: input, shape index: {}]   ;;  %s7967_s3 = inlined_call_operand.vmem [shape: f32[32,1], index: 3, kind: input, shape index: {}]   ;;  %s7968_s4 = inlined_call_operand.vmem [shape: bf16[9,4,32], index: 4, kind: input, shape index: {}]   ;;  %s7969_s5 = inlined_call_operand.vmem [shape: f32[4,1], index: 5, kind: input, shape index: {}]   ;;  %s7970_s6 = inlined_call_operand.vmem [shape: f32[9,1,896], index: 6, kind: input, shape index: {}]   ;;  %s7971_s7 = inlined_call_operand.vmem [shape: f32[2,4,896], index: 7, kind: output, shape index: {}]  }
   0x1 LB: > { %s5396_s25 = sadd.s32 4294967295, %s6083_s24   ;;  %p5400_p0 = scmp.ge.s32.totalorder %s6083_s24, 1  ;;  %s6083_s24 = sphi %s6136_s24, %s17_s24  }
   0x2   : > { %p247_p1 = scmp.lt.s32.totalorder %s6083_s24, 3 }
   0x4   : > { %p248_p2 = pnand %p5400_p0, %p247_p1 }
   0x6   : > { %251 = sbr.rel (%p248_p2) target bundleno = 1164 (0x48c), region = 48 }
   0xd   : > { %p284_p3 = scmp.lt.s32.totalorder %s5396_s25, 1  ;;  %s6085_s10 = smov 28   ;;  %v7976_v14 = vmov 0   ;;  %v335_v16 = vlaneseq  ;;  %v6306_v20 = vld [vmem:[%s7970_s6 + $0x7] sm:$0xff]  ;;  %vm496_vm1 = vcmask 1041408   ;;  %v6366_v46 = vld [vmem:[%s7966_s2 + $0x10] sm:$0xff]  }
   0xe   : > { %550 = vmatprep.mubr.bf16.mxu0 %v7976_v14  ;;  %603 = vmatprep.mubr.bf16.mxu1 %v7976_v14  ;;  %s6087_s11 = smov 29   ;;  %s6088_s12 = smov 27   ;;  %v6351_v37 = vld [vmem:[%s7970_s6] sm:$0xff]  ;;  %vm489_vm3 = vcmask 31744   ;;  %v6395_v60 = vld [vmem:[%s7966_s2 + $0x18] sm:$0xff]   ;;  %vm3491_vm10 = vcmask 261120  }
   0xf   : > { %s8107_s25 = smov (!%p284_p3, %s5396_s25), 1  ;;  %6039 = vset.pattern.permute.xlu0 %v7976_v14  ;;  %6040 = vset.pattern.permute.xlu1 %v7976_v14  ;;  %s6089_s13 = smov 1   ;;  %v6288_v17 = vshrl.u32 %v335_v16, 7  ;;  %v6294_v18 = vand.u32 127, %v335_v16  ;;  %vm6095_vm11 = vmmov 0  }
  0x10   : > { %s6144_s26 = smul.u32 28, %s8107_s25  ;;  %s6090_s14 = smov 127  }
  0x11   : > { %s6091_s15 = smov 101   ;;  %s6092_s16 = smov 100   ;;  %v6297_v19 = vsub.s32 0, %v6288_v17  ;;  %vm414_vm0 = vcmp.lt.s32.totalorder %v6294_v18, 28  ;;  %v6310_v21 = vsub.s32 1, %v6288_v17  ;;  %v6322_v26 = vsub.s32 4, %v6288_v17 }
  0x12   : > { %s6150_s29 = scalar_lea.vmem %s7964_s0, %s6144_s26  ;;  %s293_s9 = scalar_lea.vmem %s7965_s1, %s6144_s26  ;;  %v6325_v27 = vsub.s32 5, %v6288_v17  ;;  %vm337_vm2 = vcmp.lt.s32.totalorder %v6294_v18, 29  ;;  %vm985_vm4 = vcmp.lt.s32.totalorder %v6294_v18, 27  ;;  %vm1337_vm5 = vcmp.lt.s32.totalorder %v6294_v18, 1 }
  0x13   : > { %v303_v0 = vld [vmem:[%s6150_s29 + $0x18] sm:$0xf]  ;;  %v304_v1 = vld [vmem:[%s293_s9] sm:$0xff]  ;;  %v305_v2 = vld [vmem:[%s293_s9 + $0x8] sm:$0xff]  ;;  %s6093_s17 = smov 99   ;;  %v6314_v22 = vrot.slane %v6306_v20, %v6297_v19  ;;  %v6329_v28 = vrot.slane %v6306_v20, %v6310_v21  ;;  %v6341_v33 = vrot.slane %v6306_v20, %v6322_v26  ;;  %v6370_v47 = vrot.slane %v6351_v37, %v6310_v21 }
  0x14   : > { %v306_v3 = vld [vmem:[%s293_s9 + $0x10] sm:$0xff]  ;;  %v307_v4 = vld [vmem:[%s293_s9 + $0x18] sm:$0xf]  ;;  %v300_v5 = vld [vmem:[%s6150_s29] sm:$0xff]  ;;  %v6345_v34 = vrot.slane %v6306_v20, %v6325_v27  ;;  %v6385_v57 = vrot.slane %v6351_v37, %v6297_v19  ;;  %v6403_v63 = vrot.slane %v6351_v37, %v6325_v27  ;;  %vm1974_vm6 = vcmp.lt.s32.totalorder %v6294_v18, 127 }
  0x15   : > { %v6158_v6 = vadd.f32 %v307_v4, %v303_v0  ;;  %v301_v7 = vld [vmem:[%s6150_s29 + $0x8] sm:$0xff]  ;;  %v302_v8 = vld [vmem:[%s6150_s29 + $0x10] sm:$0xff]  ;;  %v6162_v9 = vadd.f32 %v304_v1, %v300_v5  ;;  %v6417_v4 = vsub.s32 2, %v6288_v17  ;;  %vm2326_vm7 = vcmp.lt.s32.totalorder %v6294_v18, 101 }
  0x16   : > { %v6164_v10 = vadd.f32 %v305_v2, %v301_v7  ;;  %v6168_v11 = vadd.f32 %v306_v3, %v302_v8  ;;  %v6409_v2 = vsub.s32 6, %v6288_v17  ;;  %v6414_v3 = vsub.s32 3, %v6288_v17 }
  0x17   : > { %412 = vrot.lane.b32.xlu1 %v6158_v6, %s6085_s10  ;;  %400 = vrot.lane.b32.xlu0 %v6162_v9, %s6085_s10  ;;  %v6174_v12 = vcombine.high %v6162_v9, %v6162_v9  ;;  %v6435_v17 = vrot.slane %v6306_v20, %v6417_v4  ;;  %vm2678_vm8 = vcmp.lt.s32.totalorder %v6294_v18, 100  ;;  %vm3030_vm9 = vcmp.lt.s32.totalorder %v6294_v18, 99 }
  0x18   : > { %v6178_v13 = vcombine.high %v6164_v10, %v6164_v10  ;;  %v6190_v15 = vcombine.high %v6168_v11, %v6168_v11 }
  0x1b   : > { %406 = vrot.lane.b32.xlu1 %v6178_v13, %s6085_s10  ;;  %402 = vrot.lane.b32.xlu0 %v6174_v12, %s6085_s10 }
  0x1f   : > { %410 = vrot.lane.b32.xlu1 %v6190_v15, %s6085_s10  ;;  %408 = vrot.lane.b32.xlu0 %v6168_v11, %s6085_s10 }
  0x23   : > { %323 = vrot.lane.b32.xlu1 %v6174_v12, %s6087_s11  ;;  %321 = vrot.lane.b32.xlu0 %v6162_v9, %s6087_s11 }
  0x27   : > { %327 = vrot.lane.b32.xlu1 %v6178_v13, %s6087_s11  ;;  %333 = vrot.lane.b32.xlu0 %v6158_v6, %s6087_s11 }
  0x2b   : > { %331 = vrot.lane.b32.xlu1 %v6190_v15, %s6087_s11  ;;  %329 = vrot.lane.b32.xlu0 %v6168_v11, %s6087_s11 }
  0x2f   : > { %973 = vrot.lane.b32.xlu1 %v6174_v12, %s6088_s12  ;;  %971 = vrot.lane.b32.xlu0 %v6162_v9, %s6088_s12 }
  0x33   : > { %404 = vrot.lane.b32.xlu1 %v6164_v10, %s6085_s10  ;;  %983 = vrot.lane.b32.xlu0 %v6158_v6, %s6088_s12 }
  0x37   : > { %979 = vrot.lane.b32.xlu1 %v6168_v11, %s6088_s12  ;;  %977 = vrot.lane.b32.xlu0 %v6178_v13, %s6088_s12 }
  0x3b   : > { %325 = vrot.lane.b32.xlu1 %v6164_v10, %s6087_s11  ;;  %981 = vrot.lane.b32.xlu0 %v6190_v15, %s6088_s12 }
  0x3f   : > { %1323 = vrot.lane.b32.xlu0 %v6162_v9, %s6089_s13  ;;  %1325 = vrot.lane.b32.xlu1 %v6174_v12, %s6089_s13 }
  0x43   : > { %1335 = vrot.lane.b32.xlu0 %v6158_v6, %s6089_s13  ;;  %1329 = vrot.lane.b32.xlu1 %v6178_v13, %s6089_s13 }
  0x47   : > { %1331 = vrot.lane.b32.xlu0 %v6168_v11, %s6089_s13  ;;  %1333 = vrot.lane.b32.xlu1 %v6190_v15, %s6089_s13 }
  0x4b   : > { %975 = vrot.lane.b32.xlu0 %v6164_v10, %s6088_s12  ;;  %1327 = vrot.lane.b32.xlu1 %v6164_v10, %s6089_s13 }
  0x4f   : > { %1960 = vrot.lane.b32.xlu0 %v6162_v9, %s6090_s14  ;;  %1962 = vrot.lane.b32.xlu1 %v6174_v12, %s6090_s14 }
  0x53   : > { %1964 = vrot.lane.b32.xlu0 %v6164_v10, %s6090_s14  ;;  %1968 = vrot.lane.b32.xlu1 %v6168_v11, %s6090_s14 }
  0x57   : > { %1970 = vrot.lane.b32.xlu0 %v6190_v15, %s6090_s14  ;;  %1972 = vrot.lane.b32.xlu1 %v6158_v6, %s6090_s14 }
  0x5b   : > { %1966 = vrot.lane.b32.xlu0 %v6178_v13, %s6090_s14  ;;  %2312 = vrot.lane.b32.xlu1 %v6162_v9, %s6091_s15 }
  0x5f   : > { %2316 = vrot.lane.b32.xlu1 %v6164_v10, %s6091_s15  ;;  %2314 = vrot.lane.b32.xlu0 %v6174_v12, %s6091_s15 }
  0x63   : > { %2322 = vrot.lane.b32.xlu1 %v6190_v15, %s6091_s15  ;;  %2320 = vrot.lane.b32.xlu0 %v6168_v11, %s6091_s15 }
  0x67   : > { %2318 = vrot.lane.b32.xlu1 %v6178_v13, %s6091_s15  ;;  %2324 = vrot.lane.b32.xlu0 %v6158_v6, %s6091_s15 }
  0x6b   : > { %2664 = vrot.lane.b32.xlu0 %v6162_v9, %s6092_s16  ;;  %2666 = vrot.lane.b32.xlu1 %v6174_v12, %s6092_s16 }
  0x6f   : > { %2668 = vrot.lane.b32.xlu0 %v6164_v10, %s6092_s16  ;;  %2670 = vrot.lane.b32.xlu1 %v6178_v13, %s6092_s16 }
  0x73   : > { %2672 = vrot.lane.b32.xlu0 %v6168_v11, %s6092_s16  ;;  %2674 = vrot.lane.b32.xlu1 %v6190_v15, %s6092_s16 }
  0x77   : > { %3016 = vrot.lane.b32.xlu1 %v6162_v9, %s6093_s17  ;;  %2676 = vrot.lane.b32.xlu0 %v6158_v6, %s6092_s16 }
  0x7b   : > { %3020 = vrot.lane.b32.xlu1 %v6164_v10, %s6093_s17  ;;  %3018 = vrot.lane.b32.xlu0 %v6174_v12, %s6093_s17 }
  0x7f   : > { %3024 = vrot.lane.b32.xlu1 %v6168_v11, %s6093_s17  ;;  %3022 = vrot.lane.b32.xlu0 %v6178_v13, %s6093_s17 }
  0x83   : > { %3028 = vrot.lane.b32.xlu1 %v6158_v6, %s6093_s17  ;;  %3026 = vrot.lane.b32.xlu0 %v6190_v15, %s6093_s17 }
  0x89   : > { %v6316_v23 = vpop.permute.xlu1 %412  ;;  %v401_v24 = vpop.permute.xlu0 %400 }
  0x8a   : > { %v421_v25 = vsel %vm414_vm0, %v6316_v23, %v401_v24 }
  0x8b   : > { %v460_v29 = vmul.f32 %v6314_v22, %v421_v25  ;;  %v6431_v25 = vrot.slane %v6306_v20, %v6414_v3 }
  0x8d   : > { %v6332_v30 = vpop.permute.xlu1 %406  ;;  %v6334_v31 = vpop.permute.xlu0 %402  ;;  %v472_v36 = vpack.c.bf16 %v460_v29, %v460_v29 }
  0x8e   : > { %v420_v32 = vsel %vm414_vm0, %v401_v24, %v6334_v31  ;;  %v6427_v24 = vrot.slane %v6306_v20, %v6409_v2 }
  0x8f   : > { %v461_v35 = vmul.f32 %v6329_v28, %v420_v32  ;;  %v498_v45 = vsel %vm496_vm1, %v472_v36, 0 }
  0x91   : > { %v411_v38 = vpop.permute.xlu1 %410  ;;  %v409_v39 = vpop.permute.xlu0 %408  ;;  %v473_v40 = vpack.c.bf16 %v461_v35, %v461_v35 }
  0x92   : > { %v416_v41 = vsel %vm414_vm0, %v409_v39, %v411_v38  ;;  %v417_v42 = vsel %vm414_vm0, %v6332_v30, %v409_v39  ;;  %v415_v29 = vsel %vm414_vm0, %v411_v38, %v6316_v23 }
  0x93   : > { %v464_v43 = vmul.f32 %v6341_v33, %v417_v42  ;;  %v465_v44 = vmul.f32 %v6345_v34, %v416_v41  ;;  %5411 = vmatprep.subr.msk.bf16.mxu0 %vm496_vm1, %v473_v40  ;;  %v466_v20 = vmul.f32 %v6427_v24, %v415_v29  ;;  %v6457_v42 = vrot.slane %v6351_v37, %v6322_v26 }
  0x94   : > { %519 = vmatpush1.bf16.msra.mxu0 %v498_v45 }
  0x95   : > { %v476_v48 = vpack.c.bf16 %v464_v43, %v464_v43  ;;  %v477_v49 = vpack.c.bf16 %v465_v44, %v465_v44  ;;  %v6372_v50 = vpop.permute.xlu1 %323  ;;  %v322_v51 = vpop.permute.xlu0 %321 }
  0x96   : > { %v343_v52 = vsel %vm337_vm2, %v322_v51, %v6372_v50 }
  0x97   : > { %5412 = vmatmul.mubr.msk.bf16.vlgmr.msra.gmra.mrb[0].mxu0 %vm489_vm3, %v6366_v46  ;;  %5417 = vmatprep.subr.msk.bf16.mxu0 %vm496_vm1, %v477_v49  ;;  %v510_v53 = vsel %vm496_vm1, %v476_v48, 0  ;;  %v383_v54 = vmul.f32 %v6370_v47, %v343_v52  ;;  %v6469_v48 = vld [vmem:[%s7970_s6 + $0xe] sm:$0xff]  ;;  %v478_v49 = vpack.c.bf16 %v466_v20, %v466_v20  ;;  %v6476_v52 = vrot.slane %v6351_v37, %v6414_v3 }
  0x98   : > { %625 = vmatpush1.bf16.msra.mxu0 %v510_v53  ;;  %560 = vmatprep.mubr.bf16.mxu0 %v7976_v14 }
  0x99   : > { %v328_v55 = vpop.permute.xlu1 %327  ;;  %v394_v56 = vpack.c.bf16 %v383_v54, %v383_v54  ;;  %v6387_v58 = vpop.permute.xlu0 %333  ;;  %v6481_v54 = vrot.slane %v6469_v48, %v6310_v21 }
  0x9a   : > { %v344_v59 = vsel %vm337_vm2, %v6387_v58, %v322_v51 }
  0x9b   : > { %5424 = vmatprep.subr.msk.bf16.mxu0 %vm496_vm1, %v394_v56  ;;  %v382_v62 = vmul.f32 %v6385_v57, %v344_v59 }
  0x9d   : > { %v6398_v61 = vpop.permute.xlu1 %331  ;;  %v330_v0 = vpop.permute.xlu0 %329  ;;  %v393_v5 = vpack.c.bf16 %v382_v62, %v382_v62 }
  0x9e   : > { %v339_v1 = vsel %vm337_vm2, %v330_v0, %v6398_v61  ;;  %v340_v45 = vsel %vm337_vm2, %v328_v55, %v330_v0 }
  0x9f   : > { %5413 = vmatmul.mubr.msk.bf16.gmra.mrb[4].mxu0 %vm489_vm3, %v6395_v60  ;;  %v387_v8 = vmul.f32 %v6403_v63, %v339_v1  ;;  %v743_v36 = vsel %vm496_vm1, %v393_v5, 0  ;;  %v386_v53 = vmul.f32 %v6457_v42, %v340_v45  ;;  %v516_v5 = vsel %vm496_vm1, %v478_v49, 0 }
  0xa0   : > { %656 = vmatprep.mubr.bf16.mxu0 %v7976_v14 }
  0xa1   : > { %v6420_v7 = vpop.permute.xlu1 %973  ;;  %v6423_v16 = vpop.permute.xlu0 %971  ;;  %v398_v32 = vpack.c.bf16 %v387_v8, %v387_v8  ;;  %v397_v8 = vpack.c.bf16 %v386_v53, %v386_v53  ;;  %v6557_v53 = vrot.slane %v6469_v48, %v6414_v3 }
  0xa2   : > { %v991_v62 = vsel %vm985_vm4, %v6423_v16, %v6420_v7 }
  0xa3   : > { %v1032_v29 = vmul.f32 %v6481_v54, %v991_v62  ;;  %v755_v20 = vsel %vm496_vm1, %v397_v8, 0 }
  0xa5   : > { %v405_v35 = vpop.permute.xlu1 %404  ;;  %v6441_v39 = vpop.permute.xlu0 %983 }
  0xa6   : > { %v419_v40 = vsel %vm414_vm0, %v6334_v31, %v405_v35  ;;  %v418_v41 = vsel %vm414_vm0, %v405_v35, %v6332_v30  ;;  %v992_v45 = vsel %vm985_vm4, %v6441_v39, %v6423_v16 }
  0xa7   : > { %5418 = vmatmul.mubr.msk.bf16.vlgmr.msra.gmra.mrb[8].mxu0 %vm489_vm3, %v6366_v46  ;;  %v463_v23 = vmul.f32 %v6431_v25, %v418_v41  ;;  %v462_v38 = vmul.f32 %v6435_v17, %v419_v40  ;;  %v1044_v41 = vpack.c.bf16 %v1032_v29, %v1032_v29 }
  0xa8   : > { %764 = vmatpush1.bf16.msra.mxu0 %v743_v36  ;;  %666 = vmatprep.mubr.bf16.mxu0 %v7976_v14  ;;  %v6511_v36 = vld [vmem:[%s7966_s2] sm:$0xff]  }
  0xa9   : > { %v6459_v31 = vpop.permute.xlu1 %979  ;;  %v475_v43 = vpack.c.bf16 %v463_v23, %v463_v23  ;;  %v474_v30 = vpack.c.bf16 %v462_v38, %v462_v38  ;;  %v6461_v44 = vpop.permute.xlu0 %977  ;;  %5430 = vmatprep.subr.msk.bf16.mxu0 %vm496_vm1, %v398_v32  ;;  %v6521_v38 = vrot.slane %v6351_v37, %v6409_v2 }
  0xab   : > { %5414 = vmatprep.subr.msk.bf16.mxu1 %vm496_vm1, %v475_v43  ;;  %v504_v51 = vsel %vm496_vm1, %v474_v30, 0 }
  0xac   : > { %572 = vmatpush1.bf16.msra.mxu1 %v504_v51  ;;  %v6553_v51 = vrot.slane %v6469_v48, %v6325_v27 }
  0xad   : > { %v326_v56 = vpop.permute.xlu1 %325  ;;  %6010 = vmatprep.subr.msk.bf16.mxu1 %vm496_vm1, %v478_v49  ;;  %v6484_v59 = vpop.permute.xlu0 %981 }
  0xae   : > { %v341_v0 = vsel %vm337_vm2, %v326_v56, %v328_v55  ;;  %v6505_v55 = vrot.slane %v6351_v37, %v6417_v4  ;;  %v342_v40 = vsel %vm337_vm2, %v6372_v50, %v326_v56  ;;  %v338_v50 = vsel %vm337_vm2, %v6398_v61, %v6387_v58 }
  0xaf   : > { %v385_v1 = vmul.f32 %v6476_v52, %v341_v0  ;;  %5415 = vmatmul.mubr.msk.bf16.vlgmr.msra.gmra.mrb[0].mxu1 %vm489_vm3, %v6366_v46  ;;  %5419 = vmatmul.mubr.msk.bf16.gmra.mrb[12].mxu0 %vm489_vm3, %v6395_v60  ;;  %v6536_v37 = vrot.slane %v6469_v48, %v6297_v19  ;;  %v388_v58 = vmul.f32 %v6521_v38, %v338_v50 }
  0xb0   : > { %5661 = vmatpush3.bf16.msra.mxu1 %v516_v5  ;;  %613 = vmatprep.mubr.bf16.mxu1 %v7976_v14  ;;  %v384_v43 = vmul.f32 %v6505_v55, %v342_v40  ;;  %v987_v16 = vsel %vm985_vm4, %v6459_v31, %v6484_v59  ;;  %v6587_v50 = vrot.slane %v6469_v48, %v6322_v26 }
  0xb1   : > { %v396_v32 = vpack.c.bf16 %v385_v1, %v385_v1  ;;  %v6500_v35 = vpop.permute.xlu0 %1323  ;;  %795 = vmatprep.mubr.bf16.mxu0 %v7976_v14  ;;  %v1031_v49 = vmul.f32 %v6536_v37, %v992_v45  ;;  %v399_v62 = vpack.c.bf16 %v388_v58, %v388_v58  ;;  %v6573_v8 = vpop.permute.xlu1 %1325  ;;  %v988_v45 = vsel %vm985_vm4, %v6461_v44, %v6459_v31  ;;  %v6600_v58 = vld [vmem:[%s7970_s6 + $0x15] sm:$0xff] }
  0xb2   : > { %v395_v61 = vpack.c.bf16 %v384_v43, %v384_v43  ;;  %v1035_v31 = vmul.f32 %v6587_v50, %v988_v45  ;;  %v6651_v45 = vrot.slane %v6600_v58, %v6297_v19 }
  0xb3   : > { %5427 = vmatprep.subr.msk.bf16.mxu1 %vm496_vm1, %v396_v32  ;;  %v1043_v5 = vpack.c.bf16 %v1031_v49, %v1031_v49 }
  0xb4   : > { %v749_v0 = vsel %vm496_vm1, %v395_v61, 0  ;;  %v6604_v61 = vrot.slane %v6469_v48, %v6417_v4 }
  0xb5   : > { %v6517_v23 = vpop.permute.xlu0 %1335  ;;  %v1067_v32 = vsel %vm496_vm1, %v1043_v5, 0  ;;  %v6583_v43 = vpop.permute.xlu1 %1329 }
  0xb7   : > { %5416 = vmatmul.mubr.msk.bf16.gmra.mrb[4].mxu1 %vm489_vm3, %v6395_v60  ;;  %5425 = vmatmul.mubr.msk.bf16.vlgmr.msra.gmra.mrb[0].mxu0 %vm489_vm3, %v6511_v36 }
  0xb8   : > { %870 = vmatpush1.bf16.msra.mxu0 %v755_v20  ;;  %5662 = vmatprep.mubr.msk.bf16.mxu1 %vm489_vm3, %v6366_v46  ;;  %v6044_v46 = vld [vmem:[%s7966_s2 + $0x8] sm:$0xff]   ;;  %v761_v20 = vsel %vm496_vm1, %v399_v62, 0 }
  0xb9   : > { %v6538_v30 = vpop.permute.xlu0 %1331  ;;  %805 = vmatprep.mubr.bf16.mxu0 %v7976_v14  ;;  %5442 = vmatprep.subr.msk.bf16.mxu0 %vm496_vm1, %v1044_v41 }
  0xbd   : > { %v976_v56 = vpop.permute.xlu0 %975 }
  0xbe   : > { %v989_v1 = vsel %vm985_vm4, %v976_v56, %v6461_v44  ;;  %v990_v49 = vsel %vm985_vm4, %v6420_v7, %v976_v56  ;;  %v1334_v44 = vpop.permute.xlu1 %1333  ;;  %v1343_v7 = vsel %vm1337_vm5, %v6500_v35, %v6573_v8  ;;  %v986_v56 = vsel %vm985_vm4, %v6484_v59, %v6441_v39 }
  0xbf   : > { %5663 = vmatmul.mubr.msk.bf16.vlgmr.msra.gmra.mrb[8].mxu1 %vm489_vm3, %v6395_v60  ;;  %5426 = vmatmul.mubr.msk.bf16.gmra.mrb[4].mxu0 %vm489_vm3, %v6044_v46  ;;  %v1036_v60 = vmul.f32 %v6553_v51, %v987_v16  ;;  %v1034_v29 = vmul.f32 %v6557_v53, %v989_v1  ;;  %v6617_v16 = vrot.slane %v6469_v48, %v6409_v2 }
  0xc0   : > { %817 = vmatpush1.bf16.msra.mxu1 %v749_v0  ;;  %848 = vmatprep.mubr.bf16.mxu1 %v7976_v14  ;;  %v1033_v0 = vmul.f32 %v6604_v61, %v990_v49  ;;  %v1047_v48 = vpack.c.bf16 %v1035_v31, %v1035_v31  ;;  %v6641_v39 = vrot.slane %v6600_v58, %v6414_v3  ;;  %v6046_v31 = vld [vmem:[%s7966_s2 + $0x28] sm:$0xff]  }
  0xc1   : > { %6011 = vmatprep.subr.msk.bf16.mxu1 %vm496_vm1, %v399_v62  ;;  %901 = vmatprep.mubr.bf16.mxu0 %v7976_v14  ;;  %v1048_v40 = vpack.c.bf16 %v1036_v60, %v1036_v60  ;;  %v1046_v41 = vpack.c.bf16 %v1034_v29, %v1034_v29  ;;  %v6613_v62 = vrot.slane %v6600_v58, %v6310_v21  ;;  %v6045_v29 = vld [vmem:[%s7966_s2 + $0x20] sm:$0xff]  }
  0xc2   : > { %v1037_v5 = vmul.f32 %v6617_v16, %v986_v56  ;;  %v1045_v60 = vpack.c.bf16 %v1033_v0, %v1033_v0 }
  0xc3   : > { %v1384_v1 = vmul.f32 %v6613_v62, %v1343_v7  ;;  %v6668_v7 = vrot.slane %v6600_v58, %v6325_v27 }
  0xc5   : > { %v1396_v59 = vpack.c.bf16 %v1384_v1, %v1384_v1 }
  0xc7   : > { %5428 = vmatmul.mubr.msk.bf16.vlgmr.msra.gmra.mrb[0].mxu1 %vm489_vm3, %v6511_v36  ;;  %5431 = vmatmul.mubr.msk.bf16.vlgmr.msra.gmra.mrb[8].mxu0 %vm489_vm3, %v6511_v36 }
  0xc8   : > { %5667 = vmatpush3.bf16.msra.mxu1 %v761_v20  ;;  %1088 = vmatpush1.bf16.msra.mxu0 %v1067_v32  ;;  %v1328_v32 = vpop.permute.xlu1 %1327  ;;  %v1073_v20 = vsel %vm496_vm1, %v1045_v60, 0  ;;  %v6680_v60 = vrot.slane %v6600_v58, %v6417_v4 }
  0xc9   : > { %858 = vmatprep.mubr.bf16.mxu1 %v7976_v14  ;;  %911 = vmatprep.mubr.bf16.mxu0 %v7976_v14 }
  0xca   : > { %5445 = vmatprep.subr.msk.bf16.mxu1 %vm496_vm1, %v1046_v41  ;;  %5448 = vmatprep.subr.msk.bf16.mxu0 %vm496_vm1, %v1048_v40  ;;  %v1079_v40 = vsel %vm496_vm1, %v1047_v48, 0  ;;  %v1049_v41 = vpack.c.bf16 %v1037_v5, %v1037_v5  ;;  %v1339_v48 = vsel %vm1337_vm5, %v6538_v30, %v1334_v44 }
  0xcb   : > { %v1388_v5 = vmul.f32 %v6668_v7, %v1339_v48  ;;  %v1681_v48 = vpack.c.bf16 %v6174_v12, %v6174_v12 }
  0xcc   : > { %v6734_v12 = vpop.permute.xlu1 %1962 }
  0xcf   : > { %5429 = vmatmul.mubr.msk.bf16.gmra.mrb[4].mxu1 %vm489_vm3, %v6044_v46  ;;  %5432 = vmatmul.mubr.msk.bf16.gmra.mrb[12].mxu0 %vm489_vm3, %v6044_v46 }
  0xd0   : > { %5668 = vmatprep.mubr.msk.bf16.mxu1 %vm489_vm3, %v6511_v36  ;;  %1119 = vmatprep.mubr.bf16.mxu0 %v7976_v14  ;;  %v1341_v36 = vsel %vm1337_vm5, %v1328_v32, %v6583_v43 }
  0xd1   : > { %v1386_v49 = vmul.f32 %v6641_v39, %v1341_v36  ;;  %v1400_v36 = vpack.c.bf16 %v1388_v5, %v1388_v5 }
  0xd3   : > { %v1398_v56 = vpack.c.bf16 %v1386_v49, %v1386_v49  ;;  %v1338_v49 = vsel %vm1337_vm5, %v1334_v44, %v6517_v23 }
  0xd7   : > { %5669 = vmatmul.mubr.msk.bf16.vlgmr.msra.gmra.mrb[8].mxu1 %vm489_vm3, %v6044_v46  ;;  %5443 = vmatmul.mubr.msk.bf16.vlgmr.msra.gmra.mrb[0].mxu0 %vm489_vm3, %v6045_v29  ;;  %v1344_v46 = vsel %vm1337_vm5, %v6517_v23, %v6500_v35  ;;  %v1085_v35 = vsel %vm496_vm1, %v1049_v41, 0  ;;  %v1340_v23 = vsel %vm1337_vm5, %v6583_v43, %v6538_v30  ;;  %v6047_v30 = vld [vmem:[%s7966_s2 + $0x30] sm:$0xff]  }
  0xd8   : > { %1141 = vmatpush1.bf16.msra.mxu1 %v1073_v20  ;;  %1194 = vmatpush1.bf16.msra.mxu0 %v1079_v40  ;;  %v1383_v0 = vmul.f32 %v6651_v45, %v1344_v46  ;;  %v1342_v40 = vsel %vm1337_vm5, %v6573_v8, %v1328_v32  ;;  %v6701_v8 = vrot.slane %v6600_v58, %v6322_v26 }
  0xd9   : > { %6012 = vmatprep.subr.msk.bf16.mxu1 %vm496_vm1, %v1049_v41  ;;  %1129 = vmatprep.mubr.bf16.mxu0 %v7976_v14  ;;  %v1385_v41 = vmul.f32 %v6680_v60, %v1342_v40  ;;  %v6745_v40 = vpop.permute.xlu1 %1968 }
  0xda   : > { %1172 = vmatprep.mubr.bf16.mxu1 %v7976_v14  ;;  %5460 = vmatprep.subr.msk.bf16.mxu0 %vm496_vm1, %v1396_v59  ;;  %v1395_v1 = vpack.c.bf16 %v1383_v0, %v1383_v0  ;;  %v6689_v59 = vrot.slane %v6600_v58, %v6409_v2  ;;  %v1387_v44 = vmul.f32 %v6701_v8, %v1340_v23 }
  0xdb   : > { %v1397_v46 = vpack.c.bf16 %v1385_v41, %v1385_v41  ;;  %v1682_v41 = vpack.c.bf16 %v6164_v10, %v6164_v10 }
  0xdc   : > { %v1419_v20 = vsel %vm496_vm1, %v1395_v1, 0  ;;  %v1389_v32 = vmul.f32 %v6689_v59, %v1338_v49  ;;  %v1399_v58 = vpack.c.bf16 %v1387_v44, %v1387_v44  ;;  %v1685_v44 = vpack.c.bf16 %v6190_v15, %v6190_v15 }
  0xdd   : > { %v1710_v23 = vsel %vm496_vm1, %v1682_v41, 0 }
  0xde   : > { %v1401_v0 = vpack.c.bf16 %v1389_v32, %v1389_v32  ;;  %v1431_v43 = vsel %vm496_vm1, %v1399_v58, 0  ;;  %v1973_v32 = vpop.permute.xlu1 %1972 }
  0xdf   : > { %5444 = vmatmul.mubr.msk.bf16.gmra.mrb[4].mxu0 %vm489_vm3, %v6046_v31  ;;  %5446 = vmatmul.mubr.msk.bf16.vlgmr.msra.gmra.mrb[0].mxu1 %vm489_vm3, %v6045_v29 }
  0xe0   : > { %5673 = vmatpush3.bf16.msra.mxu1 %v1085_v35  ;;  %1182 = vmatprep.mubr.bf16.mxu1 %v7976_v14  ;;  %v1437_v35 = vsel %vm496_vm1, %v1401_v0, 0 }
  0xe1   : > { %1225 = vmatprep.mubr.bf16.mxu0 %v7976_v14  ;;  %5463 = vmatprep.subr.msk.bf16.mxu1 %vm496_vm1, %v1398_v56  ;;  %v1425_v56 = vsel %vm496_vm1, %v1397_v46, 0 }
  0xe2   : > { %v6777_v15 = vpop.permute.xlu1 %2312 }
  0xe7   : > { %5447 = vmatmul.mubr.msk.bf16.gmra.mrb[4].mxu1 %vm489_vm3, %v6046_v31  ;;  %5449 = vmatmul.mubr.msk.bf16.vlgmr.msra.gmra.mrb[8].mxu0 %vm489_vm3, %v6045_v29 }
  0xe8   : > { %1440 = vmatpush1.bf16.msra.mxu0 %v1419_v20  ;;  %1235 = vmatprep.mubr.bf16.mxu0 %v7976_v14  ;;  %v6754_v20 = vld [vmem:[%s7970_s6 + $0x23] sm:$0xff] }
  0xe9   : > { %5674 = vmatprep.mubr.msk.bf16.mxu1 %vm489_vm3, %v6045_v29  ;;  %5466 = vmatprep.subr.msk.bf16.mxu0 %vm496_vm1, %v1400_v36  ;;  %v6717_v29 = vpop.permute.xlu0 %1960  ;;  %v1680_v36 = vpack.c.bf16 %v6162_v9, %v6162_v9  ;;  %v1686_v9 = vpack.c.bf16 %v6158_v6, %v6158_v6  ;;  %v6765_v10 = vrot.slane %v6754_v20, %v6414_v3 }
  0xea   : > { %v6784_v58 = vrot.slane %v6754_v20, %v6310_v21  ;;  %v6801_v41 = vrot.slane %v6754_v20, %v6417_v4 }
  0xeb   : > { %v1704_v46 = vsel %vm496_vm1, %v1680_v36, 0  ;;  %8016 = vst [vmem:[#allocation2_spill] sm:$0xff] %v6765_v10  ;;  %v1684_v36 = vpack.c.bf16 %v6168_v11, %v6168_v11 }
  0xec   : > { %8017 = vst [vmem:[#allocation3_spill] sm:$0xff] %v6784_v58  ;;  %8018 = vst [vmem:[#allocation4_spill] sm:$0xff] %v6801_v41 }
  0xed   : > { %v1965_v1 = vpop.permute.xlu0 %1964 }
  0xef   : > { %5450 = vmatmul.mubr.msk.bf16.gmra.mrb[12].mxu0 %vm489_vm3, %v6046_v31  ;;  %5675 = vmatmul.mubr.msk.bf16.vlgmr.msra.gmra.mrb[8].mxu1 %vm489_vm3, %v6046_v31  ;;  %v1683_v31 = vpack.c.bf16 %v6178_v13, %v6178_v13  ;;  %v6048_v13 = vld [vmem:[%s7966_s2 + $0x38] sm:$0xff]  }
  0xf0   : > { %1493 = vmatpush1.bf16.msra.mxu1 %v1425_v56  ;;  %1471 = vmatprep.mubr.bf16.mxu0 %v7976_v14  ;;  %v6049_v56 = vld [vmem:[%s7966_s2 + $0x40] sm:$0xff]  }
  0xf1   : > { %6013 = vmatprep.subr.msk.bf16.mxu1 %vm496_vm1, %v1401_v0  ;;  %1524 = vmatprep.mubr.bf16.mxu1 %v7976_v14  ;;  %v6739_v5 = vpop.permute.xlu0 %1970 }
  0xf5   : > { %v1967_v49 = vpop.permute.xlu0 %1966 }
  0xf6   : > { %v1977_v0 = vsel %vm1974_vm6, %v1967_v49, %v6745_v40 }
  0xf7   : > { %5461 = vmatmul.mubr.msk.bf16.vlgmr.msra.gmra.mrb[0].mxu0 %vm489_vm3, %v6047_v30  ;;  %5464 = vmatmul.mubr.msk.bf16.vlgmr.msra.gmra.mrb[0].mxu1 %vm489_vm3, %v6047_v30  ;;  %v2023_v6 = vmul.f32 %v6765_v10, %v1977_v0 }
  0xf8   : > { %1546 = vmatpush1.bf16.msra.mxu0 %v1431_v43  ;;  %5679 = vmatpush3.bf16.msra.mxu1 %v1437_v35 }
  0xf9   : > { %1481 = vmatprep.mubr.bf16.mxu0 %v7976_v14  ;;  %1534 = vmatprep.mubr.bf16.mxu1 %v7976_v14  ;;  %v2035_v43 = vpack.c.bf16 %v2023_v6, %v2023_v6  ;;  %v6822_v0 = vpop.permute.xlu0 %2314  ;;  %v6830_v6 = vrot.slane %v6754_v20, %v6297_v19 }
  0xfa   : > { %5477 = vmatprep.subr.msk.bf16.mxu0 %vm496_vm1, %v1681_v48  ;;  %5480 = vmatprep.subr.msk.bf16.mxu1 %vm496_vm1, %v1683_v31  ;;  %v1722_v48 = vsel %vm496_vm1, %v1686_v9, 0  ;;  %v6794_v31 = vpop.permute.xlu1 %2316 }
  0xfb   : > { %8020 = vst [vmem:[#allocation6_spill] sm:$0xff] %v6830_v6 }
  0xff   : > { %5462 = vmatmul.mubr.msk.bf16.gmra.mrb[4].mxu0 %vm489_vm3, %v6048_v13  ;;  %5465 = vmatmul.mubr.msk.bf16.gmra.mrb[4].mxu1 %vm489_vm3, %v6048_v13 }
 0x100   : > { %1577 = vmatprep.mubr.bf16.mxu0 %v7976_v14  ;;  %5680 = vmatprep.mubr.msk.bf16.mxu1 %vm489_vm3, %v6047_v30 }
 0x107   : > { %5467 = vmatmul.mubr.msk.bf16.vlgmr.msra.gmra.mrb[8].mxu0 %vm489_vm3, %v6047_v30  ;;  %5681 = vmatmul.mubr.msk.bf16.vlgmr.msra.gmra.mrb[8].mxu1 %vm489_vm3, %v6048_v13  ;;  %v1979_v30 = vsel %vm1974_vm6, %v6734_v12, %v1965_v1 }
 0x108   : > { %1725 = vmatpush1.bf16.msra.mxu0 %v1704_v46  ;;  %1778 = vmatpush1.bf16.msra.mxu1 %v1710_v23  ;;  %v2021_v35 = vmul.f32 %v6784_v58, %v1979_v30  ;;  %v6809_v46 = vld [vmem:[%s7966_s2 + $0x48] sm:$0xff]  }
 0x109   : > { %1587 = vmatprep.mubr.bf16.mxu0 %v7976_v14  ;;  %1809 = vmatprep.mubr.bf16.mxu1 %v7976_v14 }
 0x10a   : > { %5483 = vmatprep.subr.msk.bf16.mxu0 %vm496_vm1, %v1685_v44  ;;  %6014 = vmatprep.subr.msk.bf16.mxu1 %vm496_vm1, %v1686_v9  ;;  %v2033_v23 = vpack.c.bf16 %v2021_v35, %v2021_v35  ;;  %v1716_v44 = vsel %vm496_vm1, %v1684_v36, 0  ;;  %v6815_v9 = vrot.slane %v6754_v20, %v6409_v2  ;;  %v6842_v35 = vld [vmem:[%s7970_s6 + $0x2a] sm:$0xff] }
 0x10c   : > { %8019 = vst [vmem:[#allocation5_spill] sm:$0xff] %v6815_v9 }
 0x10f   : > { %5468 = vmatmul.mubr.msk.bf16.gmra.mrb[12].mxu0 %vm489_vm3, %v6048_v13  ;;  %5481 = vmatmul.mubr.msk.bf16.vlgmr.msra.gmra.mrb[0].mxu1 %vm489_vm3, %v6049_v56  ;;  %v1978_v13 = vsel %vm1974_vm6, %v1965_v1, %v1967_v49  ;;  %v1981_v1 = vsel %vm1974_vm6, %v1973_v32, %v6717_v29  ;;  %v6820_v49 = vpop.permute.xlu1 %2322 }
 0x110   : > { %1756 = vmatprep.mubr.bf16.mxu0 %v7976_v14  ;;  %1819 = vmatprep.mubr.bf16.mxu1 %v7976_v14  ;;  %v2022_v11 = vmul.f32 %v6801_v41, %v1978_v13  ;;  %v6845_v13 = vpop.permute.xlu0 %2320 }
 0x111   : > { %5685 = vmatpush3.bf16.msra.mxu1 %v1722_v48  ;;  %v1980_v48 = vsel %vm1974_vm6, %v6717_v29, %v6734_v12  ;;  %v6855_v29 = vrot.slane %v6842_v35, %v6414_v3  ;;  %v1975_v12 = vsel %vm1974_vm6, %v6739_v5, %v1973_v32 }
 0x112   : > { %5498 = vmatprep.subr.msk.bf16.mxu1 %vm496_vm1, %v2035_v43  ;;  %v2034_v30 = vpack.c.bf16 %v2022_v11, %v2022_v11  ;;  %v2026_v43 = vmul.f32 %v6815_v9, %v1981_v1  ;;  %v6851_v1 = vrot.slane %v6754_v20, %v6325_v27  ;;  %v6877_v9 = vld [vmem:[%s7966_s2 + $0x50] sm:$0xff]  }
 0x113   : > { %v2319_v36 = vpop.permute.xlu1 %2318  ;;  %8022 = vst [vmem:[#allocation8_spill] sm:$0xff] %v6855_v29 }
 0x114   : > { %v2038_v11 = vpack.c.bf16 %v2026_v43, %v2026_v43  ;;  %8021 = vst [vmem:[#allocation7_spill] sm:$0xff] %v6851_v1  ;;  %v2025_v32 = vmul.f32 %v6851_v1, %v1975_v12  ;;  %v6888_v12 = vrot.slane %v6754_v20, %v6322_v26  ;;  %v6908_v20 = vld [vmem:[%s7966_s2 + $0x58] sm:$0xff]  }
 0x115   : > { %v6950_v1 = vld [vmem:[%s7970_s6 + $0x31] sm:$0xff] }
 0x116   : > { %v2074_v58 = vsel %vm496_vm1, %v2038_v11, 0  ;;  %8023 = vst [vmem:[#allocation9_spill] sm:$0xff] %v6888_v12 }
 0x117   : > { %5482 = vmatmul.mubr.msk.bf16.gmra.mrb[4].mxu1 %vm489_vm3, %v6809_v46  ;;  %5478 = vmatmul.mubr.msk.bf16.vlgmr.msra.gmra.mrb[0].mxu0 %vm489_vm3, %v6049_v56 }
 0x118   : > { %1831 = vmatpush1.bf16.msra.mxu0 %v1716_v44  ;;  %1766 = vmatprep.mubr.bf16.mxu0 %v7976_v14  ;;  %v2020_v44 = vmul.f32 %v6830_v6, %v1980_v48  ;;  %v6870_v48 = vpop.permute.xlu0 %2324 }
 0x119   : > { %5686 = vmatprep.mubr.msk.bf16.mxu1 %vm489_vm3, %v6049_v56  ;;  %5495 = vmatprep.subr.msk.bf16.mxu0 %vm496_vm1, %v2033_v23  ;;  %v2062_v23 = vsel %vm496_vm1, %v2034_v30, 0  ;;  %v2329_v30 = vsel %vm2326_vm7, %v2319_v36, %v6845_v13 }
 0x11a   : > { %v2032_v43 = vpack.c.bf16 %v2020_v44, %v2020_v44  ;;  %v2375_v10 = vmul.f32 %v6855_v29, %v2329_v30  ;;  %v2037_v44 = vpack.c.bf16 %v2025_v32, %v2025_v32  ;;  %v8024_v30 = vmov 0   ;;  %v6912_v32 = vpop.permute.xlu1 %2666 }
 0x11c   : > { %v2387_v6 = vpack.c.bf16 %v2375_v10, %v2375_v10  ;;  %v6894_v10 = vrot.slane %v6842_v35, %v6417_v4 }
 0x11e   : > { %8025 = vst [vmem:[#allocation10_spill] sm:$0xff] %v6894_v10 }
 0x11f   : > { %5479 = vmatmul.mubr.msk.bf16.gmra.mrb[4].mxu0 %vm489_vm3, %v6809_v46  ;;  %5687 = vmatmul.mubr.msk.bf16.vlgmr.msra.gmra.mrb[8].mxu1 %vm489_vm3, %v6809_v46 }
 0x120   : > { %2130 = vmatpush1.bf16.msra.mxu1 %v2062_v23  ;;  %1862 = vmatprep.mubr.bf16.mxu0 %v7976_v14  ;;  %v2056_v23 = vsel %vm496_vm1, %v2032_v43, 0 }
 0x121   : > { %6015 = vmatprep.subr.msk.bf16.mxu1 %vm496_vm1, %v2038_v11  ;;  %2161 = vmatprep.mubr.bf16.mxu1 %v7976_v14  ;;  %v6884_v14 = vpop.permute.xlu0 %2664 }
 0x127   : > { %5484 = vmatmul.mubr.msk.bf16.vlgmr.msra.gmra.mrb[8].mxu0 %vm489_vm3, %v6049_v56  ;;  %5499 = vmatmul.mubr.msk.bf16.vlgmr.msra.gmra.mrb[0].mxu1 %vm489_vm3, %v6877_v9  ;;  %v1976_v56 = vsel %vm1974_vm6, %v6745_v40, %v6739_v5  ;;  %v6914_v5 = vpop.permute.xlu0 %2668  ;;  %v6918_v40 = vrot.slane %v6842_v35, %v6310_v21 }
 0x128   : > { %2077 = vmatpush1.bf16.msra.mxu0 %v2056_v23  ;;  %5691 = vmatpush3.bf16.msra.mxu1 %v2074_v58  ;;  %v2330_v58 = vsel %vm2326_vm7, %v6794_v31, %v2319_v36  ;;  %v2024_v11 = vmul.f32 %v6888_v12, %v1976_v56  ;;  %v2331_v36 = vsel %vm2326_vm7, %v6822_v0, %v6794_v31  ;;  %v3370_v12 = vld [vmem:[%s7967_s3 + $0x10] sm:$0xff] }
 0x129   : > { %1872 = vmatprep.mubr.bf16.mxu0 %v8024_v30  ;;  %2171 = vmatprep.mubr.bf16.mxu1 %v8024_v30  ;;  %v2374_v43 = vmul.f32 %v6894_v10, %v2330_v58  ;;  %8026 = vst [vmem:[#allocation11_spill] sm:$0xff] %v6918_v40  ;;  %v2333_v23 = vsel %vm2326_vm7, %v6870_v48, %v6777_v15 }
 0x12a   : > { %5501 = vmatprep.subr.msk.bf16.mxu0 %vm496_vm1, %v2037_v44  ;;  %5516 = vmatprep.subr.msk.bf16.mxu1 %vm496_vm1, %v2387_v6  ;;  %v6922_v6 = vrot.slane %v6842_v35, %v6409_v2  ;;  %v3368_v44 = vld [vmem:[%s7967_s3] sm:$0xff]  ;;  %v2036_v56 = vpack.c.bf16 %v2024_v11, %v2024_v11  ;;  %v2373_v58 = vmul.f32 %v6918_v40, %v2331_v36  ;;  %v3371_v11 = vld [vmem:[%s7967_s3 + $0x18] sm:$0xff] }
 0x12b   : > { %v2386_v31 = vpack.c.bf16 %v2374_v43, %v2374_v43  ;;  %3374 = vperm.xlu0 %6039, %v3368_v44   ;;  %v2671_v43 = vpop.permute.xlu1 %2670  ;;  %v6959_v44 = vpop.permute.xlu0 %2672 }
 0x12c   : > { %8027 = vst [vmem:[#allocation12_spill] sm:$0xff] %v6922_v6  ;;  %v2378_v29 = vmul.f32 %v6922_v6, %v2333_v23  ;;  %v2068_v36 = vsel %vm496_vm1, %v2036_v56, 0  ;;  %v2385_v6 = vpack.c.bf16 %v2373_v58, %v2373_v58  ;;  %v2681_v10 = vsel %vm2678_vm8, %v2671_v43, %v6959_v44  ;;  %v5289_v56 = vld [vmem:[%s7969_s5] sm:$0xf] }
 0x12d   : > { %v2414_v23 = vsel %vm496_vm1, %v2386_v31, 0  ;;  %v2332_v31 = vsel %vm2326_vm7, %v6777_v15, %v6822_v0 }
 0x12e   : > { %v2390_v40 = vpack.c.bf16 %v2378_v29, %v2378_v29 }
 0x12f   : > { %5485 = vmatmul.mubr.msk.bf16.gmra.mrb[12].mxu0 %vm489_vm3, %v6809_v46  ;;  %5500 = vmatmul.mubr.msk.bf16.gmra.mrb[4].mxu1 %vm489_vm3, %v6908_v20  ;;  %v3369_v46 = vld [vmem:[%s7967_s3 + $0x8] sm:$0xff]  ;;  %v6990_v58 = vpop.permute.xlu1 %2674 }
 0x130   : > { %2108 = vmatprep.mubr.bf16.mxu0 %v8024_v30  ;;  %5692 = vmatprep.mubr.msk.bf16.mxu1 %vm489_vm3, %v6877_v9  ;;  %v2426_v15 = vsel %vm496_vm1, %v2390_v40, 0 }
 0x131   : > { %3379 = vperm.xlu1 %6040, %v3369_v46   ;;  %v6965_v46 = vrot.slane %v6950_v1, %v6414_v3  ;;  %3389 = vperm.xlu0 %6039, %v3371_v11   ;;  %v6995_v11 = vld [vmem:[%s7966_s2 + $0x60] sm:$0xff]  }
 0x133   : > { %8028 = vst [vmem:[#allocation13_spill] sm:$0xff] %v6965_v46  ;;  %v2727_v29 = vmul.f32 %v6965_v46, %v2681_v10  ;;  %v7000_v10 = vrot.slane %v6842_v35, %v6325_v27  ;;  %v7035_v46 = vrot.slane %v6950_v1, %v6409_v2 }
 0x135   : > { %3384 = vperm.xlu1 %6040, %v3370_v12   ;;  %v6979_v12 = vrot.slane %v6842_v35, %v6297_v19  ;;  %5292 = vperm.xlu0 %6039, %v5289_v56   ;;  %8030 = vst [vmem:[#allocation15_spill] sm:$0xff] %v7000_v10  ;;  %v2739_v0 = vpack.c.bf16 %v2727_v29, %v2727_v29  ;;  %v7014_v56 = vpop.permute.xlu0 %2676  ;;  %8032 = vst [vmem:[#allocation17_spill] sm:$0xff] %v7035_v46 }
 0x137   : > { %5496 = vmatmul.mubr.msk.bf16.vlgmr.msra.gmra.mrb[0].mxu0 %vm489_vm3, %v6877_v9  ;;  %5693 = vmatmul.mubr.msk.bf16.vlgmr.msra.gmra.mrb[8].mxu1 %vm489_vm3, %v6908_v20  ;;  %8029 = vst [vmem:[#allocation14_spill] sm:$0xff] %v6979_v12 }
 0x138   : > { %2183 = vmatpush1.bf16.msra.mxu0 %v2068_v36  ;;  %2482 = vmatpush1.bf16.msra.mxu1 %v2414_v23  ;;  %v2372_v36 = vmul.f32 %v6979_v12, %v2332_v31  ;;  %v7012_v23 = vpop.permute.xlu1 %3016  ;;  %v2682_v31 = vsel %vm2678_vm8, %v6914_v5, %v2671_v43 }
 0x139   : > { %2118 = vmatprep.mubr.bf16.mxu0 %v8024_v30  ;;  %2513 = vmatprep.mubr.bf16.mxu1 %v8024_v30  ;;  %v7043_v12 = vpop.permute.xlu0 %3018 }
 0x13a   : > { %6016 = vmatprep.subr.msk.bf16.mxu1 %vm496_vm1, %v2390_v40  ;;  %5513 = vmatprep.subr.msk.bf16.mxu0 %vm496_vm1, %v2385_v6  ;;  %v2327_v6 = vsel %vm2326_vm7, %v6820_v49, %v6870_v48  ;;  %v2384_v40 = vpack.c.bf16 %v2372_v36, %v2372_v36  ;;  %v7020_v48 = vrot.slane %v6950_v1, %v6417_v4 }
 0x13b   : > { %v2377_v29 = vmul.f32 %v7000_v10, %v2327_v6 }
 0x13c   : > { %8031 = vst [vmem:[#allocation16_spill] sm:$0xff] %v7020_v48  ;;  %v2408_v6 = vsel %vm496_vm1, %v2384_v40, 0  ;;  %v2726_v10 = vmul.f32 %v7020_v48, %v2682_v31  ;;  %v7041_v43 = vpop.permute.xlu1 %3020  ;;  %v7052_v40 = vrot.slane %v6842_v35, %v6322_v26 }
 0x13d   : > { %v2389_v36 = vpack.c.bf16 %v2377_v29, %v2377_v29 }
 0x13e   : > { %8033 = vst [vmem:[#allocation18_spill] sm:$0xff] %v7052_v40  ;;  %v2738_v29 = vpack.c.bf16 %v2726_v10, %v2726_v10  ;;  %v3023_v10 = vpop.permute.xlu0 %3022 }
 0x13f   : > { %5497 = vmatmul.mubr.msk.bf16.gmra.mrb[4].mxu0 %vm489_vm3, %v6908_v20  ;;  %5517 = vmatmul.mubr.msk.bf16.vlgmr.msra.gmra.mrb[0].mxu1 %vm489_vm3, %v6995_v11 }
 0x140   : > { %5697 = vmatpush3.bf16.msra.mxu1 %v2426_v15  ;;  %2214 = vmatprep.mubr.bf16.mxu0 %v8024_v30  ;;  %v7029_v15 = vld [vmem:[%s7966_s2 + $0x68] sm:$0xff]   ;;  %v7068_v35 = vpop.permute.xlu1 %3024 }
 0x141   : > { %2523 = vmatprep.mubr.bf16.mxu1 %v8024_v30  ;;  %5534 = vmatprep.subr.msk.bf16.mxu1 %vm496_vm1, %v2739_v0  ;;  %v2685_v0 = vsel %vm2678_vm8, %v7014_v56, %v6884_v14 }
 0x142   : > { %v2730_v31 = vmul.f32 %v7035_v46, %v2685_v0  ;;  %v7074_v46 = vrot.slane %v6950_v1, %v6310_v21 }
 0x144   : > { %v2742_v0 = vpack.c.bf16 %v2730_v31, %v2730_v31  ;;  %8034 = vst [vmem:[#allocation19_spill] sm:$0xff] %v7074_v46 }
 0x147   : > { %5502 = vmatmul.mubr.msk.bf16.vlgmr.msra.gmra.mrb[8].mxu0 %vm489_vm3, %v6877_v9  ;;  %5518 = vmatmul.mubr.msk.bf16.gmra.mrb[4].mxu1 %vm489_vm3, %v7029_v15  ;;  %v2328_v9 = vsel %vm2326_vm7, %v6845_v13, %v6820_v49  ;;  %v2683_v13 = vsel %vm2678_vm8, %v6912_v32, %v6914_v5 }
 0x148   : > { %2429 = vmatpush1.bf16.msra.mxu0 %v2408_v6  ;;  %2224 = vmatprep.mubr.bf16.mxu0 %v8024_v30  ;;  %v7065_v6 = vld [vmem:[%s7970_s6 + $0x38] sm:$0xff]  ;;  %v2376_v48 = vmul.f32 %v7052_v40, %v2328_v9  ;;  %v2725_v5 = vmul.f32 %v7074_v46, %v2683_v13  ;;  %v2684_v13 = vsel %vm2678_vm8, %v6884_v14, %v6912_v32 }
 0x149   : > { %5698 = vmatprep.mubr.msk.bf16.mxu1 %vm489_vm3, %v6995_v11  ;;  %5519 = vmatprep.subr.msk.bf16.mxu0 %vm496_vm1, %v2389_v36  ;;  %v2766_v36 = vsel %vm496_vm1, %v2738_v29, 0  ;;  %v7078_v49 = vrot.slane %v7065_v6, %v6414_v3  ;;  %v3033_v29 = vsel %vm3030_vm9, %v3023_v10, %v7068_v35  ;;  %v7135_v14 = vrot.slane %v6950_v1, %v6325_v27 }
 0x14a   : > { %v2388_v3 = vpack.c.bf16 %v2376_v48, %v2376_v48  ;;  %v2737_v40 = vpack.c.bf16 %v2725_v5, %v2725_v5  ;;  %v7110_v48 = vrot.slane %v6950_v1, %v6297_v19  ;;  %v7139_v32 = vrot.slane %v7065_v6, %v6409_v2 }
 0x14b   : > { %8035 = vst [vmem:[#allocation20_spill] sm:$0xff] %v7078_v49  ;;  %v3079_v31 = vmul.f32 %v7078_v49, %v3033_v29  ;;  %v3034_v29 = vsel %vm3030_vm9, %v7041_v43, %v3023_v10  ;;  %8038 = vst [vmem:[#allocation23_spill] sm:$0xff] %v7135_v14 }
 0x14c   : > { %v2420_v9 = vsel %vm496_vm1, %v2388_v3, 0  ;;  %8036 = vst [vmem:[#allocation21_spill] sm:$0xff] %v7110_v48  ;;  %v7129_v3 = vld [vmem:[%s7966_s2 + $0x78] sm:$0xff]   ;;  %v2724_v5 = vmul.f32 %v7110_v48, %v2684_v13  ;;  %8039 = vst [vmem:[#allocation24_spill] sm:$0xff] %v7139_v32 }
 0x14d   : > { %v3091_v41 = vpack.c.bf16 %v3079_v31, %v3079_v31 }
 0x14e   : > { %v2736_v2 = vpack.c.bf16 %v2724_v5, %v2724_v5  ;;  %v7165_v5 = vrot.slane %v6950_v1, %v6322_v26 }
 0x14f   : > { %5503 = vmatmul.mubr.msk.bf16.gmra.mrb[12].mxu0 %vm489_vm3, %v6908_v20  ;;  %5699 = vmatmul.mubr.msk.bf16.vlgmr.msra.gmra.mrb[8].mxu1 %vm489_vm3, %v7029_v15  ;;  %v7099_v20 = vld [vmem:[%s7966_s2 + $0x70] sm:$0xff]  }
 0x150   : > { %2834 = vmatpush1.bf16.msra.mxu1 %v2766_v36  ;;  %2460 = vmatprep.mubr.bf16.mxu0 %v8024_v30  ;;  %v2778_v36 = vsel %vm496_vm1, %v2742_v0, 0  ;;  %8040 = vst [vmem:[#allocation25_spill] sm:$0xff] %v7165_v5 }
 0x151   : > { %2865 = vmatprep.mubr.bf16.mxu1 %v8024_v30  ;;  %6017 = vmatprep.subr.msk.bf16.mxu1 %vm496_vm1, %v2742_v0  ;;  %v7115_v0 = vrot.slane %v7065_v6, %v6417_v4  ;;  %v3029_v4 = vpop.permute.xlu1 %3028 }
 0x153   : > { %8037 = vst [vmem:[#allocation22_spill] sm:$0xff] %v7115_v0  ;;  %v3078_v31 = vmul.f32 %v7115_v0, %v3034_v29 }
 0x155   : > { %v3090_v10 = vpack.c.bf16 %v3078_v31, %v3078_v31  ;;  %v2680_v31 = vsel %vm2678_vm8, %v6959_v44, %v6990_v58 }
 0x156   : > { %v2728_v1 = vmul.f32 %v7165_v5, %v2680_v31 }
 0x157   : > { %5514 = vmatmul.mubr.msk.bf16.vlgmr.msra.gmra.mrb[0].mxu0 %vm489_vm3, %v6995_v11  ;;  %5535 = vmatmul.mubr.msk.bf16.vlgmr.msra.gmra.mrb[0].mxu1 %vm489_vm3, %v7099_v20  ;;  %v3118_v13 = vsel %vm496_vm1, %v3090_v10, 0  ;;  %v3036_v10 = vsel %vm3030_vm9, %v7012_v23, %v7043_v12 }
 0x158   : > { %2535 = vmatpush1.bf16.msra.mxu0 %v2420_v9  ;;  %2470 = vmatprep.mubr.bf16.mxu0 %v8024_v30 }
 0x159   : > { %2875 = vmatprep.mubr.bf16.mxu1 %v8024_v30  ;;  %5703 = vmatpush3.bf16.msra.mxu1 %v2778_v36  ;;  %v2760_v36 = vsel %vm496_vm1, %v2736_v2, 0  ;;  %v6058_v2 = vld [vmem:[%s7966_s2 + $0x88] sm:$0xff]  }
 0x15a   : > { %5531 = vmatprep.subr.msk.bf16.mxu0 %vm496_vm1, %v2737_v40  ;;  %5552 = vmatprep.subr.msk.bf16.mxu1 %vm496_vm1, %v3091_v41  ;;  %v2679_v41 = vsel %vm2678_vm8, %v6990_v58, %v7014_v56  ;;  %v3037_v40 = vsel %vm3030_vm9, %v3029_v4, %v7012_v23  ;;  %v2740_v58 = vpack.c.bf16 %v2728_v1, %v2728_v1 }
 0x15b   : > { %v2729_v9 = vmul.f32 %v7135_v14, %v2679_v41  ;;  %v3082_v56 = vmul.f32 %v7139_v32, %v3037_v40  ;;  %v7181_v41 = vrot.slane %v7065_v6, %v6310_v21  ;;  %v3035_v40 = vsel %vm3030_vm9, %v7043_v12, %v7041_v43 }
 0x15d   : > { %v2741_v29 = vpack.c.bf16 %v2729_v9, %v2729_v9  ;;  %v3094_v49 = vpack.c.bf16 %v3082_v56, %v3082_v56  ;;  %8041 = vst [vmem:[#allocation26_spill] sm:$0xff] %v7181_v41  ;;  %v3077_v21 = vmul.f32 %v7181_v41, %v3035_v40  ;;  %v3027_v9 = vpop.permute.xlu0 %3026 }
 0x15f   : > { %5515 = vmatmul.mubr.msk.bf16.gmra.mrb[4].mxu0 %vm489_vm3, %v7029_v15  ;;  %5536 = vmatmul.mubr.msk.bf16.gmra.mrb[4].mxu1 %vm489_vm3, %v7129_v3  ;;  %v3130_v44 = vsel %vm496_vm1, %v3094_v49, 0  ;;  %v3089_v43 = vpack.c.bf16 %v3077_v21, %v3077_v21 }
 0x160   : > { %2566 = vmatprep.mubr.bf16.mxu0 %v8024_v30  ;;  %5704 = vmatprep.mubr.msk.bf16.mxu1 %vm489_vm3, %v7099_v20 }
 0x167   : > { %5520 = vmatmul.mubr.msk.bf16.vlgmr.msra.gmra.mrb[8].mxu0 %vm489_vm3, %v6995_v11  ;;  %5705 = vmatmul.mubr.msk.bf16.vlgmr.msra.gmra.mrb[8].mxu1 %vm489_vm3, %v7129_v3  ;;  %v6057_v11 = vld [vmem:[%s7966_s2 + $0x80] sm:$0xff]  }
 0x168   : > { %2781 = vmatpush1.bf16.msra.mxu0 %v2760_v36  ;;  %3186 = vmatpush1.bf16.msra.mxu1 %v3118_v13  ;;  %v7215_v36 = vrot.slane %v7065_v6, %v6325_v27  ;;  %v7231_v27 = vrot.slane %v7065_v6, %v6322_v26 }
 0x169   : > { %2576 = vmatprep.mubr.bf16.mxu0 %v8024_v30  ;;  %3217 = vmatprep.mubr.bf16.mxu1 %v8024_v30 }
 0x16a   : > { %5537 = vmatprep.subr.msk.bf16.mxu0 %vm496_vm1, %v2741_v29  ;;  %6018 = vmatprep.subr.msk.bf16.mxu1 %vm496_vm1, %v3094_v49  ;;  %v2772_v49 = vsel %vm496_vm1, %v2740_v58, 0  ;;  %8043 = vst [vmem:[#allocation28_spill] sm:$0xff] %v7215_v36  ;;  %8044 = vst [vmem:[#allocation29_spill] sm:$0xff] %v7231_v27 }
 0x16f   : > { %5521 = vmatmul.mubr.msk.bf16.gmra.mrb[12].mxu0 %vm489_vm3, %v7029_v15  ;;  %5553 = vmatmul.mubr.msk.bf16.vlgmr.msra.gmra.mrb[0].mxu1 %vm489_vm3, %v6057_v11  ;;  %v7204_v15 = vrot.slane %v7065_v6, %v6297_v19  ;;  %v3031_v19 = vsel %vm3030_vm9, %v3027_v9, %v3029_v4  ;;  %v3032_v4 = vsel %vm3030_vm9, %v7068_v35, %v3027_v9 }
 0x170   : > { %2812 = vmatprep.mubr.bf16.mxu0 %v8024_v30  ;;  %3227 = vmatprep.mubr.bf16.mxu1 %v8024_v30  ;;  %v3081_v23 = vmul.f32 %v7215_v36, %v3031_v19  ;;  %v3080_v31 = vmul.f32 %v7231_v27, %v3032_v4 }
 0x171   : > { %5709 = vmatpush3.bf16.msra.mxu1 %v3130_v44  ;;  %8042 = vst [vmem:[#allocation27_spill] sm:$0xff] %v7204_v15  ;;  %v3076_v56 = vmul.f32 %v7204_v15, %v3036_v10 }
 0x172   : > { %v3093_v29 = vpack.c.bf16 %v3081_v23, %v3081_v23 }
 0x173   : > { %v3088_v12 = vpack.c.bf16 %v3076_v56, %v3076_v56 }
 0x175   : > { %v3112_v13 = vsel %vm496_vm1, %v3088_v12, 0 }
 0x177   : > { %5532 = vmatmul.mubr.msk.bf16.vlgmr.msra.gmra.mrb[0].mxu0 %vm489_vm3, %v7099_v20  ;;  %5554 = vmatmul.mubr.msk.bf16.gmra.mrb[4].mxu1 %vm489_vm3, %v6058_v2 }
 0x178   : > { %2887 = vmatpush1.bf16.msra.mxu0 %v2772_v49  ;;  %2822 = vmatprep.mubr.bf16.mxu0 %v8024_v30 }
 0x179   : > { %5710 = vmatprep.mubr.msk.bf16.mxu1 %vm489_vm3, %v6057_v11  ;;  %5549 = vmatprep.subr.msk.bf16.mxu0 %vm496_vm1, %v3089_v43 }
 0x17f   : > { %5533 = vmatmul.mubr.msk.bf16.gmra.mrb[4].mxu0 %vm489_vm3, %v7129_v3  ;;  %5711 = vmatmul.mubr.msk.bf16.vlgmr.msra.gmra.mrb[8].mxu1 %vm489_vm3, %v6058_v2 }
 0x180   : > { %2918 = vmatprep.mubr.bf16.mxu0 %v8024_v30  ;;  %3527 = vmatprep.mubr.bf16.mxu1 %v8024_v30 }
 0x187   : > { %5538 = vmatmul.mubr.msk.bf16.vlgmr.msra.gmra.mrb[8].mxu0 %vm489_vm3, %v7099_v20  ;;  %v3092_v20 = vpack.c.bf16 %v3080_v31, %v3080_v31 }
 0x188   : > { %3133 = vmatpush1.bf16.msra.mxu0 %v3112_v13  ;;  %2928 = vmatprep.mubr.bf16.mxu0 %v8024_v30 }
 0x189   : > { %5555 = vmatprep.subr.msk.bf16.mxu0 %vm496_vm1, %v3093_v29  ;;  %v3124_v1 = vsel %vm496_vm1, %v3092_v20, 0 }
 0x18f   : > { %5539 = vmatmul.mubr.msk.bf16.gmra.mrb[12].mxu0 %vm489_vm3, %v7129_v3 }
 0x190   : > { %3164 = vmatprep.mubr.bf16.mxu0 %v8024_v30 }
 0x197   : > { %5550 = vmatmul.mubr.msk.bf16.vlgmr.msra.gmra.mrb[0].mxu0 %vm489_vm3, %v6057_v11 }
 0x198   : > { %3239 = vmatpush1.bf16.msra.mxu0 %v3124_v1  ;;  %3174 = vmatprep.mubr.bf16.mxu0 %v8024_v30 }
 0x19f   : > { %5551 = vmatmul.mubr.msk.bf16.gmra.mrb[4].mxu0 %vm489_vm3, %v6058_v2 }
 0x1a0   : > { %3270 = vmatprep.mubr.bf16.mxu0 %v8024_v30 }
 0x1a7   : > { %5556 = vmatmul.mubr.msk.bf16.vlgmr.msra.gmra.mrb[8].mxu0 %vm489_vm3, %v6057_v11 }
 0x1a8   : > { %3280 = vmatprep.mubr.bf16.mxu0 %v8024_v30 }
 0x1aa   : > { %v7250_v26 = vpop.permute.xlu0 %3374 }
 0x1af   : > { %5557 = vmatmul.mubr.msk.bf16.gmra.mrb[12].mxu0 %vm489_vm3, %v6058_v2 }
 0x1b0   : > { %3974 = vmatprep.mubr.bf16.mxu0 %v8024_v30  ;;  %v7252_v35 = vpop.permute.xlu1 %3379  ;;  %v7260_v4 = vpop.permute.xlu0 %3389 }
 0x1b4   : > { %v7258_v56 = vpop.permute.xlu1 %3384 }
 0x242   : > { %v3219_v6 = vpop.f32.mrb[0].mxu1 }
 0x243   : > { %v3221_v3 = vpop.f32.mrb[1].mxu1  ;;  %v3394_v40 = vadd.f32 %v7250_v26, %v3219_v6 }
 0x244   : > { %v3395_v44 = vadd.f32 %v7250_v26, %v3221_v3  ;;  %v3223_v58 = vpop.f32.mrb[2].mxu1 }
 0x245   : > { %v3401_v21 = vadd.f32 %v7252_v35, %v3223_v58  ;;  %v3422_v11 = vmul.f32 0.2, %v3394_v40  ;;  %v3225_v43 = vpop.f32.mrb[3].mxu1 }
 0x246   : > { %v3423_v49 = vmul.f32 0.2, %v3395_v44  ;;  %v3402_v2 = vadd.f32 %v7252_v35, %v3225_v43 }
 0x247   : > { %v3429_v10 = vmul.f32 0.2, %v3401_v21  ;;  %v3450_v19 = vmax.f32 %v3394_v40, %v3422_v11 }
 0x248   : > { %v3430_v9 = vmul.f32 0.2, %v3402_v2  ;;  %v3451_v23 = vmax.f32 %v3395_v44, %v3423_v49 }
 0x249   : > { %v3457_v12 = vmax.f32 %v3401_v21, %v3429_v10 }
 0x24a   : > { %v3458_v13 = vmax.f32 %v3402_v2, %v3430_v9  ;;  %v3229_v29 = vpop.f32.mrb[4].mxu1 }
 0x24b   : > { %v7262_v31 = vpack.c.bf16 %v3457_v12, %v3450_v19  ;;  %v3408_v20 = vadd.f32 %v7258_v56, %v3229_v29  ;;  %v3231_v1 = vpop.f32.mrb[5].mxu1 }
 0x24c   : > { %v7265_v6 = vpack.c.bf16 %v3458_v13, %v3451_v23  ;;  %v3409_v3 = vadd.f32 %v7258_v56, %v3231_v1  ;;  %v3233_v58 = vpop.f32.mrb[6].mxu1 }
 0x24d   : > { %v3436_v43 = vmul.f32 0.2, %v3408_v20  ;;  %v3415_v32 = vadd.f32 %v7260_v4, %v3233_v58  ;;  %v3235_v40 = vpop.f32.mrb[7].mxu1 }
 0x24e   : > { %v3437_v21 = vmul.f32 0.2, %v3409_v3  ;;  %v3416_v44 = vadd.f32 %v7260_v4, %v3235_v40  ;;  %3942 = vmatprep.subr.bf16.mxu0 %v7265_v6 }
 0x24f   : > { %v3443_v11 = vmul.f32 0.2, %v3415_v32  ;;  %3943 = vmatpush1.bf16.msra.mxu0 %v7262_v31  ;;  %v3464_v2 = vmax.f32 %v3408_v20, %v3436_v43 }
 0x250   : > { %v3444_v49 = vmul.f32 0.2, %v3416_v44  ;;  %v3465_v9 = vmax.f32 %v3409_v3, %v3437_v21  ;;  %v7285_v3 = vld [vmem:[%s7968_s4 + $0x4] sm:$0x3]  ;;  %v7999_v21 = vmov 0.0  }
 0x251   : > { %v3471_v10 = vmax.f32 %v3415_v32, %v3443_v11 }
 0x252   : > { %v3472_v19 = vmax.f32 %v3416_v44, %v3444_v49  ;;  %v5712_v12 = vpop.f32.mrb[8].mxu1 }
 0x253   : > { %v7272_v23 = vpack.c.bf16 %v3471_v10, %v3464_v2  ;;  %v3412_v13 = vadd.f32 %v5712_v12, %v7258_v56  ;;  %v3325_v29 = vpop.f32.mrb[9].mxu1 }
 0x254   : > { %v7275_v1 = vpack.c.bf16 %v3472_v19, %v3465_v9  ;;  %v3398_v58 = vadd.f32 %v7250_v26, %v3325_v29  ;;  %v5713_v40 = vpop.f32.mrb[10].mxu1 }
 0x255   : > { %v3440_v36 = vmul.f32 0.2, %v3412_v13  ;;  %v3419_v27 = vadd.f32 %v5713_v40, %v7260_v4  ;;  %v3328_v14 = vpop.f32.mrb[11].mxu1 }
 0x256   : > { %v3426_v5 = vmul.f32 0.2, %v3398_v58  ;;  %v3405_v32 = vadd.f32 %v7252_v35, %v3328_v14  ;;  %3944 = vmatprep.subr.bf16.mxu0 %v7275_v1 }
 0x257   : > { %v3447_v20 = vmul.f32 0.2, %v3419_v27  ;;  %3945 = vmatpush1.bf16.msra.mxu0 %v7272_v23  ;;  %v3468_v44 = vmax.f32 %v3412_v13, %v3440_v36  ;;  %v7309_v36 = vld [vmem:[%s7968_s4 + $0x6] sm:$0x3] }
 0x258   : > { %v3433_v43 = vmul.f32 0.2, %v3405_v32  ;;  %5730 = vmatprep.subr.bf16.mxu0 %v7999_v21  ;;  %v3454_v49 = vmax.f32 %v3398_v58, %v3426_v5 }
 0x259   : > { %v3475_v11 = vmax.f32 %v3419_v27, %v3447_v20 }
 0x25a   : > { %v3461_v2 = vmax.f32 %v3405_v32, %v3433_v43  ;;  %5571 = vmatmul.mubr.msk.bf16.vlgmr.msra.gmra.mrb[16].mxu0 %vm3491_vm10, %v7285_v3 }
 0x25b   : > { %v7290_v14 = vpack.c.bf16 %v3475_v11, %v3468_v44  ;;  %5734 = vmatprep.mubr.msk.bf16.mxu0 %vm6095_vm11, %v7999_v21 }
 0x25c   : > { %v7294_v10 = vpack.c.bf16 %v3461_v2, %v3454_v49 }
 0x25e   : > { %5731 = vmatpush3.bf16.msra.mxu0 %v7294_v10 }
 0x25f   : > { %5732 = vmatprep.subr.bf16.mxu0 %v7999_v21 }
 0x262   : > { %5733 = vmatpush3.bf16.msra.mxu0 %v7290_v14 }
 0x263   : > { %4145 = vmatprep.subr.bf16.mxu0 %v7265_v6 }
 0x265   : > { %5735 = vmatmul.mubr.msk.bf16.vlgmr.msra.gmra.mrb[20].mxu0 %vm3491_vm10, %v7285_v3 }
 0x266   : > { %4146 = vmatpush1.bf16.msra.mxu0 %v7262_v31  ;;  %4177 = vmatprep.mubr.bf16.mxu0 %v8024_v30 }
 0x267   : > { %4147 = vmatprep.subr.bf16.mxu0 %v7275_v1 }
 0x26a   : > { %v3166_v5 = vpop.f32.mrb[0].mxu0  ;;  %4148 = vmatpush1.bf16.msra.mxu0 %v7272_v23 }
 0x26b   : > { %v3392_v27 = vadd.f32 %v7250_v26, %v3166_v5  ;;  %v3168_v9 = vpop.f32.mrb[1].mxu0  ;;  %5738 = vmatprep.subr.bf16.mxu0 %v7999_v21 }
 0x26c   : > { %v3393_v19 = vadd.f32 %v7250_v26, %v3168_v9  ;;  %v3170_v12 = vpop.f32.mrb[2].mxu0 }
 0x26d   : > { %v3420_v13 = vmul.f32 0.2, %v3392_v27  ;;  %v3399_v29 = vadd.f32 %v7252_v35, %v3170_v12  ;;  %v3172_v58 = vpop.f32.mrb[3].mxu0  ;;  %5576 = vmatmul.mubr.msk.bf16.vlgmr.msra.gmra.mrb[24].mxu0 %vm3491_vm10, %v7309_v36 }
 0x26e   : > { %v3421_v40 = vmul.f32 0.2, %v3393_v19  ;;  %v3400_v32 = vadd.f32 %v7252_v35, %v3172_v58  ;;  %5739 = vmatpush3.bf16.msra.mxu0 %v7294_v10  ;;  %5742 = vmatprep.mubr.msk.bf16.mxu0 %vm6095_vm11, %v7999_v21 }
 0x26f   : > { %v3427_v20 = vmul.f32 0.2, %v3399_v29  ;;  %5740 = vmatprep.subr.bf16.mxu0 %v7999_v21  ;;  %v3448_v44 = vmax.f32 %v3392_v27, %v3420_v13 }
 0x270   : > { %v3428_v43 = vmul.f32 0.2, %v3400_v32  ;;  %v3449_v49 = vmax.f32 %v3393_v19, %v3421_v40 }
 0x271   : > { %v3455_v11 = vmax.f32 %v3399_v29, %v3427_v20 }
 0x272   : > { %v3456_v2 = vmax.f32 %v3400_v32, %v3428_v43  ;;  %v3176_v5 = vpop.f32.mrb[4].mxu0  ;;  %5741 = vmatpush3.bf16.msra.mxu0 %v7290_v14 }
 0x273   : > { %v7323_v9 = vpack.c.bf16 %v3455_v11, %v3448_v44  ;;  %v3406_v12 = vadd.f32 %v7258_v56, %v3176_v5  ;;  %v3178_v58 = vpop.f32.mrb[5].mxu0  ;;  %4348 = vmatprep.subr.bf16.mxu0 %v7265_v6 }
 0x274   : > { %v7327_v41 = vpack.c.bf16 %v3456_v2, %v3449_v49  ;;  %v3407_v15 = vadd.f32 %v7258_v56, %v3178_v58  ;;  %v3180_v21 = vpop.f32.mrb[6].mxu0  ;;  %v7343_v49 = vld [vmem:[%s7968_s4 + $0x8] sm:$0x3] }
 0x275   : > { %v3434_v46 = vmul.f32 0.2, %v3406_v12  ;;  %v3413_v27 = vadd.f32 %v7260_v4, %v3180_v21  ;;  %v3182_v19 = vpop.f32.mrb[7].mxu0  ;;  %5743 = vmatmul.mubr.msk.bf16.vlgmr.msra.gmra.mrb[28].mxu0 %vm3491_vm10, %v7309_v36 }
 0x276   : > { %v3435_v13 = vmul.f32 0.2, %v3407_v15  ;;  %v3414_v29 = vadd.f32 %v7260_v4, %v3182_v19  ;;  %3495 = vmatprep.subr.bf16.mxu1 %v7327_v41  ;;  %4349 = vmatpush1.bf16.msra.mxu0 %v7262_v31  ;;  %v8045_v19 = vmov 0.0  }
 0x277   : > { %v3441_v40 = vmul.f32 0.2, %v3413_v27  ;;  %3496 = vmatpush1.bf16.msra.mxu1 %v7323_v9  ;;  %4350 = vmatprep.subr.bf16.mxu0 %v7275_v1  ;;  %v3462_v21 = vmax.f32 %v3406_v12, %v3434_v46 }
 0x278   : > { %v3442_v32 = vmul.f32 0.2, %v3414_v29  ;;  %4380 = vmatprep.mubr.bf16.mxu0 %v8024_v30  ;;  %v3463_v43 = vmax.f32 %v3407_v15, %v3435_v13 }
 0x279   : > { %v3469_v20 = vmax.f32 %v3413_v27, %v3441_v40 }
 0x27a   : > { %v3470_v44 = vmax.f32 %v3414_v29, %v3442_v32  ;;  %v3272_v11 = vpop.f32.mrb[8].mxu0  ;;  %4351 = vmatpush1.bf16.msra.mxu0 %v7272_v23 }
 0x27b   : > { %v7345_v2 = vpack.c.bf16 %v3469_v20, %v3462_v21  ;;  %v3396_v5 = vadd.f32 %v7250_v26, %v3272_v11  ;;  %v3274_v58 = vpop.f32.mrb[9].mxu0  ;;  %5746 = vmatprep.subr.bf16.mxu0 %v8045_v19 }
 0x27c   : > { %v7349_v48 = vpack.c.bf16 %v3470_v44, %v3463_v43  ;;  %v3397_v46 = vadd.f32 %v7250_v26, %v3274_v58  ;;  %v3276_v15 = vpop.f32.mrb[10].mxu0  ;;  %v7363_v26 = vld [vmem:[%s7968_s4] sm:$0x3] }
 0x27d   : > { %v3424_v12 = vmul.f32 0.2, %v3396_v5  ;;  %v3403_v27 = vadd.f32 %v7252_v35, %v3276_v15  ;;  %v3278_v13 = vpop.f32.mrb[11].mxu0  ;;  %5581 = vmatmul.mubr.msk.bf16.vlgmr.msra.gmra.mrb[32].mxu0 %vm3491_vm10, %v7343_v49 }
 0x27e   : > { %v3425_v29 = vmul.f32 0.2, %v3397_v46  ;;  %v3404_v40 = vadd.f32 %v7252_v35, %v3278_v13  ;;  %3497 = vmatprep.subr.bf16.mxu1 %v7349_v48  ;;  %5747 = vmatpush3.bf16.msra.mxu0 %v7294_v10 }
 0x27f   : > { %v3431_v32 = vmul.f32 0.2, %v3403_v27  ;;  %3498 = vmatpush1.bf16.msra.mxu1 %v7345_v2  ;;  %5748 = vmatprep.subr.bf16.mxu0 %v8045_v19  ;;  %v3452_v35 = vmax.f32 %v3396_v5, %v3424_v12 }
 0x280   : > { %v3432_v21 = vmul.f32 0.2, %v3404_v40  ;;  %3536 = vmatprep.subr.bf16.mxu1 %v7265_v6  ;;  %5750 = vmatprep.mubr.msk.bf16.mxu0 %vm6095_vm11, %v8045_v19  ;;  %v3453_v43 = vmax.f32 %v3397_v46, %v3425_v29 }
 0x281   : > { %v3459_v20 = vmax.f32 %v3403_v27, %v3431_v32 }
 0x282   : > { %v3460_v44 = vmax.f32 %v3404_v40, %v3432_v21  ;;  %v3282_v11 = vpop.f32.mrb[12].mxu0  ;;  %5560 = vmatmul.mubr.msk.bf16.vlgmr.msra.gmra.mrb[12].mxu1 %vm3491_vm10, %v7363_v26  ;;  %5749 = vmatpush3.bf16.msra.mxu0 %v7290_v14 }
 0x283   : > { %v7371_v58 = vpack.c.bf16 %v3459_v20, %v3452_v35  ;;  %v3410_v15 = vadd.f32 %v7258_v56, %v3282_v11  ;;  %v3284_v13 = vpop.f32.mrb[13].mxu0  ;;  %3537 = vmatpush1.bf16.msra.mxu1 %v7262_v31  ;;  %4523 = vmatprep.subr.bf16.mxu0 %v7265_v6 }
 0x284   : > { %v7376_v0 = vpack.c.bf16 %v3460_v44, %v3453_v43  ;;  %v3411_v5 = vadd.f32 %v7258_v56, %v3284_v13  ;;  %v3286_v46 = vpop.f32.mrb[14].mxu0  ;;  %3538 = vmatprep.subr.bf16.mxu1 %v7275_v1  ;;  %3568 = vmatprep.mubr.bf16.mxu1 %v8024_v30  ;;  %v7435_v13 = vld [vmem:[%s7968_s4 + $0xc] sm:$0x3] }
 0x285   : > { %v3438_v12 = vmul.f32 0.2, %v3410_v15  ;;  %v3417_v27 = vadd.f32 %v7260_v4, %v3286_v46  ;;  %v3288_v29 = vpop.f32.mrb[15].mxu0  ;;  %5751 = vmatmul.mubr.msk.bf16.vlgmr.msra.gmra.mrb[36].mxu0 %vm3491_vm10, %v7343_v49 }
 0x286   : > { %v3439_v40 = vmul.f32 0.2, %v3411_v5  ;;  %v3418_v32 = vadd.f32 %v7260_v4, %v3288_v29  ;;  %4524 = vmatpush1.bf16.msra.mxu0 %v7262_v31  ;;  %4555 = vmatprep.mubr.bf16.mxu0 %v8024_v30  ;;  %v7396_v4 = vld [vmem:[%s7968_s4 + $0xa] sm:$0x3] }
 0x287   : > { %v3445_v56 = vmul.f32 0.2, %v3417_v27  ;;  %3539 = vmatpush1.bf16.msra.mxu1 %v7272_v23  ;;  %4525 = vmatprep.subr.bf16.mxu0 %v7275_v1  ;;  %v3466_v35 = vmax.f32 %v3410_v15, %v3438_v12 }
 0x288   : > { %v3446_v21 = vmul.f32 0.2, %v3418_v32  ;;  %3577 = vmatprep.subr.bf16.mxu1 %v7376_v0  ;;  %v3467_v43 = vmax.f32 %v3411_v5, %v3439_v40  ;;  %v7470_v5 = vld [vmem:[%s7968_s4 + $0xe] sm:$0x3] }
 0x289   : > { %v3473_v20 = vmax.f32 %v3417_v27, %v3445_v56 }
 0x28a   : > { %v3474_v44 = vmax.f32 %v3418_v32, %v3446_v21  ;;  %5561 = vmatmul.mubr.msk.bf16.vlgmr.msra.gmra.mrb[16].mxu1 %vm3491_vm10, %v7363_v26  ;;  %4526 = vmatpush1.bf16.msra.mxu0 %v7272_v23 }
 0x28b   : > { %v7398_v11 = vpack.c.bf16 %v3473_v20, %v3466_v35  ;;  %3578 = vmatpush1.bf16.msra.mxu1 %v7371_v58  ;;  %5754 = vmatprep.subr.bf16.mxu0 %v8045_v19 }
 0x28c   : > { %v7402_v15 = vpack.c.bf16 %v3474_v44, %v3467_v43  ;;  %3609 = vmatprep.mubr.bf16.mxu1 %v8024_v30 }
 0x28d   : > { %5586 = vmatmul.mubr.msk.bf16.vlgmr.msra.gmra.mrb[40].mxu0 %vm3491_vm10, %v7396_v4 }
 0x28e   : > { %3579 = vmatprep.subr.bf16.mxu1 %v7402_v15  ;;  %5755 = vmatpush3.bf16.msra.mxu0 %v7294_v10 }
 0x28f   : > { %3580 = vmatpush1.bf16.msra.mxu1 %v7398_v11  ;;  %5756 = vmatprep.subr.bf16.mxu0 %v8045_v19 }
 0x290   : > { %5714 = vmatprep.subr.bf16.mxu1 %v8045_v19  ;;  %5758 = vmatprep.mubr.msk.bf16.mxu0 %vm6095_vm11, %v8045_v19 }
 0x292   : > { %5562 = vmatmul.mubr.msk.bf16.vlgmr.msra.gmra.mrb[20].mxu1 %vm3491_vm10, %v7363_v26  ;;  %5757 = vmatpush3.bf16.msra.mxu0 %v7290_v14 }
 0x293   : > { %5715 = vmatpush3.bf16.msra.mxu1 %v7294_v10  ;;  %4726 = vmatprep.subr.bf16.mxu0 %v7265_v6 }
 0x294   : > { %5716 = vmatprep.subr.bf16.mxu1 %v8045_v19  ;;  %5718 = vmatprep.mubr.msk.bf16.mxu1 %vm6095_vm11, %v8045_v19 }
 0x295   : > { %5759 = vmatmul.mubr.msk.bf16.vlgmr.msra.gmra.mrb[44].mxu0 %vm3491_vm10, %v7396_v4 }
 0x296   : > { %4727 = vmatpush1.bf16.msra.mxu0 %v7262_v31  ;;  %4758 = vmatprep.mubr.bf16.mxu0 %v8024_v30 }
 0x297   : > { %5717 = vmatpush3.bf16.msra.mxu1 %v7290_v14  ;;  %4728 = vmatprep.subr.bf16.mxu0 %v7275_v1 }
 0x298   : > { %3698 = vmatprep.subr.bf16.mxu1 %v7327_v41 }
 0x29a   : > { %5719 = vmatmul.mubr.msk.bf16.vlgmr.msra.gmra.mrb[24].mxu1 %vm3491_vm10, %v7363_v26  ;;  %4729 = vmatpush1.bf16.msra.mxu0 %v7272_v23  ;;  %v5564_v26 = vld [vmem:[%s7968_s4 + $0x2] sm:$0x3] }
 0x29b   : > { %3699 = vmatpush1.bf16.msra.mxu1 %v7323_v9  ;;  %5762 = vmatprep.subr.bf16.mxu0 %v8045_v19 }
 0x29c   : > { %3700 = vmatprep.subr.bf16.mxu1 %v7349_v48  ;;  %3730 = vmatprep.mubr.bf16.mxu1 %v8024_v30 }
 0x29d   : > { %5591 = vmatmul.mubr.msk.bf16.vlgmr.msra.gmra.mrb[48].mxu0 %vm3491_vm10, %v7435_v13 }
 0x29e   : > { %5763 = vmatpush3.bf16.msra.mxu0 %v7294_v10  ;;  %5766 = vmatprep.mubr.msk.bf16.mxu0 %vm6095_vm11, %v8045_v19 }
 0x29f   : > { %3701 = vmatpush1.bf16.msra.mxu1 %v7345_v2  ;;  %5764 = vmatprep.subr.bf16.mxu0 %v8045_v19 }
 0x2a0   : > { %3739 = vmatprep.subr.bf16.mxu1 %v7265_v6 }
 0x2a2   : > { %5565 = vmatmul.mubr.msk.bf16.vlgmr.msra.gmra.mrb[28].mxu1 %vm3491_vm10, %v5564_v26  ;;  %5765 = vmatpush3.bf16.msra.mxu0 %v7290_v14 }
 0x2a3   : > { %3740 = vmatpush1.bf16.msra.mxu1 %v7262_v31  ;;  %4929 = vmatprep.subr.bf16.mxu0 %v7265_v6 }
 0x2a4   : > { %3741 = vmatprep.subr.bf16.mxu1 %v7275_v1  ;;  %3771 = vmatprep.mubr.bf16.mxu1 %v8024_v30 }
 0x2a5   : > { %5767 = vmatmul.mubr.msk.bf16.vlgmr.msra.gmra.mrb[52].mxu0 %vm3491_vm10, %v7435_v13 }
 0x2a6   : > { %4930 = vmatpush1.bf16.msra.mxu0 %v7262_v31  ;;  %4961 = vmatprep.mubr.bf16.mxu0 %v8024_v30 }
 0x2a7   : > { %3742 = vmatpush1.bf16.msra.mxu1 %v7272_v23  ;;  %4931 = vmatprep.subr.bf16.mxu0 %v7275_v1 }
 0x2a8   : > { %3780 = vmatprep.subr.bf16.mxu1 %v7376_v0 }
 0x2aa   : > { %5566 = vmatmul.mubr.msk.bf16.vlgmr.msra.gmra.mrb[32].mxu1 %vm3491_vm10, %v5564_v26  ;;  %4932 = vmatpush1.bf16.msra.mxu0 %v7272_v23 }
 0x2ab   : > { %3781 = vmatpush1.bf16.msra.mxu1 %v7371_v58  ;;  %5770 = vmatprep.subr.bf16.mxu0 %v8045_v19 }
 0x2ac   : > { %3782 = vmatprep.subr.bf16.mxu1 %v7402_v15  ;;  %3812 = vmatprep.mubr.bf16.mxu1 %v8024_v30 }
 0x2ad   : > { %5596 = vmatmul.mubr.msk.bf16.vlgmr.msra.gmra.mrb[56].mxu0 %vm3491_vm10, %v7470_v5 }
 0x2ae   : > { %5771 = vmatpush3.bf16.msra.mxu0 %v7294_v10  ;;  %5774 = vmatprep.mubr.msk.bf16.mxu0 %vm6095_vm11, %v8045_v19 }
 0x2af   : > { %3783 = vmatpush1.bf16.msra.mxu1 %v7398_v11  ;;  %5772 = vmatprep.subr.bf16.mxu0 %v8045_v19 }
 0x2b0   : > { %5722 = vmatprep.subr.bf16.mxu1 %v8045_v19 }
 0x2b2   : > { %5567 = vmatmul.mubr.msk.bf16.vlgmr.msra.gmra.mrb[36].mxu1 %vm3491_vm10, %v5564_v26  ;;  %5773 = vmatpush3.bf16.msra.mxu0 %v7290_v14 }
 0x2b3   : > { %5723 = vmatpush3.bf16.msra.mxu1 %v7294_v10  ;;  %5132 = vmatprep.subr.bf16.mxu0 %v7265_v6  ;;  %v7503_v6 = vld [vmem:[%s7968_s4 + $0x10] sm:$0x3] }
 0x2b4   : > { %5724 = vmatprep.subr.bf16.mxu1 %v8045_v19  ;;  %5726 = vmatprep.mubr.msk.bf16.mxu1 %vm6095_vm11, %v8045_v19 }
 0x2b5   : > { %5775 = vmatmul.mubr.msk.bf16.vlgmr.msra.gmra.mrb[60].mxu0 %vm3491_vm10, %v7470_v5 }
 0x2b6   : > { %5133 = vmatpush1.bf16.msra.mxu0 %v7262_v31  ;;  %5164 = vmatprep.mubr.bf16.mxu0 %v8024_v30 }
 0x2b7   : > { %5725 = vmatpush3.bf16.msra.mxu1 %v7290_v14  ;;  %5134 = vmatprep.subr.bf16.mxu0 %v7275_v1 }
 0x2b8   : > { %3901 = vmatprep.subr.bf16.mxu1 %v7327_v41 }
 0x2ba   : > { %5727 = vmatmul.mubr.msk.bf16.vlgmr.msra.gmra.mrb[40].mxu1 %vm3491_vm10, %v5564_v26  ;;  %5135 = vmatpush1.bf16.msra.mxu0 %v7272_v23 }
 0x2bb   : > { %3902 = vmatpush1.bf16.msra.mxu1 %v7323_v9  ;;  %5778 = vmatprep.subr.bf16.mxu0 %v8045_v19 }
 0x2bc   : > { %3903 = vmatprep.subr.bf16.mxu1 %v7349_v48  ;;  %3933 = vmatprep.mubr.bf16.mxu1 %v8024_v30 }
 0x2bd   : > { %5601 = vmatmul.mubr.msk.bf16.vlgmr.msra.gmra.mrb[64].mxu0 %vm3491_vm10, %v7503_v6 }
 0x2be   : > { %5779 = vmatpush3.bf16.msra.mxu0 %v7294_v10  ;;  %5782 = vmatprep.mubr.msk.bf16.mxu0 %vm6095_vm11, %v8045_v19 }
 0x2bf   : > { %3904 = vmatpush1.bf16.msra.mxu1 %v7345_v2  ;;  %5780 = vmatprep.subr.bf16.mxu0 %v8045_v19 }
 0x2c0   : > { %3983 = vmatprep.subr.bf16.mxu1 %v7376_v0 }
 0x2c2   : > { %5570 = vmatmul.mubr.msk.bf16.vlgmr.msra.gmra.mrb[44].mxu1 %vm3491_vm10, %v7285_v3  ;;  %5781 = vmatpush3.bf16.msra.mxu0 %v7290_v14 }
 0x2c3   : > { %3984 = vmatpush1.bf16.msra.mxu1 %v7371_v58  ;;  %4015 = vmatprep.mubr.bf16.mxu1 %v8024_v30 }
 0x2c4   : > { %3985 = vmatprep.subr.bf16.mxu1 %v7402_v15 }
 0x2c5   : > { %5783 = vmatmul.mubr.msk.bf16.vlgmr.msra.gmra.mrb[68].mxu0 %vm3491_vm10, %v7503_v6 }
 0x2c7   : > { %3986 = vmatpush1.bf16.msra.mxu1 %v7398_v11 }
 0x2c8   : > { %4104 = vmatprep.subr.bf16.mxu1 %v7327_v41 }
 0x2ca   : > { %5572 = vmatmul.mubr.msk.bf16.vlgmr.msra.gmra.mrb[48].mxu1 %vm3491_vm10, %v7285_v3 }
 0x2cb   : > { %4105 = vmatpush1.bf16.msra.mxu1 %v7323_v9  ;;  %4136 = vmatprep.mubr.bf16.mxu1 %v8024_v30 }
 0x2cc   : > { %4106 = vmatprep.subr.bf16.mxu1 %v7349_v48 }
 0x2cf   : > { %4107 = vmatpush1.bf16.msra.mxu1 %v7345_v2 }
 0x2d0   : > { %4186 = vmatprep.subr.bf16.mxu1 %v7376_v0 }
 0x2d2   : > { %5575 = vmatmul.mubr.msk.bf16.vlgmr.msra.gmra.mrb[52].mxu1 %vm3491_vm10, %v7309_v36 }
 0x2d3   : > { %4187 = vmatpush1.bf16.msra.mxu1 %v7371_v58  ;;  %4218 = vmatprep.mubr.bf16.mxu1 %v8024_v30 }
 0x2d4   : > { %4188 = vmatprep.subr.bf16.mxu1 %v7402_v15 }
 0x2d7   : > { %4189 = vmatpush1.bf16.msra.mxu1 %v7398_v11 }
 0x2d8   : > { %4307 = vmatprep.subr.bf16.mxu1 %v7327_v41 }
 0x2da   : > { %5577 = vmatmul.mubr.msk.bf16.vlgmr.msra.gmra.mrb[56].mxu1 %vm3491_vm10, %v7309_v36 }
 0x2db   : > { %4308 = vmatpush1.bf16.msra.mxu1 %v7323_v9  ;;  %4339 = vmatprep.mubr.bf16.mxu1 %v8024_v30 }
 0x2dc   : > { %4309 = vmatprep.subr.bf16.mxu1 %v7349_v48 }
 0x2df   : > { %4310 = vmatpush1.bf16.msra.mxu1 %v7345_v2 }
 0x2e0   : > { %4389 = vmatprep.subr.bf16.mxu1 %v7376_v0 }
 0x2e2   : > { %5580 = vmatmul.mubr.msk.bf16.vlgmr.msra.gmra.mrb[60].mxu1 %vm3491_vm10, %v7343_v49 }
 0x2e3   : > { %4390 = vmatpush1.bf16.msra.mxu1 %v7371_v58  ;;  %4421 = vmatprep.mubr.bf16.mxu1 %v8024_v30 }
 0x2e4   : > { %4391 = vmatprep.subr.bf16.mxu1 %v7402_v15 }
 0x2e7   : > { %4392 = vmatpush1.bf16.msra.mxu1 %v7398_v11 }
 0x2e8   : > { %4482 = vmatprep.subr.bf16.mxu1 %v7327_v41 }
 0x2ea   : > { %5582 = vmatmul.mubr.msk.bf16.vlgmr.msra.gmra.mrb[64].mxu1 %vm3491_vm10, %v7343_v49 }
 0x2eb   : > { %4483 = vmatpush1.bf16.msra.mxu1 %v7323_v9  ;;  %4514 = vmatprep.mubr.bf16.mxu1 %v8024_v30 }
 0x2ec   : > { %4484 = vmatprep.subr.bf16.mxu1 %v7349_v48 }
 0x2ef   : > { %4485 = vmatpush1.bf16.msra.mxu1 %v7345_v2 }
 0x2f0   : > { %4564 = vmatprep.subr.bf16.mxu1 %v7376_v0 }
 0x2f2   : > { %5585 = vmatmul.mubr.msk.bf16.vlgmr.msra.gmra.mrb[68].mxu1 %vm3491_vm10, %v7396_v4 }
 0x2f3   : > { %4565 = vmatpush1.bf16.msra.mxu1 %v7371_v58  ;;  %4596 = vmatprep.mubr.bf16.mxu1 %v8024_v30 }
 0x2f4   : > { %4566 = vmatprep.subr.bf16.mxu1 %v7402_v15 }
 0x2f7   : > { %4567 = vmatpush1.bf16.msra.mxu1 %v7398_v11 }
 0x2f8   : > { %4685 = vmatprep.subr.bf16.mxu1 %v7327_v41 }
 0x2fa   : > { %5587 = vmatmul.mubr.msk.bf16.vlgmr.msra.gmra.mrb[72].mxu1 %vm3491_vm10, %v7396_v4 }
 0x2fb   : > { %4686 = vmatpush1.bf16.msra.mxu1 %v7323_v9  ;;  %4717 = vmatprep.mubr.bf16.mxu1 %v8024_v30 }
 0x2fc   : > { %4687 = vmatprep.subr.bf16.mxu1 %v7349_v48 }
 0x2ff   : > { %4688 = vmatpush1.bf16.msra.mxu1 %v7345_v2 }
 0x300   : > { %4767 = vmatprep.subr.bf16.mxu1 %v7376_v0 }
 0x302   : > { %5590 = vmatmul.mubr.msk.bf16.vlgmr.msra.gmra.mrb[76].mxu1 %vm3491_vm10, %v7435_v13 }
 0x303   : > { %4768 = vmatpush1.bf16.msra.mxu1 %v7371_v58  ;;  %4799 = vmatprep.mubr.bf16.mxu1 %v8024_v30 }
 0x304   : > { %4769 = vmatprep.subr.bf16.mxu1 %v7402_v15 }
 0x307   : > { %4770 = vmatpush1.bf16.msra.mxu1 %v7398_v11 }
 0x308   : > { %4888 = vmatprep.subr.bf16.mxu1 %v7327_v41 }
 0x30a   : > { %5592 = vmatmul.mubr.msk.bf16.vlgmr.msra.gmra.mrb[80].mxu1 %vm3491_vm10, %v7435_v13 }
 0x30b   : > { %4889 = vmatpush1.bf16.msra.mxu1 %v7323_v9  ;;  %4920 = vmatprep.mubr.bf16.mxu1 %v8024_v30 }
 0x30c   : > { %4890 = vmatprep.subr.bf16.mxu1 %v7349_v48 }
 0x30f   : > { %4891 = vmatpush1.bf16.msra.mxu1 %v7345_v2 }
 0x310   : > { %4970 = vmatprep.subr.bf16.mxu1 %v7376_v0 }
 0x312   : > { %5595 = vmatmul.mubr.msk.bf16.vlgmr.msra.gmra.mrb[84].mxu1 %vm3491_vm10, %v7470_v5 }
 0x313   : > { %4971 = vmatpush1.bf16.msra.mxu1 %v7371_v58  ;;  %5002 = vmatprep.mubr.bf16.mxu1 %v8024_v30 }
 0x314   : > { %4972 = vmatprep.subr.bf16.mxu1 %v7402_v15 }
 0x317   : > { %4973 = vmatpush1.bf16.msra.mxu1 %v7398_v11 }
 0x318   : > { %5091 = vmatprep.subr.bf16.mxu1 %v7327_v41 }
 0x31a   : > { %5597 = vmatmul.mubr.msk.bf16.vlgmr.msra.gmra.mrb[88].mxu1 %vm3491_vm10, %v7470_v5 }
 0x31b   : > { %5092 = vmatpush1.bf16.msra.mxu1 %v7323_v9  ;;  %5123 = vmatprep.mubr.bf16.mxu1 %v8024_v30 }
 0x31c   : > { %5093 = vmatprep.subr.bf16.mxu1 %v7349_v48 }
 0x31f   : > { %5094 = vmatpush1.bf16.msra.mxu1 %v7345_v2 }
 0x320   : > { %5173 = vmatprep.subr.bf16.mxu1 %v7376_v0 }
 0x322   : > { %5600 = vmatmul.mubr.msk.bf16.vlgmr.msra.gmra.mrb[92].mxu1 %vm3491_vm10, %v7503_v6 }
 0x323   : > { %5174 = vmatpush1.bf16.msra.mxu1 %v7371_v58  ;;  %5205 = vmatprep.mubr.bf16.mxu1 %v8024_v30 }
 0x324   : > { %5175 = vmatprep.subr.bf16.mxu1 %v7402_v15 }
 0x327   : > { %5176 = vmatpush1.bf16.msra.mxu1 %v7398_v11 }
 0x32a   : > { %5602 = vmatmul.mubr.msk.bf16.vlgmr.msra.gmra.mrb[96].mxu1 %vm3491_vm10, %v7503_v6 }
 0x32d   : > { %v3976_v41 = vpop.f32.mrb[16].mxu0 }
 0x32e   : > { %v3978_v48 = vpop.f32.mrb[17].mxu0  ;;  %4068 = vrot.lane.b32.xlu1 %v3976_v41, %s6088_s12 }
 0x32f   : > { %v3980_v31 = vpop.f32.mrb[18].mxu0  ;;  %4070 = vrot.lane.b32.xlu0 %v3978_v48, %s6088_s12 }
 0x330   : > { %v3981_v0 = vpop.f32.mrb[19].mxu0 }
 0x338   : > { %v4058_v23 = vpop.f32.mrb[20].mxu0 }
 0x339   : > { %v5736_v1 = vpop.f32.mrb[21].mxu0  ;;  %4076 = vrot.lane.b32.xlu1 %v4058_v23, %s6088_s12 }
 0x33a   : > { %v4061_v30 = vpop.f32.mrb[22].mxu0 }
 0x33b   : > { %v5737_v3 = vpop.f32.mrb[23].mxu0 }
 0x340   : > { %v4179_v14 = vpop.f32.mrb[24].mxu0 }
 0x341   : > { %v4181_v10 = vpop.f32.mrb[25].mxu0  ;;  %4271 = vrot.lane.b32.xlu0 %v4179_v14, %s6089_s13 }
 0x342   : > { %v4183_v36 = vpop.f32.mrb[26].mxu0  ;;  %4273 = vrot.lane.b32.xlu1 %v4181_v10, %s6089_s13 }
 0x343   : > { %v4184_v9 = vpop.f32.mrb[27].mxu0 }
 0x348   : > { %v4261_v49 = vpop.f32.mrb[28].mxu0 }
 0x349   : > { %v5744_v2 = vpop.f32.mrb[29].mxu0  ;;  %4279 = vrot.lane.b32.xlu0 %v4261_v49, %s6089_s13 }
 0x34a   : > { %v4264_v19 = vpop.f32.mrb[30].mxu0 }
 0x34b   : > { %v5745_v58 = vpop.f32.mrb[31].mxu0 }
 0x350   : > { %v7618_v46 = vpop.f32.mrb[32].mxu0 }
 0x351   : > { %v7620_v12 = vpop.f32.mrb[33].mxu0 }
 0x352   : > { %v4386_v27 = vpop.f32.mrb[34].mxu0 }
 0x353   : > { %v4387_v29 = vpop.f32.mrb[35].mxu0 }
 0x355   : > { %v3529_v40 = vpop.f32.mrb[12].mxu1 }
 0x356   : > { %v3531_v32 = vpop.f32.mrb[13].mxu1 }
 0x357   : > { %v3533_v56 = vpop.f32.mrb[14].mxu1 }
 0x358   : > { %v3534_v21 = vpop.f32.mrb[15].mxu1  ;;  %v7622_v35 = vpop.f32.mrb[36].mxu0 }
 0x359   : > { %8046 = vst [vmem:[#allocation30_spill] sm:$0xff] %v7622_v35  ;;  %v5752_v20 = vpop.f32.mrb[37].mxu0 }
 0x35a   : > { %v4467_v43 = vpop.f32.mrb[38].mxu0 }
 0x35b   : > { %v5753_v44 = vpop.f32.mrb[39].mxu0 }
 0x35d   : > { %v3570_v4 = vpop.f32.mrb[16].mxu1 }
 0x35e   : > { %v3572_v11 = vpop.f32.mrb[17].mxu1 }
 0x35f   : > { %v3574_v15 = vpop.f32.mrb[18].mxu1 }
 0x360   : > { %v3575_v13 = vpop.f32.mrb[19].mxu1  ;;  %v4557_v26 = vpop.f32.mrb[40].mxu0 }
 0x361   : > { %v4559_v5 = vpop.f32.mrb[41].mxu0  ;;  %4649 = vrot.lane.b32.xlu1 %v4557_v26, %s6090_s14 }
 0x362   : > { %4651 = vrot.lane.b32.xlu0 %v4559_v5, %s6090_s14  ;;  %v4561_v6 = vpop.f32.mrb[42].mxu0 }
 0x363   : > { %v4562_v41 = vpop.f32.mrb[43].mxu0 }
 0x365   : > { %v3611_v48 = vpop.f32.mrb[20].mxu1 }
 0x366   : > { %3660 = vrot.lane.b32.xlu0 %v3531_v32, %s6087_s11  ;;  %v3613_v31 = vpop.f32.mrb[21].mxu1 }
 0x367   : > { %v3615_v0 = vpop.f32.mrb[22].mxu1 }
 0x368   : > { %v3616_v23 = vpop.f32.mrb[23].mxu1  ;;  %v4639_v1 = vpop.f32.mrb[44].mxu0 }
 0x369   : > { %4657 = vrot.lane.b32.xlu1 %v4639_v1, %s6090_s14  ;;  %v5760_v30 = vpop.f32.mrb[45].mxu0 }
 0x36a   : > { %v4642_v3 = vpop.f32.mrb[46].mxu0 }
 0x36b   : > { %v5761_v14 = vpop.f32.mrb[47].mxu0 }
 0x36d   : > { %3658 = vrot.lane.b32.xlu1 %v3529_v40, %s6087_s11  ;;  %v3652_v10 = vpop.f32.mrb[24].mxu1 }
 0x36e   : > { %v5720_v36 = vpop.f32.mrb[25].mxu1 }
 0x36f   : > { %v3655_v9 = vpop.f32.mrb[26].mxu1 }
 0x370   : > { %v5721_v49 = vpop.f32.mrb[27].mxu1  ;;  %v4760_v2 = vpop.f32.mrb[48].mxu0 }
 0x371   : > { %4852 = vrot.lane.b32.xlu0 %v4760_v2, %s6091_s15  ;;  %v4762_v19 = vpop.f32.mrb[49].mxu0 }
 0x372   : > { %4854 = vrot.lane.b32.xlu1 %v4762_v19, %s6091_s15  ;;  %v4764_v58 = vpop.f32.mrb[50].mxu0 }
 0x373   : > { %v4765_v27 = vpop.f32.mrb[51].mxu0 }
 0x375   : > { %3664 = vrot.lane.b32.xlu0 %v3572_v11, %s6087_s11  ;;  %v3732_v29 = vpop.f32.mrb[28].mxu1 }
 0x376   : > { %3662 = vrot.lane.b32.xlu1 %v3570_v4, %s6087_s11  ;;  %v3734_v32 = vpop.f32.mrb[29].mxu1 }
 0x377   : > { %v3736_v56 = vpop.f32.mrb[30].mxu1 }
 0x378   : > { %v3737_v40 = vpop.f32.mrb[31].mxu1  ;;  %v4842_v21 = vpop.f32.mrb[52].mxu0 }
 0x379   : > { %4860 = vrot.lane.b32.xlu0 %v4842_v21, %s6091_s15  ;;  %v5768_v20 = vpop.f32.mrb[53].mxu0 }
 0x37a   : > { %3666 = vrot.lane.b32.xlu1 %v3611_v48, %s6087_s11  ;;  %v4845_v43 = vpop.f32.mrb[54].mxu0 }
 0x37b   : > { %v5769_v44 = vpop.f32.mrb[55].mxu0 }
 0x37d   : > { %3668 = vrot.lane.b32.xlu0 %v3613_v31, %s6087_s11  ;;  %v3773_v15 = vpop.f32.mrb[32].mxu1 }
 0x37e   : > { %v3775_v13 = vpop.f32.mrb[33].mxu1 }
 0x37f   : > { %v3777_v26 = vpop.f32.mrb[34].mxu1 }
 0x380   : > { %v3778_v11 = vpop.f32.mrb[35].mxu1  ;;  %v4963_v5 = vpop.f32.mrb[56].mxu0 }
 0x381   : > { %v4965_v6 = vpop.f32.mrb[57].mxu0  ;;  %5055 = vrot.lane.b32.xlu1 %v4963_v5, %s6092_s16 }
 0x382   : > { %5057 = vrot.lane.b32.xlu0 %v4965_v6, %s6092_s16  ;;  %v4967_v4 = vpop.f32.mrb[58].mxu0 }
 0x383   : > { %v4968_v41 = vpop.f32.mrb[59].mxu0 }
 0x385   : > { %3670 = vrot.lane.b32.xlu1 %v3652_v10, %s6087_s11  ;;  %v3814_v0 = vpop.f32.mrb[36].mxu1 }
 0x386   : > { %3861 = vrot.lane.b32.xlu0 %v3732_v29, %s6085_s10  ;;  %v3816_v48 = vpop.f32.mrb[37].mxu1 }
 0x387   : > { %v3818_v23 = vpop.f32.mrb[38].mxu1 }
 0x388   : > { %v3819_v31 = vpop.f32.mrb[39].mxu1  ;;  %v5045_v1 = vpop.f32.mrb[60].mxu0 }
 0x389   : > { %5063 = vrot.lane.b32.xlu1 %v5045_v1, %s6092_s16  ;;  %v5776_v30 = vpop.f32.mrb[61].mxu0 }
 0x38a   : > { %v5048_v3 = vpop.f32.mrb[62].mxu0 }
 0x38b   : > { %v5777_v14 = vpop.f32.mrb[63].mxu0 }
 0x38d   : > { %3863 = vrot.lane.b32.xlu1 %v3734_v32, %s6085_s10  ;;  %v3855_v36 = vpop.f32.mrb[40].mxu1 }
 0x38e   : > { %v5728_v9 = vpop.f32.mrb[41].mxu1 }
 0x38f   : > { %v3858_v49 = vpop.f32.mrb[42].mxu1 }
 0x390   : > { %v5729_v2 = vpop.f32.mrb[43].mxu1  ;;  %v5166_v19 = vpop.f32.mrb[64].mxu0 }
 0x391   : > { %v5168_v10 = vpop.f32.mrb[65].mxu0  ;;  %5258 = vrot.lane.b32.xlu1 %v5166_v19, %s6093_s17  ;;  %v7667_v19 = vpop.permute.xlu0 %5292 }
 0x392   : > { %5260 = vrot.lane.b32.xlu0 %v5168_v10, %s6093_s17  ;;  %v5170_v58 = vpop.f32.mrb[66].mxu0  ;;  %8050 = vst [vmem:[#allocation34_spill] sm:$0xff] %v7667_v19 }
 0x393   : > { %v5171_v27 = vpop.f32.mrb[67].mxu0 }
 0x395   : > { %3867 = vrot.lane.b32.xlu1 %v3775_v13, %s6085_s10  ;;  %v3935_v29 = vpop.f32.mrb[44].mxu1 }
 0x396   : > { %3865 = vrot.lane.b32.xlu0 %v3773_v15, %s6085_s10  ;;  %v3937_v56 = vpop.f32.mrb[45].mxu1 }
 0x397   : > { %v3939_v40 = vpop.f32.mrb[46].mxu1 }
 0x398   : > { %v3940_v32 = vpop.f32.mrb[47].mxu1  ;;  %v7646_v21 = vpop.f32.mrb[68].mxu0 }
 0x399   : > { %3871 = vrot.lane.b32.xlu1 %v3816_v48, %s6085_s10  ;;  %v5784_v20 = vpop.f32.mrb[69].mxu0 }
 0x39a   : > { %3869 = vrot.lane.b32.xlu0 %v3814_v0, %s6085_s10  ;;  %v5251_v43 = vpop.f32.mrb[70].mxu0 }
 0x39b   : > { %v5785_v44 = vpop.f32.mrb[71].mxu0 }
 0x39d   : > { %4064 = vrot.lane.b32.xlu1 %v3935_v29, %s6088_s12  ;;  %v4017_v26 = vpop.f32.mrb[48].mxu1 }
 0x39e   : > { %3873 = vrot.lane.b32.xlu0 %v3855_v36, %s6085_s10  ;;  %v4019_v13 = vpop.f32.mrb[49].mxu1 }
 0x39f   : > { %v4021_v11 = vpop.f32.mrb[50].mxu1 }
 0x3a0   : > { %v4022_v15 = vpop.f32.mrb[51].mxu1  ;;  %v7669_v10 = vpop.permute.xlu1 %4068 }
 0x3a1   : > { %4072 = vrot.lane.b32.xlu1 %v4017_v26, %s6088_s12  ;;  %v7672_v29 = vpop.permute.xlu0 %4070 }
 0x3a2   : > { %4066 = vrot.lane.b32.xlu0 %v3937_v56, %s6088_s12 }
 0x3a5   : > { %v4138_v5 = vpop.f32.mrb[52].mxu1 }
 0x3a6   : > { %4074 = vrot.lane.b32.xlu0 %v4019_v13, %s6088_s12  ;;  %v4140_v6 = vpop.f32.mrb[53].mxu1  ;;  %s298_s12 = scalar_lea.vmem %s7971_s7, %s6144_s26 }
 0x3a7   : > { %4269 = vrot.lane.b32.xlu1 %v4140_v6, %s6089_s13  ;;  %v4142_v4 = vpop.f32.mrb[54].mxu1 }
 0x3a8   : > { %v4143_v41 = vpop.f32.mrb[55].mxu1 }
 0x3aa   : > { %4267 = vrot.lane.b32.xlu0 %v4138_v5, %s6089_s13 }
 0x3ab   : > { %v7675_v32 = vpop.permute.xlu1 %4076 }
 0x3ad   : > { %v4220_v0 = vpop.f32.mrb[56].mxu1 }
 0x3ae   : > { %4275 = vrot.lane.b32.xlu0 %v4220_v0, %s6089_s13  ;;  %v4222_v48 = vpop.f32.mrb[57].mxu1 }
 0x3af   : > { %4277 = vrot.lane.b32.xlu1 %v4222_v48, %s6089_s13  ;;  %v4224_v23 = vpop.f32.mrb[58].mxu1 }
 0x3b0   : > { %v4225_v31 = vpop.f32.mrb[59].mxu1 }
 0x3b3   : > { %v7677_v20 = vpop.permute.xlu0 %4271 }
 0x3b4   : > { %v7681_v13 = vpop.permute.xlu1 %4273 }
 0x3b5   : > { %v7659_v1 = vpop.f32.mrb[60].mxu1 }
 0x3b6   : > { %v7661_v30 = vpop.f32.mrb[61].mxu1 }
 0x3b7   : > { %8047 = vst [vmem:[#allocation31_spill] sm:$0xff] %v7661_v30  ;;  %v4345_v3 = vpop.f32.mrb[62].mxu1 }
 0x3b8   : > { %v4346_v14 = vpop.f32.mrb[63].mxu1 }
 0x3bb   : > { %v7683_v15 = vpop.permute.xlu0 %4279 }
 0x3bd   : > { %v7663_v36 = vpop.f32.mrb[64].mxu1 }
 0x3be   : > { %8048 = vst [vmem:[#allocation32_spill] sm:$0xff] %v7663_v36  ;;  %v7665_v9 = vpop.f32.mrb[65].mxu1 }
 0x3bf   : > { %8049 = vst [vmem:[#allocation33_spill] sm:$0xff] %v7665_v9  ;;  %v4427_v49 = vpop.f32.mrb[66].mxu1 }
 0x3c0   : > { %v4428_v2 = vpop.f32.mrb[67].mxu1 }
 0x3c5   : > { %v4516_v58 = vpop.f32.mrb[68].mxu1 }
 0x3c6   : > { %4645 = vrot.lane.b32.xlu1 %v4516_v58, %s6090_s14  ;;  %v4518_v27 = vpop.f32.mrb[69].mxu1 }
 0x3c7   : > { %4647 = vrot.lane.b32.xlu0 %v4518_v27, %s6090_s14  ;;  %v4520_v56 = vpop.f32.mrb[70].mxu1 }
 0x3c8   : > { %v4521_v40 = vpop.f32.mrb[71].mxu1 }
 0x3cd   : > { %v4598_v43 = vpop.f32.mrb[72].mxu1 }
 0x3ce   : > { %4653 = vrot.lane.b32.xlu1 %v4598_v43, %s6090_s14  ;;  %v4600_v44 = vpop.f32.mrb[73].mxu1 }
 0x3cf   : > { %4655 = vrot.lane.b32.xlu0 %v4600_v44, %s6090_s14  ;;  %v4602_v26 = vpop.f32.mrb[74].mxu1 }
 0x3d0   : > { %v4603_v11 = vpop.f32.mrb[75].mxu1 }
 0x3d3   : > { %v7685_v6 = vpop.permute.xlu1 %4649 }
 0x3d4   : > { %8051 = vst [vmem:[#allocation35_spill] sm:$0xff] %v7685_v6  ;;  %v7689_v0 = vpop.permute.xlu0 %4651 }
 0x3d5   : > { %v4719_v5 = vpop.f32.mrb[76].mxu1  ;;  %8052 = vst [vmem:[#allocation36_spill] sm:$0xff] %v7689_v0 }
 0x3d6   : > { %4848 = vrot.lane.b32.xlu0 %v4719_v5, %s6091_s15  ;;  %v4721_v4 = vpop.f32.mrb[77].mxu1 }
 0x3d7   : > { %4850 = vrot.lane.b32.xlu1 %v4721_v4, %s6091_s15  ;;  %v4723_v41 = vpop.f32.mrb[78].mxu1 }
 0x3d8   : > { %v4724_v48 = vpop.f32.mrb[79].mxu1  ;;  %v3661_v3 = vpop.permute.xlu0 %3660 }
 0x3db   : > { %v7691_v23 = vpop.permute.xlu1 %4657 }
 0x3dc   : > { %8053 = vst [vmem:[#allocation37_spill] sm:$0xff] %v7691_v23 }
 0x3dd   : > { %v4801_v31 = vpop.f32.mrb[80].mxu1 }
 0x3de   : > { %4856 = vrot.lane.b32.xlu0 %v4801_v31, %s6091_s15  ;;  %v4803_v14 = vpop.f32.mrb[81].mxu1 }
 0x3df   : > { %v7694_v49 = vpop.permute.xlu1 %3658  ;;  %4858 = vrot.lane.b32.xlu1 %v4803_v14, %s6091_s15  ;;  %v4805_v2 = vpop.f32.mrb[82].mxu1 }
 0x3e0   : > { %v7700_v58 = vsel %vm337_vm2, %v7694_v49, %v3661_v3  ;;  %v4806_v27 = vpop.f32.mrb[83].mxu1 }
 0x3e3   : > { %v7702_v56 = vpop.permute.xlu0 %4852 }
 0x3e4   : > { %8054 = vst [vmem:[#allocation38_spill] sm:$0xff] %v7702_v56  ;;  %v7704_v40 = vpop.permute.xlu1 %4854 }
 0x3e5   : > { %8055 = vst [vmem:[#allocation39_spill] sm:$0xff] %v7704_v40  ;;  %v4922_v43 = vpop.f32.mrb[84].mxu1 }
 0x3e6   : > { %5051 = vrot.lane.b32.xlu1 %v4922_v43, %s6092_s16  ;;  %v4924_v44 = vpop.f32.mrb[85].mxu1 }
 0x3e7   : > { %v3665_v26 = vpop.permute.xlu0 %3664  ;;  %5053 = vrot.lane.b32.xlu0 %v4924_v44, %s6092_s16  ;;  %v4926_v11 = vpop.f32.mrb[86].mxu1 }
 0x3e8   : > { %v3663_v5 = vpop.permute.xlu1 %3662  ;;  %v4927_v4 = vpop.f32.mrb[87].mxu1 }
 0x3e9   : > { %v3675_v41 = vsel %vm337_vm2, %v3663_v5, %v3665_v26  ;;  %v3676_v48 = vsel %vm337_vm2, %v3661_v3, %v3663_v5 }
 0x3eb   : > { %v7712_v31 = vpop.permute.xlu0 %4860 }
 0x3ec   : > { %8056 = vst [vmem:[#allocation40_spill] sm:$0xff] %v7712_v31  ;;  %v3667_v14 = vpop.permute.xlu1 %3666 }
 0x3ed   : > { %v3674_v2 = vsel %vm337_vm2, %v3665_v26, %v3667_v14  ;;  %v5004_v27 = vpop.f32.mrb[88].mxu1 }
 0x3ee   : > { %5059 = vrot.lane.b32.xlu1 %v5004_v27, %s6092_s16  ;;  %v5006_v43 = vpop.f32.mrb[89].mxu1 }
 0x3ef   : > { %v3669_v44 = vpop.permute.xlu0 %3668  ;;  %5061 = vrot.lane.b32.xlu0 %v5006_v43, %s6092_s16  ;;  %v5008_v11 = vpop.f32.mrb[90].mxu1 }
 0x3f0   : > { %v3673_v4 = vsel %vm337_vm2, %v3667_v14, %v3669_v44  ;;  %v5009_v19 = vpop.f32.mrb[91].mxu1 }
 0x3f3   : > { %v7720_v23 = vpop.permute.xlu1 %5055 }
 0x3f4   : > { %8057 = vst [vmem:[#allocation41_spill] sm:$0xff] %v7720_v23  ;;  %v7724_v56 = vpop.permute.xlu0 %5057 }
 0x3f5   : > { %v5125_v3 = vpop.f32.mrb[92].mxu1  ;;  %8058 = vst [vmem:[#allocation42_spill] sm:$0xff] %v7724_v56 }
 0x3f6   : > { %v5127_v5 = vpop.f32.mrb[93].mxu1  ;;  %5254 = vrot.lane.b32.xlu1 %v5125_v3, %s6093_s17 }
 0x3f7   : > { %v3671_v31 = vpop.permute.xlu1 %3670  ;;  %5256 = vrot.lane.b32.xlu0 %v5127_v5, %s6093_s17  ;;  %v5129_v26 = vpop.f32.mrb[94].mxu1 }
 0x3f8   : > { %v5130_v27 = vpop.f32.mrb[95].mxu1  ;;  %v3862_v23 = vpop.permute.xlu0 %3861 }
 0x3fb   : > { %v7726_v40 = vpop.permute.xlu1 %5063 }
 0x3fc   : > { %8059 = vst [vmem:[#allocation43_spill] sm:$0xff] %v7726_v40 }
 0x3fd   : > { %v5207_v43 = vpop.f32.mrb[96].mxu1 }
 0x3fe   : > { %5262 = vrot.lane.b32.xlu1 %v5207_v43, %s6093_s17  ;;  %v5209_v14 = vpop.f32.mrb[97].mxu1  ;;  %v4081_v43 = vsel %vm985_vm4, %v7669_v10, %v7672_v29 }
 0x3ff   : > { %v3864_v19 = vpop.permute.xlu1 %3863  ;;  %5264 = vrot.lane.b32.xlu0 %v5209_v14, %s6093_s17  ;;  %v5211_v11 = vpop.f32.mrb[98].mxu1 }
 0x400   : > { %v5212_v6 = vpop.f32.mrb[99].mxu1  ;;  %v3682_v11 = vmul.f32 %v3675_v41, %v6476_v52  ;;  %v3880_v52 = vsel %vm414_vm0, %v3862_v23, %v3864_v19 }
 0x402   : > { %5266 = vrot.lane.b32.xlu1 %v7646_v21, %s6093_s17  ;;  %v4284_v21 = vsel %vm1337_vm5, %v7677_v20, %v7681_v13 }
 0x403   : > { %v7732_v3 = vpop.permute.xlu1 %5258  ;;  %v4291_v0 = vmul.f32 %v4284_v21, %v6641_v39  ;;  %v3678_v39 = vsel %vm337_vm2, %v3671_v31, %v7694_v49  ;;  %v3683_v49 = vmul.f32 %v3674_v2, %v6457_v42 }
 0x404   : > { %8060 = vst [vmem:[#allocation44_spill] sm:$0xff] %v7732_v3  ;;  %v7734_v5 = vpop.permute.xlu0 %5260  ;;  %v4088_v3 = vmul.f32 %v4081_v43, %v6557_v53 }
 0x405   : > { %8061 = vst [vmem:[#allocation45_spill] sm:$0xff] %v7734_v5 }
 0x407   : > { %v3868_v26 = vpop.permute.xlu1 %3867 }
 0x408   : > { %v3866_v27 = vpop.permute.xlu0 %3865 }
 0x409   : > { %v3878_v14 = vsel %vm414_vm0, %v3866_v27, %v3868_v26 }
 0x40a   : > { %v3885_v6 = vmul.f32 %v3878_v14, %v6431_v25  ;;  %v3879_v25 = vsel %vm414_vm0, %v3864_v19, %v3866_v27  ;;  %v3684_v19 = vmul.f32 %v3673_v4, %v6403_v63 }
 0x40b   : > { %v3872_v40 = vpop.permute.xlu1 %3871 }
 0x40c   : > { %v3892_v5 = vadd.f32 %v3885_v6, %v3682_v11  ;;  %v3870_v56 = vpop.permute.xlu0 %3869 }
 0x40d   : > { %v3877_v42 = vsel %vm414_vm0, %v3868_v26, %v3870_v56 }
 0x40e   : > { %v4095_v9 = vadd.f32 %v4088_v3, %v3892_v5  ;;  %v3883_v3 = vmul.f32 %v3880_v52, %v6329_v28 }
 0x40f   : > { %v4065_v35 = vpop.permute.xlu1 %4064 }
 0x410   : > { %v3874_v36 = vpop.permute.xlu0 %3873  ;;  %v4298_v30 = vadd.f32 %v4291_v0, %v4095_v9  ;;  %v3672_v9 = vsel %vm337_vm2, %v3669_v44, %v3671_v31  ;;  %v3884_v0 = vmul.f32 %v3879_v25, %v6435_v17  ;;  %v3679_v31 = vmul.f32 %v3678_v39, %v6385_v57 }
 0x411   : > { %v3881_v53 = vsel %vm414_vm0, %v3874_v36, %v3862_v23  ;;  %v3681_v23 = vmul.f32 %v3676_v48, %v6505_v55  ;;  %v4084_v57 = vsel %vm985_vm4, %v7675_v32, %v4065_v35  ;;  %v3875_v63 = vsel %vm414_vm0, %v3872_v40, %v3874_v36 }
 0x412   : > { %v7755_v41 = vadd.f32 %v7620_v12, %v4298_v30  ;;  %v3680_v30 = vmul.f32 %v7700_v58, %v6370_v47  ;;  %v3882_v28 = vmul.f32 %v3881_v53, %v6314_v22  ;;  %v3876_v47 = vsel %vm414_vm0, %v3870_v56, %v3872_v40 }
 0x413   : > { %v4073_v43 = vpop.permute.xlu1 %4072  ;;  %v3891_v22 = vadd.f32 %v3884_v0, %v3681_v23  ;;  %v3887_v4 = vmul.f32 %v3876_v47, %v6345_v34  ;;  %v3888_v26 = vmul.f32 %v3875_v63, %v6427_v24 }
 0x414   : > { %v4067_v5 = vpop.permute.xlu0 %4066  ;;  %v3890_v27 = vadd.f32 %v3883_v3, %v3680_v30  ;;  %v3889_v58 = vadd.f32 %v3882_v28, %v3679_v31 }
 0x415   : > { %v4082_v12 = vsel %vm985_vm4, %v4067_v5, %v7669_v10  ;;  %v4083_v17 = vsel %vm985_vm4, %v4065_v35, %v4067_v5  ;;  %v3685_v10 = vmul.f32 %v3672_v9, %v6521_v38  ;;  %v4080_v38 = vsel %vm985_vm4, %v7672_v29, %v4073_v43 }
 0x416   : > { %v4087_v44 = vmul.f32 %v4082_v12, %v6604_v61  ;;  %v4086_v48 = vmul.f32 %v4083_v17, %v6481_v54  ;;  %v3886_v35 = vmul.f32 %v3877_v42, %v6341_v33  ;;  %v4085_v29 = vmul.f32 %v4084_v57, %v6536_v37 }
 0x417   : > { %v4089_v54 = vmul.f32 %v4080_v38, %v6587_v50  ;;  %v3894_v52 = vadd.f32 %v3887_v4, %v3684_v19  ;;  %v3895_v3 = vadd.f32 %v3888_v26, %v3685_v10  ;;  %v8065_v10 = vld [vmem:[#allocation33_spill] sm:$0xff]  ;;  %v8068_v38 = vld [vmem:[#allocation4_spill] sm:$0xff]  ;;  %v8073_v26 = vld [vmem:[#allocation10_spill] sm:$0xff] }
 0x418   : > { %v4075_v55 = vpop.permute.xlu0 %4074  ;;  %v4094_v36 = vadd.f32 %v4087_v44, %v3891_v22  ;;  %v4093_v37 = vadd.f32 %v4086_v48, %v3890_v27  ;;  %v3893_v21 = vadd.f32 %v3886_v35, %v3683_v49  ;;  %v8062_v49 = vld [vmem:[#allocation31_spill] sm:$0xff]  ;;  %v8064_v44 = vld [vmem:[#allocation30_spill] sm:$0xff] }
 0x419   : > { %v4270_v61 = vpop.permute.xlu1 %4269  ;;  %v4079_v56 = vsel %vm985_vm4, %v4073_v43, %v4075_v55  ;;  %v4078_v14 = vsel %vm985_vm4, %v4075_v55, %v7675_v32  ;;  %v8067_v22 = vld [vmem:[#allocation35_spill] sm:$0xff]  ;;  %v8070_v48 = vld [vmem:[#allocation38_spill] sm:$0xff] }
 0x41a   : > { %v4285_v2 = vsel %vm1337_vm5, %v4270_v61, %v7677_v20  ;;  %v4090_v20 = vmul.f32 %v4079_v56, %v6553_v51  ;;  %v4091_v32 = vmul.f32 %v4078_v14, %v6617_v16  ;;  %v4096_v5 = vadd.f32 %v4089_v54, %v3893_v21  ;;  %v8077_v21 = vld [vmem:[#allocation37_spill] sm:$0xff] }
 0x41b   : > { %v4290_v40 = vmul.f32 %v4285_v2, %v6680_v60  ;;  %v4092_v60 = vadd.f32 %v4085_v29, %v3889_v58  ;;  %v8069_v58 = vld [vmem:[#allocation39_spill] sm:$0xff] }
 0x41c   : > { %v4268_v11 = vpop.permute.xlu0 %4267  ;;  %v4097_v9 = vadd.f32 %v4090_v20, %v3894_v52  ;;  %v4098_v12 = vadd.f32 %v4091_v32, %v3895_v3  ;;  %v4865_v56 = vsel %vm2326_vm7, %v8070_v48, %v8069_v58 }
 0x41d   : > { %v4297_v6 = vadd.f32 %v4290_v40, %v4094_v36  ;;  %v4286_v33 = vsel %vm1337_vm5, %v4268_v11, %v4270_v61  ;;  %v4287_v34 = vsel %vm1337_vm5, %v7683_v15, %v4268_v11  ;;  %v8071_v36 = vld [vmem:[#allocation42_spill] sm:$0xff]  ;;  %v8072_v40 = vld [vmem:[#allocation41_spill] sm:$0xff]  ;;  %v4871_v54 = vmul.f32 %v4865_v56, %v8073_v26  ;;  %v8074_v11 = vld [vmem:[#allocation16_spill] sm:$0xff] }
 0x41e   : > { %v4288_v24 = vmul.f32 %v4287_v34, %v6651_v45  ;;  %v4289_v50 = vmul.f32 %v4286_v33, %v6613_v62  ;;  %v5068_v29 = vsel %vm2678_vm8, %v8072_v40, %v8071_v36  ;;  %v8076_v33 = vld [vmem:[#allocation44_spill] sm:$0xff] }
 0x41f   : > { %v4472_v51 = vadd.f32 %v7618_v46, %v4297_v6  ;;  %v5074_v20 = vmul.f32 %v5068_v29, %v8074_v11  ;;  %v8075_v6 = vld [vmem:[#allocation45_spill] sm:$0xff] }
 0x420   : > { %v4295_v25 = vadd.f32 %v4288_v24, %v4092_v60  ;;  %v4296_v53 = vadd.f32 %v4289_v50, %v4093_v37  ;;  %v4276_v39 = vpop.permute.xlu0 %4275  ;;  %v5271_v34 = vsel %vm3030_vm9, %v8076_v33, %v8075_v6 }
 0x421   : > { %v4283_v0 = vsel %vm1337_vm5, %v7681_v13, %v4276_v39  ;;  %v4278_v43 = vpop.permute.xlu1 %4277 }
 0x422   : > { %v4292_v45 = vmul.f32 %v4283_v0, %v6701_v8  ;;  %v4281_v62 = vsel %vm1337_vm5, %v4278_v43, %v7683_v15  ;;  %v4282_v16 = vsel %vm1337_vm5, %v4276_v39, %v4278_v43  ;;  %v4470_v46 = vadd.f32 %v7659_v1, %v4295_v25  ;;  %v8063_v8 = vld [vmem:[#allocation32_spill] sm:$0xff]  ;;  %v8079_v39 = vld [vmem:[#allocation22_spill] sm:$0xff] }
 0x423   : > { %v4293_v30 = vmul.f32 %v4282_v16, %v6668_v7  ;;  %v4294_v23 = vmul.f32 %v4281_v62, %v6689_v59  ;;  %v4471_v28 = vadd.f32 %v8062_v49, %v4296_v53  ;;  %v8066_v7 = vld [vmem:[#allocation36_spill] sm:$0xff]  ;;  %v5277_v3 = vmul.f32 %v5271_v34, %v8079_v39  ;;  %v8082_v16 = vld [vmem:[#allocation14_spill] sm:$0xff] }
 0x424   : > { %v4299_v13 = vadd.f32 %v4292_v45, %v4096_v5  ;;  %v4662_v59 = vsel %vm1974_vm6, %v8067_v22, %v8066_v7  ;;  %v8080_v5 = vld [vmem:[#allocation3_spill] sm:$0xff]  ;;  %v8081_v45 = vld [vmem:[#allocation5_spill] sm:$0xff] }
 0x425   : > { %v4300_v19 = vadd.f32 %v4293_v30, %v4097_v9  ;;  %v4301_v31 = vadd.f32 %v4294_v23, %v4098_v12  ;;  %v4668_v61 = vmul.f32 %v4662_v59, %v8068_v38  ;;  %v8085_v59 = vld [vmem:[#allocation19_spill] sm:$0xff] }
 0x426   : > { %v7831_v17 = vadd.f32 %v8063_v8, %v4299_v13  ;;  %v8083_v13 = vld [vmem:[#allocation11_spill] sm:$0xff] }
 0x427   : > { %v4476_v15 = vadd.f32 %v8064_v44, %v4301_v31  ;;  %v7835_v27 = vadd.f32 %v8065_v10, %v4300_v19  ;;  %v4675_v2 = vadd.f32 %v4668_v61, %v4472_v51  ;;  %v8078_v51 = vld [vmem:[#allocation6_spill] sm:$0xff]  ;;  %v8084_v10 = vld [vmem:[#allocation21_spill] sm:$0xff] }
 0x429   : > { %v4878_v37 = vadd.f32 %v4871_v54, %v4675_v2 }
 0x42b   : > { %v5081_v43 = vadd.f32 %v5074_v20, %v4878_v37 }
 0x42d   : > { %v5284_v38 = vadd.f32 %v5277_v3, %v5081_v43 }
 0x438   : > { %v4646_v47 = vpop.permute.xlu1 %4645 }
 0x439   : > { %v4648_v1 = vpop.permute.xlu0 %4647  ;;  %v4665_v52 = vsel %vm1974_vm6, %v8077_v21, %v4646_v47 }
 0x43a   : > { %v4664_v14 = vsel %vm1974_vm6, %v4646_v47, %v4648_v1  ;;  %v4663_v60 = vsel %vm1974_vm6, %v4648_v1, %v8067_v22  ;;  %v4672_v62 = vmul.f32 %v4665_v52, %v8081_v45  ;;  %v8092_v52 = vld [vmem:[#allocation8_spill] sm:$0xff] }
 0x43b   : > { %v4666_v25 = vmul.f32 %v4664_v14, %v8078_v51  ;;  %v4667_v9 = vmul.f32 %v4663_v60, %v8080_v5  ;;  %v8090_v60 = vld [vmem:[#allocation26_spill] sm:$0xff] }
 0x43c   : > { %v4679_v61 = vadd.f32 %v4672_v62, %v4476_v15  ;;  %v8093_v51 = vld [vmem:[#allocation18_spill] sm:$0xff]  ;;  %v8096_v62 = vld [vmem:[#allocation12_spill] sm:$0xff] }
 0x43d   : > { %v4673_v8 = vadd.f32 %v4666_v25, %v4470_v46  ;;  %v4674_v1 = vadd.f32 %v4667_v9, %v4471_v28  ;;  %v8094_v9 = vld [vmem:[#allocation43_spill] sm:$0xff] }
 0x440   : > { %v4654_v42 = vpop.permute.xlu1 %4653 }
 0x441   : > { %v4656_v55 = vpop.permute.xlu0 %4655  ;;  %v4661_v49 = vsel %vm1974_vm6, %v8066_v7, %v4654_v42 }
 0x442   : > { %v4660_v44 = vsel %vm1974_vm6, %v4654_v42, %v4656_v55  ;;  %v4659_v22 = vsel %vm1974_vm6, %v4656_v55, %v8077_v21  ;;  %v8088_v55 = vld [vmem:[#allocation7_spill] sm:$0xff] }
 0x443   : > { %v4671_v54 = vmul.f32 %v4659_v22, %v8088_v55 }
 0x448   : > { %v4849_v57 = vpop.permute.xlu0 %4848 }
 0x449   : > { %v4851_v63 = vpop.permute.xlu1 %4850 }
 0x44a   : > { %v4867_v32 = vsel %vm2326_vm7, %v4849_v57, %v4851_v63  ;;  %v4866_v53 = vsel %vm2326_vm7, %v4851_v63, %v8070_v48  ;;  %v8086_v48 = vld [vmem:[#allocation2_spill] sm:$0xff] }
 0x44b   : > { %v4869_v12 = vmul.f32 %v4867_v32, %v8082_v16  ;;  %v4870_v19 = vmul.f32 %v4866_v53, %v8083_v13  ;;  %v4669_v7 = vmul.f32 %v4661_v49, %v8086_v48  ;;  %v8097_v16 = vld [vmem:[#allocation25_spill] sm:$0xff]  ;;  %v8099_v13 = vld [vmem:[#allocation15_spill] sm:$0xff] }
 0x44d   : > { %v4876_v56 = vadd.f32 %v4869_v12, %v4673_v8  ;;  %v4877_v29 = vadd.f32 %v4870_v19, %v4674_v1  ;;  %v4676_v53 = vadd.f32 %v4669_v7, %v7755_v41 }
 0x450   : > { %v4857_v35 = vpop.permute.xlu0 %4856 }
 0x451   : > { %v4859_v4 = vpop.permute.xlu1 %4858  ;;  %v4864_v42 = vsel %vm2326_vm7, %v8069_v58, %v4857_v35  ;;  %v8089_v58 = vld [vmem:[#allocation27_spill] sm:$0xff] }
 0x452   : > { %v4863_v28 = vsel %vm2326_vm7, %v4857_v35, %v4859_v4  ;;  %v4872_v32 = vmul.f32 %v4864_v42, %v8092_v52  ;;  %v6073_v52 = vld [vmem:[%s6150_s29] sm:$0xff] }
 0x454   : > { %v4879_v49 = vadd.f32 %v4872_v32, %v4676_v53 }
 0x458   : > { %v5052_v24 = vpop.permute.xlu1 %5051 }
 0x459   : > { %v5054_v50 = vpop.permute.xlu0 %5053 }
 0x45a   : > { %v5070_v0 = vsel %vm2678_vm8, %v5052_v24, %v5054_v50  ;;  %v5069_v30 = vsel %vm2678_vm8, %v5054_v50, %v8072_v40  ;;  %v8087_v40 = vld [vmem:[#allocation9_spill] sm:$0xff]  ;;  %v8091_v50 = vld [vmem:[#allocation40_spill] sm:$0xff] }
 0x45b   : > { %v5072_v47 = vmul.f32 %v5070_v0, %v8084_v10  ;;  %v5073_v63 = vmul.f32 %v5069_v30, %v8085_v59  ;;  %v4670_v46 = vmul.f32 %v4660_v44, %v8087_v40  ;;  %v4868_v21 = vsel %vm2326_vm7, %v8091_v50, %v4849_v57  ;;  %v8095_v0 = vld [vmem:[#allocation13_spill] sm:$0xff]  ;;  %v8098_v30 = vld [vmem:[#allocation34_spill] sm:$0xff] }
 0x45c   : > { %v5071_v57 = vsel %vm2678_vm8, %v8094_v9, %v5052_v24  ;;  %v4875_v41 = vmul.f32 %v4868_v21, %v8096_v62  ;;  %v8100_v44 = vld [vmem:[#allocation17_spill] sm:$0xff]  ;;  %v5297_v7 = vadd.f32 %v8098_v30, %v5284_v38 }
 0x45d   : > { %v5079_v14 = vadd.f32 %v5072_v47, %v4876_v56  ;;  %v5080_v20 = vadd.f32 %v5073_v63, %v4877_v29  ;;  %v4677_v5 = vadd.f32 %v4670_v46, %v7831_v17  ;;  %v4678_v17 = vadd.f32 %v4671_v54, %v7835_v27  ;;  %v8101_v47 = vld [vmem:[#allocation23_spill] sm:$0xff]  ;;  %v8102_v63 = vld [vmem:[#allocation20_spill] sm:$0xff]  ;;  %v8103_v46 = vld [vmem:[#allocation29_spill] sm:$0xff] }
 0x45e   : > { %v5078_v10 = vmul.f32 %v5071_v57, %v8100_v44  ;;  %v4882_v56 = vadd.f32 %v4875_v41, %v4679_v61  ;;  %v8105_v61 = vld [vmem:[#allocation24_spill] sm:$0xff]  ;;  %v6075_v57 = vld [vmem:[%s6150_s29 + $0x18] sm:$0xf] }
 0x460   : > { %v5060_v23 = vpop.permute.xlu1 %5059  ;;  %v5085_v55 = vadd.f32 %v5078_v10, %v4882_v56 }
 0x461   : > { %v5062_v31 = vpop.permute.xlu0 %5061  ;;  %v5067_v34 = vsel %vm2678_vm8, %v8071_v36, %v5060_v23  ;;  %v4862_v36 = vsel %vm2326_vm7, %v4859_v4, %v8091_v50 }
 0x462   : > { %v5066_v25 = vsel %vm2678_vm8, %v5060_v23, %v5062_v31  ;;  %v5075_v43 = vmul.f32 %v5067_v34, %v8095_v0  ;;  %v5065_v45 = vsel %vm2678_vm8, %v5062_v31, %v8094_v9  ;;  %v4874_v19 = vmul.f32 %v4862_v36, %v8099_v13  ;;  %v6074_v36 = vld [vmem:[%s6150_s29 + $0x8] sm:$0xff] }
 0x463   : > { %v5076_v12 = vmul.f32 %v5066_v25, %v8097_v16  ;;  %v5077_v1 = vmul.f32 %v5065_v45, %v8101_v47 }
 0x464   : > { %v5082_v59 = vadd.f32 %v5075_v43, %v4879_v49  ;;  %v4881_v42 = vadd.f32 %v4874_v19, %v4678_v17  ;;  %v6076_v43 = vld [vmem:[%s6150_s29 + $0x10] sm:$0xff] }
 0x468   : > { %v5255_v2 = vpop.permute.xlu1 %5254 }
 0x469   : > { %v5257_v26 = vpop.permute.xlu0 %5256 }
 0x46a   : > { %v5272_v15 = vsel %vm3030_vm9, %v5257_v26, %v8076_v33  ;;  %v5273_v11 = vsel %vm3030_vm9, %v5255_v2, %v5257_v26  ;;  %v4873_v33 = vmul.f32 %v4863_v28, %v8093_v51 }
 0x46b   : > { %v5275_v37 = vmul.f32 %v5273_v11, %v8089_v58  ;;  %v5276_v35 = vmul.f32 %v5272_v15, %v8090_v60  ;;  %v5084_v15 = vadd.f32 %v5077_v1, %v4881_v42 }
 0x46c   : > { %v4880_v24 = vadd.f32 %v4873_v33, %v4677_v5 }
 0x46d   : > { %v5282_v39 = vadd.f32 %v5275_v37, %v5079_v14  ;;  %v5283_v3 = vadd.f32 %v5276_v35, %v5080_v20  ;;  %v8104_v20 = vld [vmem:[#allocation28_spill] sm:$0xff] }
 0x46e   : > { %v5083_v40 = vadd.f32 %v5076_v12, %v4880_v24 }
 0x46f   : > { %v5295_v4 = vadd.f32 %v8098_v30, %v5282_v39  ;;  %v5296_v23 = vadd.f32 %v8098_v30, %v5283_v3 }
 0x470   : > { %v5263_v8 = vpop.permute.xlu1 %5262 }
 0x471   : > { %6059 = vtanh.f32 %v5295_v4  ;;  %v5270_v31 = vsel %vm3030_vm9, %v8075_v6, %v5263_v8  ;;  %v5265_v22 = vpop.permute.xlu0 %5264 }
 0x472   : > { %6061 = vtanh.f32 %v5296_v23  ;;  %v5278_v48 = vmul.f32 %v5270_v31, %v8102_v63  ;;  %v5269_v27 = vsel %vm3030_vm9, %v5263_v8, %v5265_v22 }
 0x473   : > { %v5279_v29 = vmul.f32 %v5269_v27, %v8103_v46  ;;  %6063 = vtanh.f32 %v5297_v7 }
 0x474   : > { %v5285_v28 = vadd.f32 %v5278_v48, %v5082_v59  ;;  %v5267_v26 = vpop.permute.xlu1 %5266 }
 0x475   : > { %v5286_v54 = vadd.f32 %v5279_v29, %v5083_v40  ;;  %v5268_v6 = vsel %vm3030_vm9, %v5265_v22, %v5267_v26  ;;  %v5274_v14 = vsel %vm3030_vm9, %v5267_v26, %v5255_v2 }
 0x476   : > { %v5298_v11 = vadd.f32 %v8098_v30, %v5285_v28  ;;  %v5280_v38 = vmul.f32 %v5268_v6, %v8104_v20  ;;  %v5281_v34 = vmul.f32 %v5274_v14, %v8105_v61 }
 0x477   : > { %v5299_v58 = vadd.f32 %v8098_v30, %v5286_v54 }
 0x478   : > { %6065 = vtanh.f32 %v5298_v11  ;;  %v5287_v37 = vadd.f32 %v5280_v38, %v5084_v15  ;;  %v5288_v60 = vadd.f32 %v5281_v34, %v5085_v55 }
 0x479   : > { %6067 = vtanh.f32 %v5299_v58 }
 0x47a   : > { %v5300_v35 = vadd.f32 %v8098_v30, %v5287_v37  ;;  %v5301_v18 = vadd.f32 %v8098_v30, %v5288_v60 }
 0x47b   : > { %v6060_v2 = vpop.eup %6059 }
 0x47c   : > { %v6062_v50 = vpop.eup %6061  ;;  %6069 = vtanh.f32 %v5300_v35 }
 0x47d   : > { %v5315_v21 = vcombine.low %v6060_v2, %v6062_v50  ;;  %6071 = vtanh.f32 %v5301_v18  ;;  %v6064_v51 = vpop.eup %6063 }
 0x47f   : > { %v5321_v32 = vadd.f32 %v6073_v52, %v5315_v21 }
 0x481   : > { %5325 = vst [vmem:[%s298_s12] sm:$0xff] %v5321_v32 }
 0x482   : > { %v6066_v33 = vpop.eup %6065 }
 0x483   : > { %v5316_v25 = vcombine.low %v6064_v51, %v6066_v33  ;;  %v6068_v53 = vpop.eup %6067 }
 0x485   : > { %v5322_v39 = vadd.f32 %v6074_v36, %v5316_v25 }
 0x486   : > { %v6070_v3 = vpop.eup %6069 }
 0x487   : > { %v6072_v5 = vpop.eup %6071  ;;  %5326 = vst [vmem:[%s298_s12 + $0x8] sm:$0xff] %v5322_v39  ;;  %v5317_v9 = vcombine.low %v6068_v53, %v6070_v3 }
 0x488   : > { %v5324_v0 = vadd.f32 %v6075_v57, %v6072_v5 }
 0x489   : > { %v5323_v45 = vadd.f32 %v6076_v43, %v5317_v9 }
 0x48a   : > { %5328 = vst [vmem:[%s298_s12 + $0x18] sm:$0xf] %v5324_v0 }
 0x48b   : > { %5327 = vst [vmem:[%s298_s12 + $0x10] sm:$0xff] %v5323_v45 }
 0x48c PF: > { %s17_s24 = sadd.s32 1, %s6083_s24  }
 0x48d   : > { %p14_p4 = scmp.ge.s32.totalorder %s17_s24, 4  }
 0x48f   :  { %16 = sbr.rel (!%p14_p4) target bundleno = 1 (0x1), region = 104 }

</bundles_post_ra>
